<compile_context>
chip_gen: v5e
topology: v5e:2x2
jax: 0.10.0
libtpu: 0.0.40
codegen_flags: <defaults>
</compile_context>

<pallas_src>
import jax
import jax.numpy as jnp
import numpy as np
from jax.experimental import pallas as pl
from jax.experimental.pallas import tpu as pltpu

# ---- module dimensions (GCP.__init__) ----
SI, VI = 32, 16            # scalar_input_dim, vector_input_dim
SO, VO = 32, 16            # scalar_output_dim, vector_output_dim
HID = max(VI, VO)          # bottleneck=1 -> hidden_dim = max(vi, vo)
SVD = 3                    # scalarization_vectorization_output_dim
MRG1 = SI + HID            # 48 : cat([s, ||v_hid||])
MRG2 = 48                  # cat([scalar_rep, shid(9)]) = 41, zero-padded to 48
EPS = 1e-8                 # safe_norm epsilon


def _silu(x):
    return x * jax.nn.sigmoid(x)


def _round_up(x, m):
    return (x + m - 1) // m * m


def gcp_kernel(s_ref, v_ref, fr_ref,
               w1_ref, wso_ref, bso_ref,
               wvs_ref, bvs_ref,
               wdf_ref, wsof_ref, bsof_ref,
               s_out_ref, v_out_ref,
               mrg2_ref):
    te = s_ref.shape[1]

    # --- vector_down and (vector_down @ vector_up) fused: one MXU call per spatial comp ---
    w1 = w1_ref[...]                                                   # (HID+VO, VI)
    vh, vu = [], []
    for x in range(3):
        r = jnp.dot(w1, v_ref[x], preferred_element_type=jnp.float32)  # (HID+VO, te)
        vh.append(r[:HID, :])                                          # hidden rep, comp x
        vu.append(r[HID:, :])                                          # up-projected, comp x

    # safe_norm over the spatial axis
    vnorm = jnp.sqrt(vh[0] * vh[0] + vh[1] * vh[1] + vh[2] * vh[2] + EPS)   # (HID, te)

    # scalar_out on cat([s; ||v_hid||]) -- sublane concat, single fused matmul (K=48)
    merged = jnp.concatenate([s_ref[...], vnorm], axis=0)                   # (MRG1, te)
    scalar_rep = (jnp.dot(wso_ref[...], merged, preferred_element_type=jnp.float32)
                  + bso_ref[...])                                           # (SO, te)

    # process_vector (vector_gate=True, vector_residual=False)
    scalar_act = _silu(scalar_rep)           # silu is both nonlinearities -> reuse below
    gate = (jnp.dot(wvs_ref[...], scalar_act, preferred_element_type=jnp.float32)
            + bvs_ref[...])                                                 # (VO, te)
    sig = jax.nn.sigmoid(gate)
    vrep = [vu[x] * sig for x in range(3)]                                  # gated vector rep

    # ---- frame-update path (ablate_frame_updates=False) ----
    # vector_down_frames per spatial component
    wdf = wdf_ref[...]                                                      # (SVD, VO)
    vhf = [jnp.dot(wdf, vrep[x], preferred_element_type=jnp.float32)
           for x in range(3)]                                               # 3 x (SVD, te)

    # scalarize: shid[3*x+i] = sum_c frames[:, i, c] * vhf_x[c]
    # -> lane-dense VPU mul/adds, rows written straight into the merged2 scratch
    mrg2_ref[pl.ds(0, SO), :] = scalar_act
    fr = fr_ref[...]                                                        # (9, te)
    for x in range(3):
        for i in range(3):
            row = (fr[3 * i + 0:3 * i + 1, :] * vhf[x][0:1, :]
                   + fr[3 * i + 1:3 * i + 2, :] * vhf[x][1:2, :]
                   + fr[3 * i + 2:3 * i + 3, :] * vhf[x][2:3, :])           # (1, te)
            mrg2_ref[pl.ds(SO + 3 * x + i, 1), :] = row
    # zero the pad rows (weight pad cols are zero too); unconditional so it is
    # correct under megacore "parallel" grid partitioning.
    mrg2_ref[pl.ds(SO + 3 * SVD, MRG2 - SO - 3 * SVD), :] = jnp.zeros(
        (MRG2 - SO - 3 * SVD, te), jnp.float32)

    # scalar_out_frames on cat([scalar_rep; shid]) -- single fused matmul on the scratch
    scalar_rep2 = (jnp.dot(wsof_ref[...], mrg2_ref[...],
                           preferred_element_type=jnp.float32) + bsof_ref[...])   # (SO, te)

    # process_vector_frames (no frame gates): v * silu(||v||_spatial)
    vnorm2 = jnp.sqrt(vrep[0] * vrep[0] + vrep[1] * vrep[1] + vrep[2] * vrep[2] + EPS)
    scale = _silu(vnorm2)                                                   # (VO, te)

    s_out_ref[...] = _silu(scalar_rep2)
    for x in range(3):
        v_out_ref[x] = vrep[x] * scale


def _prep_weights(params):
    Wd, Wu = params["Wd"], params["Wu"]
    # stack vector_down and (vector_down @ vector_up): one matmul gives vh and vu
    w1 = jnp.concatenate([Wd.T, (Wd @ Wu).T], axis=0).astype(jnp.float32)   # (HID+VO, VI)
    wso = params["Wso"].T.astype(jnp.float32)                               # (SO, MRG1)
    wvs = params["Wvs"].T.astype(jnp.float32)                               # (VO, SO)
    wdf = params["Wdf"].T.astype(jnp.float32)                               # (SVD, VO)
    wsof = jnp.pad(params["Wsof"].T,
                   ((0, 0), (0, MRG2 - (SO + 3 * SVD)))).astype(jnp.float32)  # (SO, MRG2)
    bso = params["bso"].astype(jnp.float32)[:, None]                        # (SO, 1)
    bvs = params["bvs"].astype(jnp.float32)[:, None]                        # (VO, 1)
    bsof = params["bsof"].astype(jnp.float32)[:, None]                      # (SO, 1)
    return w1, wso, bso, wvs, bvs, wdf, wsof, bsof


def gcp_forward(s, v, frames, params, *, te=1024):
    E = s.shape[0]
    # lane tile over edges: multiple of 128, capped by (padded) E
    te = max(128, min(_round_up(te, 128), _round_up(E, 128)))
    Ep = _round_up(E, te)
    pad = Ep - E

    # Layout adaptation (see header note): torch layouts -> lane-dense slabs.
    s_t = jnp.pad(s.astype(jnp.float32).T, ((0, 0), (0, pad)))                    # (SI, Ep)
    v_t = jnp.pad(jnp.transpose(v.astype(jnp.float32), (2, 1, 0)),
                  ((0, 0), (0, 0), (0, pad)))                                     # (3, VI, Ep)
    fr_t = jnp.pad(frames.astype(jnp.float32).reshape(E, 9).T,
                   ((0, 0), (0, pad)))                                            # (9, Ep)

    w1, wso, bso, wvs, bvs, wdf, wsof, bsof = _prep_weights(params)

    def _full(shape):
        nd = len(shape)
        return pl.BlockSpec(shape, lambda i: (0,) * nd)

    in_specs = [
        pl.BlockSpec((SI, te), lambda i: (0, i)),
        pl.BlockSpec((3, VI, te), lambda i: (0, 0, i)),
        pl.BlockSpec((9, te), lambda i: (0, i)),
        _full((HID + VO, VI)),
        _full((SO, MRG1)), _full((SO, 1)),
        _full((VO, SO)), _full((VO, 1)),
        _full((SVD, VO)),
        _full((SO, MRG2)), _full((SO, 1)),
    ]
    out_specs = (
        pl.BlockSpec((SO, te), lambda i: (0, i)),
        pl.BlockSpec((3, VO, te), lambda i: (0, 0, i)),
    )
    out_shape = (
        jax.ShapeDtypeStruct((SO, Ep), jnp.float32),
        jax.ShapeDtypeStruct((3, VO, Ep), jnp.float32),
    )

    s_out_t, v_out_t = pl.pallas_call(
        gcp_kernel,
        grid=(Ep // te,),
        in_specs=in_specs,
        out_specs=out_specs,
        out_shape=out_shape,
        scratch_shapes=[pltpu.VMEM((MRG2, te), jnp.float32)],
        compiler_params=pltpu.CompilerParams(dimension_semantics=("parallel",)),
    )(s_t, v_t, fr_t, w1, wso, bso, wvs, bvs, wdf, wsof, bsof)

    s_out = s_out_t[:, :E].T                                      # (E, SO)
    v_out = jnp.transpose(v_out_t[:, :, :E], (2, 1, 0))           # torch layout (E, VO, 3)
    return s_out, v_out


def gcp_reference(s, v, frames, params):
    """Pure-JAX reference mirroring the torch forward (torch layouts)."""
    v_pre = jnp.swapaxes(v, -1, -2)                                   # (E, 3, VI)
    vh = v_pre @ params["Wd"]                                         # (E, 3, HID)
    vnorm = jnp.sqrt(jnp.sum(vh ** 2, axis=-2) + EPS)                 # (E, HID)
    merged = jnp.concatenate([s, vnorm], axis=-1)
    scalar_rep = merged @ params["Wso"] + params["bso"]               # (E, SO)

    vu = vh @ params["Wu"]                                            # (E, 3, VO)
    vrep = jnp.swapaxes(vu, -1, -2)                                   # (E, VO, 3)
    gate = _silu(scalar_rep) @ params["Wvs"] + params["bvs"]
    vrep = vrep * jax.nn.sigmoid(gate)[..., None]
    scalar_rep = _silu(scalar_rep)

    v_pre2 = jnp.swapaxes(vrep, -1, -2)                               # (E, 3, VO)
    vhf = v_pre2 @ params["Wdf"]                                      # (E, 3, 3)
    V = jnp.swapaxes(vhf, -1, -2)                                     # (E, 3, 3)
    M = jnp.einsum("eik,ekj->eij", frames, V)
    shid = jnp.swapaxes(M, -1, -2).reshape(s.shape[0], 9)
    merged2 = jnp.concatenate([scalar_rep, shid], axis=-1)
    scalar_rep2 = merged2 @ params["Wsof"] + params["bsof"]

    n2 = jnp.sqrt(jnp.sum(vrep ** 2, axis=-1, keepdims=True) + EPS)
    vrep2 = vrep * _silu(n2)
    return _silu(scalar_rep2), vrep2


def init_params(key):
    ks = jax.random.split(key, 8)
    scale = 0.1
    return {
        "Wd":   scale * jax.random.normal(ks[0], (VI, HID), jnp.float32),          # vector_down (no bias)
        "Wso":  scale * jax.random.normal(ks[1], (SI + HID, SO), jnp.float32),     # scalar_out
        "bso":  scale * jax.random.normal(ks[2], (SO,), jnp.float32),
        "Wu":   scale * jax.random.normal(ks[3], (HID, VO), jnp.float32),          # vector_up (no bias)
        "Wvs":  scale * jax.random.normal(ks[4], (SO, VO), jnp.float32),           # vector_out_scale
        "bvs":  scale * jax.random.normal(ks[5], (VO,), jnp.float32),
        "Wdf":  scale * jax.random.normal(ks[6], (VO, SVD), jnp.float32),          # vector_down_frames (no bias)
        "Wsof": scale * jax.random.normal(ks[7], (SO + 3 * SVD, SO), jnp.float32), # scalar_out_frames
        "bsof": scale * jax.random.normal(jax.random.fold_in(key, 99), (SO,), jnp.float32),
    }


if __name__ == "__main__":
    key = jax.random.PRNGKey(0)
    k_s, k_v, k_f, k_p = jax.random.split(key, 4)

    E = 2048                                  # batch_num_entities (edges; node_inputs=False)
    s = jax.random.normal(k_s, (E, SI), jnp.float32)
    v = jax.random.normal(k_v, (E, VI, 3), jnp.float32)
    frames = jax.random.normal(k_f, (E, 3, 3), jnp.float32)
    # edge_index is required by the torch signature but unused on this config path.
    edge_index = jnp.stack([jnp.arange(E, dtype=jnp.int32),
                            (jnp.arange(E, dtype=jnp.int32) + 1) % E])
    params = init_params(k_p)

    run = jax.jit(lambda s_, v_, f_, p_: gcp_forward(s_, v_, f_, p_, te=1024))
    s_out, v_out = run(s, v, frames, params)   # grid = 2 -> both TCs busy on v7x
    jax.block_until_ready((s_out, v_out))

    s_ref, v_ref = gcp_reference(s, v, frames, params)
    np.testing.assert_allclose(np.asarray(s_out), np.asarray(s_ref), rtol=1e-4, atol=1e-4)
    np.testing.assert_allclose(np.asarray(v_out), np.asarray(v_ref), rtol=1e-4, atol=1e-4)

    print("KERNEL_OK")
</pallas_src>

<mosaic_0001>
module attributes {stable_mosaic.version = 11 : i64} {
  func.func @gcp_kernel(%arg0: i32, %arg1: memref<32x1024xf32, #tpu.memory_space<vmem>>, %arg2: memref<3x16x1024xf32, #tpu.memory_space<vmem>>, %arg3: memref<9x1024xf32, #tpu.memory_space<vmem>>, %arg4: memref<32x16xf32, #tpu.memory_space<vmem>>, %arg5: memref<32x48xf32, #tpu.memory_space<vmem>>, %arg6: memref<32x1xf32, #tpu.memory_space<vmem>>, %arg7: memref<16x32xf32, #tpu.memory_space<vmem>>, %arg8: memref<16x1xf32, #tpu.memory_space<vmem>>, %arg9: memref<3x16xf32, #tpu.memory_space<vmem>>, %arg10: memref<32x48xf32, #tpu.memory_space<vmem>>, %arg11: memref<32x1xf32, #tpu.memory_space<vmem>>, %arg12: memref<32x1024xf32, #tpu.memory_space<vmem>>, %arg13: memref<3x16x1024xf32, #tpu.memory_space<vmem>>, %arg14: memref<48x1024xf32, #tpu.memory_space<vmem>>) attributes {dimension_semantics = [#tpu.dimension_semantics<parallel>], iteration_bounds = array<i64: 2>, scalar_prefetch = 0 : i64, scratch_operands = 1 : i64, tpu.core_type = #tpu.core_type<tc>, window_params = [{transform_indices = @transform_0, window_bounds = array<i64: 32, 1024>}, {transform_indices = @transform_1, window_bounds = array<i64: 3, 16, 1024>}, {transform_indices = @transform_2, window_bounds = array<i64: 9, 1024>}, {pipeline_mode = #tpu.pipeline_mode<synchronous>, transform_indices = @transform_3, window_bounds = array<i64: 32, 16>}, {pipeline_mode = #tpu.pipeline_mode<synchronous>, transform_indices = @transform_4, window_bounds = array<i64: 32, 48>}, {pipeline_mode = #tpu.pipeline_mode<synchronous>, transform_indices = @transform_5, window_bounds = array<i64: 32, 1>}, {pipeline_mode = #tpu.pipeline_mode<synchronous>, transform_indices = @transform_6, window_bounds = array<i64: 16, 32>}, {pipeline_mode = #tpu.pipeline_mode<synchronous>, transform_indices = @transform_7, window_bounds = array<i64: 16, 1>}, {pipeline_mode = #tpu.pipeline_mode<synchronous>, transform_indices = @transform_8, window_bounds = array<i64: 3, 16>}, {pipeline_mode = #tpu.pipeline_mode<synchronous>, transform_indices = @transform_9, window_bounds = array<i64: 32, 48>}, {pipeline_mode = #tpu.pipeline_mode<synchronous>, transform_indices = @transform_10, window_bounds = array<i64: 32, 1>}, {transform_indices = @transform_11, window_bounds = array<i64: 32, 1024>}, {transform_indices = @transform_12, window_bounds = array<i64: 3, 16, 1024>}]} {
    %c0 = arith.constant 0 : index
    %c0_0 = arith.constant 0 : index
    %0 = vector.load %arg4[%c0, %c0_0] : memref<32x16xf32, #tpu.memory_space<vmem>>, vector<32x16xf32>
    %c0_1 = arith.constant 0 : index
    %c0_2 = arith.constant 0 : index
    %c0_3 = arith.constant 0 : index
    %1 = vector.load %arg2[%c0_1, %c0_2, %c0_3] : memref<3x16x1024xf32, #tpu.memory_space<vmem>>, vector<1x16x1024xf32>
    %2 = vector.shape_cast %1 : vector<1x16x1024xf32> to vector<16x1024xf32>
    %cst = arith.constant dense<0.000000e+00> : vector<32x1024xf32>
    %3 = tpu.matmul %0, %2, %cst {dimension_numbers = #tpu.dot_dimension_numbers<[1], [0], [0], [1], [0, 0, 1, 1], [], []>} : vector<32x16xf32>, vector<16x1024xf32>, vector<32x1024xf32> -> vector<32x1024xf32>
    %4 = vector.extract_strided_slice %3 {offsets = [0, 0], sizes = [16, 1024], strides = [1, 1]} : vector<32x1024xf32> to vector<16x1024xf32>
    %5 = vector.extract_strided_slice %3 {offsets = [16, 0], sizes = [16, 1024], strides = [1, 1]} : vector<32x1024xf32> to vector<16x1024xf32>
    %c1 = arith.constant 1 : index
    %c0_4 = arith.constant 0 : index
    %c0_5 = arith.constant 0 : index
    %6 = vector.load %arg2[%c1, %c0_4, %c0_5] : memref<3x16x1024xf32, #tpu.memory_space<vmem>>, vector<1x16x1024xf32>
    %7 = vector.shape_cast %6 : vector<1x16x1024xf32> to vector<16x1024xf32>
    %cst_6 = arith.constant dense<0.000000e+00> : vector<32x1024xf32>
    %8 = tpu.matmul %0, %7, %cst_6 {dimension_numbers = #tpu.dot_dimension_numbers<[1], [0], [0], [1], [0, 0, 1, 1], [], []>} : vector<32x16xf32>, vector<16x1024xf32>, vector<32x1024xf32> -> vector<32x1024xf32>
    %9 = vector.extract_strided_slice %8 {offsets = [0, 0], sizes = [16, 1024], strides = [1, 1]} : vector<32x1024xf32> to vector<16x1024xf32>
    %10 = vector.extract_strided_slice %8 {offsets = [16, 0], sizes = [16, 1024], strides = [1, 1]} : vector<32x1024xf32> to vector<16x1024xf32>
    %c2 = arith.constant 2 : index
    %c0_7 = arith.constant 0 : index
    %c0_8 = arith.constant 0 : index
    %11 = vector.load %arg2[%c2, %c0_7, %c0_8] : memref<3x16x1024xf32, #tpu.memory_space<vmem>>, vector<1x16x1024xf32>
    %12 = vector.shape_cast %11 : vector<1x16x1024xf32> to vector<16x1024xf32>
    %cst_9 = arith.constant dense<0.000000e+00> : vector<32x1024xf32>
    %13 = tpu.matmul %0, %12, %cst_9 {dimension_numbers = #tpu.dot_dimension_numbers<[1], [0], [0], [1], [0, 0, 1, 1], [], []>} : vector<32x16xf32>, vector<16x1024xf32>, vector<32x1024xf32> -> vector<32x1024xf32>
    %14 = vector.extract_strided_slice %13 {offsets = [0, 0], sizes = [16, 1024], strides = [1, 1]} : vector<32x1024xf32> to vector<16x1024xf32>
    %15 = vector.extract_strided_slice %13 {offsets = [16, 0], sizes = [16, 1024], strides = [1, 1]} : vector<32x1024xf32> to vector<16x1024xf32>
    %16 = arith.mulf %4, %4 : vector<16x1024xf32>
    %17 = arith.mulf %9, %9 : vector<16x1024xf32>
    %18 = arith.addf %16, %17 : vector<16x1024xf32>
    %19 = arith.mulf %14, %14 : vector<16x1024xf32>
    %20 = arith.addf %18, %19 : vector<16x1024xf32>
    %cst_10 = arith.constant 9.99999993E-9 : f32
    %21 = vector.broadcast %cst_10 : f32 to vector<16x1024xf32>
    %22 = arith.addf %20, %21 : vector<16x1024xf32>
    %23 = math.sqrt %22 : vector<16x1024xf32>
    %c0_11 = arith.constant 0 : index
    %c0_12 = arith.constant 0 : index
    %24 = vector.load %arg1[%c0_11, %c0_12] : memref<32x1024xf32, #tpu.memory_space<vmem>>, vector<32x1024xf32>
    %25 = tpu.concatenate %24, %23 in 0 : vector<32x1024xf32>, vector<16x1024xf32> -> vector<48x1024xf32>
    %c0_13 = arith.constant 0 : index
    %c0_14 = arith.constant 0 : index
    %26 = vector.load %arg5[%c0_13, %c0_14] : memref<32x48xf32, #tpu.memory_space<vmem>>, vector<32x48xf32>
    %cst_15 = arith.constant dense<0.000000e+00> : vector<32x1024xf32>
    %27 = tpu.matmul %26, %25, %cst_15 {dimension_numbers = #tpu.dot_dimension_numbers<[1], [0], [0], [1], [0, 0, 1, 1], [], []>} : vector<32x48xf32>, vector<48x1024xf32>, vector<32x1024xf32> -> vector<32x1024xf32>
    %c0_16 = arith.constant 0 : index
    %c0_17 = arith.constant 0 : index
    %28 = vector.load %arg6[%c0_16, %c0_17] : memref<32x1xf32, #tpu.memory_space<vmem>>, vector<32x1xf32>
    %29 = vector.broadcast %28 : vector<32x1xf32> to vector<32x1024xf32>
    %30 = arith.addf %27, %29 : vector<32x1024xf32>
    %31 = arith.negf %30 : vector<32x1024xf32>
    %32 = math.exp %31 : vector<32x1024xf32>
    %cst_18 = arith.constant 1.000000e+00 : f32
    %33 = vector.broadcast %cst_18 : f32 to vector<32x1024xf32>
    %34 = arith.addf %33, %32 : vector<32x1024xf32>
    %35 = arith.divf %33, %34 : vector<32x1024xf32>
    %36 = arith.mulf %30, %35 : vector<32x1024xf32>
    %c0_19 = arith.constant 0 : index
    %c0_20 = arith.constant 0 : index
    %37 = vector.load %arg7[%c0_19, %c0_20] : memref<16x32xf32, #tpu.memory_space<vmem>>, vector<16x32xf32>
    %cst_21 = arith.constant dense<0.000000e+00> : vector<16x1024xf32>
    %38 = tpu.matmul %37, %36, %cst_21 {dimension_numbers = #tpu.dot_dimension_numbers<[1], [0], [0], [1], [0, 0, 1, 1], [], []>} : vector<16x32xf32>, vector<32x1024xf32>, vector<16x1024xf32> -> vector<16x1024xf32>
    %c0_22 = arith.constant 0 : index
    %c0_23 = arith.constant 0 : index
    %39 = vector.load %arg8[%c0_22, %c0_23] : memref<16x1xf32, #tpu.memory_space<vmem>>, vector<16x1xf32>
    %40 = vector.broadcast %39 : vector<16x1xf32> to vector<16x1024xf32>
    %41 = arith.addf %38, %40 : vector<16x1024xf32>
    %42 = arith.negf %41 : vector<16x1024xf32>
    %43 = math.exp %42 : vector<16x1024xf32>
    %cst_24 = arith.constant 1.000000e+00 : f32
    %44 = vector.broadcast %cst_24 : f32 to vector<16x1024xf32>
    %45 = arith.addf %44, %43 : vector<16x1024xf32>
    %46 = arith.divf %44, %45 : vector<16x1024xf32>
    %47 = arith.mulf %5, %46 : vector<16x1024xf32>
    %48 = arith.mulf %10, %46 : vector<16x1024xf32>
    %49 = arith.mulf %15, %46 : vector<16x1024xf32>
    %c0_25 = arith.constant 0 : index
    %c0_26 = arith.constant 0 : index
    %50 = vector.load %arg9[%c0_25, %c0_26] : memref<3x16xf32, #tpu.memory_space<vmem>>, vector<3x16xf32>
    %cst_27 = arith.constant dense<0.000000e+00> : vector<3x1024xf32>
    %51 = tpu.matmul %50, %47, %cst_27 {dimension_numbers = #tpu.dot_dimension_numbers<[1], [0], [0], [1], [0, 0, 1, 1], [], []>} : vector<3x16xf32>, vector<16x1024xf32>, vector<3x1024xf32> -> vector<3x1024xf32>
    %cst_28 = arith.constant dense<0.000000e+00> : vector<3x1024xf32>
    %52 = tpu.matmul %50, %48, %cst_28 {dimension_numbers = #tpu.dot_dimension_numbers<[1], [0], [0], [1], [0, 0, 1, 1], [], []>} : vector<3x16xf32>, vector<16x1024xf32>, vector<3x1024xf32> -> vector<3x1024xf32>
    %cst_29 = arith.constant dense<0.000000e+00> : vector<3x1024xf32>
    %53 = tpu.matmul %50, %49, %cst_29 {dimension_numbers = #tpu.dot_dimension_numbers<[1], [0], [0], [1], [0, 0, 1, 1], [], []>} : vector<3x16xf32>, vector<16x1024xf32>, vector<3x1024xf32> -> vector<3x1024xf32>
    %c0_30 = arith.constant 0 : index
    %c0_31 = arith.constant 0 : index
    %54 = vector.load %arg14[%c0_30, %c0_31] : memref<48x1024xf32, #tpu.memory_space<vmem>>, vector<32x1024xf32>
    tpu.vector_store %arg14[%c0_30, %c0_31], %36 {strides = array<i32>} : memref<48x1024xf32, #tpu.memory_space<vmem>>, vector<32x1024xf32>,
    %c0_32 = arith.constant 0 : index
    %c0_33 = arith.constant 0 : index
    %55 = vector.load %arg3[%c0_32, %c0_33] : memref<9x1024xf32, #tpu.memory_space<vmem>>, vector<9x1024xf32>
    %56 = vector.extract_strided_slice %55 {offsets = [0, 0], sizes = [1, 1024], strides = [1, 1]} : vector<9x1024xf32> to vector<1x1024xf32>
    %57 = vector.extract_strided_slice %51 {offsets = [0, 0], sizes = [1, 1024], strides = [1, 1]} : vector<3x1024xf32> to vector<1x1024xf32>
    %58 = arith.mulf %56, %57 : vector<1x1024xf32>
    %59 = vector.extract_strided_slice %55 {offsets = [1, 0], sizes = [1, 1024], strides = [1, 1]} : vector<9x1024xf32> to vector<1x1024xf32>
    %60 = vector.extract_strided_slice %51 {offsets = [1, 0], sizes = [1, 1024], strides = [1, 1]} : vector<3x1024xf32> to vector<1x1024xf32>
    %61 = arith.mulf %59, %60 : vector<1x1024xf32>
    %62 = arith.addf %58, %61 : vector<1x1024xf32>
    %63 = vector.extract_strided_slice %55 {offsets = [2, 0], sizes = [1, 1024], strides = [1, 1]} : vector<9x1024xf32> to vector<1x1024xf32>
    %64 = vector.extract_strided_slice %51 {offsets = [2, 0], sizes = [1, 1024], strides = [1, 1]} : vector<3x1024xf32> to vector<1x1024xf32>
    %65 = arith.mulf %63, %64 : vector<1x1024xf32>
    %66 = arith.addf %62, %65 : vector<1x1024xf32>
    %c32 = arith.constant 32 : index
    %c0_34 = arith.constant 0 : index
    %67 = vector.load %arg14[%c32, %c0_34] : memref<48x1024xf32, #tpu.memory_space<vmem>>, vector<1x1024xf32>
    tpu.vector_store %arg14[%c32, %c0_34], %66 {strides = array<i32>} : memref<48x1024xf32, #tpu.memory_space<vmem>>, vector<1x1024xf32>,
    %68 = vector.extract_strided_slice %55 {offsets = [3, 0], sizes = [1, 1024], strides = [1, 1]} : vector<9x1024xf32> to vector<1x1024xf32>
    %69 = vector.extract_strided_slice %51 {offsets = [0, 0], sizes = [1, 1024], strides = [1, 1]} : vector<3x1024xf32> to vector<1x1024xf32>
    %70 = arith.mulf %68, %69 : vector<1x1024xf32>
    %71 = vector.extract_strided_slice %55 {offsets = [4, 0], sizes = [1, 1024], strides = [1, 1]} : vector<9x1024xf32> to vector<1x1024xf32>
    %72 = vector.extract_strided_slice %51 {offsets = [1, 0], sizes = [1, 1024], strides = [1, 1]} : vector<3x1024xf32> to vector<1x1024xf32>
    %73 = arith.mulf %71, %72 : vector<1x1024xf32>
    %74 = arith.addf %70, %73 : vector<1x1024xf32>
    %75 = vector.extract_strided_slice %55 {offsets = [5, 0], sizes = [1, 1024], strides = [1, 1]} : vector<9x1024xf32> to vector<1x1024xf32>
    %76 = vector.extract_strided_slice %51 {offsets = [2, 0], sizes = [1, 1024], strides = [1, 1]} : vector<3x1024xf32> to vector<1x1024xf32>
    %77 = arith.mulf %75, %76 : vector<1x1024xf32>
    %78 = arith.addf %74, %77 : vector<1x1024xf32>
    %c33 = arith.constant 33 : index
    %c0_35 = arith.constant 0 : index
    %79 = vector.load %arg14[%c33, %c0_35] : memref<48x1024xf32, #tpu.memory_space<vmem>>, vector<1x1024xf32>
    tpu.vector_store %arg14[%c33, %c0_35], %78 {strides = array<i32>} : memref<48x1024xf32, #tpu.memory_space<vmem>>, vector<1x1024xf32>,
    %80 = vector.extract_strided_slice %55 {offsets = [6, 0], sizes = [1, 1024], strides = [1, 1]} : vector<9x1024xf32> to vector<1x1024xf32>
    %81 = vector.extract_strided_slice %51 {offsets = [0, 0], sizes = [1, 1024], strides = [1, 1]} : vector<3x1024xf32> to vector<1x1024xf32>
    %82 = arith.mulf %80, %81 : vector<1x1024xf32>
    %83 = vector.extract_strided_slice %55 {offsets = [7, 0], sizes = [1, 1024], strides = [1, 1]} : vector<9x1024xf32> to vector<1x1024xf32>
    %84 = vector.extract_strided_slice %51 {offsets = [1, 0], sizes = [1, 1024], strides = [1, 1]} : vector<3x1024xf32> to vector<1x1024xf32>
    %85 = arith.mulf %83, %84 : vector<1x1024xf32>
    %86 = arith.addf %82, %85 : vector<1x1024xf32>
    %87 = vector.extract_strided_slice %55 {offsets = [8, 0], sizes = [1, 1024], strides = [1, 1]} : vector<9x1024xf32> to vector<1x1024xf32>
    %88 = vector.extract_strided_slice %51 {offsets = [2, 0], sizes = [1, 1024], strides = [1, 1]} : vector<3x1024xf32> to vector<1x1024xf32>
    %89 = arith.mulf %87, %88 : vector<1x1024xf32>
    %90 = arith.addf %86, %89 : vector<1x1024xf32>
    %c34 = arith.constant 34 : index
    %c0_36 = arith.constant 0 : index
    %91 = vector.load %arg14[%c34, %c0_36] : memref<48x1024xf32, #tpu.memory_space<vmem>>, vector<1x1024xf32>
    tpu.vector_store %arg14[%c34, %c0_36], %90 {strides = array<i32>} : memref<48x1024xf32, #tpu.memory_space<vmem>>, vector<1x1024xf32>,
    %92 = vector.extract_strided_slice %55 {offsets = [0, 0], sizes = [1, 1024], strides = [1, 1]} : vector<9x1024xf32> to vector<1x1024xf32>
    %93 = vector.extract_strided_slice %52 {offsets = [0, 0], sizes = [1, 1024], strides = [1, 1]} : vector<3x1024xf32> to vector<1x1024xf32>
    %94 = arith.mulf %92, %93 : vector<1x1024xf32>
    %95 = vector.extract_strided_slice %55 {offsets = [1, 0], sizes = [1, 1024], strides = [1, 1]} : vector<9x1024xf32> to vector<1x1024xf32>
    %96 = vector.extract_strided_slice %52 {offsets = [1, 0], sizes = [1, 1024], strides = [1, 1]} : vector<3x1024xf32> to vector<1x1024xf32>
    %97 = arith.mulf %95, %96 : vector<1x1024xf32>
    %98 = arith.addf %94, %97 : vector<1x1024xf32>
    %99 = vector.extract_strided_slice %55 {offsets = [2, 0], sizes = [1, 1024], strides = [1, 1]} : vector<9x1024xf32> to vector<1x1024xf32>
    %100 = vector.extract_strided_slice %52 {offsets = [2, 0], sizes = [1, 1024], strides = [1, 1]} : vector<3x1024xf32> to vector<1x1024xf32>
    %101 = arith.mulf %99, %100 : vector<1x1024xf32>
    %102 = arith.addf %98, %101 : vector<1x1024xf32>
    %c35 = arith.constant 35 : index
    %c0_37 = arith.constant 0 : index
    %103 = vector.load %arg14[%c35, %c0_37] : memref<48x1024xf32, #tpu.memory_space<vmem>>, vector<1x1024xf32>
    tpu.vector_store %arg14[%c35, %c0_37], %102 {strides = array<i32>} : memref<48x1024xf32, #tpu.memory_space<vmem>>, vector<1x1024xf32>,
    %104 = vector.extract_strided_slice %55 {offsets = [3, 0], sizes = [1, 1024], strides = [1, 1]} : vector<9x1024xf32> to vector<1x1024xf32>
    %105 = vector.extract_strided_slice %52 {offsets = [0, 0], sizes = [1, 1024], strides = [1, 1]} : vector<3x1024xf32> to vector<1x1024xf32>
    %106 = arith.mulf %104, %105 : vector<1x1024xf32>
    %107 = vector.extract_strided_slice %55 {offsets = [4, 0], sizes = [1, 1024], strides = [1, 1]} : vector<9x1024xf32> to vector<1x1024xf32>
    %108 = vector.extract_strided_slice %52 {offsets = [1, 0], sizes = [1, 1024], strides = [1, 1]} : vector<3x1024xf32> to vector<1x1024xf32>
    %109 = arith.mulf %107, %108 : vector<1x1024xf32>
    %110 = arith.addf %106, %109 : vector<1x1024xf32>
    %111 = vector.extract_strided_slice %55 {offsets = [5, 0], sizes = [1, 1024], strides = [1, 1]} : vector<9x1024xf32> to vector<1x1024xf32>
    %112 = vector.extract_strided_slice %52 {offsets = [2, 0], sizes = [1, 1024], strides = [1, 1]} : vector<3x1024xf32> to vector<1x1024xf32>
    %113 = arith.mulf %111, %112 : vector<1x1024xf32>
    %114 = arith.addf %110, %113 : vector<1x1024xf32>
    %c36 = arith.constant 36 : index
    %c0_38 = arith.constant 0 : index
    %115 = vector.load %arg14[%c36, %c0_38] : memref<48x1024xf32, #tpu.memory_space<vmem>>, vector<1x1024xf32>
    tpu.vector_store %arg14[%c36, %c0_38], %114 {strides = array<i32>} : memref<48x1024xf32, #tpu.memory_space<vmem>>, vector<1x1024xf32>,
    %116 = vector.extract_strided_slice %55 {offsets = [6, 0], sizes = [1, 1024], strides = [1, 1]} : vector<9x1024xf32> to vector<1x1024xf32>
    %117 = vector.extract_strided_slice %52 {offsets = [0, 0], sizes = [1, 1024], strides = [1, 1]} : vector<3x1024xf32> to vector<1x1024xf32>
    %118 = arith.mulf %116, %117 : vector<1x1024xf32>
    %119 = vector.extract_strided_slice %55 {offsets = [7, 0], sizes = [1, 1024], strides = [1, 1]} : vector<9x1024xf32> to vector<1x1024xf32>
    %120 = vector.extract_strided_slice %52 {offsets = [1, 0], sizes = [1, 1024], strides = [1, 1]} : vector<3x1024xf32> to vector<1x1024xf32>
    %121 = arith.mulf %119, %120 : vector<1x1024xf32>
    %122 = arith.addf %118, %121 : vector<1x1024xf32>
    %123 = vector.extract_strided_slice %55 {offsets = [8, 0], sizes = [1, 1024], strides = [1, 1]} : vector<9x1024xf32> to vector<1x1024xf32>
    %124 = vector.extract_strided_slice %52 {offsets = [2, 0], sizes = [1, 1024], strides = [1, 1]} : vector<3x1024xf32> to vector<1x1024xf32>
    %125 = arith.mulf %123, %124 : vector<1x1024xf32>
    %126 = arith.addf %122, %125 : vector<1x1024xf32>
    %c37 = arith.constant 37 : index
    %c0_39 = arith.constant 0 : index
    %127 = vector.load %arg14[%c37, %c0_39] : memref<48x1024xf32, #tpu.memory_space<vmem>>, vector<1x1024xf32>
    tpu.vector_store %arg14[%c37, %c0_39], %126 {strides = array<i32>} : memref<48x1024xf32, #tpu.memory_space<vmem>>, vector<1x1024xf32>,
    %128 = vector.extract_strided_slice %55 {offsets = [0, 0], sizes = [1, 1024], strides = [1, 1]} : vector<9x1024xf32> to vector<1x1024xf32>
    %129 = vector.extract_strided_slice %53 {offsets = [0, 0], sizes = [1, 1024], strides = [1, 1]} : vector<3x1024xf32> to vector<1x1024xf32>
    %130 = arith.mulf %128, %129 : vector<1x1024xf32>
    %131 = vector.extract_strided_slice %55 {offsets = [1, 0], sizes = [1, 1024], strides = [1, 1]} : vector<9x1024xf32> to vector<1x1024xf32>
    %132 = vector.extract_strided_slice %53 {offsets = [1, 0], sizes = [1, 1024], strides = [1, 1]} : vector<3x1024xf32> to vector<1x1024xf32>
    %133 = arith.mulf %131, %132 : vector<1x1024xf32>
    %134 = arith.addf %130, %133 : vector<1x1024xf32>
    %135 = vector.extract_strided_slice %55 {offsets = [2, 0], sizes = [1, 1024], strides = [1, 1]} : vector<9x1024xf32> to vector<1x1024xf32>
    %136 = vector.extract_strided_slice %53 {offsets = [2, 0], sizes = [1, 1024], strides = [1, 1]} : vector<3x1024xf32> to vector<1x1024xf32>
    %137 = arith.mulf %135, %136 : vector<1x1024xf32>
    %138 = arith.addf %134, %137 : vector<1x1024xf32>
    %c38 = arith.constant 38 : index
    %c0_40 = arith.constant 0 : index
    %139 = vector.load %arg14[%c38, %c0_40] : memref<48x1024xf32, #tpu.memory_space<vmem>>, vector<1x1024xf32>
    tpu.vector_store %arg14[%c38, %c0_40], %138 {strides = array<i32>} : memref<48x1024xf32, #tpu.memory_space<vmem>>, vector<1x1024xf32>,
    %140 = vector.extract_strided_slice %55 {offsets = [3, 0], sizes = [1, 1024], strides = [1, 1]} : vector<9x1024xf32> to vector<1x1024xf32>
    %141 = vector.extract_strided_slice %53 {offsets = [0, 0], sizes = [1, 1024], strides = [1, 1]} : vector<3x1024xf32> to vector<1x1024xf32>
    %142 = arith.mulf %140, %141 : vector<1x1024xf32>
    %143 = vector.extract_strided_slice %55 {offsets = [4, 0], sizes = [1, 1024], strides = [1, 1]} : vector<9x1024xf32> to vector<1x1024xf32>
    %144 = vector.extract_strided_slice %53 {offsets = [1, 0], sizes = [1, 1024], strides = [1, 1]} : vector<3x1024xf32> to vector<1x1024xf32>
    %145 = arith.mulf %143, %144 : vector<1x1024xf32>
    %146 = arith.addf %142, %145 : vector<1x1024xf32>
    %147 = vector.extract_strided_slice %55 {offsets = [5, 0], sizes = [1, 1024], strides = [1, 1]} : vector<9x1024xf32> to vector<1x1024xf32>
    %148 = vector.extract_strided_slice %53 {offsets = [2, 0], sizes = [1, 1024], strides = [1, 1]} : vector<3x1024xf32> to vector<1x1024xf32>
    %149 = arith.mulf %147, %148 : vector<1x1024xf32>
    %150 = arith.addf %146, %149 : vector<1x1024xf32>
    %c39 = arith.constant 39 : index
    %c0_41 = arith.constant 0 : index
    %151 = vector.load %arg14[%c39, %c0_41] : memref<48x1024xf32, #tpu.memory_space<vmem>>, vector<1x1024xf32>
    tpu.vector_store %arg14[%c39, %c0_41], %150 {strides = array<i32>} : memref<48x1024xf32, #tpu.memory_space<vmem>>, vector<1x1024xf32>,
    %152 = vector.extract_strided_slice %55 {offsets = [6, 0], sizes = [1, 1024], strides = [1, 1]} : vector<9x1024xf32> to vector<1x1024xf32>
    %153 = vector.extract_strided_slice %53 {offsets = [0, 0], sizes = [1, 1024], strides = [1, 1]} : vector<3x1024xf32> to vector<1x1024xf32>
    %154 = arith.mulf %152, %153 : vector<1x1024xf32>
    %155 = vector.extract_strided_slice %55 {offsets = [7, 0], sizes = [1, 1024], strides = [1, 1]} : vector<9x1024xf32> to vector<1x1024xf32>
    %156 = vector.extract_strided_slice %53 {offsets = [1, 0], sizes = [1, 1024], strides = [1, 1]} : vector<3x1024xf32> to vector<1x1024xf32>
    %157 = arith.mulf %155, %156 : vector<1x1024xf32>
    %158 = arith.addf %154, %157 : vector<1x1024xf32>
    %159 = vector.extract_strided_slice %55 {offsets = [8, 0], sizes = [1, 1024], strides = [1, 1]} : vector<9x1024xf32> to vector<1x1024xf32>
    %160 = vector.extract_strided_slice %53 {offsets = [2, 0], sizes = [1, 1024], strides = [1, 1]} : vector<3x1024xf32> to vector<1x1024xf32>
    %161 = arith.mulf %159, %160 : vector<1x1024xf32>
    %162 = arith.addf %158, %161 : vector<1x1024xf32>
    %c40 = arith.constant 40 : index
    %c0_42 = arith.constant 0 : index
    %163 = vector.load %arg14[%c40, %c0_42] : memref<48x1024xf32, #tpu.memory_space<vmem>>, vector<1x1024xf32>
    tpu.vector_store %arg14[%c40, %c0_42], %162 {strides = array<i32>} : memref<48x1024xf32, #tpu.memory_space<vmem>>, vector<1x1024xf32>,
    %cst_43 = arith.constant 0.000000e+00 : f32
    %164 = vector.broadcast %cst_43 : f32 to vector<7x1024xf32>
    %c41 = arith.constant 41 : index
    %c0_44 = arith.constant 0 : index
    %165 = vector.load %arg14[%c41, %c0_44] : memref<48x1024xf32, #tpu.memory_space<vmem>>, vector<7x1024xf32>
    tpu.vector_store %arg14[%c41, %c0_44], %164 {strides = array<i32>} : memref<48x1024xf32, #tpu.memory_space<vmem>>, vector<7x1024xf32>,
    %c0_45 = arith.constant 0 : index
    %c0_46 = arith.constant 0 : index
    %166 = vector.load %arg10[%c0_45, %c0_46] : memref<32x48xf32, #tpu.memory_space<vmem>>, vector<32x48xf32>
    %c0_47 = arith.constant 0 : index
    %c0_48 = arith.constant 0 : index
    %167 = vector.load %arg14[%c0_47, %c0_48] : memref<48x1024xf32, #tpu.memory_space<vmem>>, vector<48x1024xf32>
    %cst_49 = arith.constant dense<0.000000e+00> : vector<32x1024xf32>
    %168 = tpu.matmul %166, %167, %cst_49 {dimension_numbers = #tpu.dot_dimension_numbers<[1], [0], [0], [1], [0, 0, 1, 1], [], []>} : vector<32x48xf32>, vector<48x1024xf32>, vector<32x1024xf32> -> vector<32x1024xf32>
    %c0_50 = arith.constant 0 : index
    %c0_51 = arith.constant 0 : index
    %169 = vector.load %arg11[%c0_50, %c0_51] : memref<32x1xf32, #tpu.memory_space<vmem>>, vector<32x1xf32>
    %170 = vector.broadcast %169 : vector<32x1xf32> to vector<32x1024xf32>
    %171 = arith.addf %168, %170 : vector<32x1024xf32>
    %172 = arith.mulf %47, %47 : vector<16x1024xf32>
    %173 = arith.mulf %48, %48 : vector<16x1024xf32>
    %174 = arith.addf %172, %173 : vector<16x1024xf32>
    %175 = arith.mulf %49, %49 : vector<16x1024xf32>
    %176 = arith.addf %174, %175 : vector<16x1024xf32>
    %cst_52 = arith.constant 9.99999993E-9 : f32
    %177 = vector.broadcast %cst_52 : f32 to vector<16x1024xf32>
    %178 = arith.addf %176, %177 : vector<16x1024xf32>
    %179 = math.sqrt %178 : vector<16x1024xf32>
    %180 = arith.negf %179 : vector<16x1024xf32>
    %181 = math.exp %180 : vector<16x1024xf32>
    %cst_53 = arith.constant 1.000000e+00 : f32
    %182 = vector.broadcast %cst_53 : f32 to vector<16x1024xf32>
    %183 = arith.addf %182, %181 : vector<16x1024xf32>
    %184 = arith.divf %182, %183 : vector<16x1024xf32>
    %185 = arith.mulf %179, %184 : vector<16x1024xf32>
    %186 = arith.negf %171 : vector<32x1024xf32>
    %187 = math.exp %186 : vector<32x1024xf32>
    %cst_54 = arith.constant 1.000000e+00 : f32
    %188 = vector.broadcast %cst_54 : f32 to vector<32x1024xf32>
    %189 = arith.addf %188, %187 : vector<32x1024xf32>
    %190 = arith.divf %188, %189 : vector<32x1024xf32>
    %191 = arith.mulf %171, %190 : vector<32x1024xf32>
    %c0_55 = arith.constant 0 : index
    %c0_56 = arith.constant 0 : index
    %192 = vector.load %arg12[%c0_55, %c0_56] : memref<32x1024xf32, #tpu.memory_space<vmem>>, vector<32x1024xf32>
    tpu.vector_store %arg12[%c0_55, %c0_56], %191 {strides = array<i32>} : memref<32x1024xf32, #tpu.memory_space<vmem>>, vector<32x1024xf32>,
    %193 = arith.mulf %47, %185 : vector<16x1024xf32>
    %c0_57 = arith.constant 0 : index
    %c0_58 = arith.constant 0 : index
    %c0_59 = arith.constant 0 : index
    %194 = vector.load %arg13[%c0_57, %c0_58, %c0_59] : memref<3x16x1024xf32, #tpu.memory_space<vmem>>, vector<1x16x1024xf32>
    %195 = vector.shape_cast %194 : vector<1x16x1024xf32> to vector<16x1024xf32>
    %196 = vector.shape_cast %193 : vector<16x1024xf32> to vector<1x16x1024xf32>
    tpu.vector_store %arg13[%c0_57, %c0_58, %c0_59], %196 {strides = array<i32>} : memref<3x16x1024xf32, #tpu.memory_space<vmem>>, vector<1x16x1024xf32>,
    %197 = arith.mulf %48, %185 : vector<16x1024xf32>
    %c1_60 = arith.constant 1 : index
    %c0_61 = arith.constant 0 : index
    %c0_62 = arith.constant 0 : index
    %198 = vector.load %arg13[%c1_60, %c0_61, %c0_62] : memref<3x16x1024xf32, #tpu.memory_space<vmem>>, vector<1x16x1024xf32>
    %199 = vector.shape_cast %198 : vector<1x16x1024xf32> to vector<16x1024xf32>
    %200 = vector.shape_cast %197 : vector<16x1024xf32> to vector<1x16x1024xf32>
    tpu.vector_store %arg13[%c1_60, %c0_61, %c0_62], %200 {strides = array<i32>} : memref<3x16x1024xf32, #tpu.memory_space<vmem>>, vector<1x16x1024xf32>,
    %201 = arith.mulf %49, %185 : vector<16x1024xf32>
    %c2_63 = arith.constant 2 : index
    %c0_64 = arith.constant 0 : index
    %c0_65 = arith.constant 0 : index
    %202 = vector.load %arg13[%c2_63, %c0_64, %c0_65] : memref<3x16x1024xf32, #tpu.memory_space<vmem>>, vector<1x16x1024xf32>
    %203 = vector.shape_cast %202 : vector<1x16x1024xf32> to vector<16x1024xf32>
    %204 = vector.shape_cast %201 : vector<16x1024xf32> to vector<1x16x1024xf32>
    tpu.vector_store %arg13[%c2_63, %c0_64, %c0_65], %204 {strides = array<i32>} : memref<3x16x1024xf32, #tpu.memory_space<vmem>>, vector<1x16x1024xf32>,
    return
  }
  func.func @transform_0(%arg0: i32) -> (i32, i32) {
    %c0_i32 = arith.constant 0 : i32
    %c0_i32_0 = arith.constant 0 : i32
    return %c0_i32, %arg0 : i32, i32
  }
  func.func @transform_1(%arg0: i32) -> (i32, i32, i32) {
    %c0_i32 = arith.constant 0 : i32
    %c0_i32_0 = arith.constant 0 : i32
    %c0_i32_1 = arith.constant 0 : i32
    return %c0_i32, %c0_i32_0, %arg0 : i32, i32, i32
  }
  func.func @transform_2(%arg0: i32) -> (i32, i32) {
    %c0_i32 = arith.constant 0 : i32
    %c0_i32_0 = arith.constant 0 : i32
    return %c0_i32, %arg0 : i32, i32
  }
  func.func @transform_3(%arg0: i32) -> (i32, i32) {
    %c0_i32 = arith.constant 0 : i32
    %c0_i32_0 = arith.constant 0 : i32
    %c0_i32_1 = arith.constant 0 : i32
    return %c0_i32, %c0_i32_0 : i32, i32
  }
  func.func @transform_4(%arg0: i32) -> (i32, i32) {
    %c0_i32 = arith.constant 0 : i32
    %c0_i32_0 = arith.constant 0 : i32
    %c0_i32_1 = arith.constant 0 : i32
    return %c0_i32, %c0_i32_0 : i32, i32
  }
  func.func @transform_5(%arg0: i32) -> (i32, i32) {
    %c0_i32 = arith.constant 0 : i32
    %c0_i32_0 = arith.constant 0 : i32
    %c0_i32_1 = arith.constant 0 : i32
    return %c0_i32, %c0_i32_0 : i32, i32
  }
  func.func @transform_6(%arg0: i32) -> (i32, i32) {
    %c0_i32 = arith.constant 0 : i32
    %c0_i32_0 = arith.constant 0 : i32
    %c0_i32_1 = arith.constant 0 : i32
    return %c0_i32, %c0_i32_0 : i32, i32
  }
  func.func @transform_7(%arg0: i32) -> (i32, i32) {
    %c0_i32 = arith.constant 0 : i32
    %c0_i32_0 = arith.constant 0 : i32
    %c0_i32_1 = arith.constant 0 : i32
    return %c0_i32, %c0_i32_0 : i32, i32
  }
  func.func @transform_8(%arg0: i32) -> (i32, i32) {
    %c0_i32 = arith.constant 0 : i32
    %c0_i32_0 = arith.constant 0 : i32
    %c0_i32_1 = arith.constant 0 : i32
    return %c0_i32, %c0_i32_0 : i32, i32
  }
  func.func @transform_9(%arg0: i32) -> (i32, i32) {
    %c0_i32 = arith.constant 0 : i32
    %c0_i32_0 = arith.constant 0 : i32
    %c0_i32_1 = arith.constant 0 : i32
    return %c0_i32, %c0_i32_0 : i32, i32
  }
  func.func @transform_10(%arg0: i32) -> (i32, i32) {
    %c0_i32 = arith.constant 0 : i32
    %c0_i32_0 = arith.constant 0 : i32
    %c0_i32_1 = arith.constant 0 : i32
    return %c0_i32, %c0_i32_0 : i32, i32
  }
  func.func @transform_11(%arg0: i32) -> (i32, i32) {
    %c0_i32 = arith.constant 0 : i32
    %c0_i32_0 = arith.constant 0 : i32
    return %c0_i32, %arg0 : i32, i32
  }
  func.func @transform_12(%arg0: i32) -> (i32, i32, i32) {
    %c0_i32 = arith.constant 0 : i32
    %c0_i32_0 = arith.constant 0 : i32
    %c0_i32_1 = arith.constant 0 : i32
    return %c0_i32, %c0_i32_0, %arg0 : i32, i32, i32
  }
}

</mosaic_0001>

<bundles_post_ra>
// kernel: _lambda_.1
= control target key start
LH: loop header
LB: loop body
LE: loop exit
PB: predicated region body
PF: predicated region fallthrough
CT: control target
= control target key end

     0   :  { %s12126_s0 = inlined_call_operand.vmem [shape: f32[32,2048], index: 0, kind: input, shape index: {}]   ;;  %s12127_s1 = inlined_call_operand.hbm [shape: f32[3,16,2048], index: 1, kind: input, shape index: {}]   ;;  %s12128_s2 = inlined_call_operand.vmem [shape: f32[9,2048], index: 2, kind: input, shape index: {}]   ;;  %s12129_s3 = inlined_call_operand.vmem [shape: f32[32,16], index: 3, kind: input, shape index: {}]   ;;  %s12130_s4 = inlined_call_operand.hbm [shape: f32[32,48], index: 4, kind: input, shape index: {}]   ;;  %s12131_s5 = inlined_call_operand.vmem [shape: f32[32,1], index: 5, kind: input, shape index: {}]   ;;  %s12132_s6 = inlined_call_operand.hbm [shape: f32[16,32], index: 6, kind: input, shape index: {}]   ;;  %s12133_s7 = inlined_call_operand.vmem [shape: f32[16,1], index: 7, kind: input, shape index: {}]   ;;  %s12134_s8 = inlined_call_operand.vmem [shape: f32[3,16], index: 8, kind: input, shape index: {}]   ;;  %s12135_s9 = inlined_call_operand.vmem [shape: f32[32,48], index: 9, kind: input, shape index: {}]   ;;  %s12136_s10 = inlined_call_operand.vmem [shape: f32[32,1], index: 10, kind: input, shape index: {}]   ;;  %s12137_s11 = inlined_call_operand.hbm [shape: f32[32,2048], index: 11, kind: output, shape index: {0}]   ;;  %s12138_s12 = inlined_call_operand.hbm [shape: f32[3,16,2048], index: 12, kind: output, shape index: {1}]  }
   0x1   :  { %12173 = sst [smem:[#allocation65_spill]] %s12126_s0 }
   0x2   :  { %12174 = sst [smem:[#allocation66_spill]] %s12130_s4 }
   0x3   :  { %12175 = sst [smem:[#allocation67_spill]] %s12132_s6 }
   0x4   :  { %12176 = sst [smem:[#allocation68_spill]] %s12137_s11 }
   0x5   :  { %18 = vsyncpa [#allocation5], 0 }
   0x6   :  { %20 = vsyncpa [#allocation5 + $0x1], 0 }
   0x7   :  { %21 = vsyncpa [#allocation9], 0 }
   0x8   :  { %22 = vsyncpa [#allocation6], 0 }
   0x9   :  { %24 = vsyncpa [#allocation6 + $0x1], 0 }
   0xa   :  { %25 = vsyncpa [#allocation13], 0 }
   0xb   :  { %27 = vsyncpa [#allocation13 + $0x1], 0  ;;  %s7803_s21 = smov 0   ;;  %s7805_s22 = smov 0  }
   0xc   :  { %s7807_s23 = smov 0   ;;  %s7809_s24 = smov 0  }
   0xd LB: > { %12177 = sst [smem:[#allocation18_spill]] %s7712_s21  ;;  %s7824_s25 = sadd.s32 4294967295, %s7724_s24   ;;  %s7724_s24 = sphi %s7809_s24, %s12512_s24   ;;  %s7720_s23 = sphi %s7807_s23, %s12514_s23   ;;  %s7716_s22 = sphi %s7805_s22, %s12516_s22   ;;  %s7712_s21 = sphi %s7803_s21, %s12515_s21  }
   0xe   : > { %12178 = sst [smem:[#allocation19_spill]] %s7720_s23  ;;  %s6606_s26 = sadd.s32 4294967294, %s7724_s24  }
   0xf   : > { %s7828_s27 = sadd.s32 1, %s7724_s24   ;;  %s40_s28 = sadd.s32 1, %s7720_s23 }
  0x10   : > { %12179 = sst [smem:[#allocation20_spill]] %s7828_s27  ;;  %s37_s29 = ssub.s32 %s7724_s24, %s7828_s27 }
  0x11   : > { %p47_p0 = scmp.ne.s32.totalorder %s7720_s23, %s7716_s22  ;;  %p38_p1 = scmp.eq.s32.totalorder %s37_s29, 0 }
  0x12   : > { %p48_p2 = scmp.eq.s32.totalorder %s7724_s24, 0  ;;  %p79_p3 = scmp.ne.s32.totalorder %s7716_s22, %s7712_s21 }
  0x13   : > { %p80_p4 = scmp.eq.s32.totalorder %s7824_s25, 0  ;;  %p297_p7 = scmp.eq.s32.totalorder %s7824_s25, 1 }
  0x14   : > { %s7840_s30 = scalar_select %p38_p1, %s7720_s23, %s40_s28  }
  0x15   : > { %p7842_p5 = por %p48_p2, %p47_p0  ;;  %p7848_p6 = por %p80_p4, %p79_p3 }
  0x16   : > { %12180 = sst [smem:[#allocation21_spill]] %s7840_s30  ;;  %p303_p8 = scmp.eq.s32.totalorder %s6606_s26, 1 }
  0x17   : > { %p6607_p9 = scmp.ge.s32.totalorder %s7724_s24, 1  ;;  %p336_p10 = scmp.lt.s32.totalorder %s7724_s24, 3 }
  0x18   : > { %p7855_p11 = por %p297_p7, %p47_p0  ;;  %p7859_p12 = por %p303_p8, %p79_p3 }
  0x19   : > { %p7863_p13 = pnand %p6607_p9, %p336_p10  ;;  %s12188_s4 = sld [smem:[#allocation66_spill]] }
  0x1a   : > { %s12183_s15 = scalar_select %p7855_p11, 1, 0 }
  0x1b   : > { %s12185_s16 = scalar_select %p7859_p12, 1, 0 }
  0x1c   : > { %12184 = sst [smem:[#allocation22_spill]] %s12183_s15  ;;  %p7013_p1 = pneg %p7863_p13 }
  0x1d   : > { %12186 = sst [smem:[#allocation23_spill]] %s12185_s16  ;;  %s7726_s26 = smov [#allocation8]  }
  0x1e   : > { %s352_s28 = sshll.u32 %s7726_s26, 4  ;;  %p7014_p0 = pnand %p7013_p1, %p80_p4  ;;  %s353_s28 = int_to_ptr.vmem [resolvable:$true] %s352_s28 }
  0x1f   : > { %s350_s20 = sshll.u32 %s12188_s4, 4  ;;  %s12189_s6 = sld [smem:[#allocation67_spill]]  ;;  %s351_s20 = int_to_ptr.hbm [resolvable:$true] %s350_s20 }
  0x20   : > { %s7727_s16 = smov 128   ;;  %s7728_s21 = smov 8  }
  0x21   : > { %7016 = dma.hbm_to_vmem [thread:$0]  (!%p7014_p0), %s351_s20, 512, %s353_s28, [#allocation9], %s7727_s16, %s7727_s16, %s7728_s21  }
  0x22   : > { %s7729_s11 = smov [#allocation10]   ;;  %p6610_p2 = scmp.ge.s32.totalorder %s7724_s24, 2 }
  0x23   : > { %s369_s18 = sshll.u32 %s7729_s11, 4  ;;  %s370_s18 = int_to_ptr.vmem [resolvable:$true] %s369_s18 }
  0x24   : > { %391 = sbr.rel (%p6610_p2) target bundleno = 118 (0x76), region = 48 }
  0x25   : > { %s367_s27 = sshll.u32 %s12189_s6, 4  ;;  %s368_s27 = int_to_ptr.hbm [resolvable:$true] %s367_s27 }
  0x26   : > { %7019 = dma.hbm_to_vmem [thread:$0]  (!%p7014_p0), %s368_s27, 256, %s370_s18, [#allocation9], %s7727_s16, %s7727_s16, %s7728_s21  }
  0x29   : > { %394 = sbr.rel (!%p7842_p5) target bundleno = 83 (0x53), region = 52  ;;  %s396_s30 = sand.u32 (%p7842_p5), 1, %s7720_s23  }
  0x2a   : > { %s6992_s19 = sshll.u32 (%p7842_p5), %s7724_s24, 6  ;;  %s6611_s26 = sshll.u32 (%p7842_p5), %s396_s30, 8 }
  0x2b   : > { %s12190_s0 = sld [smem:[#allocation65_spill]] (%p7842_p5)  ;;  %s7892_s11 = scalar_lea.vmem (%p7842_p5), [#allocation3], %s6611_s26 }
  0x31   : > { %s7887_s28 = scalar_lea.vmem %s12190_s0, %s6992_s19 }
  0x32   : > { %v414_v0 = vld [vmem:[%s7887_s28] sm:$0xff]  ;;  %v416_v1 = vld [vmem:[%s7887_s28 + $0x8] sm:$0xff]  ;;  %v418_v2 = vld [vmem:[%s7887_s28 + $0x10] sm:$0xff] }
  0x33   : > { %415 = vst [vmem:[%s7892_s11] sm:$0xff] %v414_v0  ;;  %v420_v3 = vld [vmem:[%s7887_s28 + $0x18] sm:$0xff]  ;;  %v422_v4 = vld [vmem:[%s7887_s28 + $0x20] sm:$0xff]  ;;  %v424_v5 = vld [vmem:[%s7887_s28 + $0x28] sm:$0xff] }
  0x34   : > { %417 = vst [vmem:[%s7892_s11 + $0x8] sm:$0xff] %v416_v1  ;;  %v426_v6 = vld [vmem:[%s7887_s28 + $0x30] sm:$0xff]  ;;  %v428_v7 = vld [vmem:[%s7887_s28 + $0x38] sm:$0xff]  ;;  %v430_v8 = vld [vmem:[%s7887_s28 + $0x80] sm:$0xff] }
  0x35   : > { %419 = vst [vmem:[%s7892_s11 + $0x10] sm:$0xff] %v418_v2  ;;  %v432_v9 = vld [vmem:[%s7887_s28 + $0x88] sm:$0xff]  ;;  %v434_v10 = vld [vmem:[%s7887_s28 + $0x90] sm:$0xff]  ;;  %v436_v11 = vld [vmem:[%s7887_s28 + $0x98] sm:$0xff] }
  0x36   : > { %421 = vst [vmem:[%s7892_s11 + $0x18] sm:$0xff] %v420_v3  ;;  %v438_v12 = vld [vmem:[%s7887_s28 + $0xa0] sm:$0xff]  ;;  %v440_v13 = vld [vmem:[%s7887_s28 + $0xa8] sm:$0xff]  ;;  %v442_v14 = vld [vmem:[%s7887_s28 + $0xb0] sm:$0xff] }
  0x37   : > { %423 = vst [vmem:[%s7892_s11 + $0x20] sm:$0xff] %v422_v4  ;;  %v444_v15 = vld [vmem:[%s7887_s28 + $0xb8] sm:$0xff]  ;;  %v446_v16 = vld [vmem:[%s7887_s28 + $0x100] sm:$0xff]  ;;  %v448_v17 = vld [vmem:[%s7887_s28 + $0x108] sm:$0xff] }
  0x38   : > { %425 = vst [vmem:[%s7892_s11 + $0x28] sm:$0xff] %v424_v5  ;;  %v450_v18 = vld [vmem:[%s7887_s28 + $0x110] sm:$0xff]  ;;  %v452_v19 = vld [vmem:[%s7887_s28 + $0x118] sm:$0xff]  ;;  %v454_v20 = vld [vmem:[%s7887_s28 + $0x120] sm:$0xff] }
  0x39   : > { %427 = vst [vmem:[%s7892_s11 + $0x30] sm:$0xff] %v426_v6  ;;  %v456_v21 = vld [vmem:[%s7887_s28 + $0x128] sm:$0xff]  ;;  %v458_v22 = vld [vmem:[%s7887_s28 + $0x130] sm:$0xff]  ;;  %v460_v23 = vld [vmem:[%s7887_s28 + $0x138] sm:$0xff] }
  0x3a   : > { %429 = vst [vmem:[%s7892_s11 + $0x38] sm:$0xff] %v428_v7  ;;  %v462_v24 = vld [vmem:[%s7887_s28 + $0x180] sm:$0xff]  ;;  %v464_v25 = vld [vmem:[%s7887_s28 + $0x188] sm:$0xff]  ;;  %v466_v26 = vld [vmem:[%s7887_s28 + $0x190] sm:$0xff] }
  0x3b   : > { %431 = vst [vmem:[%s7892_s11 + $0x40] sm:$0xff] %v430_v8  ;;  %v468_v27 = vld [vmem:[%s7887_s28 + $0x198] sm:$0xff]  ;;  %v470_v28 = vld [vmem:[%s7887_s28 + $0x1a0] sm:$0xff]  ;;  %v472_v29 = vld [vmem:[%s7887_s28 + $0x1a8] sm:$0xff] }
  0x3c   : > { %433 = vst [vmem:[%s7892_s11 + $0x48] sm:$0xff] %v432_v9  ;;  %v474_v30 = vld [vmem:[%s7887_s28 + $0x1b0] sm:$0xff]  ;;  %v476_v31 = vld [vmem:[%s7887_s28 + $0x1b8] sm:$0xff] }
  0x3d   : > { %435 = vst [vmem:[%s7892_s11 + $0x50] sm:$0xff] %v434_v10 }
  0x3e   : > { %437 = vst [vmem:[%s7892_s11 + $0x58] sm:$0xff] %v436_v11 }
  0x3f   : > { %439 = vst [vmem:[%s7892_s11 + $0x60] sm:$0xff] %v438_v12 }
  0x40   : > { %441 = vst [vmem:[%s7892_s11 + $0x68] sm:$0xff] %v440_v13 }
  0x41   : > { %443 = vst [vmem:[%s7892_s11 + $0x70] sm:$0xff] %v442_v14 }
  0x42   : > { %445 = vst [vmem:[%s7892_s11 + $0x78] sm:$0xff] %v444_v15 }
  0x43   : > { %447 = vst [vmem:[%s7892_s11 + $0x80] sm:$0xff] %v446_v16 }
  0x44   : > { %449 = vst [vmem:[%s7892_s11 + $0x88] sm:$0xff] %v448_v17 }
  0x45   : > { %451 = vst [vmem:[%s7892_s11 + $0x90] sm:$0xff] %v450_v18 }
  0x46   : > { %453 = vst [vmem:[%s7892_s11 + $0x98] sm:$0xff] %v452_v19 }
  0x47   : > { %455 = vst [vmem:[%s7892_s11 + $0xa0] sm:$0xff] %v454_v20 }
  0x48   : > { %457 = vst [vmem:[%s7892_s11 + $0xa8] sm:$0xff] %v456_v21 }
  0x49   : > { %459 = vst [vmem:[%s7892_s11 + $0xb0] sm:$0xff] %v458_v22 }
  0x4a   : > { %461 = vst [vmem:[%s7892_s11 + $0xb8] sm:$0xff] %v460_v23 }
  0x4b   : > { %463 = vst [vmem:[%s7892_s11 + $0xc0] sm:$0xff] %v462_v24 }
  0x4c   : > { %465 = vst [vmem:[%s7892_s11 + $0xc8] sm:$0xff] %v464_v25 }
  0x4d   : > { %467 = vst [vmem:[%s7892_s11 + $0xd0] sm:$0xff] %v466_v26 }
  0x4e   : > { %469 = vst [vmem:[%s7892_s11 + $0xd8] sm:$0xff] %v468_v27 }
  0x4f   : > { %471 = vst [vmem:[%s7892_s11 + $0xe0] sm:$0xff] %v470_v28 }
  0x50   : > { %473 = vst [vmem:[%s7892_s11 + $0xe8] sm:$0xff] %v472_v29 }
  0x51   : > { %475 = vst [vmem:[%s7892_s11 + $0xf0] sm:$0xff] %v474_v30 }
  0x52   : > { %477 = vst [vmem:[%s7892_s11 + $0xf8] sm:$0xff] %v476_v31 }
  0x53 PF: > { %s7956_s21 = sand.u32 1, %s7720_s23   ;;  %s6993_s27 = sshll.u32 %s7724_s24, 6 }
  0x54   : > { %s6997_s16 = smul.u32 384, %s7956_s21  ;;  %s493_s19 = scalar_lea.hbm %s12127_s1, %s6993_s27 }
  0x55   : > { %s494_s26 = sshll.u32 %s493_s19, 4  ;;  %s485_s28 = scalar_lea.sflag [#allocation5], %s7956_s21  ;;  %s495_s26 = int_to_ptr.hbm [resolvable:$true] %s494_s26 }
  0x56   : > { %s488_s29 = scalar_lea.vmem [#allocation4], %s6997_s16  ;;  %s7594_s11 = sshra.s32 %s495_s26, 4  ;;  %s7595_s11 = int_to_ptr.hbm [resolvable:$true] %s7594_s11 }
  0x57   : > { %s496_s20 = sshll.u32 %s488_s29, 4  ;;  %s7596_s0 = scalar_lea.hbm %s7595_s11, 384  ;;  %s497_s20 = int_to_ptr.vmem [resolvable:$true] %s496_s20 }
  0x58   : > { %p7597_p3 = scmp.ne.s32.totalorder %s7595_s11, %s7596_s0  ;;  %s7600_s23 = scalar_lea.hbm %s12127_s1, 768 }
  0x59   : > { %p7601_p9 = scmp.lt.s32.totalorder %s7595_s11, %s12127_s1  ;;  %p7602_p10 = scmp.lt.s32.totalorder %s7600_s23, %s7596_s0 }
  0x5a   : > { %p7598_p7 = pnand %p7597_p3, %p7842_p5 }
  0x5b   : > { %p7603_p1 = por %p7602_p10, %p7601_p9 }
  0x5c   : > { %p7599_p8 = pneg %p7598_p7 }
  0x5e   : > { %p7604_p0 = pnand %p7603_p1, %p7599_p8 }
  0x60   : > { %7607 = shalt.err (!%p7604_p0)
}
  0x61   : > { %s7730_s16 = smov 2048   ;;  %s7731_s30 = smov 1024  }
  0x62   : > { %s7732_s19 = smov 64   ;;  %505 = sbr.rel (!%p7842_p5) target bundleno = 118 (0x76), region = 79 }
  0x63   : > { %7003 = dma.hbm_to_vmem [thread:$0]  (%p7842_p5), %s495_s26, 6144, %s497_s20, %s485_s28, %s7730_s16, %s7731_s30, %s7732_s19  }
  0x64   : > { %s6616_s4 = sshll.u32 (%p7842_p5), %s7956_s21, 7  ;;  %s7984_s0 = scalar_lea.vmem (%p7842_p5), %s12128_s2, %s6993_s27 }
  0x65   : > { %v525_v32 = vld [vmem:[%s7984_s0] sm:$0xff] (%p7842_p5)  ;;  %v527_v33 = vld [vmem:[%s7984_s0 + $0x8] sm:$0xff] (%p7842_p5)  ;;  %v529_v34 = vld [vmem:[%s7984_s0 + $0x10] sm:$0xff] (%p7842_p5)  ;;  %s509_s23 = scalar_lea.vmem (%p7842_p5), [#allocation7], %s6616_s4 }
  0x66   : > { %526 = vst [vmem:[%s509_s23] sm:$0xff] (%p7842_p5), %v525_v32  ;;  %v531_v35 = vld [vmem:[%s7984_s0 + $0x18] sm:$0xff] (%p7842_p5)  ;;  %v533_v36 = vld [vmem:[%s7984_s0 + $0x20] sm:$0xff] (%p7842_p5)  ;;  %v535_v37 = vld [vmem:[%s7984_s0 + $0x28] sm:$0xff] (%p7842_p5) }
  0x67   : > { %528 = vst [vmem:[%s509_s23 + $0x8] sm:$0xff] %v527_v33  ;;  %v537_v38 = vld [vmem:[%s7984_s0 + $0x30] sm:$0xff]  ;;  %v539_v39 = vld [vmem:[%s7984_s0 + $0x38] sm:$0xff]  ;;  %v541_v40 = vld [vmem:[%s7984_s0 + $0x80] sm:$0xff] }
  0x68   : > { %530 = vst [vmem:[%s509_s23 + $0x10] sm:$0xff] %v529_v34  ;;  %v543_v41 = vld [vmem:[%s7984_s0 + $0x88] sm:$0xff]  ;;  %v545_v42 = vld [vmem:[%s7984_s0 + $0x90] sm:$0xff]  ;;  %v547_v43 = vld [vmem:[%s7984_s0 + $0x98] sm:$0xff] }
  0x69   : > { %532 = vst [vmem:[%s509_s23 + $0x18] sm:$0xff] %v531_v35  ;;  %v549_v44 = vld [vmem:[%s7984_s0 + $0xa0] sm:$0xff]  ;;  %v551_v45 = vld [vmem:[%s7984_s0 + $0xa8] sm:$0xff]  ;;  %v553_v46 = vld [vmem:[%s7984_s0 + $0xb0] sm:$0xff] }
  0x6a   : > { %534 = vst [vmem:[%s509_s23 + $0x20] sm:$0xff] %v533_v36  ;;  %v555_v47 = vld [vmem:[%s7984_s0 + $0xb8] sm:$0xff] }
  0x6b   : > { %536 = vst [vmem:[%s509_s23 + $0x28] sm:$0xff] %v535_v37 }
  0x6c   : > { %538 = vst [vmem:[%s509_s23 + $0x30] sm:$0xff] %v537_v38 }
  0x6d   : > { %540 = vst [vmem:[%s509_s23 + $0x38] sm:$0xff] %v539_v39 }
  0x6e   : > { %542 = vst [vmem:[%s509_s23 + $0x40] sm:$0xff] %v541_v40 }
  0x6f   : > { %544 = vst [vmem:[%s509_s23 + $0x48] sm:$0xff] %v543_v41 }
  0x70   : > { %546 = vst [vmem:[%s509_s23 + $0x50] sm:$0xff] %v545_v42 }
  0x71   : > { %548 = vst [vmem:[%s509_s23 + $0x58] sm:$0xff] %v547_v43 }
  0x72   : > { %550 = vst [vmem:[%s509_s23 + $0x60] sm:$0xff] %v549_v44 }
  0x73   : > { %552 = vst [vmem:[%s509_s23 + $0x68] sm:$0xff] %v551_v45 }
  0x74   : > { %554 = vst [vmem:[%s509_s23 + $0x70] sm:$0xff] %v553_v46 }
  0x75   : > { %556 = vst [vmem:[%s509_s23 + $0x78] sm:$0xff] %v555_v47 }
  0x76 PF: > { %565 = sbr.rel (%p7863_p13) target bundleno = 1546 (0x60a), region = 102 }
  0x7b   : > { %s8005_s13 = sand.u32 1, %s7716_s22  }
  0x7c   : > { %s6620_s21 = sshll.u32 %s8005_s13, 8  ;;  %s6998_s27 = smul.u32 384, %s8005_s13 }
  0x7d   : > { %s8011_s26 = scalar_lea.vmem [#allocation3], %s6620_s21  ;;  %s575_s29 = scalar_lea.sflag [#allocation5], %s8005_s13 }
  0x7e   : > { %s8016_s20 = scalar_lea.vmem [#allocation4], %s6998_s27 }
  0x7f   : > { %7695 = dma.done.wait (%p7848_p6), %s575_s29, 6144  }
  0x80   : > { %7697 = vsyncadd (%p7848_p6), %s575_s29, 4294961152  ;;  %s6621_s17 = sshll.u32 %s8005_s13, 7 }
  0x81   : > { %s8023_s28 = scalar_lea.vmem [#allocation7], %s6621_s17 }
  0x82   : > { %7699 = dma.done.wait (%p80_p4), [#allocation9], 768  }
  0x83   : > { %7701 = vsyncadd (%p80_p4), [#allocation9], 4294966528  ;;  %v667_v48 = vld [vmem:[%s8016_s20 + $0x40] sm:$0xff]  ;;  %v668_v49 = vld [vmem:[%s8016_s20 + $0x48] sm:$0xff]  ;;  %vm675_vm0 = vcmask 130048   ;;  %s10518_s11 = scalar_lea.vmem [#allocation12], %s6998_s27 }
  0x84   : > { %v669_v50 = vld [vmem:[%s8016_s20 + $0x50] sm:$0xff]  ;;  %702 = vmatpush.msra.mxu0 %v667_v48  ;;  %731 = vmatpush.msra.mxu1 %v668_v49  ;;  %v670_v51 = vld [vmem:[%s8016_s20 + $0x58] sm:$0xff]  ;;  %v659_v52 = vld [vmem:[%s8016_s20] sm:$0xff]  ;;  %s11542_s0 = scalar_lea.vmem [#allocation11], %s6620_s21  ;;  %s6995_s21 = sshll.u32 %s7824_s25, 6 }
  0x85   : > { %v660_v53 = vld [vmem:[%s8016_s20 + $0x8] sm:$0xff]  ;;  %760 = vmatpush.msra.mxu2 %v669_v50  ;;  %789 = vmatpush.msra.mxu3 %v670_v51  ;;  %v661_v54 = vld [vmem:[%s8016_s20 + $0x10] sm:$0xff]  ;;  %v662_v55 = vld [vmem:[%s8016_s20 + $0x18] sm:$0xff]  ;;  %s6442_s14 = sshll.u32 %s10518_s11, 4  ;;  %s7642_s19 = scalar_lea.hbm %s12138_s12, 768  ;;  %s11621_s14 = int_to_ptr.vmem [resolvable:$true] %s6442_s14 }
  0x86   : > { %v8040_v56 = vld [vmem:[%s12129_s3] sm:$0xff]  ;;  %703 = vmatpush.msra.mxu0 %v659_v52  ;;  %732 = vmatpush.msra.mxu1 %v660_v53  ;;  %v673_v57 = vld [vmem:[%s8016_s20 + $0x70] sm:$0xff]  ;;  %v671_v59 = vld [vmem:[%s8016_s20 + $0x60] sm:$0xff] }
  0x87   : > { %761 = vmatpush.msra.mxu2 %v661_v54  ;;  %790 = vmatpush.msra.mxu3 %v662_v55  ;;  %v674_v58 = vld [vmem:[%s8016_s20 + $0x78] sm:$0xff]  ;;  %v672_v60 = vld [vmem:[%s8016_s20 + $0x68] sm:$0xff]  ;;  %v665_v61 = vld [vmem:[%s8016_s20 + $0x30] sm:$0xff] }
  0x88   : > { %6625 = vmatmul.msk.f32.vlgmr.msra.gmra.mxu0 %vm675_vm0, %v8040_v56  ;;  %6629 = vmatmul.msk.f32.vlgmr.msra.gmra.mxu1 %vm675_vm0, %v8040_v56  ;;  %v666_v62 = vld [vmem:[%s8016_s20 + $0x38] sm:$0xff]  ;;  %v663_v63 = vld [vmem:[%s8016_s20 + $0x20] sm:$0xff]  ;;  %v664_v0 = vld [vmem:[%s8016_s20 + $0x28] sm:$0xff] }
  0x89   : > { %6633 = vmatmul.msk.f32.vlgmr.msra.gmra.mxu2 %vm675_vm0, %v8040_v56  ;;  %6637 = vmatmul.msk.f32.vlgmr.msra.gmra.mxu3 %vm675_vm0, %v8040_v56  ;;  %v8061_v1 = vld [vmem:[%s12129_s3 + $0x8] sm:$0xff]  ;;  %v8074_v2 = vld [vmem:[%s12129_s3 + $0x10] sm:$0xff]  ;;  %v6667_v3 = vld [vmem:[%s8016_s20 + $0xd0] sm:$0xff] }
  0x8a   : > { %876 = vmatpush.msrb.mxu2 %v673_v57  ;;  %905 = vmatpush.msrb.mxu3 %v674_v58  ;;  %v6668_v4 = vld [vmem:[%s8016_s20 + $0xd8] sm:$0xff]  ;;  %v8089_v5 = vld [vmem:[%s12129_s3 + $0x18] sm:$0xff]  ;;  %v6665_v6 = vld [vmem:[%s8016_s20 + $0xc0] sm:$0xff] }
  0x8b   : > { %818 = vmatpush.msrb.mxu0 %v671_v59  ;;  %847 = vmatpush.msrb.mxu1 %v672_v60  ;;  %v6666_v7 = vld [vmem:[%s8016_s20 + $0xc8] sm:$0xff]  ;;  %v6657_v8 = vld [vmem:[%s8016_s20 + $0x80] sm:$0xff]  ;;  %v6659_v10 = vld [vmem:[%s8016_s20 + $0x90] sm:$0xff] }
  0x8c   : > { %877 = vmatpush.msrb.mxu2 %v665_v61  ;;  %906 = vmatpush.msrb.mxu3 %v666_v62  ;;  %v6658_v9 = vld [vmem:[%s8016_s20 + $0x88] sm:$0xff]  ;;  %v6660_v11 = vld [vmem:[%s8016_s20 + $0x98] sm:$0xff]  ;;  %v6671_v12 = vld [vmem:[%s8016_s20 + $0xf0] sm:$0xff] }
  0x8d   : > { %819 = vmatpush.msrb.mxu0 %v663_v63  ;;  %848 = vmatpush.msrb.mxu1 %v664_v0  ;;  %v6672_v13 = vld [vmem:[%s8016_s20 + $0xf8] sm:$0xff]  ;;  %v6669_v14 = vld [vmem:[%s8016_s20 + $0xe0] sm:$0xff]  ;;  %v6670_v15 = vld [vmem:[%s8016_s20 + $0xe8] sm:$0xff] }
  0x8e   : > { %1009 = vmatpush.msra.mxu2 %v6667_v3  ;;  %1038 = vmatpush.msra.mxu3 %v6668_v4  ;;  %v6661_v16 = vld [vmem:[%s8016_s20 + $0xa0] sm:$0xff]  ;;  %v6662_v17 = vld [vmem:[%s8016_s20 + $0xa8] sm:$0xff]  ;;  %v6663_v18 = vld [vmem:[%s8016_s20 + $0xb0] sm:$0xff] }
  0x8f   : > { %951 = vmatpush.msra.mxu0 %v6665_v6  ;;  %980 = vmatpush.msra.mxu1 %v6666_v7  ;;  %v6664_v19 = vld [vmem:[%s8016_s20 + $0xb8] sm:$0xff]  ;;  %v6715_v20 = vld [vmem:[%s8016_s20 + $0x150] sm:$0xff]  ;;  %v6713_v22 = vld [vmem:[%s8016_s20 + $0x140] sm:$0xff] }
  0x90   : > { %6626 = vmatmul.msk.f32.gmra.mxu0 %vm675_vm0, %v8061_v1  ;;  %6630 = vmatmul.msk.f32.gmra.mxu1 %vm675_vm0, %v8061_v1  ;;  %v6716_v21 = vld [vmem:[%s8016_s20 + $0x158] sm:$0xff]  ;;  %v6714_v23 = vld [vmem:[%s8016_s20 + $0x148] sm:$0xff]  ;;  %v6707_v24 = vld [vmem:[%s8016_s20 + $0x110] sm:$0xff] }
  0x91   : > { %6634 = vmatmul.msk.f32.gmra.mxu2 %vm675_vm0, %v8061_v1  ;;  %6638 = vmatmul.msk.f32.gmra.mxu3 %vm675_vm0, %v8061_v1  ;;  %v6705_v25 = vld [vmem:[%s8016_s20 + $0x100] sm:$0xff]  ;;  %v6706_v26 = vld [vmem:[%s8016_s20 + $0x108] sm:$0xff]  ;;  %v6708_v27 = vld [vmem:[%s8016_s20 + $0x118] sm:$0xff] }
  0x92   : > { %1010 = vmatpush.msra.mxu2 %v6659_v10  ;;  %1039 = vmatpush.msra.mxu3 %v6660_v11  ;;  %v6719_v28 = vld [vmem:[%s8016_s20 + $0x170] sm:$0xff]  ;;  %v6720_v29 = vld [vmem:[%s8016_s20 + $0x178] sm:$0xff]  ;;  %v6717_v32 = vld [vmem:[%s8016_s20 + $0x160] sm:$0xff] }
  0x93   : > { %952 = vmatpush.msra.mxu0 %v6657_v8  ;;  %981 = vmatpush.msra.mxu1 %v6658_v9  ;;  %v6718_v33 = vld [vmem:[%s8016_s20 + $0x168] sm:$0xff]  ;;  %v6711_v34 = vld [vmem:[%s8016_s20 + $0x130] sm:$0xff]  ;;  %v6709_v35 = vld [vmem:[%s8016_s20 + $0x120] sm:$0xff] }
  0x94   : > { %v6710_v36 = vld [vmem:[%s8016_s20 + $0x128] sm:$0xff]  ;;  %v6712_v37 = vld [vmem:[%s8016_s20 + $0x138] sm:$0xff]  ;;  %s6441_s20 = scalar_lea.hbm %s12138_s12, %s6995_s21 }
  0x95   : > { %s6444_s17 = sshll.u32 %s6441_s20, 4  ;;  %s11619_s17 = int_to_ptr.hbm [resolvable:$true] %s6444_s17 }
  0x96   : > { %s7636_s18 = sshra.s32 %s11619_s17, 4  ;;  %s7637_s18 = int_to_ptr.hbm [resolvable:$true] %s7636_s18 }
  0x97   : > { %p7643_p13 = scmp.lt.s32.totalorder %s7637_s18, %s12138_s12 }
  0x98   : > { %6627 = vmatmul.msk.f32.gmra.mxu0 %vm675_vm0, %v8074_v2  ;;  %6631 = vmatmul.msk.f32.gmra.mxu1 %vm675_vm0, %v8074_v2 }
  0x99   : > { %6635 = vmatmul.msk.f32.gmra.mxu2 %vm675_vm0, %v8074_v2  ;;  %6639 = vmatmul.msk.f32.gmra.mxu3 %vm675_vm0, %v8074_v2 }
  0xa0   : > { %6628 = vmatmul.msk.f32.gmra.mxu0 %vm675_vm0, %v8089_v5  ;;  %6632 = vmatmul.msk.f32.gmra.mxu1 %vm675_vm0, %v8089_v5 }
  0xa1   : > { %6636 = vmatmul.msk.f32.gmra.mxu2 %vm675_vm0, %v8089_v5  ;;  %6640 = vmatmul.msk.f32.gmra.mxu3 %vm675_vm0, %v8089_v5 }
  0xa8   : > { %6641 = vmatmul.msk.f32.vlgmr.msrb.gmra.mxu0 %vm675_vm0, %v8040_v56  ;;  %6645 = vmatmul.msk.f32.vlgmr.msrb.gmra.mxu1 %vm675_vm0, %v8040_v56 }
  0xa9   : > { %6649 = vmatmul.msk.f32.vlgmr.msrb.gmra.mxu2 %vm675_vm0, %v8040_v56  ;;  %6653 = vmatmul.msk.f32.vlgmr.msrb.gmra.mxu3 %vm675_vm0, %v8040_v56 }
  0xaa   : > { %1125 = vmatpush.msrb.mxu2 %v6671_v12  ;;  %1154 = vmatpush.msrb.mxu3 %v6672_v13 }
  0xab   : > { %1067 = vmatpush.msrb.mxu0 %v6669_v14  ;;  %1096 = vmatpush.msrb.mxu1 %v6670_v15 }
  0xac   : > { %1126 = vmatpush.msrb.mxu2 %v6663_v18  ;;  %1155 = vmatpush.msrb.mxu3 %v6664_v19 }
  0xad   : > { %1068 = vmatpush.msrb.mxu0 %v6661_v16  ;;  %1097 = vmatpush.msrb.mxu1 %v6662_v17 }
  0xb0   : > { %6642 = vmatmul.msk.f32.gmra.mxu0 %vm675_vm0, %v8061_v1  ;;  %6646 = vmatmul.msk.f32.gmra.mxu1 %vm675_vm0, %v8061_v1 }
  0xb1   : > { %6650 = vmatmul.msk.f32.gmra.mxu2 %vm675_vm0, %v8061_v1  ;;  %6654 = vmatmul.msk.f32.gmra.mxu3 %vm675_vm0, %v8061_v1 }
  0xb8   : > { %6643 = vmatmul.msk.f32.gmra.mxu0 %vm675_vm0, %v8074_v2  ;;  %6647 = vmatmul.msk.f32.gmra.mxu1 %vm675_vm0, %v8074_v2 }
  0xb9   : > { %6651 = vmatmul.msk.f32.gmra.mxu2 %vm675_vm0, %v8074_v2  ;;  %6655 = vmatmul.msk.f32.gmra.mxu3 %vm675_vm0, %v8074_v2 }
  0xc0   : > { %6644 = vmatmul.msk.f32.gmra.mxu0 %vm675_vm0, %v8089_v5  ;;  %6648 = vmatmul.msk.f32.gmra.mxu1 %vm675_vm0, %v8089_v5 }
  0xc1   : > { %6652 = vmatmul.msk.f32.gmra.mxu2 %vm675_vm0, %v8089_v5  ;;  %6656 = vmatmul.msk.f32.gmra.mxu3 %vm675_vm0, %v8089_v5 }
  0xc8   : > { %6673 = vmatmul.msk.f32.vlgmr.msra.gmra.mxu0 %vm675_vm0, %v8040_v56  ;;  %6677 = vmatmul.msk.f32.vlgmr.msra.gmra.mxu1 %vm675_vm0, %v8040_v56 }
  0xc9   : > { %6681 = vmatmul.msk.f32.vlgmr.msra.gmra.mxu2 %vm675_vm0, %v8040_v56  ;;  %6685 = vmatmul.msk.f32.vlgmr.msra.gmra.mxu3 %vm675_vm0, %v8040_v56 }
  0xca   : > { %1258 = vmatpush.msra.mxu2 %v6715_v20  ;;  %1287 = vmatpush.msra.mxu3 %v6716_v21 }
  0xcb   : > { %1200 = vmatpush.msra.mxu0 %v6713_v22  ;;  %1229 = vmatpush.msra.mxu1 %v6714_v23 }
  0xcc   : > { %1259 = vmatpush.msra.mxu2 %v6707_v24  ;;  %1288 = vmatpush.msra.mxu3 %v6708_v27 }
  0xcd   : > { %1201 = vmatpush.msra.mxu0 %v6705_v25  ;;  %1230 = vmatpush.msra.mxu1 %v6706_v26 }
  0xd0   : > { %6674 = vmatmul.msk.f32.gmra.mxu0 %vm675_vm0, %v8061_v1  ;;  %6678 = vmatmul.msk.f32.gmra.mxu1 %vm675_vm0, %v8061_v1 }
  0xd1   : > { %6682 = vmatmul.msk.f32.gmra.mxu2 %vm675_vm0, %v8061_v1  ;;  %6686 = vmatmul.msk.f32.gmra.mxu3 %vm675_vm0, %v8061_v1 }
  0xd8   : > { %6675 = vmatmul.msk.f32.gmra.mxu0 %vm675_vm0, %v8074_v2  ;;  %6679 = vmatmul.msk.f32.gmra.mxu1 %vm675_vm0, %v8074_v2 }
  0xd9   : > { %6683 = vmatmul.msk.f32.gmra.mxu2 %vm675_vm0, %v8074_v2  ;;  %6687 = vmatmul.msk.f32.gmra.mxu3 %vm675_vm0, %v8074_v2 }
  0xe0   : > { %6676 = vmatmul.msk.f32.gmra.mxu0 %vm675_vm0, %v8089_v5  ;;  %6680 = vmatmul.msk.f32.gmra.mxu1 %vm675_vm0, %v8089_v5 }
  0xe1   : > { %6684 = vmatmul.msk.f32.gmra.mxu2 %vm675_vm0, %v8089_v5  ;;  %6688 = vmatmul.msk.f32.gmra.mxu3 %vm675_vm0, %v8089_v5 }
  0xe8   : > { %6689 = vmatmul.msk.f32.vlgmr.msrb.gmra.mxu0 %vm675_vm0, %v8040_v56  ;;  %6693 = vmatmul.msk.f32.vlgmr.msrb.gmra.mxu1 %vm675_vm0, %v8040_v56 }
  0xe9   : > { %6697 = vmatmul.msk.f32.vlgmr.msrb.gmra.mxu2 %vm675_vm0, %v8040_v56  ;;  %6701 = vmatmul.msk.f32.vlgmr.msrb.gmra.mxu3 %vm675_vm0, %v8040_v56 }
  0xea   : > { %1374 = vmatpush.msrb.mxu2 %v6719_v28  ;;  %1403 = vmatpush.msrb.mxu3 %v6720_v29 }
  0xeb   : > { %1316 = vmatpush.msrb.mxu0 %v6717_v32  ;;  %1345 = vmatpush.msrb.mxu1 %v6718_v33 }
  0xec   : > { %1375 = vmatpush.msrb.mxu2 %v6711_v34  ;;  %1404 = vmatpush.msrb.mxu3 %v6712_v37 }
  0xed   : > { %1317 = vmatpush.msrb.mxu0 %v6709_v35  ;;  %1346 = vmatpush.msrb.mxu1 %v6710_v36 }
  0xf0   : > { %6690 = vmatmul.msk.f32.gmra.mxu0 %vm675_vm0, %v8061_v1  ;;  %6694 = vmatmul.msk.f32.gmra.mxu1 %vm675_vm0, %v8061_v1 }
  0xf1   : > { %6698 = vmatmul.msk.f32.gmra.mxu2 %vm675_vm0, %v8061_v1  ;;  %6702 = vmatmul.msk.f32.gmra.mxu3 %vm675_vm0, %v8061_v1 }
  0xf8   : > { %6691 = vmatmul.msk.f32.gmra.mxu0 %vm675_vm0, %v8074_v2  ;;  %6695 = vmatmul.msk.f32.gmra.mxu1 %vm675_vm0, %v8074_v2 }
  0xf9   : > { %6699 = vmatmul.msk.f32.gmra.mxu2 %vm675_vm0, %v8074_v2  ;;  %6703 = vmatmul.msk.f32.gmra.mxu3 %vm675_vm0, %v8074_v2 }
 0x100   : > { %6692 = vmatmul.msk.f32.gmra.mxu0 %vm675_vm0, %v8089_v5  ;;  %6696 = vmatmul.msk.f32.gmra.mxu1 %vm675_vm0, %v8089_v5 }
 0x101   : > { %6700 = vmatmul.msk.f32.gmra.mxu2 %vm675_vm0, %v8089_v5  ;;  %6704 = vmatmul.msk.f32.gmra.mxu3 %vm675_vm0, %v8089_v5 }
 0x105   : > { %v8219_v30 = vpop.f32.mrf.mxu0  ;;  %v8221_v31 = vpop.f32.mrf.mxu1 }
 0x108   : > { %6721 = vmatmul.msk.f32.vlgmr.msra.gmra.mxu0 %vm675_vm0, %v8040_v56  ;;  %6725 = vmatmul.msk.f32.vlgmr.msra.gmra.mxu1 %vm675_vm0, %v8040_v56 }
 0x109   : > { %6729 = vmatmul.msk.f32.vlgmr.msra.gmra.mxu2 %vm675_vm0, %v8040_v56  ;;  %6733 = vmatmul.msk.f32.vlgmr.msra.gmra.mxu3 %vm675_vm0, %v8040_v56 }
 0x10c   : > { %v8237_v38 = vpop.f32.mrf.mxu2  ;;  %v8239_v39 = vpop.f32.mrf.mxu3 }
 0x10d   : > { %v8241_v40 = vpop.f32.mrf.mxu0  ;;  %v8243_v41 = vpop.f32.mrf.mxu1 }
 0x110   : > { %6722 = vmatmul.msk.f32.gmra.mxu0 %vm675_vm0, %v8061_v1  ;;  %6726 = vmatmul.msk.f32.gmra.mxu1 %vm675_vm0, %v8061_v1 }
 0x111   : > { %6730 = vmatmul.msk.f32.gmra.mxu2 %vm675_vm0, %v8061_v1  ;;  %6734 = vmatmul.msk.f32.gmra.mxu3 %vm675_vm0, %v8061_v1 }
 0x114   : > { %v8253_v42 = vpop.f32.mrf.mxu2  ;;  %v8255_v43 = vpop.f32.mrf.mxu3 }
 0x115   : > { %v8257_v44 = vpop.f32.mrf.mxu0  ;;  %v8259_v45 = vpop.f32.mrf.mxu1 }
 0x118   : > { %6723 = vmatmul.msk.f32.gmra.mxu0 %vm675_vm0, %v8074_v2  ;;  %6727 = vmatmul.msk.f32.gmra.mxu1 %vm675_vm0, %v8074_v2 }
 0x119   : > { %6731 = vmatmul.msk.f32.gmra.mxu2 %vm675_vm0, %v8074_v2  ;;  %6735 = vmatmul.msk.f32.gmra.mxu3 %vm675_vm0, %v8074_v2 }
 0x11c   : > { %v8269_v46 = vpop.f32.mrf.mxu2  ;;  %v8271_v47 = vpop.f32.mrf.mxu3 }
 0x11d   : > { %v8273_v48 = vpop.f32.mrf.mxu0  ;;  %v8275_v49 = vpop.f32.mrf.mxu1 }
 0x120   : > { %6724 = vmatmul.msk.f32.gmra.mxu0 %vm675_vm0, %v8089_v5  ;;  %6728 = vmatmul.msk.f32.gmra.mxu1 %vm675_vm0, %v8089_v5 }
 0x121   : > { %6732 = vmatmul.msk.f32.gmra.mxu2 %vm675_vm0, %v8089_v5  ;;  %6736 = vmatmul.msk.f32.gmra.mxu3 %vm675_vm0, %v8089_v5 }
 0x124   : > { %v8285_v50 = vpop.f32.mrf.mxu2  ;;  %v8287_v51 = vpop.f32.mrf.mxu3 }
 0x125   : > { %v8289_v52 = vpop.f32.mrf.mxu0  ;;  %v8291_v53 = vpop.f32.mrf.mxu1 }
 0x128   : > { %6737 = vmatmul.msk.f32.vlgmr.msrb.gmra.mxu0 %vm675_vm0, %v8040_v56  ;;  %6741 = vmatmul.msk.f32.vlgmr.msrb.gmra.mxu1 %vm675_vm0, %v8040_v56 }
 0x129   : > { %6745 = vmatmul.msk.f32.vlgmr.msrb.gmra.mxu2 %vm675_vm0, %v8040_v56  ;;  %6749 = vmatmul.msk.f32.vlgmr.msrb.gmra.mxu3 %vm675_vm0, %v8040_v56 }
 0x12c   : > { %v8301_v54 = vpop.f32.mrf.mxu2  ;;  %v8303_v55 = vpop.f32.mrf.mxu3 }
 0x12d   : > { %v8305_v57 = vpop.f32.mrf.mxu0  ;;  %v8307_v58 = vpop.f32.mrf.mxu1 }
 0x130   : > { %6738 = vmatmul.msk.f32.gmra.mxu0 %vm675_vm0, %v8061_v1  ;;  %6742 = vmatmul.msk.f32.gmra.mxu1 %vm675_vm0, %v8061_v1 }
 0x131   : > { %6746 = vmatmul.msk.f32.gmra.mxu2 %vm675_vm0, %v8061_v1  ;;  %6750 = vmatmul.msk.f32.gmra.mxu3 %vm675_vm0, %v8061_v1 }
 0x134   : > { %v8317_v56 = vpop.f32.mrf.mxu2  ;;  %v8319_v59 = vpop.f32.mrf.mxu3 }
 0x135   : > { %v8321_v60 = vpop.f32.mrf.mxu0  ;;  %v8323_v61 = vpop.f32.mrf.mxu1 }
 0x136   : > { %12191 = vst [vmem:[#allocation24_spill] sm:$0xff] %v8321_v60 }
 0x137   : > { %12192 = vst [vmem:[#allocation25_spill] sm:$0xff] %v8323_v61 }
 0x138   : > { %6739 = vmatmul.msk.f32.gmra.mxu0 %vm675_vm0, %v8074_v2  ;;  %6743 = vmatmul.msk.f32.gmra.mxu1 %vm675_vm0, %v8074_v2 }
 0x139   : > { %6747 = vmatmul.msk.f32.gmra.mxu2 %vm675_vm0, %v8074_v2  ;;  %6751 = vmatmul.msk.f32.gmra.mxu3 %vm675_vm0, %v8074_v2 }
 0x13c   : > { %v8333_v62 = vpop.f32.mrf.mxu2  ;;  %v8335_v63 = vpop.f32.mrf.mxu3 }
 0x13d   : > { %12193 = vst [vmem:[#allocation26_spill] sm:$0xff] %v8333_v62  ;;  %v8337_v0 = vpop.f32.mrf.mxu0  ;;  %v8339_v1 = vpop.f32.mrf.mxu1 }
 0x13e   : > { %12194 = vst [vmem:[#allocation27_spill] sm:$0xff] %v8335_v63 }
 0x140   : > { %6740 = vmatmul.msk.f32.gmra.mxu0 %vm675_vm0, %v8089_v5  ;;  %6744 = vmatmul.msk.f32.gmra.mxu1 %vm675_vm0, %v8089_v5 }
 0x141   : > { %6748 = vmatmul.msk.f32.gmra.mxu2 %vm675_vm0, %v8089_v5  ;;  %6752 = vmatmul.msk.f32.gmra.mxu3 %vm675_vm0, %v8089_v5 }
 0x144   : > { %v8349_v2 = vpop.f32.mrf.mxu2  ;;  %v8351_v3 = vpop.f32.mrf.mxu3 }
 0x145   : > { %12195 = vst [vmem:[#allocation28_spill] sm:$0xff] %v8349_v2  ;;  %v954_v4 = vpop.f32.mrf.mxu0  ;;  %v983_v6 = vpop.f32.mrf.mxu1 }
 0x146   : > { %12196 = vst [vmem:[#allocation29_spill] sm:$0xff] %v8351_v3  ;;  %v1434_v36 = vmul.f32 %v954_v4, %v954_v4  ;;  %v1435_v37 = vmul.f32 %v983_v6, %v983_v6 }
 0x14c   : > { %v1012_v7 = vpop.f32.mrf.mxu2  ;;  %v1041_v8 = vpop.f32.mrf.mxu3 }
 0x14d   : > { %v957_v9 = vpop.f32.mrf.mxu0  ;;  %v986_v10 = vpop.f32.mrf.mxu1 }
 0x154   : > { %v1015_v11 = vpop.f32.mrf.mxu2  ;;  %v8353_v12 = vpop.f32.mrf.mxu3 }
 0x155   : > { %v8355_v13 = vpop.f32.mrf.mxu0  ;;  %v8357_v14 = vpop.f32.mrf.mxu1 }
 0x156   : > { %12197 = vst [vmem:[#allocation30_spill] sm:$0xff] %v8355_v13 }
 0x157   : > { %12198 = vst [vmem:[#allocation31_spill] sm:$0xff] %v8357_v14 }
 0x15c   : > { %v8359_v15 = vpop.f32.mrf.mxu2  ;;  %v8361_v5 = vpop.f32.mrf.mxu3 }
 0x15d   : > { %12199 = vst [vmem:[#allocation32_spill] sm:$0xff] %v8359_v15  ;;  %v8363_v16 = vpop.f32.mrf.mxu0  ;;  %v8365_v17 = vpop.f32.mrf.mxu1  ;;  %v1419_v15 = vmul.f32 %v8221_v31, %v8221_v31  ;;  %v1421_v31 = vmul.f32 %v8239_v39, %v8239_v39 }
 0x15e   : > { %12200 = vst [vmem:[#allocation33_spill] sm:$0xff] %v8361_v5  ;;  %v1418_v5 = vmul.f32 %v8219_v30, %v8219_v30  ;;  %v1420_v30 = vmul.f32 %v8237_v38, %v8237_v38  ;;  %v1429_v38 = vmul.f32 %v8255_v43, %v8255_v43  ;;  %v1422_v43 = vmul.f32 %v8289_v52, %v8289_v52 }
 0x15f   : > { %v1431_v52 = vmul.f32 %v8307_v58, %v8307_v58 }
 0x164   : > { %v8367_v18 = vpop.f32.mrf.mxu2  ;;  %v8369_v19 = vpop.f32.mrf.mxu3 }
 0x165   : > { %12201 = vst [vmem:[#allocation34_spill] sm:$0xff] %v8367_v18  ;;  %v8371_v20 = vpop.f32.mrf.mxu0  ;;  %v8373_v21 = vpop.f32.mrf.mxu1  ;;  %v1450_v18 = vadd.f32 %v1434_v36, %v1418_v5 }
 0x166   : > { %12202 = vst [vmem:[#allocation35_spill] sm:$0xff] %v8369_v19  ;;  %v1438_v58 = vmul.f32 %v8371_v20, %v8371_v20 }
 0x16c   : > { %v8375_v22 = vpop.f32.mrf.mxu2  ;;  %v8377_v23 = vpop.f32.mrf.mxu3 }
 0x16d   : > { %v8379_v24 = vpop.f32.mrf.mxu0  ;;  %v8381_v25 = vpop.f32.mrf.mxu1 }
 0x16e   : > { %v1446_v20 = vmul.f32 %v8379_v24, %v8379_v24 }
 0x174   : > { %v8383_v26 = vpop.f32.mrf.mxu2  ;;  %v8385_v27 = vpop.f32.mrf.mxu3 }
 0x175   : > { %v8387_v28 = vpop.f32.mrf.mxu0  ;;  %v8389_v29 = vpop.f32.mrf.mxu1 }
 0x176   : > { %12203 = vst [vmem:[#allocation36_spill] sm:$0xff] %v8387_v28  ;;  %v1442_v28 = vmul.f32 %v957_v9, %v957_v9 }
 0x177   : > { %12204 = vst [vmem:[#allocation37_spill] sm:$0xff] %v8389_v29  ;;  %v1436_v29 = vmul.f32 %v1012_v7, %v1012_v7  ;;  %v1427_v7 = vmul.f32 %v8243_v41, %v8243_v41 }
 0x17c   : > { %v8391_v32 = vpop.f32.mrf.mxu2  ;;  %v8393_v33 = vpop.f32.mrf.mxu3 }
 0x17d   : > { %12205 = vst [vmem:[#allocation38_spill] sm:$0xff] %v8391_v32  ;;  %v8395_v34 = vpop.f32.mrf.mxu0  ;;  %v8397_v35 = vpop.f32.mrf.mxu1 }
 0x17e   : > { %12206 = vst [vmem:[#allocation39_spill] sm:$0xff] %v8393_v33  ;;  %v1451_v33 = vadd.f32 %v1435_v37, %v1419_v15  ;;  %v1424_v37 = vmul.f32 %v8301_v54, %v8301_v54 }
 0x17f   : > { %12207 = vst [vmem:[#allocation40_spill] sm:$0xff] %v8395_v34 }
 0x180   : > { %12208 = vst [vmem:[#allocation41_spill] sm:$0xff] %v8397_v35  ;;  %v1437_v35 = vmul.f32 %v1041_v8, %v1041_v8 }
 0x182   : > { %v1453_v8 = vadd.f32 %v1437_v35, %v1421_v31 }
 0x184   : > { %v8403_v63 = vpop.f32.mrf.mxu2  ;;  %v8405_v19 = vpop.f32.mrf.mxu3 }
 0x185   : > { %12209 = vst [vmem:[#allocation42_spill] sm:$0xff] %v8403_v63  ;;  %v1203_v62 = vpop.f32.mrf.mxu0  ;;  %v1232_v32 = vpop.f32.mrf.mxu1  ;;  %v1443_v63 = vmul.f32 %v986_v10, %v986_v10 }
 0x186   : > { %12210 = vst [vmem:[#allocation43_spill] sm:$0xff] %v8405_v19  ;;  %v1466_v3 = vmul.f32 %v1203_v62, %v1203_v62  ;;  %v1467_v2 = vmul.f32 %v1232_v32, %v1232_v32  ;;  %v1426_v62 = vmul.f32 %v8241_v40, %v8241_v40  ;;  %v1444_v32 = vmul.f32 %v1015_v11, %v1015_v11 }
 0x187   : > { %v1459_v41 = vadd.f32 %v1443_v63, %v1427_v7  ;;  %v1425_v63 = vmul.f32 %v8303_v55, %v8303_v55  ;;  %v1430_v11 = vmul.f32 %v8305_v57, %v8305_v57 }
 0x188   : > { %v1482_v4 = vadd.f32 %v1466_v3, %v1450_v18  ;;  %v1483_v6 = vadd.f32 %v1467_v2, %v1451_v33  ;;  %v1428_v2 = vmul.f32 %v8253_v42, %v8253_v42  ;;  %v1452_v3 = vadd.f32 %v1436_v29, %v1420_v30 }
 0x189   : > { %v1458_v10 = vadd.f32 %v1442_v28, %v1426_v62  ;;  %v1445_v29 = vmul.f32 %v8353_v12, %v8353_v12  ;;  %v1423_v28 = vmul.f32 %v8291_v53, %v8291_v53  ;;  %v8443_v53 = vmul.f32 %v8317_v56, %v8317_v56 }
 0x18a   : > { %v8411_v34 = vadd.f32 1e-08, %v1482_v4  ;;  %v8413_v19 = vadd.f32 1e-08, %v1483_v6  ;;  %v1460_v31 = vadd.f32 %v1444_v32, %v1428_v2  ;;  %v1439_v56 = vmul.f32 %v8373_v21, %v8373_v21 }
 0x18b   : > { %v1461_v55 = vadd.f32 %v1445_v29, %v1429_v38  ;;  %v1440_v2 = vmul.f32 %v8375_v22, %v8375_v22  ;;  %v1441_v38 = vmul.f32 %v8377_v23, %v8377_v23  ;;  %v1447_v21 = vmul.f32 %v8381_v25, %v8381_v25 }
 0x18c   : > { %v1261_v39 = vpop.f32.mrf.mxu2  ;;  %v1290_v9 = vpop.f32.mrf.mxu3  ;;  %7079 = vrsqrt.f32 %v8411_v34  ;;  %v8474_v23 = vmul.f32 %v8319_v59, %v8319_v59  ;;  %v8477_v32 = vadd.f32 %v1438_v58, %v1422_v43  ;;  %vm1521_vm1 = vcmp.eq.f32.partialorder %v8411_v34, inf }
 0x18d   : > { %v1468_v15 = vmul.f32 %v1261_v39, %v1261_v39  ;;  %v1469_v5 = vmul.f32 %v1290_v9, %v1290_v9  ;;  %v1206_v18 = vpop.f32.mrf.mxu0  ;;  %v1235_v40 = vpop.f32.mrf.mxu1  ;;  %7081 = vrsqrt.f32 %v8413_v19  ;;  %v8483_v25 = vadd.f32 %v1440_v2, %v1424_v37 }
 0x18e   : > { %v1474_v33 = vmul.f32 %v1206_v18, %v1206_v18  ;;  %v1475_v42 = vmul.f32 %v1235_v40, %v1235_v40  ;;  %vm1533_vm3 = vcmp.eq.f32.partialorder %v8413_v19, inf  ;;  %vm1523_vm7 = vcmp.eq.f32.partialorder %v8411_v34, 0.0 }
 0x18f   : > { %v1484_v35 = vadd.f32 %v1468_v15, %v1452_v3  ;;  %v1485_v36 = vadd.f32 %v1469_v5, %v1453_v8  ;;  %vm1535_vm8 = vcmp.eq.f32.partialorder %v8413_v19, 0.0 }
 0x190   : > { %v1490_v4 = vadd.f32 %v1474_v33, %v1458_v10  ;;  %v1491_v6 = vadd.f32 %v1475_v42, %v1459_v41  ;;  %v8479_v33 = vadd.f32 %v1439_v56, %v1423_v28 }
 0x191   : > { %v8439_v12 = vadd.f32 1e-08, %v1484_v35  ;;  %v8449_v3 = vadd.f32 1e-08, %v1485_v36  ;;  %v8485_v35 = vadd.f32 %v1441_v38, %v1425_v63 }
 0x192   : > { %v7080_v30 = vpop.eup %7079  ;;  %v8445_v54 = vadd.f32 1e-08, %v1490_v4  ;;  %v8447_v62 = vadd.f32 1e-08, %v1491_v6  ;;  %v8491_v6 = vadd.f32 %v1446_v20, %v1430_v11  ;;  %v8505_v11 = vmul.f32 %v8385_v27, %v8385_v27 }
 0x193   : > { %v7082_v7 = vpop.eup %7081  ;;  %v1515_v57 = vmul.f32 %v7080_v30, %v8411_v34  ;;  %7083 = vrsqrt.f32 %v8439_v12  ;;  %vm1545_vm9 = vcmp.eq.f32.partialorder %v8439_v12, inf  ;;  %vm1557_vm10 = vcmp.eq.f32.partialorder %v8449_v3, inf }
 0x194   : > { %v1264_v8 = vpop.f32.mrf.mxu2  ;;  %v1293_v39 = vpop.f32.mrf.mxu3  ;;  %7085 = vrsqrt.f32 %v8445_v54  ;;  %v1527_v18 = vmul.f32 %v7082_v7, %v8413_v19  ;;  %vm1617_vm2 = vcmp.eq.f32.partialorder %v8445_v54, inf  ;;  %vm1619_vm4 = vcmp.eq.f32.partialorder %v8445_v54, 0.0 }
 0x195   : > { %v1476_v9 = vmul.f32 %v1264_v8, %v1264_v8  ;;  %v1477_v10 = vmul.f32 %v1293_v39, %v1293_v39  ;;  %v8462_v15 = vpop.f32.mrf.mxu0  ;;  %v8464_v5 = vpop.f32.mrf.mxu1  ;;  %7087 = vrsqrt.f32 %v8447_v62  ;;  %v1516_v22 = vmul.f32 %v7080_v30, %v1515_v57 }
 0x196   : > { %12211 = vst [vmem:[#allocation44_spill] sm:$0xff] %v8462_v15  ;;  %7089 = vrsqrt.f32 %v8449_v3  ;;  %v1528_v24 = vmul.f32 %v7082_v7, %v1527_v18  ;;  %v8497_v57 = vmul.f32 %v8383_v26, %v8383_v26  ;;  %vm1629_vm5 = vcmp.eq.f32.partialorder %v8447_v62, inf }
 0x197   : > { %12212 = vst [vmem:[#allocation45_spill] sm:$0xff] %v8464_v5  ;;  %v1492_v40 = vadd.f32 %v1476_v9, %v1460_v31  ;;  %v1493_v41 = vadd.f32 %v1477_v10, %v1461_v55  ;;  %v1517_v42 = vmul.f32 0.5, %v1516_v22  ;;  %v8493_v31 = vadd.f32 %v1447_v21, %v1431_v52  ;;  %v1743_v22 = vld [vmem:[%s12131_s5 + $0x8] sm:$0xff] }
 0x198   : > { %v1529_v28 = vmul.f32 0.5, %v1528_v24  ;;  %vm1631_vm6 = vcmp.eq.f32.partialorder %v8447_v62, 0.0  ;;  %vm1547_vm12 = vcmp.eq.f32.partialorder %v8439_v12, 0.0 }
 0x199   : > { %v8481_v29 = vpop.eup %7083  ;;  %v8487_v36 = vadd.f32 1e-08, %v1492_v40  ;;  %v8489_v59 = vadd.f32 1e-08, %v1493_v41  ;;  %v1518_v43 = vsub.f32 1.5, %v1517_v42  ;;  %v1620_v41 = vand.u32 2147483648, %v8445_v54 }
 0x19a   : > { %v7086_v4 = vpop.eup %7085  ;;  %v1539_v63 = vmul.f32 %v8481_v29, %v8439_v12  ;;  %v1530_v26 = vsub.f32 1.5, %v1529_v28 }
 0x19b   : > { %v7088_v55 = vpop.eup %7087  ;;  %v1611_v37 = vmul.f32 %v7086_v4, %v8445_v54  ;;  %7091 = vrsqrt.f32 %v8487_v36  ;;  %v1519_v9 = vmul.f32 %v7080_v30, %v1518_v43  ;;  %vm1641_vm11 = vcmp.eq.f32.partialorder %v8487_v36, inf }
 0x19c   : > { %v8507_v52 = vpop.f32.mrf.mxu2  ;;  %v8509_v58 = vpop.f32.mrf.mxu3  ;;  %v1623_v56 = vmul.f32 %v7088_v55, %v8447_v62  ;;  %7093 = vrsqrt.f32 %v8489_v59  ;;  %v1531_v20 = vmul.f32 %v7082_v7, %v1530_v26  ;;  %v1540_v30 = vmul.f32 %v8481_v29, %v1539_v63 }
 0x19d   : > { %12213 = vst [vmem:[#allocation46_spill] sm:$0xff] %v8507_v52  ;;  %v8513_v2 = vpop.eup %7089  ;;  %v8515_v8 = vpop.f32.mrf.mxu0  ;;  %v1612_v38 = vmul.f32 %v7086_v4, %v1611_v37  ;;  %v7733_v7 = vmov 0   ;;  %v1520_v28 = vmul.f32 %v1519_v9, %v8411_v34  ;;  %v1632_v26 = vand.u32 2147483648, %v8447_v62 }
 0x19e   : > { %12214 = vst [vmem:[#allocation47_spill] sm:$0xff] %v8509_v58  ;;  %v8517_v39 = vpop.f32.mrf.mxu1  ;;  %v1624_v10 = vmul.f32 %v7088_v55, %v1623_v56  ;;  %v1551_v40 = vmul.f32 %v8513_v2, %v8449_v3  ;;  %7077 = vset.pattern.permute.xlu1 %v7733_v7  ;;  %7076 = vset.pattern.permute.xlu0 %v7733_v7  ;;  %v1541_v37 = vmul.f32 0.5, %v1540_v30  ;;  %v1560_v52 = vand.u32 2147483648, %v8449_v3 }
 0x19f   : > { %12215 = vst [vmem:[#allocation48_spill] sm:$0xff] %v8515_v8  ;;  %v1613_v18 = vmul.f32 0.5, %v1612_v38  ;;  %1753 = vperm.xlu1 %7077, %v1743_v22   ;;  %7078 = vset.pattern.permute.xlu2 %v7733_v7  ;;  %v1532_v9 = vmul.f32 %v1531_v20, %v8413_v19  ;;  %vm1643_vm13 = vcmp.eq.f32.partialorder %v8487_v36, 0.0  ;;  %vm1653_vm14 = vcmp.eq.f32.partialorder %v8489_v59, inf }
 0x1a0   : > { %12216 = vst [vmem:[#allocation49_spill] sm:$0xff] %v8517_v39  ;;  %v1625_v42 = vmul.f32 0.5, %v1624_v10  ;;  %v1552_v63 = vmul.f32 %v8513_v2, %v1551_v40  ;;  %v1542_v27 = vsub.f32 1.5, %v1541_v37  ;;  %vm1655_vm15 = vcmp.eq.f32.partialorder %v8489_v59, 0.0 }
 0x1a1   : > { %v7092_v24 = vpop.eup %7091  ;;  %v1614_v43 = vsub.f32 1.5, %v1613_v18 }
 0x1a2   : > { %v1626_v56 = vsub.f32 1.5, %v1625_v42  ;;  %v1635_v38 = vmul.f32 %v7092_v24, %v8487_v36  ;;  %v8541_v21 = vpop.eup %7093  ;;  %v1553_v30 = vmul.f32 0.5, %v1552_v63  ;;  %v1543_v20 = vmul.f32 %v8481_v29, %v1542_v27 }
 0x1a3   : > { %v1615_v18 = vmul.f32 %v7086_v4, %v1614_v43  ;;  %v1647_v7 = vmul.f32 %v8541_v21, %v8489_v59  ;;  %v1522_v4 = vsel %vm1521_vm1, %v8411_v34, %v1520_v28  ;;  %v1534_v29 = vsel %vm1533_vm3, %v8413_v19, %v1532_v9 }
 0x1a4   : > { %v8544_v58 = vpop.f32.mrf.mxu2  ;;  %v8546_v22 = vpop.f32.mrf.mxu3  ;;  %v1627_v40 = vmul.f32 %v7088_v55, %v1626_v56  ;;  %v1636_v42 = vmul.f32 %v7092_v24, %v1635_v38  ;;  %v1554_v43 = vsub.f32 1.5, %v1553_v30  ;;  %v1742_v38 = vld [vmem:[%s12131_s5] sm:$0xff]  ;;  %vm1559_vm1 = vcmp.eq.f32.partialorder %v8449_v3, 0.0 }
 0x1a5   : > { %12217 = vst [vmem:[#allocation50_spill] sm:$0xff] %v8544_v58  ;;  %v1319_v5 = vpop.f32.mrf.mxu0  ;;  %v1616_v15 = vmul.f32 %v1615_v18, %v8445_v54  ;;  %v1648_v27 = vmul.f32 %v8541_v21, %v1647_v7  ;;  %v1731_v7 = vld [vmem:[%s8011_s26 + $0xc8] sm:$0xff] }
 0x1a6   : > { %12218 = vst [vmem:[#allocation51_spill] sm:$0xff] %v8546_v22  ;;  %v1348_v10 = vpop.f32.mrf.mxu1  ;;  %v1470_v55 = vmul.f32 %v1319_v5, %v1319_v5  ;;  %v1628_v63 = vmul.f32 %v1627_v40, %v8447_v62  ;;  %v1637_v56 = vmul.f32 0.5, %v1636_v42  ;;  %v1555_v5 = vmul.f32 %v8513_v2, %v1554_v43  ;;  %v1730_v40 = vld [vmem:[%s8011_s26 + $0xc0] sm:$0xff] }
 0x1a7   : > { %v1471_v37 = vmul.f32 %v1348_v10, %v1348_v10  ;;  %v1618_v18 = vsel %vm1617_vm2, %v8445_v54, %v1616_v15  ;;  %1748 = vperm.xlu1 %7077, %v1742_v38   ;;  %vm12160_vm2 = vcmask 392192  }
 0x1a8   : > { %v1486_v28 = vadd.f32 %v1470_v55, %v8477_v32  ;;  %v1621_v30 = vsel %vm1619_vm4, %v1620_v41, %v1618_v18  ;;  %v1630_v15 = vsel %vm1629_vm5, %v8447_v62, %v1628_v63  ;;  %v1638_v2 = vsub.f32 1.5, %v1637_v56  ;;  %v1722_v56 = vld [vmem:[%s8011_s26 + $0x80] sm:$0xff] }
 0x1a9   : > { %v1487_v10 = vadd.f32 %v1471_v37, %v8479_v33  ;;  %1789 = vmatpush.msra.mxu0 %v1621_v30  ;;  %v1633_v9 = vsel %vm1631_vm6, %v1632_v26, %v1630_v15  ;;  %v1649_v32 = vmul.f32 0.5, %v1648_v27  ;;  %v12219_v33 = vand.u32 2147483648, %v8411_v34 }
 0x1aa   : > { %v8581_v54 = vadd.f32 1e-08, %v1486_v28  ;;  %1818 = vmatpush.msra.mxu1 %v1633_v9  ;;  %v1544_v62 = vmul.f32 %v1543_v20, %v8439_v12  ;;  %v12220_v26 = vand.u32 2147483648, %v8413_v19  ;;  %v1639_v43 = vmul.f32 %v7092_v24, %v1638_v2  ;;  %v1714_v9 = vld [vmem:[%s8011_s26 + $0x40] sm:$0xff]  ;;  %v1745_v2 = vld [vmem:[%s12131_s5 + $0x18] sm:$0xff] }
 0x1ab   : > { %v1525_v41 = vsel %vm1523_vm7, %v12219_v33, %v1522_v4  ;;  %v1644_v55 = vand.u32 2147483648, %v8487_v36  ;;  %v1650_v37 = vsub.f32 1.5, %v1649_v32  ;;  %v8596_v63 = vadd.f32 1e-08, %v1487_v10  ;;  %1763 = vperm.xlu0 %7076, %v1745_v2   ;;  %v1708_v2 = vld [vmem:[%s8011_s26 + $0x10] sm:$0xff] }
 0x1ac   : > { %1790 = vmatpush.msra.mxu0 %v1525_v41  ;;  %v1537_v42 = vsel %vm1535_vm8, %v12220_v26, %v1534_v29  ;;  %v1377_v34 = vpop.f32.mrf.mxu2  ;;  %v1406_v4 = vpop.f32.mrf.mxu3  ;;  %v1556_v20 = vmul.f32 %v1555_v5, %v8449_v3  ;;  %7095 = vrsqrt.f32 %v8581_v54  ;;  %v1723_v29 = vld [vmem:[%s8011_s26 + $0x88] sm:$0xff]  ;;  %v1640_v27 = vmul.f32 %v1639_v43, %v8487_v36 }
 0x1ad   : > { %1819 = vmatpush.msra.mxu1 %v1537_v42  ;;  %v1472_v19 = vmul.f32 %v1377_v34, %v1377_v34  ;;  %v1473_v38 = vmul.f32 %v1406_v4, %v1406_v4  ;;  %v1322_v24 = vpop.f32.mrf.mxu0  ;;  %v1651_v28 = vmul.f32 %v8541_v21, %v1650_v37  ;;  %v1656_v15 = vand.u32 2147483648, %v8489_v59  ;;  %v1732_v4 = vld [vmem:[%s8011_s26 + $0xd0] sm:$0xff] }
 0x1ae   : > { %v1351_v18 = vpop.f32.mrf.mxu1  ;;  %1791 = vmatpush.msra.mxu0 %v1730_v40  ;;  %v1478_v10 = vmul.f32 %v1322_v24, %v1322_v24  ;;  %v1546_v5 = vsel %vm1545_vm9, %v8439_v12, %v1544_v62  ;;  %v1642_v21 = vsel %vm1641_vm11, %v8487_v36, %v1640_v27  ;;  %v1715_v40 = vld [vmem:[%s8011_s26 + $0x48] sm:$0xff]  ;;  %7097 = vrsqrt.f32 %v8596_v63  ;;  %v1706_v36 = vld [vmem:[%s8011_s26] sm:$0xff]  ;;  %v1724_v27 = vld [vmem:[%s8011_s26 + $0x90] sm:$0xff] }
 0x1af   : > { %v1479_v30 = vmul.f32 %v1351_v18, %v1351_v18  ;;  %1820 = vmatpush.msra.mxu1 %v1731_v7  ;;  %v1488_v32 = vadd.f32 %v1472_v19, %v8483_v25  ;;  %v1489_v33 = vadd.f32 %v1473_v38, %v8485_v35  ;;  %v1652_v41 = vmul.f32 %v1651_v28, %v8489_v59 }
 0x1b0   : > { %1792 = vmatpush.msra.mxu0 %v1722_v56  ;;  %v1494_v62 = vadd.f32 %v1478_v10, %v8491_v6  ;;  %v1645_v25 = vsel %vm1643_vm13, %v1644_v55, %v1642_v21  ;;  %v1558_v6 = vsel %vm1557_vm10, %v8449_v3, %v1556_v20  ;;  %v12221_v34 = vand.u32 2147483648, %v8439_v12  ;;  %v8648_v56 = vld [vmem:[#allocation8] sm:$0xff]  ;;  %v1716_v10 = vld [vmem:[%s8011_s26 + $0x50] sm:$0xff] }
 0x1b1   : > { %v1495_v26 = vadd.f32 %v1479_v30, %v8493_v31  ;;  %1821 = vmatpush.msra.mxu1 %v1723_v29  ;;  %v8625_v35 = vadd.f32 1e-08, %v1488_v32  ;;  %1847 = vmatpush.msra.mxu2 %v1645_v25  ;;  %v1654_v42 = vsel %vm1653_vm14, %v8489_v59, %v1652_v41  ;;  %v1707_v31 = vld [vmem:[%s8011_s26 + $0x8] sm:$0xff]  ;;  %v1464_v19 = vadd.f32 %v8497_v57, %v8443_v53  ;;  %v1733_v29 = vld [vmem:[%s8011_s26 + $0xd8] sm:$0xff] }
 0x1b2   : > { %1793 = vmatpush.msra.mxu0 %v1714_v9  ;;  %v8636_v7 = vpop.eup %7095  ;;  %v8638_v43 = vadd.f32 1e-08, %v1494_v62  ;;  %v1657_v37 = vsel %vm1655_vm15, %v1656_v15, %v1654_v42  ;;  %v1549_v59 = vsel %vm1547_vm12, %v12221_v34, %v1546_v5  ;;  %v8655_v12 = vadd.f32 1e-08, %v1489_v33  ;;  %v1717_v5 = vld [vmem:[%s8011_s26 + $0x58] sm:$0xff] }
 0x1b3   : > { %v8640_v55 = vadd.f32 1e-08, %v1495_v26  ;;  %1822 = vmatpush.msra.mxu1 %v1715_v40  ;;  %1876 = vmatpush.msra.mxu3 %v1657_v37  ;;  %v1563_v20 = vmul.f32 %v8636_v7, %v8581_v54  ;;  %7099 = vrsqrt.f32 %v8625_v35  ;;  %v1561_v38 = vsel %vm1559_vm1, %v1560_v52, %v1558_v6  ;;  %v1725_v52 = vld [vmem:[%s8011_s26 + $0x98] sm:$0xff]  ;;  %v8686_v6 = vld [vmem:[#allocation8 + $0x8] sm:$0xff] }
 0x1b4   : > { %1848 = vmatpush.msra.mxu2 %v1549_v59  ;;  %v1380_v24 = vpop.f32.mrf.mxu2  ;;  %v1409_v18 = vpop.f32.mrf.mxu3  ;;  %1794 = vmatpush.msra.mxu0 %v1706_v36  ;;  %7101 = vrsqrt.f32 %v8638_v43  ;;  %v1465_v28 = vadd.f32 %v8505_v11, %v8474_v23  ;;  %v1744_v23 = vld [vmem:[%s12131_s5 + $0x10] sm:$0xff]  ;;  %v1709_v26 = vld [vmem:[%s8011_s26 + $0x18] sm:$0xff]  ;;  %vm1569_vm3 = vcmp.eq.f32.partialorder %v8581_v54, inf  ;;  %vm1581_vm4 = vcmp.eq.f32.partialorder %v8596_v63, inf }
 0x1b5   : > { %1823 = vmatpush.msra.mxu1 %v1707_v31  ;;  %1877 = vmatpush.msra.mxu3 %v1561_v38  ;;  %v1480_v53 = vmul.f32 %v1380_v24, %v1380_v24  ;;  %v1481_v57 = vmul.f32 %v1409_v18, %v1409_v18  ;;  %7103 = vrsqrt.f32 %v8640_v55  ;;  %v7098_v3 = vpop.eup %7097  ;;  %v1564_v30 = vmul.f32 %v8636_v7, %v1563_v20 }
 0x1b6   : > { %1849 = vmatpush.msra.mxu2 %v1732_v4  ;;  %6753 = vmatmul.msk.f32.vlgmr.msra.gmra.mxu0 %vm12160_vm2, %v8648_v56  ;;  %v1575_v9 = vmul.f32 %v7098_v3, %v8596_v63  ;;  %7105 = vrsqrt.f32 %v8655_v12  ;;  %vm1665_vm5 = vcmp.eq.f32.partialorder %v8638_v43, inf  ;;  %vm1667_vm6 = vcmp.eq.f32.partialorder %v8638_v43, 0.0 }
 0x1b7   : > { %6757 = vmatmul.msk.f32.vlgmr.msra.gmra.mxu1 %vm12160_vm2, %v8648_v56  ;;  %v1496_v11 = vadd.f32 %v1480_v53, %v1464_v19  ;;  %v1497_v15 = vadd.f32 %v1481_v57, %v1465_v28  ;;  %1878 = vmatpush.msra.mxu3 %v1733_v29  ;;  %v1565_v32 = vmul.f32 0.5, %v1564_v30  ;;  %v1572_v53 = vand.u32 2147483648, %v8581_v54 }
 0x1b8   : > { %1850 = vmatpush.msra.mxu2 %v1724_v27  ;;  %1758 = vperm.xlu0 %7076, %v1744_v23   ;;  %v1576_v40 = vmul.f32 %v7098_v3, %v1575_v9  ;;  %vm1677_vm7 = vcmp.eq.f32.partialorder %v8640_v55, inf  ;;  %vm1679_vm8 = vcmp.eq.f32.partialorder %v8640_v55, 0.0  ;;  %vm1571_vm9 = vcmp.eq.f32.partialorder %v8581_v54, 0.0 }
 0x1b9   : > { %v8679_v33 = vpop.eup %7099  ;;  %v8681_v21 = vadd.f32 1e-08, %v1496_v11  ;;  %v8683_v41 = vadd.f32 1e-08, %v1497_v15  ;;  %1879 = vmatpush.msra.mxu3 %v1725_v52  ;;  %v1566_v25 = vsub.f32 1.5, %v1565_v32  ;;  %v8712_v15 = vld [vmem:[#allocation8 + $0x10] sm:$0xff] }
 0x1ba   : > { %1851 = vmatpush.msra.mxu2 %v1716_v10  ;;  %v7102_v62 = vpop.eup %7101  ;;  %v1577_v31 = vmul.f32 0.5, %v1576_v40  ;;  %v1587_v37 = vmul.f32 %v8679_v33, %v8625_v35  ;;  %vm1583_vm10 = vcmp.eq.f32.partialorder %v8596_v63, 0.0  ;;  %vm1593_vm12 = vcmp.eq.f32.partialorder %v8625_v35, inf }
 0x1bb   : > { %v7104_v42 = vpop.eup %7103  ;;  %1880 = vmatpush.msra.mxu3 %v1717_v5  ;;  %v1659_v36 = vmul.f32 %v7102_v62, %v8638_v43  ;;  %7107 = vrsqrt.f32 %v8681_v21  ;;  %v1567_v38 = vmul.f32 %v8636_v7, %v1566_v25  ;;  %v1668_v5 = vand.u32 2147483648, %v8638_v43 }
 0x1bc   : > { %1852 = vmatpush.msra.mxu2 %v1708_v2  ;;  %v1671_v34 = vmul.f32 %v7104_v42, %v8640_v55  ;;  %v1578_v4 = vsub.f32 1.5, %v1577_v31  ;;  %7109 = vrsqrt.f32 %v8683_v41  ;;  %v7106_v20 = vpop.eup %7105  ;;  %v1588_v29 = vmul.f32 %v8679_v33, %v1587_v37 }
 0x1bd   : > { %6761 = vmatmul.msk.f32.vlgmr.msra.gmra.mxu2 %vm12160_vm2, %v8648_v56  ;;  %1881 = vmatpush.msra.mxu3 %v1709_v26  ;;  %v1660_v59 = vmul.f32 %v7102_v62, %v1659_v36  ;;  %v1599_v27 = vmul.f32 %v7106_v20, %v8655_v12  ;;  %vm1689_vm11 = vcmp.eq.f32.partialorder %v8681_v21, inf  ;;  %vm1691_vm13 = vcmp.eq.f32.partialorder %v8681_v21, 0.0 }
 0x1be   : > { %6765 = vmatmul.msk.f32.vlgmr.msra.gmra.mxu3 %vm12160_vm2, %v8648_v56  ;;  %6754 = vmatmul.msk.f32.gmra.mxu0 %vm12160_vm2, %v8686_v6  ;;  %v1672_v19 = vmul.f32 %v7104_v42, %v1671_v34  ;;  %v1579_v18 = vmul.f32 %v7098_v3, %v1578_v4  ;;  %v1589_v7 = vmul.f32 0.5, %v1588_v29  ;;  %v1568_v3 = vmul.f32 %v1567_v38, %v8581_v54 }
 0x1bf   : > { %6758 = vmatmul.msk.f32.gmra.mxu1 %vm12160_vm2, %v8686_v6  ;;  %v1661_v24 = vmul.f32 0.5, %v1660_v59  ;;  %v1600_v23 = vmul.f32 %v7106_v20, %v1599_v27  ;;  %vm1605_vm14 = vcmp.eq.f32.partialorder %v8655_v12, inf  ;;  %vm1701_vm15 = vcmp.eq.f32.partialorder %v8683_v41, inf }
 0x1c0   : > { %v1673_v28 = vmul.f32 0.5, %v1672_v19  ;;  %v1580_v2 = vmul.f32 %v1579_v18, %v8596_v63  ;;  %v1590_v32 = vsub.f32 1.5, %v1589_v7  ;;  %v1570_v37 = vsel %vm1569_vm3, %v8581_v54, %v1568_v3  ;;  %v1734_v3 = vld [vmem:[%s8011_s26 + $0xe0] sm:$0xff] }
 0x1c1   : > { %v7108_v57 = vpop.eup %7107  ;;  %v1662_v52 = vsub.f32 1.5, %v1661_v24  ;;  %v1601_v31 = vmul.f32 0.5, %v1600_v23  ;;  %v1726_v54 = vld [vmem:[%s8011_s26 + $0xa0] sm:$0xff]  ;;  %vm1703_vm1 = vcmp.eq.f32.partialorder %v8683_v41, 0.0  ;;  %vm1595_vm3 = vcmp.eq.f32.partialorder %v8625_v35, 0.0 }
 0x1c2   : > { %v1674_v10 = vsub.f32 1.5, %v1673_v28  ;;  %v1683_v30 = vmul.f32 %v7108_v57, %v8681_v21  ;;  %v7110_v11 = vpop.eup %7109  ;;  %v1582_v19 = vsel %vm1581_vm4, %v8596_v63, %v1580_v2  ;;  %v1591_v38 = vmul.f32 %v8679_v33, %v1590_v32 }
 0x1c3   : > { %v1663_v9 = vmul.f32 %v7102_v62, %v1662_v52  ;;  %v1695_v25 = vmul.f32 %v7110_v11, %v8683_v41  ;;  %v1680_v62 = vand.u32 2147483648, %v8640_v55  ;;  %v1602_v24 = vsub.f32 1.5, %v1601_v31  ;;  %v4761_v52 = vld [vmem:[%s12136_s10] sm:$0xff] }
 0x1c4   : > { %v1675_v40 = vmul.f32 %v7104_v42, %v1674_v10  ;;  %v1684_v26 = vmul.f32 %v7108_v57, %v1683_v30  ;;  %4767 = vperm.xlu0 %7076, %v4761_v52   ;;  %v1573_v10 = vsel %vm1571_vm9, %v1572_v53, %v1570_v37  ;;  %v1692_v2 = vand.u32 2147483648, %v8681_v21  ;;  %v1710_v37 = vld [vmem:[%s8011_s26 + $0x20] sm:$0xff]  ;;  %v1721_v52 = vld [vmem:[%s8011_s26 + $0x78] sm:$0xff] }
 0x1c5   : > { %6762 = vmatmul.msk.f32.gmra.mxu2 %vm12160_vm2, %v8686_v6  ;;  %v1664_v36 = vmul.f32 %v1663_v9, %v8638_v43  ;;  %v1696_v59 = vmul.f32 %v7110_v11, %v1695_v25  ;;  %v1603_v33 = vmul.f32 %v7106_v20, %v1602_v24  ;;  %v1596_v31 = vand.u32 2147483648, %v8625_v35  ;;  %v1711_v24 = vld [vmem:[%s8011_s26 + $0x28] sm:$0xff] }
 0x1c6   : > { %6766 = vmatmul.msk.f32.gmra.mxu3 %vm12160_vm2, %v8686_v6  ;;  %6755 = vmatmul.msk.f32.gmra.mxu0 %vm12160_vm2, %v8712_v15  ;;  %v1676_v42 = vmul.f32 %v1675_v40, %v8640_v55  ;;  %v1685_v34 = vmul.f32 0.5, %v1684_v26  ;;  %v1718_v40 = vld [vmem:[%s8011_s26 + $0x60] sm:$0xff]  ;;  %v1727_v26 = vld [vmem:[%s8011_s26 + $0xa8] sm:$0xff]  ;;  %vm1607_vm4 = vcmp.eq.f32.partialorder %v8655_v12, 0.0 }
 0x1c7   : > { %6759 = vmatmul.msk.f32.gmra.mxu1 %vm12160_vm2, %v8712_v15  ;;  %v1666_v4 = vsel %vm1665_vm5, %v8638_v43, %v1664_v36  ;;  %v1697_v28 = vmul.f32 0.5, %v1696_v59  ;;  %v1584_v43 = vand.u32 2147483648, %v8596_v63  ;;  %v1604_v63 = vmul.f32 %v1603_v33, %v8655_v12 }
 0x1c8   : > { %v1669_v18 = vsel %vm1667_vm6, %v1668_v5, %v1666_v4  ;;  %v1678_v29 = vsel %vm1677_vm7, %v8640_v55, %v1676_v42  ;;  %v1686_v27 = vsub.f32 1.5, %v1685_v34  ;;  %v8754_v5 = vld [vmem:[#allocation8 + $0x18] sm:$0xff]  ;;  %v1592_v55 = vmul.f32 %v1591_v38, %v8625_v35  ;;  %v4764_v34 = vld [vmem:[%s12136_s10 + $0x18] sm:$0xff]  ;;  %v1719_v4 = vld [vmem:[%s8011_s26 + $0x68] sm:$0xff] }
 0x1c9   : > { %1905 = vmatpush.msrb.mxu0 %v1669_v18  ;;  %v1681_v7 = vsel %vm1679_vm8, %v1680_v62, %v1678_v29  ;;  %v1698_v23 = vsub.f32 1.5, %v1697_v28  ;;  %v1585_v9 = vsel %vm1583_vm10, %v1584_v43, %v1582_v19  ;;  %v1704_v36 = vand.u32 2147483648, %v8683_v41  ;;  %v1736_v18 = vld [vmem:[%s8011_s26 + $0xf0] sm:$0xff]  ;;  %v1729_v29 = vld [vmem:[%s8011_s26 + $0xb8] sm:$0xff] }
 0x1ca   : > { %1934 = vmatpush.msrb.mxu1 %v1681_v7  ;;  %v1687_v30 = vmul.f32 %v7108_v57, %v1686_v27  ;;  %v1735_v57 = vld [vmem:[%s8011_s26 + $0xe8] sm:$0xff]  ;;  %v1594_v62 = vsel %vm1593_vm12, %v8625_v35, %v1592_v55  ;;  %v1606_v42 = vsel %vm1605_vm14, %v8655_v12, %v1604_v63  ;;  %v1608_v19 = vand.u32 2147483648, %v8655_v12  ;;  %v1737_v35 = vld [vmem:[%s8011_s26 + $0xf8] sm:$0xff]  ;;  %v1728_v12 = vld [vmem:[%s8011_s26 + $0xb0] sm:$0xff] }
 0x1cb   : > { %1906 = vmatpush.msrb.mxu0 %v1573_v10  ;;  %v1699_v53 = vmul.f32 %v7110_v11, %v1698_v23  ;;  %v4762_v27 = vld [vmem:[%s12136_s10 + $0x8] sm:$0xff]  ;;  %v1720_v28 = vld [vmem:[%s8011_s26 + $0x70] sm:$0xff]  ;;  %v1713_v43 = vld [vmem:[%s8011_s26 + $0x38] sm:$0xff] }
 0x1cc   : > { %1935 = vmatpush.msrb.mxu1 %v1585_v9  ;;  %v1688_v20 = vmul.f32 %v1687_v30, %v8681_v21  ;;  %4782 = vperm.xlu0 %7076, %v4764_v34   ;;  %v1609_v38 = vsel %vm1607_vm4, %v1608_v19, %v1606_v42  ;;  %v1712_v7 = vld [vmem:[%s8011_s26 + $0x30] sm:$0xff] }
 0x1cd   : > { %6763 = vmatmul.msk.f32.gmra.mxu2 %vm12160_vm2, %v8712_v15  ;;  %1907 = vmatpush.msrb.mxu0 %v1734_v3  ;;  %v1700_v11 = vmul.f32 %v1699_v53, %v8683_v41  ;;  %v8851_v3 = vpop.f32.mrf.mxu3 }
 0x1ce   : > { %6767 = vmatmul.msk.f32.gmra.mxu3 %vm12160_vm2, %v8712_v15  ;;  %6756 = vmatmul.msk.f32.gmra.mxu0 %vm12160_vm2, %v8754_v5  ;;  %v1690_v32 = vsel %vm1689_vm11, %v8681_v21, %v1688_v20  ;;  %12227 = vst [vmem:[#allocation57_spill] sm:$0xff] %v8851_v3 }
 0x1cf   : > { %6760 = vmatmul.msk.f32.gmra.mxu1 %vm12160_vm2, %v8754_v5  ;;  %1908 = vmatpush.msrb.mxu0 %v1726_v54  ;;  %v1693_v25 = vsel %vm1691_vm13, %v1692_v2, %v1690_v32  ;;  %v1702_v21 = vsel %vm1701_vm15, %v8683_v41, %v1700_v11  ;;  %v1597_v41 = vsel %vm1595_vm3, %v1596_v31, %v1594_v62 }
 0x1d0   : > { %1936 = vmatpush.msrb.mxu1 %v1735_v57  ;;  %1963 = vmatpush.msrb.mxu2 %v1693_v25  ;;  %v1705_v59 = vsel %vm1703_vm1, %v1704_v36, %v1702_v21 }
 0x1d1   : > { %1909 = vmatpush.msrb.mxu0 %v1718_v40  ;;  %1992 = vmatpush.msrb.mxu3 %v1705_v59 }
 0x1d2   : > { %1937 = vmatpush.msrb.mxu1 %v1727_v26  ;;  %1964 = vmatpush.msrb.mxu2 %v1597_v41 }
 0x1d3   : > { %1910 = vmatpush.msrb.mxu0 %v1710_v37  ;;  %1993 = vmatpush.msrb.mxu3 %v1609_v38 }
 0x1d4   : > { %1938 = vmatpush.msrb.mxu1 %v1719_v4  ;;  %1965 = vmatpush.msrb.mxu2 %v1736_v18 }
 0x1d5   : > { %6764 = vmatmul.msk.f32.gmra.mxu2 %vm12160_vm2, %v8754_v5  ;;  %1994 = vmatpush.msrb.mxu3 %v1737_v35 }
 0x1d6   : > { %6768 = vmatmul.msk.f32.gmra.mxu3 %vm12160_vm2, %v8754_v5  ;;  %1939 = vmatpush.msrb.mxu1 %v1711_v24 }
 0x1d7   : > { %6769 = vmatmul.msk.f32.vlgmr.msrb.gmra.mxu0 %vm12160_vm2, %v8648_v56  ;;  %6773 = vmatmul.msk.f32.vlgmr.msrb.gmra.mxu1 %vm12160_vm2, %v8648_v56 }
 0x1d8   : > { %1966 = vmatpush.msrb.mxu2 %v1728_v12  ;;  %1995 = vmatpush.msrb.mxu3 %v1729_v29 }
 0x1d9   : > { %4772 = vperm.xlu1 %7077, %v4762_v27  }
 0x1da   : > { %1967 = vmatpush.msrb.mxu2 %v1720_v28  ;;  %1996 = vmatpush.msrb.mxu3 %v1721_v52 }
 0x1dc   : > { %1968 = vmatpush.msrb.mxu2 %v1712_v7  ;;  %1997 = vmatpush.msrb.mxu3 %v1713_v43 }
 0x1dd   : > { %6777 = vmatmul.msk.f32.vlgmr.msrb.gmra.mxu2 %vm12160_vm2, %v8648_v56 }
 0x1de   : > { %6781 = vmatmul.msk.f32.vlgmr.msrb.gmra.mxu3 %vm12160_vm2, %v8648_v56  ;;  %v8841_v56 = vpop.f32.mrf.mxu0 }
 0x1df   : > { %6770 = vmatmul.msk.f32.gmra.mxu0 %vm12160_vm2, %v8686_v6  ;;  %6774 = vmatmul.msk.f32.gmra.mxu1 %vm12160_vm2, %v8686_v6  ;;  %12222 = vst [vmem:[#allocation52_spill] sm:$0xff] %v8841_v56 }
 0x1e5   : > { %6778 = vmatmul.msk.f32.gmra.mxu2 %vm12160_vm2, %v8686_v6 }
 0x1e6   : > { %6782 = vmatmul.msk.f32.gmra.mxu3 %vm12160_vm2, %v8686_v6  ;;  %v8843_v6 = vpop.f32.mrf.mxu1  ;;  %v8845_v33 = vpop.f32.mrf.mxu0 }
 0x1e7   : > { %6771 = vmatmul.msk.f32.gmra.mxu0 %vm12160_vm2, %v8712_v15  ;;  %6775 = vmatmul.msk.f32.gmra.mxu1 %vm12160_vm2, %v8712_v15  ;;  %12223 = vst [vmem:[#allocation53_spill] sm:$0xff] %v8843_v6 }
 0x1e8   : > { %12224 = vst [vmem:[#allocation54_spill] sm:$0xff] %v8845_v33 }
 0x1ed   : > { %6779 = vmatmul.msk.f32.gmra.mxu2 %vm12160_vm2, %v8712_v15 }
 0x1ee   : > { %6783 = vmatmul.msk.f32.gmra.mxu3 %vm12160_vm2, %v8712_v15  ;;  %v8847_v10 = vpop.f32.mrf.mxu1  ;;  %v8849_v15 = vpop.f32.mrf.mxu2 }
 0x1ef   : > { %6772 = vmatmul.msk.f32.gmra.mxu0 %vm12160_vm2, %v8754_v5  ;;  %6776 = vmatmul.msk.f32.gmra.mxu1 %vm12160_vm2, %v8754_v5  ;;  %12225 = vst [vmem:[#allocation55_spill] sm:$0xff] %v8847_v10 }
 0x1f0   : > { %12226 = vst [vmem:[#allocation56_spill] sm:$0xff] %v8849_v15 }
 0x1f5   : > { %6780 = vmatmul.msk.f32.gmra.mxu2 %vm12160_vm2, %v8754_v5 }
 0x1f6   : > { %6784 = vmatmul.msk.f32.gmra.mxu3 %vm12160_vm2, %v8754_v5  ;;  %v8859_v55 = vpop.f32.mrf.mxu2  ;;  %v8861_v5 = vpop.f32.mrf.mxu3 }
 0x1f7   : > { %12228 = vst [vmem:[#allocation58_spill] sm:$0xff] %v8859_v55 }
 0x1f8   : > { %12229 = vst [vmem:[#allocation59_spill] sm:$0xff] %v8861_v5 }
 0x211   : > { %v8857_v9 = vpop.permute.xlu1 %1753 }
 0x219   : > { %v8870_v2 = vpop.permute.xlu1 %1748 }
 0x21d   : > { %v8888_v41 = vpop.permute.xlu0 %1763 }
 0x22a   : > { %v8921_v5 = vpop.permute.xlu0 %1758 }
 0x233   : > { %v8853_v30 = vpop.f32.mrf.mxu0 }
 0x234   : > { %v8855_v23 = vpop.f32.mrf.mxu1 }
 0x23b   : > { %v1799_v54 = vpop.f32.mrf.mxu0 }
 0x23c   : > { %v8864_v20 = vadd.f32 %v1799_v54, %v8857_v9  ;;  %v1828_v53 = vpop.f32.mrf.mxu1 }
 0x23d   : > { %v8867_v63 = vadd.f32 %v1828_v53, %v8857_v9 }
 0x23e   : > { %v6793_v57 = vmul.f32 -1.442695, %v8864_v20 }
 0x23f   : > { %v6794_v32 = vmul.f32 -1.442695, %v8867_v63 }
 0x240   : > { %v1854_v11 = vpop.f32.mrf.mxu2  ;;  %7111 = vpow2.f32 %v6793_v57 }
 0x241   : > { %v8874_v40 = vadd.f32 %v1854_v11, %v8870_v2  ;;  %7113 = vpow2.f32 %v6794_v32  ;;  %v1883_v26 = vpop.f32.mrf.mxu3 }
 0x242   : > { %v8878_v36 = vadd.f32 %v1883_v26, %v8870_v2 }
 0x243   : > { %v6787_v25 = vmul.f32 -1.442695, %v8874_v40  ;;  %v8880_v62 = vpop.f32.mrf.mxu0 }
 0x244   : > { %v6788_v21 = vmul.f32 -1.442695, %v8878_v36  ;;  %v8883_v31 = vpop.f32.mrf.mxu1 }
 0x245   : > { %7115 = vpow2.f32 %v6787_v25 }
 0x246   : > { %v7112_v42 = vpop.eup %7111  ;;  %7117 = vpow2.f32 %v6788_v21 }
 0x247   : > { %v7114_v37 = vpop.eup %7113  ;;  %v2115_v34 = vadd.f32 1.0, %v7112_v42 }
 0x248   : > { %v1857_v59 = vpop.f32.mrf.mxu2  ;;  %v2116_v4 = vadd.f32 1.0, %v7114_v37 }
 0x249   : > { %v8886_v19 = vadd.f32 %v1857_v59, %v8857_v9  ;;  %7119 = vrcp.f32 %v2115_v34  ;;  %v1886_v38 = vpop.f32.mrf.mxu3  ;;  %v2268_v18 = vand.u32 2147483647, %v2115_v34  ;;  %v2270_v35 = vand.u32 2147483648, %v2115_v34 }
 0x24a   : > { %7121 = vrcp.f32 %v2116_v4  ;;  %v2283_v52 = vand.u32 2147483647, %v2116_v4  ;;  %v2285_v7 = vand.u32 2147483648, %v2116_v4  ;;  %v8894_v43 = vadd.f32 %v1886_v38, %v8857_v9 }
 0x24b   : > { %v7116_v24 = vpop.eup %7115  ;;  %v6795_v29 = vmul.f32 -1.442695, %v8886_v19  ;;  %v1805_v27 = vpop.f32.mrf.mxu0  ;;  %vm2264_vm5 = vweird.f32 %v2115_v34  ;;  %vm2279_vm6 = vweird.f32 %v2116_v4  ;;  %vm8903_vm7 = vcmp.eq.f32.partialorder %v2268_v18, 8.507059e+37 }
 0x24c   : > { %v8890_v12 = vadd.f32 1.0, %v7116_v24  ;;  %v7118_v28 = vpop.eup %7117  ;;  %v8897_v54 = vadd.f32 %v1805_v27, %v8888_v41  ;;  %v1834_v53 = vpop.f32.mrf.mxu1  ;;  %v6796_v32 = vmul.f32 -1.442695, %v8894_v43  ;;  %v2271_v25 = vor.u32 1.1754944e-38, %v2270_v35 }
 0x24d   : > { %v8900_v57 = vadd.f32 1.0, %v7118_v28  ;;  %v8909_v42 = vadd.f32 %v1834_v53, %v8888_v41  ;;  %vm8911_vm8 = vcmp.eq.f32.partialorder %v2283_v52, 8.507059e+37  ;;  %v2286_v24 = vor.u32 1.1754944e-38, %v2285_v7 }
 0x24e   : > { %7123 = vrcp.f32 %v8890_v12  ;;  %v6809_v21 = vmul.f32 -1.442695, %v8897_v54  ;;  %v2180_v35 = vand.u32 2147483648, %v8890_v12  ;;  %vm2174_vm12 = vweird.f32 %v8890_v12 }
 0x24f   : > { %7125 = vpow2.f32 %v6795_v29  ;;  %v7120_v11 = vpop.eup %7119  ;;  %v2178_v29 = vand.u32 2147483647, %v8890_v12  ;;  %v6810_v53 = vmul.f32 -1.442695, %v8909_v42  ;;  %v2193_v15 = vand.u32 2147483647, %v8900_v57 }
 0x250   : > { %v7122_v37 = vpop.eup %7121  ;;  %v2260_v59 = vmul.f32 %v7120_v11, %v2115_v34  ;;  %7127 = vrcp.f32 %v8900_v57  ;;  %vm2265_vm9 = vweird.f32 %v7120_v11  ;;  %v1860_v27 = vpop.f32.mrf.mxu2  ;;  %v2195_v7 = vand.u32 2147483648, %v8900_v57 }
 0x251   : > { %v2275_v18 = vmul.f32 %v7122_v37, %v2116_v4  ;;  %vm2280_vm10 = vweird.f32 %v7122_v37  ;;  %7129 = vpow2.f32 %v6796_v32  ;;  %vm8929_vm11 = vmor %vm2264_vm5, %vm2265_vm9  ;;  %vm8934_vm13 = vcmp.eq.f32.partialorder %v2178_v29, 8.507059e+37 }
 0x252   : > { %v2261_v28 = vsub.f32 1.0, %v2260_v59  ;;  %7131 = vpow2.f32 %v6809_v21  ;;  %v8925_v59 = vadd.f32 %v1860_v27, %v8921_v5  ;;  %vm8942_vm14 = vmor %vm2279_vm6, %vm2280_vm10  ;;  %v2181_v56 = vor.u32 1.1754944e-38, %v2180_v35 }
 0x253   : > { %v2276_v52 = vsub.f32 1.0, %v2275_v18  ;;  %7133 = vpow2.f32 %v6810_v53  ;;  %vm2189_vm15 = vweird.f32 %v8900_v57  ;;  %vm8948_vm1 = vcmp.eq.f32.partialorder %v2193_v15, 8.507059e+37 }
 0x254   : > { %v7124_v3 = vpop.eup %7123  ;;  %v2262_v22 = vmul.f32 %v7120_v11, %v2261_v28  ;;  %v6803_v35 = vmul.f32 -1.442695, %v8925_v59 }
 0x255   : > { %v7126_v55 = vpop.eup %7125  ;;  %v2170_v58 = vmul.f32 %v7124_v3, %v8890_v12  ;;  %v2277_v18 = vmul.f32 %v7122_v37, %v2276_v52  ;;  %v1889_v52 = vpop.f32.mrf.mxu3  ;;  %vm2175_vm3 = vweird.f32 %v7124_v3 }
 0x256   : > { %v8938_v21 = vadd.f32 1.0, %v7126_v55  ;;  %v7128_v28 = vpop.eup %7127  ;;  %v2263_v53 = vadd.f32 %v7120_v11, %v2262_v22  ;;  %v2196_v55 = vor.u32 1.1754944e-38, %v2195_v7  ;;  %v1912_v22 = vpop.f32.mrf.mxu0  ;;  %v8961_v7 = vadd.f32 %v1889_v52, %v8921_v5  ;;  %vm2176_vm4 = vmor %vm2174_vm12, %vm2175_vm3 }
 0x257   : > { %v2171_v34 = vsub.f32 1.0, %v2170_v58  ;;  %v2278_v10 = vadd.f32 %v7122_v37, %v2277_v18  ;;  %v2185_v29 = vmul.f32 %v7128_v28, %v8900_v57  ;;  %v7130_v4 = vpop.eup %7129  ;;  %vm2190_vm5 = vweird.f32 %v7128_v28 }
 0x258   : > { %7135 = vrcp.f32 %v8938_v21  ;;  %v2267_v39 = vsel %vm8929_vm11, %v7120_v11, %v2263_v53  ;;  %v7132_v8 = vpop.eup %7131  ;;  %v8967_v53 = vadd.f32 %v1912_v22, %v8870_v2  ;;  %vm2191_vm6 = vmor %vm2189_vm15, %vm2190_vm5 }
 0x259   : > { %v2172_v58 = vmul.f32 %v7124_v3, %v2171_v34  ;;  %v2272_v18 = vsel %vm8903_vm7, %v2271_v25, %v2267_v39  ;;  %v2282_v15 = vsel %vm8942_vm14, %v7122_v37, %v2278_v10  ;;  %v2186_v61 = vsub.f32 1.0, %v2185_v29  ;;  %v7134_v14 = vpop.eup %7133  ;;  %v1941_v25 = vpop.f32.mrf.mxu1 }
 0x25a   : > { %v2627_v60 = vmul.f32 %v2272_v18, %v8864_v20  ;;  %v2287_v11 = vsel %vm8911_vm8, %v2286_v24, %v2282_v15  ;;  %v8972_v10 = vadd.f32 1.0, %v7130_v4  ;;  %v2298_v20 = vand.u32 2147483647, %v8938_v21 }
 0x25b   : > { %v2173_v32 = vadd.f32 %v7124_v3, %v2172_v58  ;;  %v2628_v26 = vmul.f32 %v2287_v11, %v8867_v63  ;;  %v2187_v39 = vmul.f32 %v7128_v28, %v2186_v61  ;;  %v8975_v38 = vadd.f32 1.0, %v7132_v8 }
 0x25c   : > { %3700 = vst [vmem:[#allocation2 + $0x40] sm:$0xff] %v2627_v60  ;;  %7137 = vpow2.f32 %v6803_v35  ;;  %v8980_v61 = vadd.f32 1.0, %v7134_v14  ;;  %v2300_v8 = vand.u32 2147483648, %v8938_v21  ;;  %vm2294_vm7 = vweird.f32 %v8938_v21 }
 0x25d   : > { %v2177_v37 = vsel %vm2176_vm4, %v7124_v3, %v2173_v32  ;;  %3701 = vst [vmem:[#allocation2 + $0x48] sm:$0xff] %v2628_v26  ;;  %v2188_v27 = vadd.f32 %v7128_v28, %v2187_v39  ;;  %7139 = vrcp.f32 %v8972_v10  ;;  %v8991_v3 = vadd.f32 %v1941_v25, %v8870_v2 }
 0x25e   : > { %v7136_v24 = vpop.eup %7135  ;;  %v2182_v63 = vsel %vm8934_vm13, %v2181_v56, %v2177_v37  ;;  %v2313_v14 = vand.u32 2147483647, %v8972_v10  ;;  %7141 = vrcp.f32 %v8975_v38  ;;  %v2315_v57 = vand.u32 2147483648, %v8972_v10 }
 0x25f   : > { %v8983_v12 = vmul.f32 %v2182_v63, %v8874_v40  ;;  %v2290_v60 = vmul.f32 %v7136_v24, %v8938_v21  ;;  %v2192_v56 = vsel %vm2191_vm6, %v7128_v28, %v2188_v27  ;;  %v2508_v34 = vand.u32 2147483647, %v8975_v38 }
 0x260   : > { %v2197_v6 = vsel %vm8948_vm1, %v2196_v55, %v2192_v56  ;;  %vm9004_vm8 = vcmp.eq.f32.partialorder %v2298_v20, 8.507059e+37  ;;  %v2510_v29 = vand.u32 2147483648, %v8975_v38  ;;  %7143 = vrcp.f32 %v8980_v61  ;;  %v1863_v56 = vpop.f32.mrf.mxu2 }
 0x261   : > { %3694 = vst [vmem:[#allocation2 + $0x10] sm:$0xff] %v8983_v12  ;;  %v2291_v40 = vsub.f32 1.0, %v2290_v60  ;;  %v9002_v52 = vmul.f32 %v2197_v6, %v8878_v36  ;;  %vm2295_vm9 = vweird.f32 %v7136_v24  ;;  %v2301_v33 = vor.u32 1.1754944e-38, %v2300_v8 }
 0x262   : > { %v7138_v22 = vpop.eup %7137  ;;  %vm2309_vm10 = vweird.f32 %v8972_v10  ;;  %vm2504_vm11 = vweird.f32 %v8975_v38  ;;  %v2523_v36 = vand.u32 2147483647, %v8980_v61  ;;  %v6804_v35 = vmul.f32 -1.442695, %v8961_v7  ;;  %vm2296_vm14 = vmor %vm2294_vm7, %vm2295_vm9 }
 0x263   : > { %v2292_v4 = vmul.f32 %v7136_v24, %v2291_v40  ;;  %v7140_v55 = vpop.eup %7139  ;;  %3695 = vst [vmem:[#allocation2 + $0x18] sm:$0xff] %v9002_v52  ;;  %v9014_v58 = vadd.f32 1.0, %v7138_v22  ;;  %vm9018_vm12 = vcmp.eq.f32.partialorder %v2313_v14, 8.507059e+37  ;;  %v2316_v32 = vor.u32 1.1754944e-38, %v2315_v57  ;;  %v1892_v57 = vpop.f32.mrf.mxu3 }
 0x264   : > { %v2305_v15 = vmul.f32 %v7140_v55, %v8972_v10  ;;  %vm9022_vm13 = vcmp.eq.f32.partialorder %v2508_v34, 8.507059e+37  ;;  %v7142_v39 = vpop.eup %7141  ;;  %v2511_v25 = vor.u32 1.1754944e-38, %v2510_v29  ;;  %vm2519_vm15 = vweird.f32 %v8980_v61 }
 0x265   : > { %v2293_v18 = vadd.f32 %v7136_v24, %v2292_v4  ;;  %v2525_v37 = vand.u32 2147483648, %v8980_v61  ;;  %7145 = vrcp.f32 %v9014_v58  ;;  %vm2310_vm1 = vweird.f32 %v7140_v55 }
 0x266   : > { %v2306_v63 = vsub.f32 1.0, %v2305_v15  ;;  %v2500_v27 = vmul.f32 %v7142_v39, %v8975_v38  ;;  %v7144_v60 = vpop.eup %7143  ;;  %vm2505_vm3 = vweird.f32 %v7142_v39  ;;  %vm9035_vm4 = vcmp.eq.f32.partialorder %v2523_v36, 8.507059e+37  ;;  %vm9049_vm6 = vmor %vm2309_vm10, %vm2310_vm1 }
 0x267   : > { %v2297_v20 = vsel %vm2296_vm14, %v7136_v24, %v2293_v18  ;;  %7147 = vpow2.f32 %v6804_v35  ;;  %v2515_v40 = vmul.f32 %v7144_v60, %v8980_v61  ;;  %vm2520_vm5 = vweird.f32 %v7144_v60  ;;  %v1915_v35 = vpop.f32.mrf.mxu0  ;;  %vm9059_vm7 = vmor %vm2504_vm11, %vm2505_vm3 }
 0x268   : > { %v2302_v8 = vsel %vm9004_vm8, %v2301_v33, %v2297_v20  ;;  %v2307_v6 = vmul.f32 %v7140_v55, %v2306_v63  ;;  %v2501_v24 = vsub.f32 1.0, %v2500_v27  ;;  %v2526_v34 = vor.u32 1.1754944e-38, %v2525_v37  ;;  %vm9076_vm8 = vmor %vm2519_vm15, %vm2520_vm5 }
 0x269   : > { %v9040_v14 = vmul.f32 %v2302_v8, %v8886_v19  ;;  %v6789_v28 = vmul.f32 -1.442695, %v8967_v53  ;;  %v6790_v29 = vmul.f32 -1.442695, %v8991_v3  ;;  %v2516_v33 = vsub.f32 1.0, %v2515_v40 }
 0x26a   : > { %v2308_v22 = vadd.f32 %v7140_v55, %v2307_v6  ;;  %v2502_v4 = vmul.f32 %v7142_v39, %v2501_v24  ;;  %v9054_v36 = vadd.f32 %v1863_v56, %v8888_v41  ;;  %v2418_v10 = vand.u32 2147483647, %v9014_v58 }
 0x26b   : > { %3702 = vst [vmem:[#allocation2 + $0x50] sm:$0xff] %v9040_v14  ;;  %v7146_v18 = vpop.eup %7145  ;;  %v2420_v37 = vand.u32 2147483648, %v9014_v58  ;;  %7149 = vpow2.f32 %v6789_v28  ;;  %v9066_v20 = vadd.f32 %v1892_v57, %v8888_v41  ;;  %v2517_v8 = vmul.f32 %v7144_v60, %v2516_v33 }
 0x26c   : > { %v2312_v63 = vsel %vm9049_vm6, %v7140_v55, %v2308_v22  ;;  %v2503_v27 = vadd.f32 %v7142_v39, %v2502_v4  ;;  %v2410_v56 = vmul.f32 %v7146_v18, %v9014_v58  ;;  %7151 = vpow2.f32 %v6790_v29 }
 0x26d   : > { %v7148_v38 = vpop.eup %7147  ;;  %v2317_v6 = vsel %vm9018_vm12, %v2316_v32, %v2312_v63  ;;  %v6811_v40 = vmul.f32 -1.442695, %v9054_v36  ;;  %v9082_v55 = vadd.f32 %v1915_v35, %v8857_v9  ;;  %v2518_v32 = vadd.f32 %v7144_v60, %v2517_v8 }
 0x26e   : > { %v9085_v57 = vmul.f32 %v2317_v6, %v8894_v43  ;;  %v2507_v11 = vsel %vm9059_vm7, %v7142_v39, %v2503_v27  ;;  %v2411_v28 = vsub.f32 1.0, %v2410_v56  ;;  %v9091_v22 = vadd.f32 1.0, %v7148_v38  ;;  %v1944_v39 = vpop.f32.mrf.mxu1 }
 0x26f   : > { %v2512_v61 = vsel %vm9022_vm13, %v2511_v25, %v2507_v11  ;;  %7153 = vpow2.f32 %v6811_v40  ;;  %v6812_v29 = vmul.f32 -1.442695, %v9066_v20  ;;  %v2522_v43 = vsel %vm9076_vm8, %v7144_v60, %v2518_v32  ;;  %v1970_v60 = vpop.f32.mrf.mxu2 }
 0x270   : > { %3703 = vst [vmem:[#allocation2 + $0x58] sm:$0xff] %v9085_v57  ;;  %v2643_v19 = vmul.f32 %v2512_v61, %v8897_v54  ;;  %v2412_v4 = vmul.f32 %v7146_v18, %v2411_v28  ;;  %vm2415_vm9 = vweird.f32 %v7146_v18  ;;  %v2527_v26 = vsel %vm9035_vm4, %v2526_v34, %v2522_v43 }
 0x271   : > { %v7150_v33 = vpop.eup %7149  ;;  %vm2414_vm10 = vweird.f32 %v9014_v58  ;;  %7155 = vrcp.f32 %v9091_v22  ;;  %v2644_v25 = vmul.f32 %v2527_v26, %v8909_v42  ;;  %v6797_v54 = vmul.f32 -1.442695, %v9082_v55 }
 0x272   : > { %3716 = vst [vmem:[#allocation2 + $0xc0] sm:$0xff] %v2643_v19  ;;  %v2413_v35 = vadd.f32 %v7146_v18, %v2412_v4  ;;  %v9103_v15 = vadd.f32 1.0, %v7150_v33  ;;  %2684 = vmatpush.msra.mxu0 %v2643_v19  ;;  %v7152_v63 = vpop.eup %7151  ;;  %vm2416_vm11 = vmor %vm2414_vm10, %vm2415_vm9  ;;  %vm2419_vm12 = vcmp.eq.f32.partialorder %v2418_v10, 8.507059e+37  ;;  %v2421_v27 = vor.u32 1.1754944e-38, %v2420_v37 }
 0x273   : > { %7157 = vpow2.f32 %v6812_v29  ;;  %v9107_v21 = vadd.f32 %v1944_v39, %v8857_v9  ;;  %3717 = vst [vmem:[#allocation2 + $0xc8] sm:$0xff] %v2644_v25  ;;  %v2433_v34 = vand.u32 2147483647, %v9091_v22  ;;  %v2435_v42 = vand.u32 2147483648, %v9091_v22  ;;  %2707 = vmatpush.msra.mxu1 %v2644_v25 }
 0x274   : > { %v2417_v58 = vsel %vm2416_vm11, %v7146_v18, %v2413_v35  ;;  %7159 = vrcp.f32 %v9103_v15  ;;  %v2208_v38 = vand.u32 2147483647, %v9103_v15  ;;  %v9113_v6 = vadd.f32 1.0, %v7152_v63 }
 0x275   : > { %v7154_v8 = vpop.eup %7153  ;;  %v2422_v56 = vsel %vm2419_vm12, %v2421_v27, %v2417_v58  ;;  %v9116_v10 = vadd.f32 %v1970_v60, %v8870_v2  ;;  %v2210_v18 = vand.u32 2147483648, %v9103_v15  ;;  %7161 = vpow2.f32 %v6797_v54 }
 0x276   : > { %v9119_v37 = vmul.f32 %v2422_v56, %v8925_v59  ;;  %v9122_v24 = vadd.f32 1.0, %v7154_v8  ;;  %vm2429_vm13 = vweird.f32 %v9091_v22  ;;  %7163 = vrcp.f32 %v9113_v6 }
 0x277   : > { %v7156_v40 = vpop.eup %7155  ;;  %vm9128_vm14 = vcmp.eq.f32.partialorder %v2433_v34, 8.507059e+37  ;;  %v2436_v59 = vor.u32 1.1754944e-38, %v2435_v42  ;;  %v6798_v28 = vmul.f32 -1.442695, %v9107_v21  ;;  %vm2204_vm15 = vweird.f32 %v9103_v15 }
 0x278   : > { %3710 = vst [vmem:[#allocation2 + $0x90] sm:$0xff] %v9119_v37  ;;  %v2425_v11 = vmul.f32 %v7156_v40, %v9091_v22  ;;  %vm9134_vm1 = vcmp.eq.f32.partialorder %v2208_v38, 8.507059e+37  ;;  %7165 = vrcp.f32 %v9122_v24  ;;  %v6791_v19 = vmul.f32 -1.442695, %v9116_v10 }
 0x279   : > { %v7158_v61 = vpop.eup %7157  ;;  %v2211_v39 = vor.u32 1.1754944e-38, %v2210_v18  ;;  %v2223_v33 = vand.u32 2147483647, %v9113_v6  ;;  %vm2430_vm3 = vweird.f32 %v7156_v40  ;;  %vm2219_vm4 = vweird.f32 %v9113_v6 }
 0x27a   : > { %v7160_v43 = vpop.eup %7159  ;;  %v2426_v4 = vsub.f32 1.0, %v2425_v11  ;;  %v9141_v26 = vadd.f32 1.0, %v7158_v61  ;;  %v2225_v35 = vand.u32 2147483648, %v9113_v6  ;;  %v2538_v63 = vand.u32 2147483647, %v9122_v24  ;;  %vm2431_vm8 = vmor %vm2429_vm13, %vm2430_vm3 }
 0x27b   : > { %v2200_v25 = vmul.f32 %v7160_v43, %v9103_v15  ;;  %v7162_v54 = vpop.eup %7161  ;;  %v2540_v27 = vand.u32 2147483648, %v9122_v24  ;;  %vm2205_vm5 = vweird.f32 %v7160_v43  ;;  %vm9152_vm6 = vcmp.eq.f32.partialorder %v2223_v33, 8.507059e+37 }
 0x27c   : > { %v2427_v60 = vmul.f32 %v7156_v40, %v2426_v4  ;;  %7167 = vrcp.f32 %v9141_v26  ;;  %v7164_v58 = vpop.eup %7163  ;;  %v9149_v42 = vadd.f32 1.0, %v7162_v54  ;;  %vm2534_vm7 = vweird.f32 %v9122_v24  ;;  %vm9164_vm9 = vmor %vm2204_vm15, %vm2205_vm5 }
 0x27d   : > { %v2201_v34 = vsub.f32 1.0, %v2200_v25  ;;  %7169 = vpow2.f32 %v6798_v28  ;;  %v2215_v56 = vmul.f32 %v7164_v58, %v9113_v6  ;;  %v2226_v61 = vor.u32 1.1754944e-38, %v2225_v35 }
 0x27e   : > { %v2428_v8 = vadd.f32 %v7156_v40, %v2427_v60  ;;  %v7166_v18 = vpop.eup %7165  ;;  %v2555_v4 = vand.u32 2147483648, %v9141_v26  ;;  %7171 = vrcp.f32 %v9149_v42  ;;  %vm2220_vm10 = vweird.f32 %v7164_v58 }
 0x27f   : > { %v2202_v11 = vmul.f32 %v7160_v43, %v2201_v34  ;;  %v2216_v25 = vsub.f32 1.0, %v2215_v56  ;;  %v2530_v54 = vmul.f32 %v7166_v18, %v9122_v24  ;;  %vm9169_vm11 = vcmp.eq.f32.partialorder %v2538_v63, 8.507059e+37  ;;  %vm9183_vm13 = vmor %vm2219_vm4, %vm2220_vm10 }
 0x280   : > { %v2432_v28 = vsel %vm2431_vm8, %v7156_v40, %v2428_v8  ;;  %v2541_v34 = vor.u32 1.1754944e-38, %v2540_v27  ;;  %vm2549_vm12 = vweird.f32 %v9141_v26  ;;  %7173 = vpow2.f32 %v6791_v19 }
 0x281   : > { %v2437_v35 = vsel %vm9128_vm14, %v2436_v59, %v2432_v28  ;;  %v2203_v60 = vadd.f32 %v7160_v43, %v2202_v11  ;;  %v2217_v8 = vmul.f32 %v7164_v58, %v2216_v25  ;;  %v2531_v56 = vsub.f32 1.0, %v2530_v54 }
 0x282   : > { %v7168_v15 = vpop.eup %7167  ;;  %v9177_v40 = vmul.f32 %v2437_v35, %v8961_v7  ;;  %v2553_v27 = vand.u32 2147483647, %v9141_v26  ;;  %v2556_v11 = vor.u32 1.1754944e-38, %v2555_v4  ;;  %v1999_v7 = vpop.f32.mrf.mxu3  ;;  %vm2535_vm14 = vweird.f32 %v7166_v18 }
 0x283   : > { %v7170_v13 = vpop.eup %7169  ;;  %v2207_v63 = vsel %vm9164_vm9, %v7160_v43, %v2203_v60  ;;  %v2545_v59 = vmul.f32 %v7168_v15, %v9141_v26  ;;  %v2218_v28 = vadd.f32 %v7164_v58, %v2217_v8  ;;  %v2532_v33 = vmul.f32 %v7166_v18, %v2531_v56  ;;  %v1918_v43 = vpop.f32.mrf.mxu0 }
 0x284   : > { %3711 = vst [vmem:[#allocation2 + $0x98] sm:$0xff] %v9177_v40  ;;  %v2212_v19 = vsel %vm9134_vm1, %v2211_v39, %v2207_v63  ;;  %v7172_v6 = vpop.eup %7171  ;;  %vm2324_vm15 = vweird.f32 %v9149_v42  ;;  %v9196_v35 = vadd.f32 1.0, %v7170_v13  ;;  %v9202_v39 = vadd.f32 %v1999_v7, %v8870_v2  ;;  %vm2536_vm1 = vmor %vm2534_vm7, %vm2535_vm14  ;;  %v1947_v13 = vpop.f32.mrf.mxu1 }
 0x285   : > { %v9193_v25 = vmul.f32 %v2212_v19, %v8967_v53  ;;  %v2546_v54 = vsub.f32 1.0, %v2545_v59  ;;  %v2222_v4 = vsel %vm9183_vm13, %v7164_v58, %v2218_v28  ;;  %v2533_v60 = vadd.f32 %v7166_v18, %v2532_v33 }
 0x286   : > { %v2320_v29 = vmul.f32 %v7172_v6, %v9149_v42  ;;  %v2227_v53 = vsel %vm9152_vm6, %v2226_v61, %v2222_v4  ;;  %vm2550_vm3 = vweird.f32 %v7168_v15  ;;  %7175 = vrcp.f32 %v9196_v35  ;;  %v7174_v58 = vpop.eup %7173 }
 0x287   : > { %3696 = vst [vmem:[#allocation2 + $0x20] sm:$0xff] %v9193_v25  ;;  %v2547_v8 = vmul.f32 %v7168_v15, %v2546_v54  ;;  %v9211_v56 = vmul.f32 %v2227_v53, %v8991_v3  ;;  %v2537_v63 = vsel %vm2536_vm1, %v7166_v18, %v2533_v60  ;;  %v2330_v59 = vand.u32 2147483648, %v9149_v42  ;;  %vm2551_vm4 = vmor %vm2549_vm12, %vm2550_vm3 }
 0x288   : > { %v2321_v32 = vsub.f32 1.0, %v2320_v29  ;;  %v2542_v38 = vsel %vm9169_vm11, %v2541_v34, %v2537_v63  ;;  %v2328_v24 = vand.u32 2147483647, %v9149_v42  ;;  %v9217_v7 = vadd.f32 1.0, %v7174_v58 }
 0x289   : > { %v2548_v61 = vadd.f32 %v7168_v15, %v2547_v8  ;;  %3697 = vst [vmem:[#allocation2 + $0x28] sm:$0xff] %v9211_v56  ;;  %v2645_v19 = vmul.f32 %v2542_v38, %v9054_v36  ;;  %vm2325_vm5 = vweird.f32 %v7172_v6  ;;  %v6792_v18 = vmul.f32 -1.442695, %v9202_v39 }
 0x28a   : > { %v2322_v3 = vmul.f32 %v7172_v6, %v2321_v32  ;;  %vm2554_vm6 = vcmp.eq.f32.partialorder %v2553_v27, 8.507059e+37  ;;  %7177 = vrcp.f32 %v9217_v7  ;;  %v2331_v33 = vor.u32 1.1754944e-38, %v2330_v59  ;;  %vm2326_vm7 = vmor %vm2324_vm15, %vm2325_vm5  ;;  %v1973_v27 = vpop.f32.mrf.mxu2 }
 0x28b   : > { %v2552_v28 = vsel %vm2551_vm4, %v7168_v15, %v2548_v61  ;;  %3718 = vst [vmem:[#allocation2 + $0xd0] sm:$0xff] %v2645_v19  ;;  %v2343_v54 = vand.u32 2147483647, %v9196_v35  ;;  %2730 = vmatpush.msra.mxu2 %v2645_v19  ;;  %7179 = vpow2.f32 %v6792_v18  ;;  %v9230_v26 = vadd.f32 %v1918_v43, %v8921_v5  ;;  %v1921_v53 = vpop.f32.mrf.mxu0 }
 0x28c   : > { %v2557_v22 = vsel %vm2554_vm6, %v2556_v11, %v2552_v28  ;;  %v2323_v34 = vadd.f32 %v7172_v6, %v2322_v3  ;;  %v7176_v4 = vpop.eup %7175  ;;  %v9233_v15 = vadd.f32 %v1947_v13, %v8921_v5  ;;  %v2002_v11 = vpop.f32.mrf.mxu3  ;;  %vm2329_vm8 = vcmp.eq.f32.partialorder %v2328_v24, 8.507059e+37 }
 0x28d   : > { %v2646_v36 = vmul.f32 %v2557_v22, %v9066_v20  ;;  %v2335_v29 = vmul.f32 %v7176_v4, %v9196_v35  ;;  %2731 = vmatpush.msra.mxu2 %v9119_v37  ;;  %v2345_v42 = vand.u32 2147483648, %v9196_v35  ;;  %v6805_v8 = vmul.f32 -1.442695, %v9230_v26  ;;  %v1950_v59 = vpop.f32.mrf.mxu1 }
 0x28e   : > { %v2327_v60 = vsel %vm2326_vm7, %v7172_v6, %v2323_v34  ;;  %v6806_v43 = vmul.f32 -1.442695, %v9233_v15  ;;  %v9244_v6 = vadd.f32 %v1973_v27, %v8857_v9  ;;  %v9247_v63 = vadd.f32 %v2002_v11, %v8857_v9 }
 0x28f   : > { %3719 = vst [vmem:[#allocation2 + $0xd8] sm:$0xff] %v2646_v36  ;;  %v2332_v20 = vsel %vm2329_vm8, %v2331_v33, %v2327_v60  ;;  %2753 = vmatpush.msra.mxu3 %v2646_v36  ;;  %v2336_v58 = vsub.f32 1.0, %v2335_v29  ;;  %2732 = vmatpush.msra.mxu2 %v9040_v14  ;;  %vm2339_vm9 = vweird.f32 %v9196_v35  ;;  %vm9251_vm10 = vcmp.eq.f32.partialorder %v2343_v54, 8.507059e+37 }
 0x290   : > { %v9241_v13 = vmul.f32 %v2332_v20, %v9082_v55  ;;  %v7178_v37 = vpop.eup %7177  ;;  %7181 = vpow2.f32 %v6805_v8  ;;  %v9256_v55 = vadd.f32 %v1921_v53, %v8888_v41  ;;  %vm2340_vm11 = vweird.f32 %v7176_v4 }
 0x291   : > { %2754 = vmatpush.msra.mxu3 %v9177_v40  ;;  %v2337_v9 = vmul.f32 %v7176_v4, %v2336_v58  ;;  %v2230_v14 = vmul.f32 %v7178_v37, %v9217_v7  ;;  %7183 = vpow2.f32 %v6806_v43  ;;  %2733 = vmatpush.msra.mxu2 %v8983_v12  ;;  %v7180_v38 = vpop.eup %7179  ;;  %v2346_v61 = vor.u32 1.1754944e-38, %v2345_v42  ;;  %vm2341_vm13 = vmor %vm2339_vm9, %vm2340_vm11 }
 0x292   : > { %3704 = vst [vmem:[#allocation2 + $0x60] sm:$0xff] %v9241_v13  ;;  %vm2234_vm12 = vweird.f32 %v9217_v7  ;;  %v6799_v24 = vmul.f32 -1.442695, %v9244_v6  ;;  %v6800_v19 = vmul.f32 -1.442695, %v9247_v63  ;;  %v9266_v18 = vadd.f32 1.0, %v7180_v38 }
 0x293   : > { %2755 = vmatpush.msra.mxu3 %v9085_v57  ;;  %v2338_v40 = vadd.f32 %v7176_v4, %v2337_v9  ;;  %v2231_v3 = vsub.f32 1.0, %v2230_v14  ;;  %v9269_v28 = vadd.f32 %v1950_v59, %v8888_v41  ;;  %v2238_v12 = vand.u32 2147483647, %v9217_v7 }
 0x294   : > { %v2240_v22 = vand.u32 2147483648, %v9217_v7  ;;  %7185 = vpow2.f32 %v6799_v24  ;;  %v6813_v34 = vmul.f32 -1.442695, %v9256_v55  ;;  %vm2235_vm14 = vweird.f32 %v7178_v37 }
 0x295   : > { %2756 = vmatpush.msra.mxu3 %v9002_v52  ;;  %v2342_v57 = vsel %vm2341_vm13, %v7176_v4, %v2338_v40  ;;  %v2232_v33 = vmul.f32 %v7178_v37, %v2231_v3  ;;  %7187 = vrcp.f32 %v9266_v18  ;;  %v9282_v35 = vadd.f32 %v8880_v62, %v8921_v5  ;;  %vm2236_vm15 = vmor %vm2234_vm12, %vm2235_vm14 }
 0x296   : > { %v7182_v54 = vpop.eup %7181  ;;  %v2347_v36 = vsel %vm9251_vm10, %v2346_v61, %v2342_v57  ;;  %7189 = vpow2.f32 %v6800_v19  ;;  %v9286_v27 = vadd.f32 %v8883_v31, %v8921_v5  ;;  %v6814_v29 = vmul.f32 -1.442695, %v9269_v28 }
 0x297   : > { %v7184_v11 = vpop.eup %7183  ;;  %v9289_v52 = vmul.f32 %v2347_v36, %v9107_v21  ;;  %v2233_v4 = vadd.f32 %v7178_v37, %v2232_v33  ;;  %v9291_v60 = vadd.f32 1.0, %v7182_v54  ;;  %v2241_v53 = vor.u32 1.1754944e-38, %v2240_v22 }
 0x298   : > { %v9296_v20 = vadd.f32 1.0, %v7184_v11  ;;  %7191 = vpow2.f32 %v6813_v34  ;;  %vm2239_vm1 = vcmp.eq.f32.partialorder %v2238_v12, 8.507059e+37  ;;  %v2253_v42 = vand.u32 2147483647, %v9266_v18 }
 0x299   : > { %3705 = vst [vmem:[#allocation2 + $0x68] sm:$0xff] %v9289_v52  ;;  %v2237_v62 = vsel %vm2236_vm15, %v7178_v37, %v2233_v4  ;;  %7193 = vrcp.f32 %v9291_v60  ;;  %v6801_v8 = vmul.f32 -1.442695, %v9282_v35  ;;  %v2255_v58 = vand.u32 2147483648, %v9266_v18 }
 0x29a   : > { %v7186_v31 = vpop.eup %7185  ;;  %v2242_v21 = vsel %vm2239_vm1, %v2241_v53, %v2237_v62  ;;  %7195 = vrcp.f32 %v9296_v20  ;;  %v6802_v37 = vmul.f32 -1.442695, %v9286_v27  ;;  %v2448_v9 = vand.u32 2147483647, %v9291_v60 }
 0x29b   : > { %v7188_v7 = vpop.eup %7187  ;;  %v9304_v43 = vmul.f32 %v2242_v21, %v9116_v10  ;;  %7197 = vpow2.f32 %v6814_v29  ;;  %v2450_v14 = vand.u32 2147483648, %v9291_v60  ;;  %v9311_v38 = vadd.f32 1.0, %v7186_v31 }
 0x29c   : > { %v7190_v32 = vpop.eup %7189  ;;  %v2245_v59 = vmul.f32 %v7188_v7, %v9266_v18  ;;  %v2463_v61 = vand.u32 2147483647, %v9296_v20  ;;  %v2465_v10 = vand.u32 2147483648, %v9296_v20  ;;  %v9320_v19 = vadd.f32 %v8853_v30, %v8870_v2 }
 0x29d   : > { %3698 = vst [vmem:[#allocation2 + $0x30] sm:$0xff] %v9304_v43  ;;  %v9316_v24 = vadd.f32 1.0, %v7190_v32  ;;  %vm2249_vm3 = vweird.f32 %v9266_v18  ;;  %vm9323_vm4 = vcmp.eq.f32.partialorder %v2253_v42, 8.507059e+37  ;;  %7199 = vrcp.f32 %v9311_v38 }
 0x29e   : > { %v7192_v40 = vpop.eup %7191  ;;  %v2246_v3 = vsub.f32 1.0, %v2245_v59  ;;  %v2256_v34 = vor.u32 1.1754944e-38, %v2255_v58  ;;  %vm2444_vm5 = vweird.f32 %v9291_v60  ;;  %vm2459_vm6 = vweird.f32 %v9296_v20 }
 0x29f   : > { %v7194_v22 = vpop.eup %7193  ;;  %7201 = vrcp.f32 %v9316_v24  ;;  %vm2250_vm7 = vweird.f32 %v7188_v7  ;;  %vm9332_vm8 = vcmp.eq.f32.partialorder %v2448_v9, 8.507059e+37  ;;  %v2451_v36 = vor.u32 1.1754944e-38, %v2450_v14 }
 0x2a0   : > { %v7196_v30 = vpop.eup %7195  ;;  %v2247_v57 = vmul.f32 %v7188_v7, %v2246_v3  ;;  %v2440_v33 = vmul.f32 %v7194_v22, %v9291_v60  ;;  %vm9337_vm9 = vcmp.eq.f32.partialorder %v2463_v61, 8.507059e+37  ;;  %v2466_v53 = vor.u32 1.1754944e-38, %v2465_v10  ;;  %vm2251_vm10 = vmor %vm2249_vm3, %vm2250_vm7 }
 0x2a1   : > { %v7198_v11 = vpop.eup %7197  ;;  %v2455_v4 = vmul.f32 %v7196_v30, %v9296_v20  ;;  %7203 = vpow2.f32 %v6801_v8  ;;  %v2358_v21 = vand.u32 2147483647, %v9311_v38  ;;  %v9342_v42 = vadd.f32 1.0, %v7192_v40 }
 0x2a2   : > { %v2248_v62 = vadd.f32 %v7188_v7, %v2247_v57  ;;  %v2441_v31 = vsub.f32 1.0, %v2440_v33  ;;  %vm2445_vm11 = vweird.f32 %v7194_v22  ;;  %vm2460_vm12 = vweird.f32 %v7196_v30 }
 0x2a3   : > { %v2456_v58 = vsub.f32 1.0, %v2455_v4  ;;  %vm2354_vm13 = vweird.f32 %v9311_v38  ;;  %v2360_v32 = vand.u32 2147483648, %v9311_v38  ;;  %v7200_v59 = vpop.eup %7199  ;;  %vm2369_vm14 = vweird.f32 %v9316_v24  ;;  %vm2446_vm15 = vmor %vm2444_vm5, %vm2445_vm11 }
 0x2a4   : > { %v2252_v9 = vsel %vm2251_vm10, %v7188_v7, %v2248_v62  ;;  %v2442_v14 = vmul.f32 %v7194_v22, %v2441_v31  ;;  %7205 = vrcp.f32 %v9342_v42  ;;  %v9350_v8 = vadd.f32 1.0, %v7198_v11  ;;  %vm2461_vm3 = vmor %vm2459_vm6, %vm2460_vm12 }
 0x2a5   : > { %v7202_v61 = vpop.eup %7201  ;;  %v2257_v18 = vsel %vm9323_vm4, %v2256_v34, %v2252_v9  ;;  %v2457_v10 = vmul.f32 %v7196_v30, %v2456_v58  ;;  %v2350_v40 = vmul.f32 %v7200_v59, %v9311_v38  ;;  %7207 = vpow2.f32 %v6802_v37 }
 0x2a6   : > { %v9356_v3 = vmul.f32 %v2257_v18, %v9202_v39  ;;  %v2443_v57 = vadd.f32 %v7194_v22, %v2442_v14  ;;  %v2365_v7 = vmul.f32 %v7202_v61, %v9316_v24  ;;  %v2373_v33 = vand.u32 2147483647, %v9316_v24 }
 0x2a7   : > { %v7204_v4 = vpop.eup %7203  ;;  %v2458_v11 = vadd.f32 %v7196_v30, %v2457_v10  ;;  %v2351_v12 = vsub.f32 1.0, %v2350_v40  ;;  %vm9363_vm1 = vcmp.eq.f32.partialorder %v2358_v21, 8.507059e+37  ;;  %v2361_v37 = vor.u32 1.1754944e-38, %v2360_v32 }
 0x2a8   : > { %3699 = vst [vmem:[#allocation2 + $0x38] sm:$0xff] %v9356_v3  ;;  %v2447_v39 = vsel %vm2446_vm15, %v7194_v22, %v2443_v57  ;;  %v2366_v62 = vsub.f32 1.0, %v2365_v7  ;;  %v2375_v31 = vand.u32 2147483648, %v9316_v24  ;;  %7209 = vrcp.f32 %v9350_v8 }
 0x2a9   : > { %v2452_v60 = vsel %vm9332_vm8, %v2451_v36, %v2447_v39  ;;  %v2462_v21 = vsel %vm2461_vm3, %v7196_v30, %v2458_v11  ;;  %v2352_v58 = vmul.f32 %v7200_v59, %v2351_v12  ;;  %vm2355_vm4 = vweird.f32 %v7200_v59 }
 0x2aa   : > { %v7206_v9 = vpop.eup %7205  ;;  %v9376_v32 = vmul.f32 %v2452_v60, %v9230_v26  ;;  %v2467_v22 = vsel %vm9337_vm9, %v2466_v53, %v2462_v21  ;;  %v2367_v20 = vmul.f32 %v7202_v61, %v2366_v62  ;;  %vm2370_vm5 = vweird.f32 %v7202_v61  ;;  %vm2356_vm7 = vmor %vm2354_vm13, %vm2355_vm4  ;;  %v2005_v60 = vpop.f32.mrf.mxu3 }
 0x2ab   : > { %v7208_v14 = vpop.eup %7207  ;;  %v9381_v18 = vmul.f32 %v2467_v22, %v9233_v15  ;;  %v2353_v10 = vadd.f32 %v7200_v59, %v2352_v58  ;;  %vm9383_vm6 = vcmp.eq.f32.partialorder %v2373_v33, 8.507059e+37  ;;  %v2560_v30 = vmul.f32 %v7206_v9, %v9342_v42  ;;  %vm2371_vm8 = vmor %vm2369_vm14, %vm2370_vm5 }
 0x2ac   : > { %3712 = vst [vmem:[#allocation2 + $0xa0] sm:$0xff] %v9376_v32  ;;  %v2368_v26 = vadd.f32 %v7202_v61, %v2367_v20  ;;  %v2376_v36 = vor.u32 1.1754944e-38, %v2375_v31  ;;  %v2568_v29 = vand.u32 2147483647, %v9342_v42  ;;  %v2570_v53 = vand.u32 2147483648, %v9342_v42 }
 0x2ad   : > { %3713 = vst [vmem:[#allocation2 + $0xa8] sm:$0xff] %v9381_v18  ;;  %v2357_v15 = vsel %vm2356_vm7, %v7200_v59, %v2353_v10  ;;  %v2561_v40 = vsub.f32 1.0, %v2560_v30  ;;  %vm2565_vm9 = vweird.f32 %v7206_v9  ;;  %v9396_v57 = vadd.f32 1.0, %v7204_v4 }
 0x2ae   : > { %v7210_v7 = vpop.eup %7209  ;;  %v2362_v38 = vsel %vm9363_vm1, %v2361_v37, %v2357_v15  ;;  %v2372_v33 = vsel %vm2371_vm8, %v7202_v61, %v2368_v26  ;;  %v2583_v11 = vand.u32 2147483647, %v9350_v8  ;;  %v9401_v12 = vadd.f32 1.0, %v7208_v14  ;;  %v1976_v61 = vpop.f32.mrf.mxu2 }
 0x2af   : > { %v9404_v39 = vmul.f32 %v2362_v38, %v9244_v6  ;;  %v2377_v24 = vsel %vm9383_vm6, %v2376_v36, %v2372_v33  ;;  %v2562_v59 = vmul.f32 %v7206_v9, %v2561_v40  ;;  %v2575_v62 = vmul.f32 %v7210_v7, %v9350_v8 }
 0x2b0   : > { %v9410_v4 = vmul.f32 %v2377_v24, %v9247_v63  ;;  %v2585_v34 = vand.u32 2147483648, %v9350_v8  ;;  %7211 = vrcp.f32 %v9396_v57  ;;  %vm2564_vm10 = vweird.f32 %v9342_v42  ;;  %v9457_v24 = vld [vmem:[#allocation10] sm:$0xff] }
 0x2b1   : > { %3706 = vst [vmem:[#allocation2 + $0x70] sm:$0xff] %v9404_v39  ;;  %v2563_v37 = vadd.f32 %v7206_v9, %v2562_v59  ;;  %v2576_v6 = vsub.f32 1.0, %v2575_v62  ;;  %v6785_v31 = vmul.f32 -1.442695, %v9320_v19  ;;  %vm2566_vm11 = vmor %vm2564_vm10, %vm2565_vm9  ;;  %vm2569_vm12 = vcmp.eq.f32.partialorder %v2568_v29, 8.507059e+37 }
 0x2b2   : > { %3707 = vst [vmem:[#allocation2 + $0x78] sm:$0xff] %v9410_v4  ;;  %v2571_v63 = vor.u32 1.1754944e-38, %v2570_v53  ;;  %vm2579_vm13 = vweird.f32 %v9350_v8  ;;  %7213 = vrcp.f32 %v9401_v12  ;;  %vm2580_vm14 = vweird.f32 %v7210_v7 }
 0x2b3   : > { %v2567_v21 = vsel %vm2566_vm11, %v7206_v9, %v2563_v37  ;;  %v2577_v58 = vmul.f32 %v7210_v7, %v2576_v6  ;;  %vm9421_vm15 = vcmp.eq.f32.partialorder %v2583_v11, 8.507059e+37  ;;  %v2586_v20 = vor.u32 1.1754944e-38, %v2585_v34  ;;  %vm2581_vm3 = vmor %vm2579_vm13, %vm2580_vm14 }
 0x2b4   : > { %v2572_v42 = vsel %vm2569_vm12, %v2571_v63, %v2567_v21  ;;  %vm2384_vm1 = vweird.f32 %v9396_v57  ;;  %v9427_v14 = vadd.f32 %v1976_v61, %v8921_v5  ;;  %v9433_v30 = vadd.f32 %v2005_v60, %v8921_v5  ;;  %v2008_v60 = vpop.f32.mrf.mxu3 }
 0x2b5   : > { %v9430_v10 = vmul.f32 %v2572_v42, %v9256_v55  ;;  %v2578_v54 = vadd.f32 %v7210_v7, %v2577_v58  ;;  %7215 = vpow2.f32 %v6785_v31  ;;  %v2388_v26 = vand.u32 2147483647, %v9396_v57 }
 0x2b6   : > { %v7212_v9 = vpop.eup %7211  ;;  %v2390_v36 = vand.u32 2147483648, %v9396_v57  ;;  %v6807_v29 = vmul.f32 -1.442695, %v9427_v14  ;;  %v9442_v53 = vadd.f32 %v8855_v23, %v8870_v2  ;;  %vm2399_vm4 = vweird.f32 %v9401_v12  ;;  %v1979_v59 = vpop.f32.mrf.mxu2 }
 0x2b7   : > { %3720 = vst [vmem:[#allocation2 + $0xe0] sm:$0xff] %v9430_v10  ;;  %v2582_v55 = vsel %vm2581_vm3, %v7210_v7, %v2578_v54  ;;  %v2380_v5 = vmul.f32 %v7212_v9, %v9396_v57  ;;  %v6808_v8 = vmul.f32 -1.442695, %v9433_v30  ;;  %v2403_v38 = vand.u32 2147483647, %v9401_v12 }
 0x2b8   : > { %v7214_v15 = vpop.eup %7213  ;;  %v2587_v40 = vsel %vm9421_vm15, %v2586_v20, %v2582_v55  ;;  %7217 = vpow2.f32 %v6807_v29  ;;  %v6786_v33 = vmul.f32 -1.442695, %v9442_v53  ;;  %vm2385_vm5 = vweird.f32 %v7212_v9 }
 0x2b9   : > { %v9453_v23 = vmul.f32 %v2587_v40, %v9269_v28  ;;  %v2381_v2 = vsub.f32 1.0, %v2380_v5  ;;  %v2395_v7 = vmul.f32 %v7214_v15, %v9401_v12  ;;  %vm2400_vm6 = vweird.f32 %v7214_v15  ;;  %vm9470_vm8 = vmor %vm2384_vm1, %vm2385_vm5 }
 0x2ba   : > { %v2405_v11 = vand.u32 2147483648, %v9401_v12  ;;  %7219 = vpow2.f32 %v6808_v8  ;;  %vm2665_vm7 = vcmask 261120   ;;  %v9461_v28 = vadd.f32 %v1979_v59, %v8888_v41  ;;  %vm9487_vm10 = vmor %vm2399_vm4, %vm2400_vm6 }
 0x2bb   : > { %v7216_v62 = vpop.eup %7215  ;;  %3721 = vst [vmem:[#allocation2 + $0xe8] sm:$0xff] %v9453_v23  ;;  %v2382_v34 = vmul.f32 %v7212_v9, %v2381_v2  ;;  %v2396_v61 = vsub.f32 1.0, %v2395_v7  ;;  %7221 = vpow2.f32 %v6786_v33  ;;  %6821 = vmatmul.msk.f32.vlgmr.msra.gmra.mxu2 %vm2665_vm7, %v9457_v24  ;;  %6823 = vmatmul.msk.f32.vlgmr.msra.gmra.mxu3 %vm2665_vm7, %v9457_v24  ;;  %vm9474_vm9 = vcmp.eq.f32.partialorder %v2388_v26, 8.507059e+37  ;;  %v9505_v33 = vld [vmem:[#allocation10 + $0x8] sm:$0xff]  ;;  %v2654_v2 = vld [vmem:[%s12133_s7 + $0x8] sm:$0xff] }
 0x2bc   : > { %v2391_v31 = vor.u32 1.1754944e-38, %v2390_v36  ;;  %v9478_v63 = vadd.f32 1.0, %v7216_v62  ;;  %v6815_v22 = vmul.f32 -1.442695, %v9461_v28  ;;  %v9482_v42 = vadd.f32 %v2008_v60, %v8888_v41  ;;  %2662 = vperm.xlu2 %7078, %v2654_v2   ;;  %v7527_v62 = vld [vmem:[#allocation2 + $0x40] sm:$0xff] }
 0x2bd   : > { %v2383_v21 = vadd.f32 %v7212_v9, %v2382_v34  ;;  %v2397_v58 = vmul.f32 %v7214_v15, %v2396_v61  ;;  %vm2404_vm11 = vcmp.eq.f32.partialorder %v2403_v38, 8.507059e+37  ;;  %v2406_v54 = vor.u32 1.1754944e-38, %v2405_v11 }
 0x2be   : > { %v7218_v57 = vpop.eup %7217  ;;  %7223 = vrcp.f32 %v9478_v63  ;;  %v6816_v12 = vmul.f32 -1.442695, %v9482_v42  ;;  %v2150_v34 = vand.u32 2147483648, %v9478_v63  ;;  %vm2144_vm12 = vweird.f32 %v9478_v63 }
 0x2bf   : > { %v2387_v26 = vsel %vm9470_vm8, %v7212_v9, %v2383_v21  ;;  %v2398_v36 = vadd.f32 %v7214_v15, %v2397_v58  ;;  %v9494_v29 = vadd.f32 1.0, %v7218_v57  ;;  %7225 = vpow2.f32 %v6815_v22 }
 0x2c0   : > { %v7220_v41 = vpop.eup %7219  ;;  %v2392_v55 = vsel %vm9474_vm9, %v2391_v31, %v2387_v26  ;;  %v7528_v31 = vld [vmem:[#allocation2 + $0x48] sm:$0xff] }
 0x2c1   : > { %v7222_v5 = vpop.eup %7221  ;;  %v2635_v8 = vmul.f32 %v2392_v55, %v9282_v35  ;;  %v2402_v40 = vsel %vm9487_vm10, %v7214_v15, %v2398_v36  ;;  %7227 = vrcp.f32 %v9494_v29  ;;  %v9503_v9 = vadd.f32 1.0, %v7220_v41 }
 0x2c2   : > { %v2407_v38 = vsel %vm2404_vm11, %v2406_v54, %v2402_v40  ;;  %v9511_v11 = vadd.f32 1.0, %v7222_v5  ;;  %7229 = vpow2.f32 %v6816_v12  ;;  %v2148_v15 = vand.u32 2147483647, %v9478_v63  ;;  %v2653_v5 = vld [vmem:[%s12133_s7] sm:$0xff] }
 0x2c3   : > { %2685 = vmatpush.msra.mxu0 %v2635_v8  ;;  %3708 = vst [vmem:[#allocation2 + $0x80] sm:$0xff] %v2635_v8  ;;  %v2636_v7 = vmul.f32 %v2407_v38, %v9286_v27  ;;  %6822 = vmatmul.msk.f32.gmra.mxu2 %vm2665_vm7, %v9505_v33  ;;  %7231 = vrcp.f32 %v9503_v9  ;;  %v2478_v61 = vand.u32 2147483647, %v9494_v29  ;;  %v2480_v37 = vand.u32 2147483648, %v9494_v29 }
 0x2c4   : > { %v7224_v35 = vpop.eup %7223  ;;  %6824 = vmatmul.msk.f32.gmra.mxu3 %vm2665_vm7, %v9505_v33  ;;  %7233 = vrcp.f32 %v9511_v11  ;;  %vm9528_vm14 = vcmp.eq.f32.partialorder %v2148_v15, 8.507059e+37  ;;  %vm2474_vm15 = vweird.f32 %v9494_v29  ;;  %v2151_v54 = vor.u32 1.1754944e-38, %v2150_v34  ;;  %2657 = vperm.xlu2 %7078, %v2653_v5  }
 0x2c5   : > { %v7226_v59 = vpop.eup %7225  ;;  %2708 = vmatpush.msra.mxu1 %v2636_v7  ;;  %3709 = vst [vmem:[#allocation2 + $0x88] sm:$0xff] %v2636_v7  ;;  %2686 = vmatpush.msra.mxu0 %v7527_v62  ;;  %v2140_v27 = vmul.f32 %v7224_v35, %v9478_v63  ;;  %vm2145_vm13 = vweird.f32 %v7224_v35  ;;  %vm9534_vm1 = vcmp.eq.f32.partialorder %v2478_v61, 8.507059e+37  ;;  %v2481_v41 = vor.u32 1.1754944e-38, %v2480_v37 }
 0x2c6   : > { %v9525_v21 = vadd.f32 1.0, %v7226_v59  ;;  %vm9538_vm3 = vmor %vm2144_vm12, %vm2145_vm13  ;;  %v2493_v40 = vand.u32 2147483647, %v9503_v9  ;;  %v2495_v38 = vand.u32 2147483648, %v9503_v9  ;;  %vm2159_vm5 = vweird.f32 %v9511_v11 }
 0x2c7   : > { %v7228_v6 = vpop.eup %7227  ;;  %2709 = vmatpush.msra.mxu1 %v7528_v31  ;;  %v2141_v60 = vsub.f32 1.0, %v2140_v27  ;;  %v2163_v34 = vand.u32 2147483647, %v9511_v11  ;;  %v2165_v31 = vand.u32 2147483648, %v9511_v11  ;;  %vm2489_vm10 = vweird.f32 %v9503_v9 }
 0x2c8   : > { %v2470_v58 = vmul.f32 %v7228_v6, %v9494_v29  ;;  %v7230_v57 = vpop.eup %7229  ;;  %7235 = vrcp.f32 %v9525_v21  ;;  %vm2475_vm4 = vweird.f32 %v7228_v6  ;;  %vm9563_vm11 = vcmp.eq.f32.partialorder %v2493_v40, 8.507059e+37 }
 0x2c9   : > { %v2142_v20 = vmul.f32 %v7224_v35, %v2141_v60  ;;  %v7232_v26 = vpop.eup %7231  ;;  %v9542_v12 = vadd.f32 1.0, %v7230_v57  ;;  %vm2476_vm8 = vmor %vm2474_vm15, %vm2475_vm4  ;;  %v2166_v63 = vor.u32 1.1754944e-38, %v2165_v31  ;;  %v2600_v40 = vand.u32 2147483648, %v9525_v21 }
 0x2ca   : > { %v2471_v36 = vsub.f32 1.0, %v2470_v58  ;;  %v2485_v8 = vmul.f32 %v7232_v26, %v9503_v9  ;;  %v7234_v7 = vpop.eup %7233  ;;  %vm2490_vm6 = vweird.f32 %v7232_v26 }
 0x2cb   : > { %v2143_v2 = vadd.f32 %v7224_v35, %v2142_v20  ;;  %7237 = vrcp.f32 %v9542_v12  ;;  %v2155_v27 = vmul.f32 %v7234_v7, %v9511_v11  ;;  %vm2160_vm9 = vweird.f32 %v7234_v7  ;;  %vm9571_vm12 = vmor %vm2489_vm10, %vm2490_vm6 }
 0x2cc   : > { %v2472_v15 = vmul.f32 %v7228_v6, %v2471_v36  ;;  %v2486_v59 = vsub.f32 1.0, %v2485_v8  ;;  %vm9578_vm13 = vmor %vm2159_vm5, %vm2160_vm9  ;;  %v2615_v31 = vand.u32 2147483648, %v9542_v12  ;;  %vm2609_vm6 = vweird.f32 %v9542_v12 }
 0x2cd   : > { %v2147_v62 = vsel %vm9538_vm3, %v7224_v35, %v2143_v2  ;;  %v2156_v20 = vsub.f32 1.0, %v2155_v27 }
 0x2ce   : > { %v2473_v61 = vadd.f32 %v7228_v6, %v2472_v15  ;;  %v2152_v37 = vsel %vm9528_vm14, %v2151_v54, %v2147_v62  ;;  %v7236_v60 = vpop.eup %7235  ;;  %v2487_v58 = vmul.f32 %v7232_v26, %v2486_v59  ;;  %vm2164_vm14 = vcmp.eq.f32.partialorder %v2163_v34, 8.507059e+37 }
 0x2cf   : > { %v2619_v57 = vmul.f32 %v2152_v37, %v9320_v19  ;;  %v2590_v22 = vmul.f32 %v7236_v60, %v9525_v21  ;;  %v2496_v19 = vor.u32 1.1754944e-38, %v2495_v38  ;;  %v4763_v38 = vld [vmem:[%s12136_s10 + $0x10] sm:$0xff]  ;;  %vm2595_vm15 = vweird.f32 %v7236_v60 }
 0x2d0   : > { %v2477_v35 = vsel %vm2476_vm8, %v7228_v6, %v2473_v61  ;;  %v2488_v55 = vadd.f32 %v7232_v26, %v2487_v58  ;;  %v2157_v6 = vmul.f32 %v7234_v7, %v2156_v20  ;;  %v2598_v62 = vand.u32 2147483647, %v9525_v21  ;;  %4777 = vperm.xlu2 %7078, %v4763_v38  }
 0x2d1   : > { %v2482_v54 = vsel %vm9534_vm1, %v2481_v41, %v2477_v35  ;;  %2687 = vmatpush.msra.mxu0 %v2619_v57  ;;  %3692 = vst [vmem:[#allocation2] sm:$0xff] %v2619_v57  ;;  %v7238_v9 = vpop.eup %7237  ;;  %v2591_v41 = vsub.f32 1.0, %v2590_v22  ;;  %vm2594_vm1 = vweird.f32 %v9525_v21  ;;  %v2601_v37 = vor.u32 1.1754944e-38, %v2600_v40 }
 0x2d2   : > { %v2641_v5 = vmul.f32 %v2482_v54, %v9427_v14  ;;  %6817 = vmatmul.msk.f32.vlgmr.msra.gmra.mxu0 %vm2665_vm7, %v9457_v24  ;;  %v2492_v14 = vsel %vm9571_vm12, %v7232_v26, %v2488_v55  ;;  %v2158_v2 = vadd.f32 %v7234_v7, %v2157_v6  ;;  %v2605_v11 = vmul.f32 %v7238_v9, %v9542_v12  ;;  %vm2596_vm3 = vmor %vm2594_vm1, %vm2595_vm15 }
 0x2d3   : > { %2776 = vmatpush.msrb.mxu0 %v9430_v10  ;;  %v2497_v15 = vsel %vm9563_vm11, %v2496_v19, %v2492_v14  ;;  %v2592_v59 = vmul.f32 %v7236_v60, %v2591_v41  ;;  %vm2610_vm4 = vweird.f32 %v7238_v9  ;;  %vm2599_vm5 = vcmp.eq.f32.partialorder %v2598_v62, 8.507059e+37 }
 0x2d4   : > { %3714 = vst [vmem:[#allocation2 + $0xb0] sm:$0xff] %v2641_v5  ;;  %v2642_v27 = vmul.f32 %v2497_v15, %v9433_v30  ;;  %v2162_v26 = vsel %vm9578_vm13, %v7234_v7, %v2158_v2  ;;  %v2606_v34 = vsub.f32 1.0, %v2605_v11  ;;  %v2613_v30 = vand.u32 2147483647, %v9542_v12  ;;  %vm2611_vm8 = vmor %vm2609_vm6, %vm2610_vm4 }
 0x2d5   : > { %2777 = vmatpush.msrb.mxu0 %v9376_v32  ;;  %v2167_v10 = vsel %vm2164_vm14, %v2166_v63, %v2162_v26  ;;  %v2593_v61 = vadd.f32 %v7236_v60, %v2592_v59  ;;  %v2616_v20 = vor.u32 1.1754944e-38, %v2615_v31 }
 0x2d6   : > { %3715 = vst [vmem:[#allocation2 + $0xb8] sm:$0xff] %v2642_v27  ;;  %v2620_v58 = vmul.f32 %v2167_v10, %v9442_v53  ;;  %v2607_v57 = vmul.f32 %v7238_v9, %v2606_v34  ;;  %vm2614_vm9 = vcmp.eq.f32.partialorder %v2613_v30, 8.507059e+37 }
 0x2d7   : > { %2778 = vmatpush.msrb.mxu0 %v9241_v13  ;;  %v2597_v7 = vsel %vm2596_vm3, %v7236_v60, %v2593_v61 }
 0x2d8   : > { %2710 = vmatpush.msra.mxu1 %v2620_v58  ;;  %3693 = vst [vmem:[#allocation2 + $0x8] sm:$0xff] %v2620_v58  ;;  %v2602_v32 = vsel %vm2599_vm5, %v2601_v37, %v2597_v7  ;;  %v2608_v21 = vadd.f32 %v7238_v9, %v2607_v57 }
 0x2d9   : > { %2779 = vmatpush.msrb.mxu0 %v9193_v25  ;;  %6819 = vmatmul.msk.f32.vlgmr.msra.gmra.mxu1 %vm2665_vm7, %v9457_v24  ;;  %v2649_v53 = vmul.f32 %v2602_v32, %v9461_v28 }
 0x2da   : > { %6818 = vmatmul.msk.f32.gmra.mxu0 %vm2665_vm7, %v9505_v33  ;;  %v2612_v13 = vsel %vm2611_vm8, %v7238_v9, %v2608_v21  ;;  %2799 = vmatpush.msrb.mxu1 %v9453_v23 }
 0x2db   : > { %3722 = vst [vmem:[#allocation2 + $0xf0] sm:$0xff] %v2649_v53  ;;  %v2617_v60 = vsel %vm2614_vm9, %v2616_v20, %v2612_v13  ;;  %2822 = vmatpush.msrb.mxu2 %v2649_v53 }
 0x2dc   : > { %v2650_v12 = vmul.f32 %v2617_v60, %v9482_v42  ;;  %2800 = vmatpush.msrb.mxu1 %v9381_v18 }
 0x2dd   : > { %2823 = vmatpush.msrb.mxu2 %v2641_v5 }
 0x2de   : > { %3723 = vst [vmem:[#allocation2 + $0xf8] sm:$0xff] %v2650_v12  ;;  %2801 = vmatpush.msrb.mxu1 %v9289_v52  ;;  %2845 = vmatpush.msrb.mxu3 %v2650_v12 }
 0x2df   : > { %2824 = vmatpush.msrb.mxu2 %v9404_v39 }
 0x2e0   : > { %2802 = vmatpush.msrb.mxu1 %v9211_v56  ;;  %2846 = vmatpush.msrb.mxu3 %v2642_v27 }
 0x2e1   : > { %6820 = vmatmul.msk.f32.gmra.mxu1 %vm2665_vm7, %v9505_v33  ;;  %2825 = vmatpush.msrb.mxu2 %v9304_v43 }
 0x2e2   : > { %6825 = vmatmul.msk.f32.vlgmr.msrb.gmra.mxu0 %vm2665_vm7, %v9457_v24  ;;  %2847 = vmatpush.msrb.mxu3 %v9410_v4 }
 0x2e3   : > { %6829 = vmatmul.msk.f32.vlgmr.msrb.gmra.mxu2 %vm2665_vm7, %v9457_v24 }
 0x2e4   : > { %2848 = vmatpush.msrb.mxu3 %v9356_v3 }
 0x2e5   : > { %6831 = vmatmul.msk.f32.vlgmr.msrb.gmra.mxu3 %vm2665_vm7, %v9457_v24 }
 0x2e9   : > { %6827 = vmatmul.msk.f32.vlgmr.msrb.gmra.mxu1 %vm2665_vm7, %v9457_v24 }
 0x2ea   : > { %6826 = vmatmul.msk.f32.gmra.mxu0 %vm2665_vm7, %v9505_v33 }
 0x2eb   : > { %6830 = vmatmul.msk.f32.gmra.mxu2 %vm2665_vm7, %v9505_v33 }
 0x2ed   : > { %6832 = vmatmul.msk.f32.gmra.mxu3 %vm2665_vm7, %v9505_v33 }
 0x2f1   : > { %6828 = vmatmul.msk.f32.gmra.mxu1 %vm2665_vm7, %v9505_v33 }
 0x316   : > { %v9638_v25 = vpop.permute.xlu2 %2662 }
 0x31e   : > { %v9640_v56 = vpop.permute.xlu2 %2657 }
 0x33e   : > { %v2735_v24 = vpop.f32.mrf.mxu2  ;;  %v2758_v28 = vpop.f32.mrf.mxu3 }
 0x33f   : > { %v2736_v42 = vadd.f32 %v2735_v24, %v9640_v56  ;;  %v2759_v33 = vadd.f32 %v2758_v28, %v9640_v56 }
 0x341   : > { %v6835_v55 = vmul.f32 -1.442695, %v2736_v42  ;;  %v6836_v29 = vmul.f32 -1.442695, %v2759_v33 }
 0x346   : > { %v2738_v5 = vpop.f32.mrf.mxu2 }
 0x347   : > { %v2761_v8 = vpop.f32.mrf.mxu3  ;;  %v2739_v63 = vadd.f32 %v2738_v5, %v9638_v25 }
 0x348   : > { %v2762_v38 = vadd.f32 %v2761_v8, %v9638_v25 }
 0x349   : > { %v6843_v11 = vmul.f32 -1.442695, %v2739_v63 }
 0x34a   : > { %v6844_v26 = vmul.f32 -1.442695, %v2762_v38 }
 0x34f   : > { %v2689_v52 = vpop.f32.mrf.mxu0 }
 0x350   : > { %v2690_v43 = vadd.f32 %v2689_v52, %v9640_v56 }
 0x352   : > { %v6833_v3 = vmul.f32 -1.442695, %v2690_v43 }
 0x354   : > { %7239 = vpow2.f32 %v6833_v3 }
 0x356   : > { %v2712_v18 = vpop.f32.mrf.mxu1 }
 0x357   : > { %v2692_v39 = vpop.f32.mrf.mxu0  ;;  %v2713_v4 = vadd.f32 %v2712_v18, %v9640_v56 }
 0x358   : > { %v2693_v23 = vadd.f32 %v2692_v39, %v9638_v25 }
 0x359   : > { %v6834_v36 = vmul.f32 -1.442695, %v2713_v4 }
 0x35a   : > { %v7240_v35 = vpop.eup %7239  ;;  %v6841_v22 = vmul.f32 -1.442695, %v2693_v23 }
 0x35b   : > { %v9647_v54 = vadd.f32 1.0, %v7240_v35  ;;  %7241 = vpow2.f32 %v6834_v36 }
 0x35d   : > { %7243 = vrcp.f32 %v9647_v54  ;;  %vm2925_vm11 = vweird.f32 %v9647_v54 }
 0x35e   : > { %7245 = vpow2.f32 %v6841_v22  ;;  %v2715_v19 = vpop.f32.mrf.mxu1 }
 0x35f   : > { %7247 = vpow2.f32 %v6835_v55  ;;  %v2781_v6 = vpop.f32.mrf.mxu0  ;;  %v2716_v9 = vadd.f32 %v2715_v19, %v9638_v25 }
 0x360   : > { %7249 = vpow2.f32 %v6836_v29  ;;  %v2782_v57 = vadd.f32 %v2781_v6, %v9640_v56 }
 0x361   : > { %v7242_v41 = vpop.eup %7241  ;;  %v6842_v40 = vmul.f32 -1.442695, %v2716_v9 }
 0x362   : > { %v9655_v2 = vadd.f32 1.0, %v7242_v41  ;;  %v6837_v52 = vmul.f32 -1.442695, %v2782_v57 }
 0x363   : > { %v9653_v14 = vpop.eup %7243  ;;  %7251 = vpow2.f32 %v6842_v40 }
 0x364   : > { %v7246_v15 = vpop.eup %7245  ;;  %7253 = vrcp.f32 %v9655_v2  ;;  %v2921_v34 = vmul.f32 %v9653_v14, %v9647_v54  ;;  %vm2926_vm14 = vweird.f32 %v9653_v14  ;;  %vm2940_vm8 = vweird.f32 %v9655_v2 }
 0x365   : > { %v7248_v59 = vpop.eup %7247  ;;  %v2912_v62 = vadd.f32 1.0, %v7246_v15  ;;  %7255 = vpow2.f32 %v6843_v11  ;;  %vm9704_vm1 = vmor %vm2925_vm11, %vm2926_vm14 }
 0x366   : > { %v7250_v27 = vpop.eup %7249  ;;  %v9660_v10 = vadd.f32 1.0, %v7248_v59  ;;  %v2804_v61 = vpop.f32.mrf.mxu1  ;;  %v2922_v53 = vsub.f32 1.0, %v2921_v34 }
 0x367   : > { %7257 = vrcp.f32 %v2912_v62  ;;  %v2784_v37 = vpop.f32.mrf.mxu0  ;;  %v9662_v31 = vadd.f32 1.0, %v7250_v27  ;;  %v2805_v7 = vadd.f32 %v2804_v61, %v9640_v56  ;;  %v3049_v18 = vand.u32 2147483647, %v2912_v62 }
 0x368   : > { %v2785_v58 = vadd.f32 %v2784_v37, %v9638_v25  ;;  %7259 = vpow2.f32 %v6844_v26  ;;  %vm3045_vm7 = vweird.f32 %v2912_v62  ;;  %v3051_v4 = vand.u32 2147483648, %v2912_v62 }
 0x369   : > { %v7252_v30 = vpop.eup %7251  ;;  %7261 = vrcp.f32 %v9660_v10  ;;  %v6838_v3 = vmul.f32 -1.442695, %v2805_v7  ;;  %v2923_v23 = vmul.f32 %v9653_v14, %v2922_v53  ;;  %vm9688_vm12 = vcmp.eq.f32.partialorder %v3049_v18, 8.507059e+37  ;;  %v9745_v18 = vpop.f32.mrf.mxu2 }
 0x36a   : > { %v6845_v32 = vmul.f32 -1.442695, %v2785_v58  ;;  %v9667_v21 = vpop.eup %7253  ;;  %v9669_v20 = vadd.f32 1.0, %v7252_v30  ;;  %7263 = vrcp.f32 %v9662_v31  ;;  %v3052_v5 = vor.u32 1.1754944e-38, %v3051_v4 }
 0x36b   : > { %v7256_v13 = vpop.eup %7255  ;;  %v2936_v28 = vmul.f32 %v9667_v21, %v9655_v2  ;;  %v2924_v8 = vadd.f32 %v9653_v14, %v2923_v23  ;;  %v2929_v27 = vand.u32 2147483647, %v9647_v54  ;;  %v2931_v7 = vand.u32 2147483648, %v9647_v54 }
 0x36c   : > { %7265 = vrcp.f32 %v9669_v20  ;;  %v9674_v12 = vadd.f32 1.0, %v7256_v13  ;;  %vm3060_vm15 = vweird.f32 %v9669_v20  ;;  %v3064_v59 = vand.u32 2147483647, %v9669_v20 }
 0x36d   : > { %v7258_v60 = vpop.eup %7257  ;;  %7267 = vpow2.f32 %v6845_v32  ;;  %v2937_v41 = vsub.f32 1.0, %v2936_v28  ;;  %v2928_v30 = vsel %vm9704_vm1, %v9653_v14, %v2924_v8  ;;  %vm2930_vm4 = vcmp.eq.f32.partialorder %v2929_v27, 8.507059e+37 }
 0x36e   : > { %v3041_v43 = vmul.f32 %v7258_v60, %v2912_v62  ;;  %7269 = vrcp.f32 %v9674_v12  ;;  %v2807_v39 = vpop.f32.mrf.mxu1  ;;  %v7260_v24 = vpop.eup %7259  ;;  %vm3046_vm10 = vweird.f32 %v7258_v60  ;;  %v3066_v62 = vand.u32 2147483648, %v9669_v20 }
 0x36f   : > { %v2808_v33 = vadd.f32 %v2807_v39, %v9638_v25  ;;  %v9681_v35 = vpop.eup %7261  ;;  %v9683_v36 = vadd.f32 1.0, %v7260_v24  ;;  %7271 = vpow2.f32 %v6837_v52  ;;  %vm9694_vm13 = vmor %vm3045_vm7, %vm3046_vm10  ;;  %vm9741_vm6 = vcmp.eq.f32.partialorder %v3064_v59, 8.507059e+37 }
 0x370   : > { %v3042_v42 = vsub.f32 1.0, %v3041_v43  ;;  %v9686_v22 = vpop.eup %7263  ;;  %7273 = vpow2.f32 %v6838_v3  ;;  %v3067_v14 = vor.u32 1.1754944e-38, %v3066_v62  ;;  %vm2941_vm9 = vweird.f32 %v9667_v21 }
 0x371   : > { %v6846_v29 = vmul.f32 -1.442695, %v2808_v33  ;;  %7275 = vrcp.f32 %v9683_v36  ;;  %v2944_v33 = vand.u32 2147483647, %v9655_v2  ;;  %vm9774_vm7 = vmor %vm2940_vm8, %vm2941_vm9  ;;  %v9804_v59 = vmul.f32 %v9686_v22, %v9662_v31 }
 0x372   : > { %v3043_v55 = vmul.f32 %v7258_v60, %v3042_v42  ;;  %v7266_v6 = vpop.eup %7265  ;;  %vm3075_vm11 = vweird.f32 %v9674_v12  ;;  %vm3090_vm14 = vweird.f32 %v9683_v36 }
 0x373   : > { %v7268_v63 = vpop.eup %7267  ;;  %v3056_v40 = vmul.f32 %v7266_v6, %v9669_v20  ;;  %vm3061_vm3 = vweird.f32 %v7266_v6  ;;  %7277 = vpow2.f32 %v6846_v29  ;;  %vm2945_vm10 = vcmp.eq.f32.partialorder %v2944_v33, 8.507059e+37 }
 0x374   : > { %v3044_v38 = vadd.f32 %v7258_v60, %v3043_v55  ;;  %v9708_v15 = vpop.eup %7269  ;;  %v9717_v58 = vadd.f32 1.0, %v7268_v63  ;;  %vm9737_vm5 = vmor %vm3060_vm15, %vm3061_vm3  ;;  %v9766_v55 = vld [vmem:[%s12134_s8] sm:$0x7] }
 0x375   : > { %v3057_v26 = vsub.f32 1.0, %v3056_v40  ;;  %v3071_v34 = vmul.f32 %v9708_v15, %v9674_v12  ;;  %v7272_v37 = vpop.eup %7271 }
 0x376   : > { %v3048_v61 = vsel %vm9694_vm13, %v7258_v60, %v3044_v38  ;;  %v7274_v32 = vpop.eup %7273  ;;  %v2938_v60 = vmul.f32 %v9667_v21, %v2937_v41  ;;  %7279 = vrcp.f32 %v9717_v58  ;;  %v9781_v8 = vadd.f32 1.0, %v7272_v37 }
 0x377   : > { %v9721_v57 = vsel %vm9688_vm12, %v3052_v5, %v3048_v61  ;;  %v3058_v53 = vmul.f32 %v7266_v6, %v3057_v26  ;;  %v9732_v52 = vpop.eup %7275  ;;  %v3072_v43 = vsub.f32 1.0, %v3071_v34  ;;  %v2951_v41 = vmul.f32 %v9681_v35, %v9660_v10  ;;  %v2830_v34 = vpop.f32.mrf.mxu2 }
 0x378   : > { %v9729_v13 = vmul.f32 %v9721_v57, %v8273_v48  ;;  %v2932_v48 = vor.u32 1.1754944e-38, %v2931_v7  ;;  %v3086_v39 = vmul.f32 %v9732_v52, %v9683_v36  ;;  %v2939_v42 = vadd.f32 %v9667_v21, %v2938_v60 }
 0x379   : > { %v3059_v4 = vadd.f32 %v7266_v6, %v3058_v53  ;;  %v7278_v23 = vpop.eup %7277  ;;  %v3073_v5 = vmul.f32 %v9708_v15, %v3072_v43  ;;  %v9790_v40 = vadd.f32 1.0, %v7274_v32  ;;  %v2946_v38 = vand.u32 2147483648, %v9655_v2 }
 0x37a   : > { %3226 = vmatpush.msra.mxu0 %v9729_v13  ;;  %v9753_v20 = vsel %vm2930_vm4, %v2932_v48, %v2928_v30  ;;  %v3087_v29 = vsub.f32 1.0, %v3086_v39  ;;  %v9768_v19 = vadd.f32 1.0, %v7278_v23  ;;  %v2952_v26 = vsub.f32 1.0, %v2951_v41 }
 0x37b   : > { %v3063_v24 = vsel %vm9737_vm5, %v7266_v6, %v3059_v4  ;;  %v9759_v28 = vmul.f32 %v9753_v20, %v8257_v44  ;;  %v9778_v44 = vpop.f32.mrf.mxu3  ;;  %v2947_v27 = vor.u32 1.1754944e-38, %v2946_v38  ;;  %v3074_v2 = vadd.f32 %v9708_v15, %v3073_v5 }
 0x37c   : > { %v9772_v9 = vsel %vm9741_vm6, %v3067_v14, %v3063_v24  ;;  %7281 = vrcp.f32 %v9768_v19  ;;  %v9800_v11 = vpop.eup %7279  ;;  %v3088_v62 = vmul.f32 %v9732_v52, %v3087_v29  ;;  %vm3076_vm12 = vweird.f32 %v9708_v15 }
 0x37d   : > { %v9785_v63 = vmul.f32 %v9772_v9, %v8275_v49  ;;  %3227 = vmatpush.msra.mxu0 %v9759_v28  ;;  %v2943_v49 = vsel %vm9774_vm7, %v9667_v21, %v2939_v42  ;;  %7283 = vrcp.f32 %v9781_v8  ;;  %v3101_v61 = vmul.f32 %v9800_v11, %v9717_v58  ;;  %vm9820_vm13 = vmor %vm3075_vm11, %vm3076_vm12 }
 0x37e   : > { %6849 = vmatmul.msk.f32.vlgmr.msra.gmra.mxu0 %vm675_vm0, %v9766_v55  ;;  %7285 = vrcp.f32 %v9790_v40  ;;  %v9811_v21 = vsel %vm2945_vm10, %v2947_v27, %v2943_v49  ;;  %v3079_v7 = vand.u32 2147483647, %v9674_v12  ;;  %v3081_v32 = vand.u32 2147483648, %v9674_v12 }
 0x37f   : > { %3246 = vmatpush.msra.mxu1 %v9785_v63  ;;  %v9818_v37 = vmul.f32 %v9811_v21, %v8259_v45  ;;  %v2967_v60 = vsub.f32 1.0, %v9804_v59  ;;  %v3089_v43 = vadd.f32 %v9732_v52, %v3088_v62  ;;  %v2831_v3 = vadd.f32 %v2830_v34, %v9638_v25 }
 0x380   : > { %v3078_v54 = vsel %vm9820_vm13, %v9708_v15, %v3074_v2  ;;  %vm3080_vm15 = vcmp.eq.f32.partialorder %v3079_v7, 8.507059e+37  ;;  %v3082_v14 = vor.u32 1.1754944e-38, %v3081_v32  ;;  %vm3091_vm1 = vweird.f32 %v9732_v52 }
 0x381   : > { %3247 = vmatpush.msra.mxu1 %v9818_v37  ;;  %v3094_v48 = vand.u32 2147483647, %v9683_v36  ;;  %v3096_v39 = vand.u32 2147483648, %v9683_v36  ;;  %v3102_v23 = vsub.f32 1.0, %v3101_v61  ;;  %vm9845_vm3 = vmor %vm3090_vm14, %vm3091_vm1  ;;  %v2953_v15 = vmul.f32 %v9681_v35, %v2952_v26 }
 0x382   : > { %v9826_v53 = vpop.eup %7281  ;;  %6850 = vmatmul.msk.f32.vlgmr.msra.gmra.mxu1 %vm675_vm0, %v9766_v55  ;;  %vm2955_vm4 = vweird.f32 %v9660_v10  ;;  %vm2956_vm5 = vweird.f32 %v9681_v35  ;;  %v9854_v33 = vsel %vm3080_vm15, %v3082_v14, %v3078_v54  ;;  %v3093_v36 = vsel %vm9845_vm3, %v9732_v52, %v3089_v43 }
 0x383   : > { %v3116_v45 = vmul.f32 %v9826_v53, %v9768_v19  ;;  %v2853_v12 = vpop.f32.mrf.mxu3  ;;  %v9843_v4 = vpop.eup %7283  ;;  %vm3095_vm6 = vcmp.eq.f32.partialorder %v3094_v48, 8.507059e+37  ;;  %v3097_v29 = vor.u32 1.1754944e-38, %v3096_v39  ;;  %v6847_v6 = vmul.f32 -1.442695, %v2831_v3  ;;  %vm9865_vm8 = vmor %vm2955_vm4, %vm2956_vm5 }
 0x384   : > { %v9852_v42 = vpop.eup %7285  ;;  %v2854_v5 = vadd.f32 %v2853_v12, %v9638_v25  ;;  %v9862_v41 = vmul.f32 %v9854_v33, %v8285_v50  ;;  %v2954_v38 = vadd.f32 %v9681_v35, %v2953_v15  ;;  %v2959_v52 = vand.u32 2147483647, %v9660_v10 }
 0x385   : > { %v3117_v59 = vsub.f32 1.0, %v3116_v45  ;;  %v9869_v62 = vsel %vm3095_vm6, %v3097_v29, %v3093_v36  ;;  %v2961_v27 = vand.u32 2147483648, %v9660_v10  ;;  %v2981_v25 = vmul.f32 %v9843_v4, %v9781_v8 }
 0x386   : > { %12318 = vst [vmem:[#allocation60_spill] sm:$0xff] %v9869_v62  ;;  %v9877_v50 = vmul.f32 %v9852_v42, %v9790_v40  ;;  %v3103_v2 = vmul.f32 %v9800_v11, %v3102_v23  ;;  %3266 = vmatpush.msra.mxu2 %v9862_v41  ;;  %v9883_v26 = vmul.f32 %v9869_v62, %v8287_v51  ;;  %vm2960_vm9 = vcmp.eq.f32.partialorder %v2959_v52, 8.507059e+37 }
 0x387   : > { %v2828_v34 = vadd.f32 %v9745_v18, %v9640_v56  ;;  %v2851_v10 = vadd.f32 %v9778_v44, %v9640_v56  ;;  %v2958_v61 = vsel %vm9865_vm8, %v9681_v35, %v2954_v38  ;;  %7287 = vpow2.f32 %v6847_v6 }
 0x388   : > { %v6848_v30 = vmul.f32 -1.442695, %v2854_v5  ;;  %3286 = vmatpush.msra.mxu3 %v9883_v26  ;;  %v2962_v7 = vor.u32 1.1754944e-38, %v2961_v27  ;;  %v2968_v32 = vmul.f32 %v9686_v22, %v2967_v60  ;;  %v3118_v51 = vmul.f32 %v9826_v53, %v3117_v59 }
 0x389   : > { %vm2970_vm7 = vweird.f32 %v9662_v31  ;;  %vm2971_vm10 = vweird.f32 %v9686_v22  ;;  %v2974_v56 = vand.u32 2147483647, %v9662_v31  ;;  %v2976_v43 = vand.u32 2147483648, %v9662_v31 }
 0x38a   : > { %v9898_v18 = vsel %vm2960_vm9, %v2962_v7, %v2958_v61  ;;  %v2969_v35 = vadd.f32 %v9686_v22, %v2968_v32  ;;  %vm9901_vm11 = vmor %vm2970_vm7, %vm2971_vm10  ;;  %v3104_v60 = vadd.f32 %v9800_v11, %v3103_v2  ;;  %vm3105_vm13 = vweird.f32 %v9717_v58 }
 0x38b   : > { %v9909_v45 = vmul.f32 %v9898_v18, %v8269_v46  ;;  %vm2975_vm12 = vcmp.eq.f32.partialorder %v2974_v56, 8.507059e+37  ;;  %vm3106_vm14 = vweird.f32 %v9800_v11  ;;  %v2977_v54 = vor.u32 1.1754944e-38, %v2976_v43  ;;  %v12346_v56 = vld [vmem:[#allocation41_spill] sm:$0xff] }
 0x38c   : > { %v2973_v3 = vsel %vm9901_vm11, %v9686_v22, %v2969_v35  ;;  %vm9916_vm15 = vmor %vm3105_vm13, %vm3106_vm14  ;;  %v3109_v31 = vand.u32 2147483647, %v9717_v58  ;;  %v3111_v14 = vand.u32 2147483648, %v9717_v58  ;;  %v6839_v46 = vmul.f32 -1.442695, %v2828_v34 }
 0x38d   : > { %12321 = vst [vmem:[#allocation61_spill] sm:$0xff] %v9909_v45  ;;  %3267 = vmatpush.msra.mxu2 %v9909_v45  ;;  %v3108_v48 = vsel %vm9916_vm15, %v9800_v11, %v3104_v60  ;;  %v7288_v39 = vpop.eup %7287  ;;  %v2982_v23 = vsub.f32 1.0, %v2981_v25  ;;  %v6840_v24 = vmul.f32 -1.442695, %v2851_v10  ;;  %v9926_v22 = vsel %vm2975_vm12, %v2977_v54, %v2973_v3  ;;  %v12333_v54 = vld [vmem:[#allocation30_spill] sm:$0xff] }
 0x38e   : > { %v3112_v15 = vor.u32 1.1754944e-38, %v3111_v14  ;;  %6851 = vmatmul.msk.f32.vlgmr.msra.gmra.mxu2 %vm675_vm0, %v9766_v55  ;;  %7289 = vpow2.f32 %v6848_v30  ;;  %v9932_v58 = vmul.f32 %v9926_v22, %v8271_v47  ;;  %vm3110_vm1 = vcmp.eq.f32.partialorder %v3109_v31, 8.507059e+37 }
 0x38f   : > { %v3119_v36 = vadd.f32 %v9826_v53, %v3118_v51  ;;  %v2997_v29 = vsub.f32 1.0, %v9877_v50  ;;  %vm3121_vm3 = vweird.f32 %v9826_v53  ;;  %7291 = vpow2.f32 %v6839_v46 }
 0x390   : > { %12324 = vst [vmem:[#allocation62_spill] sm:$0xff] %v9932_v58  ;;  %v9936_v11 = vsel %vm3110_vm1, %v3112_v15, %v3108_v48  ;;  %3287 = vmatpush.msra.mxu3 %v9932_v58  ;;  %vm3120_vm4 = vweird.f32 %v9768_v19  ;;  %v3124_v47 = vand.u32 2147483647, %v9768_v19  ;;  %v5037_v5 = vmul.f32 %v9729_v13, %v9729_v13 }
 0x391   : > { %v9942_v6 = vmul.f32 %v9936_v11, %v8337_v0  ;;  %vm9948_vm5 = vmor %vm3120_vm4, %vm3121_vm3  ;;  %v3126_v49 = vand.u32 2147483648, %v9768_v19  ;;  %v2983_v59 = vmul.f32 %v9843_v4, %v2982_v23  ;;  %6852 = vmatmul.msk.f32.vlgmr.msra.gmra.mxu3 %vm675_vm0, %v9766_v55  ;;  %7293 = vpow2.f32 %v6840_v24 }
 0x392   : > { %v9956_v0 = vadd.f32 1.0, %v7288_v39  ;;  %v3123_v52 = vsel %vm9948_vm5, %v9826_v53, %v3119_v36  ;;  %vm2985_vm6 = vweird.f32 %v9781_v8  ;;  %vm3125_vm8 = vcmp.eq.f32.partialorder %v3124_v47, 8.507059e+37  ;;  %v12336_v39 = vld [vmem:[#allocation31_spill] sm:$0xff] }
 0x393   : > { %12325 = vst [vmem:[#allocation63_spill] sm:$0xff] %v9942_v6  ;;  %3306 = vmatpush.msrb.mxu0 %v9942_v6  ;;  %v3127_v27 = vor.u32 1.1754944e-38, %v3126_v49  ;;  %v2984_v19 = vadd.f32 %v9843_v4, %v2983_v59  ;;  %vm2986_vm9 = vweird.f32 %v9843_v4  ;;  %v2989_v2 = vand.u32 2147483647, %v9781_v8  ;;  %v12339_v59 = vld [vmem:[#allocation48_spill] sm:$0xff] }
 0x394   : > { %v7290_v25 = vpop.eup %7289  ;;  %vm9965_vm7 = vmor %vm2985_vm6, %vm2986_vm9  ;;  %v2991_v34 = vand.u32 2147483648, %v9781_v8  ;;  %v2998_v10 = vmul.f32 %v9852_v42, %v2997_v29  ;;  %vm3000_vm10 = vweird.f32 %v9790_v40  ;;  %vm3001_vm11 = vweird.f32 %v9852_v42  ;;  %v12337_v29 = vld [vmem:[#allocation25_spill] sm:$0xff] }
 0x395   : > { %v9973_v53 = vsel %vm3125_vm8, %v3127_v27, %v3123_v52  ;;  %v2988_v61 = vsel %vm9965_vm7, %v9843_v4, %v2984_v19  ;;  %v3004_v30 = vand.u32 2147483647, %v9790_v40  ;;  %v7292_v7 = vpop.eup %7291  ;;  %vm2990_vm12 = vcmp.eq.f32.partialorder %v2989_v2, 8.507059e+37  ;;  %vm9985_vm13 = vmor %vm3000_vm10, %vm3001_vm11  ;;  %v12342_v2 = vld [vmem:[#allocation49_spill] sm:$0xff] }
 0x396   : > { %v9982_v32 = vmul.f32 %v9973_v53, %v8339_v1  ;;  %v2992_v8 = vor.u32 1.1754944e-38, %v2991_v34  ;;  %v2999_v51 = vadd.f32 %v9852_v42, %v2998_v10  ;;  %v9989_v35 = vadd.f32 1.0, %v7290_v25  ;;  %v12340_v25 = vld [vmem:[#allocation40_spill] sm:$0xff] }
 0x397   : > { %v3006_v4 = vand.u32 2147483648, %v9790_v40  ;;  %v9994_v44 = vmul.f32 %v9721_v57, %v8363_v16  ;;  %v9998_v1 = vmul.f32 %v9772_v9, %v8365_v17  ;;  %v7294_v43 = vpop.eup %7293  ;;  %vm3005_vm14 = vcmp.eq.f32.partialorder %v3004_v30, 8.507059e+37  ;;  %v12334_v17 = vld [vmem:[#allocation24_spill] sm:$0xff] }
 0x398   : > { %12330 = vst [vmem:[#allocation64_spill] sm:$0xff] %v9982_v32  ;;  %3326 = vmatpush.msrb.mxu1 %v9982_v32  ;;  %v10001_v60 = vsel %vm2990_vm12, %v2992_v8, %v2988_v61  ;;  %v3003_v3 = vsel %vm9985_vm13, %v9852_v42, %v2999_v51  ;;  %v10008_v40 = vmul.f32 %v9753_v20, %v12333_v54  ;;  %v10012_v12 = vadd.f32 1.0, %v7292_v7  ;;  %v12343_v10 = vld [vmem:[#allocation36_spill] sm:$0xff] }
 0x399   : > { %v5029_v16 = vmul.f32 %v9759_v28, %v9759_v28  ;;  %v10016_v31 = vmul.f32 %v10001_v60, %v12334_v17  ;;  %v3007_v14 = vor.u32 1.1754944e-38, %v3006_v4  ;;  %v5038_v46 = vmul.f32 %v9785_v63, %v9785_v63  ;;  %v12345_v30 = vld [vmem:[#allocation44_spill] sm:$0xff] }
 0x39a   : > { %v5053_v42 = vmul.f32 %v9994_v44, %v9994_v44  ;;  %v5054_v48 = vmul.f32 %v9998_v1, %v9998_v1  ;;  %v10026_v23 = vmul.f32 %v9811_v21, %v12336_v39  ;;  %v10028_v24 = vadd.f32 1.0, %v7294_v43  ;;  %v12348_v43 = vld [vmem:[#allocation45_spill] sm:$0xff] }
 0x39b   : > { %12335 = vst [vmem:[#allocation30_spill] sm:$0xff] %v10016_v31  ;;  %7295 = vrcp.f32 %v9956_v0  ;;  %3307 = vmatpush.msrb.mxu0 %v10016_v31  ;;  %v10032_v15 = vsel %vm3005_vm14, %v3007_v14, %v3003_v3  ;;  %v5045_v36 = vmul.f32 %v10008_v40, %v10008_v40  ;;  %v5030_v38 = vmul.f32 %v9818_v37, %v9818_v37 }
 0x39c   : > { %7297 = vrcp.f32 %v9989_v35  ;;  %v10039_v47 = vmul.f32 %v10032_v15, %v12337_v29  ;;  %6853 = vmatmul.msk.f32.vlgmr.msrb.gmra.mxu0 %vm675_vm0, %v9766_v55  ;;  %v5046_v49 = vmul.f32 %v10026_v23, %v10026_v23  ;;  %v10051_v52 = vmul.f32 %v9721_v57, %v12339_v59 }
 0x39d   : > { %7299 = vrcp.f32 %v10012_v12  ;;  %3386 = vmatpush.msra.mxu0 %v9994_v44  ;;  %v5069_v27 = vadd.f32 %v5053_v42, %v5037_v5  ;;  %v5070_v19 = vadd.f32 %v5054_v48, %v5038_v46  ;;  %v10056_v50 = vmul.f32 %v9936_v11, %v12340_v25  ;;  %v12350_v46 = vld [vmem:[#allocation37_spill] sm:$0xff] }
 0x39e   : > { %12338 = vst [vmem:[#allocation24_spill] sm:$0xff] %v10039_v47  ;;  %3327 = vmatpush.msrb.mxu1 %v10039_v47  ;;  %v10060_v34 = vmul.f32 %v9772_v9, %v12342_v2  ;;  %7301 = vrcp.f32 %v10028_v24  ;;  %v5061_v57 = vadd.f32 %v5045_v36, %v5029_v16  ;;  %v10068_v5 = vmul.f32 %v10001_v60, %v12343_v10 }
 0x39f   : > { %12341 = vst [vmem:[#allocation31_spill] sm:$0xff] %v10056_v50  ;;  %6854 = vmatmul.msk.f32.vlgmr.msrb.gmra.mxu1 %vm675_vm0, %v9766_v55  ;;  %3387 = vmatpush.msra.mxu0 %v10008_v40  ;;  %v5085_v9 = vmul.f32 %v10051_v52, %v10051_v52  ;;  %v10078_v7 = vmul.f32 %v9753_v20, %v12345_v30  ;;  %v3139_v58 = vand.u32 2147483647, %v9956_v0  ;;  %v3154_v45 = vand.u32 2147483647, %v9989_v35 }
 0x3a0   : > { %12344 = vst [vmem:[#allocation25_spill] sm:$0xff] %v10068_v5  ;;  %3406 = vmatpush.msra.mxu1 %v9998_v1  ;;  %v5086_v61 = vmul.f32 %v10060_v34, %v10060_v34  ;;  %v5062_v51 = vadd.f32 %v5046_v49, %v5030_v38  ;;  %v10084_v4 = vmul.f32 %v9973_v53, %v12346_v56  ;;  %vm3135_vm6 = vweird.f32 %v9956_v0 }
 0x3a1   : > { %3466 = vmatpush.msrb.mxu0 %v10056_v50  ;;  %v10080_v8 = vpop.eup %7295  ;;  %v10088_v3 = vmul.f32 %v9811_v21, %v12348_v43  ;;  %v5101_v16 = vadd.f32 %v5085_v9, %v5069_v27  ;;  %v5077_v17 = vmul.f32 %v10078_v7, %v10078_v7  ;;  %v10101_v42 = vmul.f32 %v10032_v15, %v12350_v46 }
 0x3a2   : > { %12347 = vst [vmem:[#allocation48_spill] sm:$0xff] %v10084_v4  ;;  %v10090_v54 = vpop.eup %7297  ;;  %3407 = vmatpush.msra.mxu1 %v10026_v23  ;;  %v5102_v20 = vadd.f32 %v5086_v61, %v5070_v19  ;;  %v3131_v48 = vmul.f32 %v10080_v8, %v9956_v0  ;;  %v5041_v9 = vmul.f32 %v9942_v6, %v9942_v6  ;;  %vm3150_vm7 = vweird.f32 %v9989_v35 }
 0x3a3   : > { %12349 = vst [vmem:[#allocation40_spill] sm:$0xff] %v10088_v3  ;;  %3467 = vmatpush.msrb.mxu0 %v10068_v5  ;;  %v10096_v14 = vpop.eup %7299  ;;  %v5078_v21 = vmul.f32 %v10088_v3, %v10088_v3  ;;  %v10109_v39 = vadd.f32 1e-08, %v5101_v16  ;;  %v5093_v29 = vadd.f32 %v5077_v17, %v5061_v57  ;;  %v3146_v49 = vmul.f32 %v10090_v54, %v9989_v35 }
 0x3a4   : > { %3486 = vmatpush.msrb.mxu1 %v10084_v4  ;;  %12351 = vst [vmem:[#allocation49_spill] sm:$0xff] %v10101_v42  ;;  %6857 = vmatmul.msk.f32.vlgmr.msra.gmra.mxu0 %vm675_vm0, %v9766_v55  ;;  %v10111_v36 = vadd.f32 1e-08, %v5102_v20  ;;  %v10113_v38 = vpop.eup %7301  ;;  %v10122_v27 = vmul.f32 %v10096_v14, %v10012_v12  ;;  %v3132_v25 = vsub.f32 1.0, %v3131_v48  ;;  %v5042_v61 = vmul.f32 %v9982_v32, %v9982_v32 }
 0x3a5   : > { %3546 = vmatpush.msra.mxu0 %v10051_v52  ;;  %v5094_v59 = vadd.f32 %v5078_v21, %v5062_v51  ;;  %7303 = vrsqrt.f32 %v10109_v39  ;;  %v10130_v19 = vmul.f32 %v10113_v38, %v10028_v24  ;;  %v10133_v2 = vadd.f32 1e-08, %v5093_v29 }
 0x3a6   : > { %3487 = vmatpush.msrb.mxu1 %v10101_v42  ;;  %7305 = vrsqrt.f32 %v10111_v36  ;;  %v3147_v10 = vsub.f32 1.0, %v3146_v49  ;;  %v5057_v30 = vmul.f32 %v10056_v50, %v10056_v50  ;;  %v5058_v51 = vmul.f32 %v10084_v4, %v10084_v4  ;;  %v12354_v4 = vld [vmem:[#allocation55_spill] sm:$0xff] }
 0x3a7   : > { %6858 = vmatmul.msk.f32.vlgmr.msra.gmra.mxu1 %vm675_vm0, %v9766_v55  ;;  %3547 = vmatpush.msra.mxu0 %v10078_v7  ;;  %v10135_v57 = vadd.f32 1e-08, %v5094_v59  ;;  %7307 = vrsqrt.f32 %v10133_v2  ;;  %v10151_v20 = vmul.f32 %v10080_v8, %v3132_v25  ;;  %v10160_v21 = vmul.f32 %v10016_v31, %v10016_v31  ;;  %v12352_v31 = vld [vmem:[#allocation54_spill] sm:$0xff] }
 0x3a8   : > { %3566 = vmatpush.msra.mxu1 %v10060_v34  ;;  %v10156_v46 = vmul.f32 %v10090_v54, %v3147_v10  ;;  %v10164_v48 = vmul.f32 %v10039_v47, %v10039_v47  ;;  %v5073_v49 = vadd.f32 %v5057_v30, %v5041_v9  ;;  %v5074_v59 = vadd.f32 %v5058_v51, %v5042_v61 }
 0x3a9   : > { %7309 = vrsqrt.f32 %v10135_v57  ;;  %v10169_v25 = vmul.f32 %v10068_v5, %v10068_v5  ;;  %v10177_v47 = vmul.f32 %v9936_v11, %v12352_v31  ;;  %v10181_v9 = vmul.f32 %v9973_v53, %v12354_v4  ;;  %v12356_v31 = vld [vmem:[#allocation52_spill] sm:$0xff] }
 0x3aa   : > { %3567 = vmatpush.msra.mxu1 %v10088_v3  ;;  %vm5228_vm15 = vcmp.eq.f32.partialorder %v10109_v39, inf  ;;  %v5243_v51 = vand.u32 2147483648, %v10111_v36  ;;  %vm5230_vm1 = vcmp.eq.f32.partialorder %v10109_v39, 0.0  ;;  %vm5240_vm3 = vcmp.eq.f32.partialorder %v10111_v36, inf }
 0x3ab   : > { %v7304_v56 = vpop.eup %7303  ;;  %12353 = vst [vmem:[#allocation36_spill] sm:$0xff] %v10177_v47  ;;  %v3141_v53 = vand.u32 2147483648, %v9956_v0  ;;  %v10195_v4 = vmul.f32 %v10001_v60, %v12356_v31  ;;  %vm5242_vm4 = vcmp.eq.f32.partialorder %v10111_v36, 0.0  ;;  %vm5132_vm5 = vcmp.eq.f32.partialorder %v10133_v2, inf }
 0x3ac   : > { %6861 = vmatmul.msk.f32.vlgmr.msrb.gmra.mxu0 %vm675_vm0, %v9766_v55  ;;  %v7306_v17 = vpop.eup %7305  ;;  %v5222_v29 = vmul.f32 %v7304_v56, %v10109_v39  ;;  %12355 = vst [vmem:[#allocation44_spill] sm:$0xff] %v10181_v9  ;;  %vm5134_vm8 = vcmp.eq.f32.partialorder %v10133_v2, 0.0  ;;  %vm5144_vm9 = vcmp.eq.f32.partialorder %v10135_v57, inf  ;;  %vm5146_vm10 = vcmp.eq.f32.partialorder %v10135_v57, 0.0 }
 0x3ad   : > { %v5234_v16 = vmul.f32 %v7306_v17, %v10111_v36  ;;  %v7308_v61 = vpop.eup %7307  ;;  %3626 = vmatpush.msrb.mxu0 %v10177_v47  ;;  %12357 = vst [vmem:[#allocation41_spill] sm:$0xff] %v10195_v4  ;;  %v3142_v31 = vor.u32 1.1754944e-38, %v3141_v53  ;;  %vm3016_vm11 = vweird.f32 %v10096_v14  ;;  %vm10218_vm12 = vcmp.eq.f32.partialorder %v3139_v58, 8.507059e+37 }
 0x3ae   : > { %v5223_v10 = vmul.f32 %v7304_v56, %v5222_v29  ;;  %v5126_v11 = vmul.f32 %v7308_v61, %v10133_v2  ;;  %vm10222_vm13 = vcmp.eq.f32.partialorder %v3154_v45, 8.507059e+37  ;;  %vm3015_vm14 = vweird.f32 %v10012_v12 }
 0x3af   : > { %6862 = vmatmul.msk.f32.vlgmr.msrb.gmra.mxu1 %vm675_vm0, %v9766_v55  ;;  %v5235_v30 = vmul.f32 %v7306_v17, %v5234_v16  ;;  %v7310_v5 = vpop.eup %7309  ;;  %3627 = vmatpush.msrb.mxu0 %v10195_v4  ;;  %vm3136_vm2 = vweird.f32 %v10080_v8 }
 0x3b0   : > { %v5224_v32 = vmul.f32 0.5, %v5223_v10  ;;  %3646 = vmatpush.msrb.mxu1 %v10181_v9  ;;  %v5135_v10 = vand.u32 2147483648, %v10133_v2  ;;  %v5138_v29 = vmul.f32 %v7310_v5, %v10135_v57  ;;  %v5127_v6 = vmul.f32 %v7308_v61, %v5126_v11 }
 0x3b1   : > { %v5236_v16 = vmul.f32 0.5, %v5235_v30  ;;  %v5089_v30 = vmul.f32 %v10177_v47, %v10177_v47  ;;  %v5090_v47 = vmul.f32 %v10181_v9, %v10181_v9  ;;  %v12363_v9 = vand.u32 2147483648, %v10109_v39 }
 0x3b2   : > { %v5225_v50 = vsub.f32 1.5, %v5224_v32  ;;  %v5139_v60 = vmul.f32 %v7310_v5, %v5138_v29  ;;  %v5128_v11 = vmul.f32 0.5, %v5127_v6 }
 0x3b3   : > { %v5237_v3 = vsub.f32 1.5, %v5236_v16  ;;  %v5105_v29 = vadd.f32 %v5089_v30, %v5073_v49  ;;  %v5106_v30 = vadd.f32 %v5090_v47, %v5074_v59 }
 0x3b4   : > { %6865 = vmatmul.msk.f32.vlgmr.msra.gmra.mxu0 %vm675_vm0, %v9766_v55  ;;  %v5226_v32 = vmul.f32 %v7304_v56, %v5225_v50  ;;  %v5140_v43 = vmul.f32 0.5, %v5139_v60  ;;  %v5129_v6 = vsub.f32 1.5, %v5128_v11 }
 0x3b5   : > { %v5238_v16 = vmul.f32 %v7306_v17, %v5237_v3  ;;  %v3156_v3 = vand.u32 2147483648, %v9989_v35  ;;  %v10230_v60 = vadd.f32 1e-08, %v5105_v29 }
 0x3b6   : > { %v5227_v50 = vmul.f32 %v5226_v32, %v10109_v39  ;;  %v5141_v49 = vsub.f32 1.5, %v5140_v43  ;;  %v5130_v58 = vmul.f32 %v7308_v61, %v5129_v6  ;;  %v12362_v32 = vsub.f32 1.0, %v10122_v27 }
 0x3b7   : > { %6866 = vmatmul.msk.f32.vlgmr.msra.gmra.mxu1 %vm675_vm0, %v9766_v55  ;;  %v5239_v17 = vmul.f32 %v5238_v16, %v10111_v36  ;;  %7311 = vrsqrt.f32 %v10230_v60  ;;  %v3157_v29 = vor.u32 1.1754944e-38, %v3156_v3 }
 0x3b8   : > { %v5229_v45 = vsel %vm5228_vm15, %v10109_v39, %v5227_v50  ;;  %v3013_v11 = vmul.f32 %v10096_v14, %v12362_v32  ;;  %v5142_v59 = vmul.f32 %v7310_v5, %v5141_v49  ;;  %v5131_v16 = vmul.f32 %v5130_v58, %v10133_v2 }
 0x3b9   : > { %v10244_v43 = vsel %vm5230_vm1, %v12363_v9, %v5229_v45  ;;  %v5241_v47 = vsel %vm5240_vm3, %v10111_v36, %v5239_v17  ;;  %vm3151_vm15 = vweird.f32 %v10090_v54  ;;  %v10259_v50 = vadd.f32 1e-08, %v5106_v30  ;;  %vm3137_vm1 = vmor %vm3135_vm6, %vm3136_vm2 }
 0x3ba   : > { %v6913_v61 = vmul.f32 -1.442695, %v10244_v43  ;;  %v10253_v27 = vsel %vm5242_vm4, %v5243_v51, %v5241_v47  ;;  %v5143_v9 = vmul.f32 %v5142_v59, %v10135_v57  ;;  %v5133_v5 = vsel %vm5132_vm5, %v10133_v2, %v5131_v16  ;;  %vm3152_vm3 = vmor %vm3150_vm7, %vm3151_vm15 }
 0x3bb   : > { %v6914_v39 = vmul.f32 -1.442695, %v10253_v27  ;;  %v3134_v36 = vadd.f32 %v10080_v8, %v10151_v20  ;;  %v3149_v51 = vadd.f32 %v10090_v54, %v10156_v46  ;;  %v10276_v6 = vsel %vm5134_vm8, %v5135_v10, %v5133_v5  ;;  %vm10319_vm2 = vmor %vm3015_vm14, %vm3016_vm11 }
 0x3bc   : > { %6869 = vmatmul.msk.f32.vlgmr.msrb.gmra.mxu0 %vm675_vm0, %v9766_v55  ;;  %7313 = vpow2.f32 %v6913_v61  ;;  %v5145_v3 = vsel %vm5144_vm9, %v10135_v57, %v5143_v9  ;;  %v3014_v20 = vadd.f32 %v10096_v14, %v3013_v11  ;;  %v6905_v0 = vmul.f32 -1.442695, %v10276_v6 }
 0x3bd   : > { %7315 = vpow2.f32 %v6914_v39  ;;  %v12364_v17 = vand.u32 2147483648, %v10135_v57  ;;  %v3138_v2 = vsel %vm3137_vm1, %v10080_v8, %v3134_v36  ;;  %v3153_v10 = vsel %vm3152_vm3, %v10090_v54, %v3149_v51  ;;  %v10293_v49 = vpop.eup %7311  ;;  %v12367_v57 = vld [vmem:[#allocation28_spill] sm:$0xff]  ;;  %v12368_v54 = vld [vmem:[#allocation29_spill] sm:$0xff]  ;;  %v12374_v51 = vld [vmem:[#allocation34_spill] sm:$0xff] }
 0x3be   : > { %v10298_v35 = vsel %vm10218_vm12, %v3142_v31, %v3138_v2  ;;  %v10302_v45 = vsel %vm10222_vm13, %v3157_v29, %v3153_v10  ;;  %7317 = vrsqrt.f32 %v10259_v50  ;;  %v5270_v56 = vmul.f32 %v10293_v49, %v10230_v60  ;;  %v12377_v2 = vld [vmem:[#allocation53_spill] sm:$0xff] }
 0x3bf   : > { %v10289_v46 = vsel %vm5146_vm10, %v12364_v17, %v5145_v3  ;;  %12365 = vst [vmem:[#allocation45_spill] sm:$0xff] %v10298_v35  ;;  %7319 = vpow2.f32 %v6905_v0  ;;  %v10307_v8 = vmul.f32 %v10298_v35, %v12367_v57  ;;  %v10311_v58 = vmul.f32 %v10302_v45, %v12368_v54 }
 0x3c0   : > { %v6906_v30 = vmul.f32 -1.442695, %v10289_v46  ;;  %12366 = vst [vmem:[#allocation37_spill] sm:$0xff] %v10302_v45  ;;  %v3018_v53 = vsel %vm10319_vm2, %v10096_v14, %v3014_v20  ;;  %v12371_v32 = vand.u32 2147483648, %v10012_v12  ;;  %v3036_v47 = vand.u32 2147483648, %v10028_v24 }
 0x3c1   : > { %v10331_v61 = vmul.f32 %v10101_v42, %v10101_v42  ;;  %3346 = vmatpush.msrb.mxu2 %v10307_v8  ;;  %3366 = vmatpush.msrb.mxu3 %v10311_v58  ;;  %v5271_v16 = vmul.f32 %v10293_v49, %v5270_v56  ;;  %v12372_v39 = vand.u32 2147483647, %v10012_v12  ;;  %v3034_v14 = vand.u32 2147483647, %v10028_v24  ;;  %v12375_v12 = vld [vmem:[#allocation26_spill] sm:$0xff] }
 0x3c2   : > { %7321 = vpow2.f32 %v6906_v30  ;;  %v3022_v11 = vor.u32 1.1754944e-38, %v12371_v32  ;;  %v7314_v59 = vpop.eup %7313  ;;  %v10341_v29 = vadd.f32 %v10169_v25, %v10160_v21  ;;  %v10349_v3 = vmul.f32 %v9854_v33, %v12374_v51  ;;  %v12378_v30 = vld [vmem:[#allocation35_spill] sm:$0xff] }
 0x3c3   : > { %vm3020_vm4 = vcmp.eq.f32.partialorder %v12372_v39, 8.507059e+37  ;;  %v7316_v9 = vpop.eup %7315  ;;  %v10343_v5 = vadd.f32 1.0, %v7314_v59  ;;  %v5272_v0 = vmul.f32 0.5, %v5271_v16  ;;  %v10359_v10 = vmul.f32 %v10032_v15, %v12377_v2 }
 0x3c4   : > { %v10345_v36 = vsel %vm3020_vm4, %v3022_v11, %v3018_v53  ;;  %v10351_v20 = vadd.f32 1.0, %v7316_v9  ;;  %v10361_v21 = vpop.eup %7317  ;;  %vm3030_vm5 = vweird.f32 %v10028_v24  ;;  %v3037_v25 = vor.u32 1.1754944e-38, %v3036_v47 }
 0x3c5   : > { %12373 = vst [vmem:[#allocation54_spill] sm:$0xff] %v10345_v36  ;;  %v10355_v17 = vmul.f32 %v10345_v36, %v12375_v12  ;;  %7323 = vrcp.f32 %v10343_v5  ;;  %v10367_v57 = vmul.f32 %v9869_v62, %v12378_v30  ;;  %v7320_v54 = vpop.eup %7319  ;;  %vm5276_vm6 = vcmp.eq.f32.partialorder %v10230_v60, inf  ;;  %3647 = vmatpush.msrb.mxu1 %v10359_v10 }
 0x3c6   : > { %7325 = vrcp.f32 %v10351_v20  ;;  %v12379_v15 = vsub.f32 1.0, %v10130_v19  ;;  %vm10376_vm8 = vcmp.eq.f32.partialorder %v3034_v14, 8.507059e+37  ;;  %v5512_v11 = vand.u32 2147483648, %v10343_v5  ;;  %6870 = vmatmul.msk.f32.vlgmr.msrb.gmra.mxu1 %vm675_vm0, %v9766_v55 }
 0x3c7   : > { %12376 = vst [vmem:[#allocation55_spill] sm:$0xff] %v10355_v17  ;;  %3347 = vmatpush.msrb.mxu2 %v10355_v17  ;;  %v5527_v47 = vand.u32 2147483648, %v10351_v20  ;;  %v10383_v59 = vadd.f32 1.0, %v7320_v54  ;;  %v5273_v16 = vsub.f32 1.5, %v5272_v0  ;;  %vm5278_vm9 = vcmp.eq.f32.partialorder %v10230_v60, 0.0 }
 0x3c8   : > { %v3028_v31 = vmul.f32 %v10113_v38, %v12379_v15  ;;  %v7322_v32 = vpop.eup %7321  ;;  %6855 = vmatmul.msk.f32.vlgmr.msrb.gmra.mxu2 %vm675_vm0, %v9766_v55  ;;  %v5510_v19 = vand.u32 2147483647, %v10343_v5  ;;  %v5282_v14 = vmul.f32 %v10361_v21, %v10259_v50  ;;  %v5525_v51 = vand.u32 2147483647, %v10351_v20 }
 0x3c9   : > { %v10391_v39 = vadd.f32 1.0, %v7322_v32  ;;  %3426 = vmatpush.msra.mxu2 %v10349_v3  ;;  %7327 = vrcp.f32 %v10383_v59  ;;  %v5392_v0 = vand.u32 2147483648, %v10383_v59  ;;  %vm3031_vm7 = vweird.f32 %v10113_v38 }
 0x3ca   : > { %vm5506_vm10 = vweird.f32 %v10343_v5  ;;  %v3029_v12 = vadd.f32 %v10113_v38, %v3028_v31  ;;  %v5081_v2 = vmul.f32 %v10195_v4, %v10195_v4  ;;  %v5513_v54 = vor.u32 1.1754944e-38, %v5512_v11  ;;  %vm3032_vm15 = vmor %vm3030_vm5, %vm3031_vm7 }
 0x3cb   : > { %7329 = vrcp.f32 %v10391_v39  ;;  %v7324_v30 = vpop.eup %7323  ;;  %vm5521_vm11 = vweird.f32 %v10351_v20  ;;  %v5528_v15 = vor.u32 1.1754944e-38, %v5527_v47  ;;  %v5274_v32 = vmul.f32 %v10293_v49, %v5273_v16 }
 0x3cc   : > { %v5283_v9 = vmul.f32 %v10361_v21, %v5282_v14  ;;  %v7326_v56 = vpop.eup %7325  ;;  %v5502_v42 = vmul.f32 %v7324_v30, %v10343_v5  ;;  %vm10410_vm12 = vcmp.eq.f32.partialorder %v5510_v19, 8.507059e+37  ;;  %v5390_v31 = vand.u32 2147483647, %v10383_v59 }
 0x3cd   : > { %v5405_v4 = vand.u32 2147483647, %v10391_v39  ;;  %v5517_v36 = vmul.f32 %v7326_v56, %v10351_v20  ;;  %vm10418_vm13 = vcmp.eq.f32.partialorder %v5525_v51, 8.507059e+37  ;;  %v10422_v49 = vor.u32 1.1754944e-38, %v5392_v0 }
 0x3ce   : > { %v5275_v16 = vmul.f32 %v5274_v32, %v10230_v60  ;;  %v5284_v19 = vmul.f32 0.5, %v5283_v9  ;;  %vm5288_vm14 = vcmp.eq.f32.partialorder %v10259_v50, inf  ;;  %v5503_v14 = vsub.f32 1.0, %v5502_v42 }
 0x3cf   : > { %vm5507_vm1 = vweird.f32 %v7324_v30  ;;  %vm5386_vm3 = vweird.f32 %v10383_v59  ;;  %vm5290_vm2 = vcmp.eq.f32.partialorder %v10259_v50, 0.0  ;;  %v3033_v51 = vsel %vm3032_vm15, %v10113_v38, %v3029_v12  ;;  %v7328_v11 = vpop.eup %7327 }
 0x3d0   : > { %v5097_v0 = vadd.f32 %v5081_v2, %v10341_v29  ;;  %v5518_v32 = vsub.f32 1.0, %v5517_v36  ;;  %v5277_v9 = vsel %vm5276_vm6, %v10230_v60, %v5275_v16  ;;  %v5285_v45 = vsub.f32 1.5, %v5284_v19  ;;  %v12389_v19 = vld [vmem:[#allocation27_spill] sm:$0xff] }
 0x3d1   : > { %v10439_v24 = vsel %vm10376_vm8, %v3037_v25, %v3033_v51  ;;  %v10441_v42 = vpop.eup %7329  ;;  %v5504_v35 = vmul.f32 %v7324_v30, %v5503_v14  ;;  %vm5522_vm4 = vweird.f32 %v7326_v56  ;;  %v5382_v62 = vmul.f32 %v7328_v11, %v10383_v59  ;;  %vm5508_vm8 = vmor %vm5506_vm10, %vm5507_vm1 }
 0x3d2   : > { %vm10444_vm5 = vcmp.eq.f32.partialorder %v5390_v31, 8.507059e+37  ;;  %vm5401_vm7 = vweird.f32 %v10391_v39  ;;  %v12388_v29 = vand.u32 2147483648, %v10230_v60  ;;  %v5519_v25 = vmul.f32 %v7326_v56, %v5518_v32 }
 0x3d3   : > { %vm5387_vm6 = vweird.f32 %v7328_v11  ;;  %v5397_v53 = vmul.f32 %v10441_v42, %v10391_v39  ;;  %v5505_v2 = vadd.f32 %v7324_v30, %v5504_v35  ;;  %v5383_v31 = vsub.f32 1.0, %v5382_v62 }
 0x3d4   : > { %v10453_v36 = vsel %vm5278_vm9, %v12388_v29, %v5277_v9  ;;  %v5286_v16 = vmul.f32 %v10361_v21, %v5285_v45  ;;  %v10461_v14 = vmul.f32 %v10439_v24, %v12389_v19  ;;  %v5520_v60 = vadd.f32 %v7326_v56, %v5519_v25  ;;  %vm5523_vm9 = vmor %vm5521_vm11, %vm5522_vm4 }
 0x3d5   : > { %v6917_v12 = vmul.f32 -1.442695, %v10453_v36  ;;  %v5398_v51 = vsub.f32 1.0, %v5397_v53  ;;  %v10466_v32 = vadd.f32 1e-08, %v5097_v0  ;;  %v5509_v9 = vsel %vm5508_vm8, %v7324_v30, %v5505_v2  ;;  %vm5388_vm10 = vmor %vm5386_vm3, %vm5387_vm6 }
 0x3d6   : > { %v5384_v62 = vmul.f32 %v7328_v11, %v5383_v31  ;;  %vm5402_vm15 = vweird.f32 %v10441_v42  ;;  %v5287_v35 = vmul.f32 %v5286_v16, %v10259_v50  ;;  %3367 = vmatpush.msrb.mxu3 %v10461_v14  ;;  %v5514_v45 = vsel %vm10410_vm12, %v5513_v54, %v5509_v9  ;;  %v12395_v9 = vld [vmem:[#allocation33_spill] sm:$0xff] }
 0x3d7   : > { %7331 = vpow2.f32 %v6917_v12  ;;  %v5524_v5 = vsel %vm5523_vm9, %v7326_v56, %v5520_v60  ;;  %v5399_v21 = vmul.f32 %v10441_v42, %v5398_v51  ;;  %6856 = vmatmul.msk.f32.vlgmr.msrb.gmra.mxu3 %vm675_vm0, %v9766_v55  ;;  %v5629_v20 = vmul.f32 %v5514_v45, %v10244_v43  ;;  %vm5403_vm12 = vmor %vm5401_vm7, %vm5402_vm15  ;;  %v12397_v45 = vld [vmem:[#allocation40_spill] sm:$0xff]  ;;  %v10591_v43 = vld [vmem:[%s12134_s8] sm:$0x7] }
 0x3d8   : > { %7333 = vrsqrt.f32 %v10466_v32  ;;  %v5529_v30 = vsel %vm10418_vm13, %v5528_v15, %v5524_v5  ;;  %v5385_v0 = vadd.f32 %v7328_v11, %v5384_v62  ;;  %v5289_v29 = vsel %vm5288_vm14, %v10259_v50, %v5287_v35  ;;  %3446 = vmatpush.msra.mxu3 %v10367_v57 }
 0x3d9   : > { %v5630_v17 = vmul.f32 %v5529_v30, %v10253_v27  ;;  %v5400_v55 = vadd.f32 %v10441_v42, %v5399_v21  ;;  %vm10492_vm11 = vcmp.eq.f32.partialorder %v5405_v4, 8.507059e+37  ;;  %v12392_v56 = vand.u32 2147483648, %v10259_v50 }
 0x3da   : > { %v6317_v15 = vmul.f32 %v5629_v20, %v9729_v13  ;;  %v6349_v27 = vmul.f32 %v5629_v20, %v9994_v44  ;;  %v6382_v47 = vmul.f32 %v5629_v20, %v10051_v52  ;;  %v5389_v59 = vsel %vm5388_vm10, %v7328_v11, %v5385_v0  ;;  %v12398_v0 = vld [vmem:[#allocation61_spill] sm:$0xff] }
 0x3db   : > { %v10500_v54 = vsel %vm5290_vm2, %v12392_v56, %v5289_v29  ;;  %v6318_v53 = vmul.f32 %v5630_v17, %v9785_v63  ;;  %v6350_v4 = vmul.f32 %v5630_v17, %v9998_v1  ;;  %v5394_v12 = vsel %vm10444_vm5, %v10422_v49, %v5389_v59  ;;  %v12399_v29 = vld [vmem:[#allocation62_spill] sm:$0xff] }
 0x3dc   : > { %v12393_v13 = vand.u32 2147483648, %v10391_v39  ;;  %6333 = vst [vmem:[%s10518_s11 + $0x40] sm:$0xff] %v6317_v15  ;;  %v5621_v63 = vmul.f32 %v5394_v12, %v10276_v6  ;;  %v5404_v1 = vsel %vm5403_vm12, %v10441_v42, %v5400_v55  ;;  %v6918_v50 = vmul.f32 -1.442695, %v10500_v54 }
 0x3dd   : > { %v7332_v25 = vpop.eup %7331  ;;  %v5066_v39 = vadd.f32 %v10331_v61, %v10164_v48  ;;  %6961 = vst [vmem:[%s10518_s11 + $0xc0] sm:$0xff] %v6349_v27  ;;  %v6383_v49 = vmul.f32 %v5630_v17, %v10060_v34  ;;  %v5039_v2 = vmul.f32 %v9862_v41, %v9862_v41  ;;  %v5082_v34 = vmul.f32 %v10359_v10, %v10359_v10 }
 0x3de   : > { %v5408_v44 = vor.u32 1.1754944e-38, %v12393_v13  ;;  %v10523_v52 = vadd.f32 1.0, %v7332_v25  ;;  %v10526_v11 = vpop.eup %7333  ;;  %6977 = vst [vmem:[%s10518_s11 + $0x140] sm:$0xff] %v6382_v47  ;;  %v6309_v6 = vmul.f32 %v5621_v63, %v9759_v28  ;;  %v6341_v31 = vmul.f32 %v5621_v63, %v10008_v40 }
 0x3df   : > { %6334 = vst [vmem:[%s10518_s11 + $0x48] sm:$0xff] %v6318_v53  ;;  %v5040_v48 = vmul.f32 %v9883_v26, %v9883_v26  ;;  %v6374_v28 = vmul.f32 %v5621_v63, %v10078_v7  ;;  %v5056_v61 = vmul.f32 %v10367_v57, %v10367_v57  ;;  %v5174_v16 = vmul.f32 %v10526_v11, %v10466_v32  ;;  %v12394_v7 = vld [vmem:[#allocation32_spill] sm:$0xff] }
 0x3e0   : > { %v5409_v38 = vsel %vm10492_vm11, %v5408_v44, %v5404_v1  ;;  %7335 = vrcp.f32 %v10523_v52  ;;  %6962 = vst [vmem:[%s10518_s11 + $0xc8] sm:$0xff] %v6350_v4  ;;  %v5098_v19 = vadd.f32 %v5082_v34, %v5066_v39  ;;  %v10560_v51 = vmul.f32 %v9898_v18, %v12394_v7  ;;  %v12401_v39 = vld [vmem:[#allocation60_spill] sm:$0xff]  ;;  %v12405_v34 = vld [vmem:[#allocation45_spill] sm:$0xff] }
 0x3e1   : > { %v5622_v42 = vmul.f32 %v5409_v38, %v10289_v46  ;;  %7337 = vpow2.f32 %v6918_v50  ;;  %v5055_v46 = vmul.f32 %v10349_v3, %v10349_v3  ;;  %6978 = vst [vmem:[%s10518_s11 + $0x148] sm:$0xff] %v6383_v49  ;;  %v10564_v62 = vmul.f32 %v9926_v22, %v12395_v9  ;;  %v12400_v50 = vld [vmem:[#allocation51_spill] sm:$0xff] }
 0x3e2   : > { %6325 = vst [vmem:[%s10518_s11] sm:$0xff] %v6309_v6  ;;  %v5175_v21 = vmul.f32 %v10526_v11, %v5174_v16  ;;  %v10573_v20 = vadd.f32 1e-08, %v5098_v19  ;;  %3427 = vmatpush.msra.mxu2 %v10560_v51  ;;  %v10584_v17 = vmul.f32 %v12399_v29, %v12399_v29  ;;  %v10600_v15 = vmul.f32 %v10307_v8, %v10307_v8  ;;  %v12409_v16 = vld [vmem:[#allocation54_spill] sm:$0xff] }
 0x3e3   : > { %v6310_v40 = vmul.f32 %v5622_v42, %v9818_v37  ;;  %v6342_v60 = vmul.f32 %v5622_v42, %v10026_v23  ;;  %v12396_v37 = vld [vmem:[#allocation50_spill] sm:$0xff]  ;;  %6953 = vst [vmem:[%s10518_s11 + $0x80] sm:$0xff] %v6341_v31  ;;  %v6375_v5 = vmul.f32 %v5622_v42, %v12397_v45  ;;  %v5071_v23 = vadd.f32 %v5055_v46, %v5039_v2  ;;  %v12407_v46 = vld [vmem:[#allocation37_spill] sm:$0xff]  ;;  %v12410_v45 = vld [vmem:[#allocation39_spill] sm:$0xff] }
 0x3e4   : > { %v10568_v35 = vmul.f32 %v9854_v33, %v12396_v37  ;;  %6969 = vst [vmem:[%s10518_s11 + $0x100] sm:$0xff] %v6374_v28  ;;  %3447 = vmatpush.msra.mxu3 %v10564_v62  ;;  %v10580_v33 = vmul.f32 %v12398_v0, %v12398_v0  ;;  %v5176_v55 = vmul.f32 0.5, %v5175_v21  ;;  %7339 = vrsqrt.f32 %v10573_v20  ;;  %6859 = vmatmul.msk.f32.vlgmr.msra.gmra.mxu2 %vm675_vm0, %v10591_v43  ;;  %v12404_v31 = vld [vmem:[#allocation42_spill] sm:$0xff]  ;;  %v12406_v28 = vld [vmem:[#allocation43_spill] sm:$0xff] }
 0x3e5   : > { %6326 = vst [vmem:[%s10518_s11 + $0x8] sm:$0xff] %v6310_v40  ;;  %6860 = vmatmul.msk.f32.vlgmr.msra.gmra.mxu3 %vm675_vm0, %v10591_v43  ;;  %v5072_v47 = vadd.f32 %v5056_v61, %v5040_v48  ;;  %v10608_v25 = vmul.f32 %v10311_v58, %v10311_v58  ;;  %v5570_v53 = vand.u32 2147483647, %v10523_v52  ;;  %vm5180_vm13 = vcmp.eq.f32.partialorder %v10466_v32, inf  ;;  %v12408_v61 = vld [vmem:[#allocation38_spill] sm:$0xff] }
 0x3e6   : > { %v7336_v30 = vpop.eup %7335  ;;  %6954 = vst [vmem:[%s10518_s11 + $0x88] sm:$0xff] %v6342_v60  ;;  %v5087_v59 = vmul.f32 %v10568_v35, %v10568_v35  ;;  %v5177_v12 = vsub.f32 1.5, %v5176_v55  ;;  %vm5182_vm14 = vcmp.eq.f32.partialorder %v10466_v32, 0.0  ;;  %v5572_v63 = vand.u32 2147483648, %v10523_v52 }
 0x3e7   : > { %v7338_v56 = vpop.eup %7337  ;;  %v5562_v27 = vmul.f32 %v7336_v30, %v10523_v52  ;;  %6970 = vst [vmem:[%s10518_s11 + $0x108] sm:$0xff] %v6375_v5  ;;  %v5183_v1 = vand.u32 2147483648, %v10466_v32  ;;  %v10620_v49 = vmul.f32 %v12401_v39, %v12400_v50  ;;  %vm5566_vm1 = vweird.f32 %v10523_v52 }
 0x3e8   : > { %v10611_v4 = vadd.f32 1.0, %v7338_v56  ;;  %v5103_v44 = vadd.f32 %v5087_v59, %v5071_v23  ;;  %vm5567_vm3 = vweird.f32 %v7336_v30  ;;  %v5178_v6 = vmul.f32 %v10526_v11, %v5177_v12 }
 0x3e9   : > { %v5563_v13 = vsub.f32 1.0, %v5562_v27  ;;  %vm10624_vm2 = vcmp.eq.f32.partialorder %v5570_v53, 8.507059e+37  ;;  %v10630_v48 = vmul.f32 %v12405_v34, %v12404_v31  ;;  %v10634_v40 = vmul.f32 %v12407_v46, %v12406_v28  ;;  %vm5568_vm4 = vmor %vm5566_vm1, %vm5567_vm3  ;;  %v12411_v53 = vld [vmem:[#allocation55_spill] sm:$0xff]  ;;  %v12414_v31 = vld [vmem:[#allocation36_spill] sm:$0xff] }
 0x3ea   : > { %7341 = vrcp.f32 %v10611_v4  ;;  %v7340_v42 = vpop.eup %7339  ;;  %v10638_v19 = vmul.f32 %v12409_v16, %v12408_v61  ;;  %v5179_v11 = vmul.f32 %v5178_v6, %v10466_v32  ;;  %v10642_v7 = vadd.f32 1e-08, %v5103_v44  ;;  %v12413_v6 = vld [vmem:[#allocation31_spill] sm:$0xff] }
 0x3eb   : > { %v5564_v38 = vmul.f32 %v7336_v30, %v5563_v13  ;;  %v5186_v60 = vmul.f32 %v7340_v42, %v10573_v20  ;;  %v5573_v9 = vor.u32 1.1754944e-38, %v5572_v63  ;;  %v5047_v37 = vmul.f32 %v10560_v51, %v10560_v51  ;;  %3506 = vmatpush.msrb.mxu2 %v10630_v48  ;;  %3526 = vmatpush.msrb.mxu3 %v10634_v40 }
 0x3ec   : > { %v10650_v5 = vmul.f32 %v10439_v24, %v12410_v45  ;;  %v5088_v21 = vmul.f32 %v10620_v49, %v10620_v49  ;;  %v5181_v55 = vsel %vm5180_vm13, %v10466_v32, %v5179_v11  ;;  %7343 = vrsqrt.f32 %v10642_v7  ;;  %v12415_v11 = vld [vmem:[#allocation46_spill] sm:$0xff] }
 0x3ed   : > { %v5565_v52 = vadd.f32 %v7336_v30, %v5564_v38  ;;  %v5187_v56 = vmul.f32 %v7340_v42, %v5186_v60  ;;  %v10662_v12 = vmul.f32 %v12411_v53, %v12411_v53  ;;  %v10666_v13 = vsel %vm5182_vm14, %v5183_v1, %v5181_v55  ;;  %3507 = vmatpush.msrb.mxu2 %v10638_v19 }
 0x3ee   : > { %v6909_v50 = vmul.f32 -1.442695, %v10666_v13  ;;  %v5048_v39 = vmul.f32 %v10564_v62, %v10564_v62  ;;  %3527 = vmatpush.msrb.mxu3 %v10650_v5  ;;  %v5587_v32 = vand.u32 2147483648, %v10611_v4  ;;  %vm5192_vm5 = vcmp.eq.f32.partialorder %v10573_v20, inf  ;;  %6863 = vmatmul.msk.f32.vlgmr.msrb.gmra.mxu2 %vm675_vm0, %v10591_v43 }
 0x3ef   : > { %v5569_v23 = vsel %vm5568_vm4, %v7336_v30, %v5565_v52  ;;  %v5104_v30 = vadd.f32 %v5088_v21, %v5072_v47  ;;  %3586 = vmatpush.msra.mxu2 %v10568_v35  ;;  %v5188_v1 = vmul.f32 0.5, %v5187_v56  ;;  %v5063_v47 = vadd.f32 %v5047_v37, %v10580_v33  ;;  %6864 = vmatmul.msk.f32.vlgmr.msrb.gmra.mxu3 %vm675_vm0, %v10591_v43  ;;  %v12416_v21 = vld [vmem:[#allocation47_spill] sm:$0xff] }
 0x3f0   : > { %v7342_v27 = vpop.eup %7341  ;;  %v5574_v59 = vsel %vm10624_vm2, %v5573_v9, %v5569_v23  ;;  %3606 = vmatpush.msra.mxu3 %v10620_v49  ;;  %7345 = vpow2.f32 %v6909_v50  ;;  %v10691_v60 = vmul.f32 %v9898_v18, %v12415_v11  ;;  %v5585_v45 = vand.u32 2147483647, %v10611_v4 }
 0x3f1   : > { %v5633_v44 = vmul.f32 %v5574_v59, %v10453_v36  ;;  %v5577_v63 = vmul.f32 %v7342_v27, %v10611_v4  ;;  %v12412_v36 = vld [vmem:[#allocation63_spill] sm:$0xff]  ;;  %v5189_v52 = vsub.f32 1.5, %v5188_v1  ;;  %v10687_v33 = vadd.f32 1e-08, %v5104_v30 }
 0x3f2   : > { %v7344_v9 = vpop.eup %7343  ;;  %vm5582_vm7 = vweird.f32 %v7342_v27  ;;  %v10697_v23 = vmul.f32 %v9926_v22, %v12416_v21  ;;  %v5064_v56 = vadd.f32 %v5048_v39, %v10584_v17  ;;  %3587 = vmatpush.msra.mxu2 %v10691_v60  ;;  %vm5581_vm6 = vweird.f32 %v10611_v4  ;;  %v12419_v21 = vld [vmem:[#allocation44_spill] sm:$0xff] }
 0x3f3   : > { %v6321_v38 = vmul.f32 %v5633_v44, %v12412_v36  ;;  %v6353_v2 = vmul.f32 %v5633_v44, %v12413_v6  ;;  %v6386_v28 = vmul.f32 %v5633_v44, %v12414_v31  ;;  %v5578_v61 = vsub.f32 1.0, %v5577_v63  ;;  %vm5583_vm9 = vmor %vm5581_vm6, %vm5582_vm7 }
 0x3f4   : > { %v5190_v55 = vmul.f32 %v7340_v42, %v5189_v52  ;;  %v5246_v59 = vmul.f32 %v7344_v9, %v10642_v7  ;;  %7347 = vrsqrt.f32 %v10687_v33  ;;  %vm5194_vm8 = vcmp.eq.f32.partialorder %v10573_v20, 0.0  ;;  %3607 = vmatpush.msra.mxu3 %v10697_v23 }
 0x3f5   : > { %6337 = vst [vmem:[%s10518_s11 + $0x60] sm:$0xff] %v6321_v38  ;;  %v5579_v37 = vmul.f32 %v7342_v27, %v5578_v61  ;;  %v5079_v22 = vmul.f32 %v10691_v60, %v10691_v60  ;;  %v5588_v17 = vor.u32 1.1754944e-38, %v5587_v32  ;;  %v5080_v44 = vmul.f32 %v10697_v23, %v10697_v23 }
 0x3f6   : > { %6965 = vst [vmem:[%s10518_s11 + $0xe0] sm:$0xff] %v6353_v2  ;;  %v5191_v42 = vmul.f32 %v5190_v55, %v10573_v20  ;;  %v5247_v30 = vmul.f32 %v7344_v9, %v5246_v59  ;;  %vm5586_vm15 = vcmp.eq.f32.partialorder %v5585_v45, 8.507059e+37  ;;  %v5195_v4 = vand.u32 2147483648, %v10573_v20  ;;  %v7346_v39 = vpop.eup %7345  ;;  %6867 = vmatmul.msk.f32.vlgmr.msra.gmra.mxu2 %vm675_vm0, %v10591_v43 }
 0x3f7   : > { %6981 = vst [vmem:[%s10518_s11 + $0x160] sm:$0xff] %v6386_v28  ;;  %v5580_v18 = vadd.f32 %v7342_v27, %v5579_v37  ;;  %v5095_v50 = vadd.f32 %v5079_v22, %v5063_v47  ;;  %v5096_v6 = vadd.f32 %v5080_v44, %v5064_v56  ;;  %v10721_v2 = vadd.f32 1.0, %v7346_v39  ;;  %6868 = vmatmul.msk.f32.vlgmr.msra.gmra.mxu3 %vm675_vm0, %v10591_v43  ;;  %v12418_v37 = vld [vmem:[#allocation48_spill] sm:$0xff] }
 0x3f8   : > { %v5193_v36 = vsel %vm5192_vm5, %v10573_v20, %v5191_v42  ;;  %v5248_v38 = vmul.f32 0.5, %v5247_v30  ;;  %v5051_v61 = vmul.f32 %v10638_v19, %v10638_v19  ;;  %v12417_v20 = vld [vmem:[#allocation64_spill] sm:$0xff]  ;;  %v5036_v56 = vmul.f32 %v10461_v14, %v10461_v14 }
 0x3f9   : > { %v5584_v63 = vsel %vm5583_vm9, %v7342_v27, %v5580_v18  ;;  %v10725_v27 = vsel %vm5194_vm8, %v5195_v4, %v5193_v36  ;;  %v10727_v47 = vadd.f32 1e-08, %v5095_v50  ;;  %v10734_v52 = vadd.f32 1e-08, %v5096_v6 }
 0x3fa   : > { %v5589_v1 = vsel %vm5586_vm15, %v5588_v17, %v5584_v63  ;;  %v7348_v31 = vpop.eup %7347  ;;  %v6910_v28 = vmul.f32 -1.442695, %v10725_v27  ;;  %7349 = vrcp.f32 %v10721_v2  ;;  %v5059_v59 = vmul.f32 %v10630_v48, %v10630_v48 }
 0x3fb   : > { %v5634_v32 = vmul.f32 %v5589_v1, %v10500_v54  ;;  %v5249_v54 = vsub.f32 1.5, %v5248_v38  ;;  %v5052_v18 = vmul.f32 %v10650_v5, %v10650_v5  ;;  %v5060_v22 = vmul.f32 %v10634_v40, %v10634_v40 }
 0x3fc   : > { %7351 = vpow2.f32 %v6910_v28  ;;  %v5258_v42 = vmul.f32 %v7348_v31, %v10687_v33  ;;  %v10754_v30 = vadd.f32 %v5051_v61, %v10662_v12  ;;  %v5075_v4 = vadd.f32 %v5059_v59, %v10600_v15  ;;  %v12422_v59 = vld [vmem:[#allocation56_spill] sm:$0xff] }
 0x3fd   : > { %v6322_v11 = vmul.f32 %v5634_v32, %v12417_v20  ;;  %v6354_v45 = vmul.f32 %v5634_v32, %v12418_v37  ;;  %v6387_v55 = vmul.f32 %v5634_v32, %v12419_v21  ;;  %v5250_v17 = vmul.f32 %v7344_v9, %v5249_v54  ;;  %v12420_v37 = vld [vmem:[#allocation58_spill] sm:$0xff]  ;;  %v12421_v21 = vld [vmem:[#allocation59_spill] sm:$0xff] }
 0x3fe   : > { %7353 = vrsqrt.f32 %v10727_v47  ;;  %v5259_v63 = vmul.f32 %v7348_v31, %v5258_v42  ;;  %v10759_v50 = vadd.f32 %v5052_v18, %v5036_v56  ;;  %vm5252_vm10 = vcmp.eq.f32.partialorder %v10642_v7, inf }
 0x3ff   : > { %6338 = vst [vmem:[%s10518_s11 + $0x68] sm:$0xff] %v6322_v11  ;;  %v5251_v44 = vmul.f32 %v5250_v17, %v10642_v7  ;;  %7355 = vrsqrt.f32 %v10734_v52  ;;  %v5255_v9 = vand.u32 2147483648, %v10642_v7  ;;  %v10764_v1 = vadd.f32 %v5060_v22, %v10608_v25  ;;  %v12423_v22 = vld [vmem:[#allocation57_spill] sm:$0xff] }
 0x400   : > { %6966 = vst [vmem:[%s10518_s11 + $0xe8] sm:$0xff] %v6354_v45  ;;  %v7350_v39 = vpop.eup %7349  ;;  %vm5254_vm11 = vcmp.eq.f32.partialorder %v10642_v7, 0.0  ;;  %v5260_v36 = vmul.f32 0.5, %v5259_v63  ;;  %v5450_v15 = vand.u32 2147483647, %v10721_v2  ;;  %vm5264_vm12 = vcmp.eq.f32.partialorder %v10687_v33, inf }
 0x401   : > { %6982 = vst [vmem:[%s10518_s11 + $0x168] sm:$0xff] %v6387_v55  ;;  %v5253_v12 = vsel %vm5252_vm10, %v10642_v7, %v5251_v44  ;;  %v5442_v6 = vmul.f32 %v7350_v39, %v10721_v2  ;;  %v5452_v61 = vand.u32 2147483648, %v10721_v2  ;;  %v10780_v45 = vmul.f32 %v12405_v34, %v12420_v37 }
 0x402   : > { %v7352_v38 = vpop.eup %7351  ;;  %v10770_v32 = vsel %vm5254_vm11, %v5255_v9, %v5253_v12  ;;  %v5261_v20 = vsub.f32 1.5, %v5260_v36  ;;  %v10784_v55 = vmul.f32 %v12407_v46, %v12421_v21  ;;  %vm5447_vm13 = vweird.f32 %v7350_v39 }
 0x403   : > { %v10774_v54 = vadd.f32 1.0, %v7352_v38  ;;  %v6915_v25 = vmul.f32 -1.442695, %v10770_v32  ;;  %v5443_v11 = vsub.f32 1.0, %v5442_v6  ;;  %v10789_v18 = vmul.f32 %v12409_v16, %v12422_v59  ;;  %3666 = vmatpush.msrb.mxu2 %v10780_v45 }
 0x404   : > { %v7354_v28 = vpop.eup %7353  ;;  %v10793_v17 = vmul.f32 %v10439_v24, %v12423_v22  ;;  %v5262_v34 = vmul.f32 %v7348_v31, %v5261_v20  ;;  %3686 = vmatpush.msrb.mxu3 %v10784_v55  ;;  %vm5446_vm14 = vweird.f32 %v10721_v2  ;;  %vm5266_vm1 = vcmp.eq.f32.partialorder %v10687_v33, 0.0 }
 0x405   : > { %v5150_v7 = vmul.f32 %v7354_v28, %v10727_v47  ;;  %v7356_v56 = vpop.eup %7355  ;;  %7357 = vrcp.f32 %v10774_v54  ;;  %v5444_v42 = vmul.f32 %v7350_v39, %v5443_v11  ;;  %v5267_v46 = vand.u32 2147483648, %v10687_v33  ;;  %3667 = vmatpush.msrb.mxu2 %v10789_v18  ;;  %vm5448_vm3 = vmor %vm5446_vm14, %vm5447_vm13 }
 0x406   : > { %7359 = vpow2.f32 %v6915_v25  ;;  %v5162_v16 = vmul.f32 %v7356_v56, %v10734_v52  ;;  %v5263_v24 = vmul.f32 %v5262_v34, %v10687_v33  ;;  %v5091_v31 = vmul.f32 %v10780_v45, %v10780_v45  ;;  %3687 = vmatpush.msrb.mxu3 %v10793_v17  ;;  %6871 = vmatmul.msk.f32.vlgmr.msrb.gmra.mxu2 %vm675_vm0, %v10591_v43 }
 0x407   : > { %v5151_v44 = vmul.f32 %v7354_v28, %v5150_v7  ;;  %v5445_v63 = vadd.f32 %v7350_v39, %v5444_v42  ;;  %vm5451_vm2 = vcmp.eq.f32.partialorder %v5450_v15, 8.507059e+37  ;;  %v5453_v2 = vor.u32 1.1754944e-38, %v5452_v61  ;;  %6872 = vmatmul.msk.f32.vlgmr.msrb.gmra.mxu3 %vm675_vm0, %v10591_v43 }
 0x408   : > { %vm5156_vm4 = vcmp.eq.f32.partialorder %v10727_v47, inf  ;;  %v5159_v12 = vand.u32 2147483648, %v10727_v47  ;;  %v5163_v36 = vmul.f32 %v7356_v56, %v5162_v16  ;;  %v5265_v6 = vsel %vm5264_vm12, %v10687_v33, %v5263_v24 }
 0x409   : > { %v5152_v9 = vmul.f32 0.5, %v5151_v44  ;;  %v5449_v38 = vsel %vm5448_vm3, %v7350_v39, %v5445_v63  ;;  %vm5158_vm5 = vcmp.eq.f32.partialorder %v10727_v47, 0.0  ;;  %v5107_v15 = vadd.f32 %v5091_v31, %v5075_v4  ;;  %v12424_v44 = vld [vmem:[#allocation30_spill] sm:$0xff]  ;;  %v12426_v63 = vld [vmem:[#allocation41_spill] sm:$0xff] }
 0x40a   : > { %v5454_v20 = vsel %vm5451_vm2, %v5453_v2, %v5449_v38  ;;  %v5465_v11 = vand.u32 2147483647, %v10774_v54  ;;  %v10820_v7 = vsel %vm5266_vm1, %v5267_v46, %v5265_v6  ;;  %v5164_v37 = vmul.f32 0.5, %v5163_v36 }
 0x40b   : > { %v5153_v25 = vsub.f32 1.5, %v5152_v9  ;;  %v7358_v61 = vpop.eup %7357  ;;  %vm5168_vm0 = vcmp.eq.f32.partialorder %v10734_v52, inf  ;;  %v5625_v39 = vmul.f32 %v5454_v20, %v10666_v13  ;;  %v6916_v59 = vmul.f32 -1.442695, %v10820_v7  ;;  %v12425_v13 = vld [vmem:[#allocation25_spill] sm:$0xff] }
 0x40c   : > { %v7360_v43 = vpop.eup %7359  ;;  %v5457_v21 = vmul.f32 %v7358_v61, %v10774_v54  ;;  %vm5170_vm7 = vcmp.eq.f32.partialorder %v10734_v52, 0.0  ;;  %v5092_v4 = vmul.f32 %v10784_v55, %v10784_v55  ;;  %v5165_v42 = vsub.f32 1.5, %v5164_v37 }
 0x40d   : > { %v10829_v22 = vadd.f32 1.0, %v7360_v43  ;;  %v5154_v33 = vmul.f32 %v7354_v28, %v5153_v25  ;;  %v10831_v34 = vadd.f32 1e-08, %v5107_v15  ;;  %v6313_v46 = vmul.f32 %v5625_v39, %v12424_v44 }
 0x40e   : > { %v6345_v16 = vmul.f32 %v5625_v39, %v12425_v13  ;;  %v6378_v24 = vmul.f32 %v5625_v39, %v12426_v63  ;;  %v5458_v9 = vsub.f32 1.0, %v5457_v21  ;;  %vm5462_vm6 = vweird.f32 %v7358_v61 }
 0x40f   : > { %v5467_v31 = vand.u32 2147483648, %v10774_v54  ;;  %7361 = vrcp.f32 %v10829_v22  ;;  %v5108_v2 = vadd.f32 %v5092_v4, %v10764_v1  ;;  %6329 = vst [vmem:[%s10518_s11 + $0x20] sm:$0xff] %v6313_v46  ;;  %v5155_v36 = vmul.f32 %v5154_v33, %v10727_v47 }
 0x410   : > { %v5459_v28 = vmul.f32 %v7358_v61, %v5458_v9  ;;  %7363 = vpow2.f32 %v6916_v59  ;;  %v5166_v38 = vmul.f32 %v7356_v56, %v5165_v42  ;;  %6957 = vst [vmem:[%s10518_s11 + $0xa0] sm:$0xff] %v6345_v16  ;;  %v5171_v6 = vand.u32 2147483648, %v10734_v52  ;;  %v12427_v16 = vld [vmem:[#allocation24_spill] sm:$0xff] }
 0x411   : > { %7365 = vrsqrt.f32 %v10831_v34  ;;  %v5083_v25 = vmul.f32 %v10789_v18, %v10789_v18  ;;  %v5084_v15 = vmul.f32 %v10793_v17, %v10793_v17  ;;  %6973 = vst [vmem:[%s10518_s11 + $0x120] sm:$0xff] %v6378_v24  ;;  %vm5461_vm8 = vweird.f32 %v10774_v54  ;;  %v12428_v24 = vld [vmem:[#allocation49_spill] sm:$0xff] }
 0x412   : > { %v5460_v20 = vadd.f32 %v7358_v61, %v5459_v28  ;;  %v5157_v1 = vsel %vm5156_vm4, %v10727_v47, %v5155_v36  ;;  %v5167_v56 = vmul.f32 %v5166_v38, %v10734_v52  ;;  %vm5463_vm9 = vmor %vm5461_vm8, %vm5462_vm6  ;;  %v5468_v37 = vor.u32 1.1754944e-38, %v5467_v31 }
 0x413   : > { %v10857_v43 = vsel %vm5158_vm5, %v5159_v12, %v5157_v1  ;;  %v10859_v39 = vadd.f32 1e-08, %v5108_v2  ;;  %v5099_v21 = vadd.f32 %v5083_v25, %v10754_v30  ;;  %vm5466_vm15 = vcmp.eq.f32.partialorder %v5465_v11, 8.507059e+37 }
 0x414   : > { %v5464_v59 = vsel %vm5463_vm9, %v7358_v61, %v5460_v20  ;;  %v6907_v54 = vmul.f32 -1.442695, %v10857_v43  ;;  %v5169_v4 = vsel %vm5168_vm0, %v10734_v52, %v5167_v56  ;;  %v5100_v47 = vadd.f32 %v5084_v15, %v10759_v50 }
 0x415   : > { %v7362_v33 = vpop.eup %7361  ;;  %v5469_v42 = vsel %vm5466_vm15, %v5468_v37, %v5464_v59  ;;  %v10868_v44 = vsel %vm5170_vm7, %v5171_v6, %v5169_v4  ;;  %7367 = vrsqrt.f32 %v10859_v39  ;;  %v10879_v52 = vadd.f32 1e-08, %v5099_v21 }
 0x416   : > { %v7364_v12 = vpop.eup %7363  ;;  %v5626_v30 = vmul.f32 %v5469_v42, %v10725_v27  ;;  %v5532_v61 = vmul.f32 %v7362_v33, %v10829_v22  ;;  %7369 = vpow2.f32 %v6907_v54  ;;  %v6908_v13 = vmul.f32 -1.442695, %v10868_v44 }
 0x417   : > { %v10874_v11 = vpop.eup %7365  ;;  %v10876_v46 = vadd.f32 1.0, %v7364_v12  ;;  %v5540_v31 = vand.u32 2147483647, %v10829_v22  ;;  %v5542_v2 = vand.u32 2147483648, %v10829_v22  ;;  %v10887_v28 = vadd.f32 1e-08, %v5100_v47 }
 0x418   : > { %v6314_v63 = vmul.f32 %v5626_v30, %v12427_v16  ;;  %v6346_v50 = vmul.f32 %v5626_v30, %v12428_v24  ;;  %v6379_v9 = vmul.f32 %v5626_v30, %v10359_v10  ;;  %v5533_v27 = vsub.f32 1.0, %v5532_v61 }
 0x419   : > { %7371 = vrcp.f32 %v10876_v46  ;;  %vm5537_vm10 = vweird.f32 %v7362_v33  ;;  %v5294_v38 = vmul.f32 %v10874_v11, %v10831_v34  ;;  %vm5536_vm11 = vweird.f32 %v10829_v22 }
 0x41a   : > { %6330 = vst [vmem:[%s10518_s11 + $0x28] sm:$0xff] %v6314_v63  ;;  %v5534_v36 = vmul.f32 %v7362_v33, %v5533_v27  ;;  %7373 = vpow2.f32 %v6908_v13  ;;  %vm5538_vm12 = vmor %vm5536_vm11, %vm5537_vm10  ;;  %v5543_v1 = vor.u32 1.1754944e-38, %v5542_v2  ;;  %vm5541_vm13 = vcmp.eq.f32.partialorder %v5540_v31, 8.507059e+37 }
 0x41b   : > { %v10892_v6 = vpop.eup %7367  ;;  %6958 = vst [vmem:[%s10518_s11 + $0xa8] sm:$0xff] %v6346_v50  ;;  %v5295_v15 = vmul.f32 %v10874_v11, %v5294_v38  ;;  %7375 = vrsqrt.f32 %v10879_v52  ;;  %v5555_v4 = vand.u32 2147483647, %v10876_v46  ;;  %v5303_v42 = vand.u32 2147483648, %v10831_v34 }
 0x41c   : > { %v7370_v10 = vpop.eup %7369  ;;  %6974 = vst [vmem:[%s10518_s11 + $0x128] sm:$0xff] %v6379_v9  ;;  %v5535_v25 = vadd.f32 %v7362_v33, %v5534_v36  ;;  %v5306_v20 = vmul.f32 %v10892_v6, %v10859_v39  ;;  %7377 = vrsqrt.f32 %v10887_v28  ;;  %v5557_v61 = vand.u32 2147483648, %v10876_v46 }
 0x41d   : > { %v10901_v56 = vadd.f32 1.0, %v7370_v10  ;;  %v5296_v21 = vmul.f32 0.5, %v5295_v15  ;;  %vm5300_vm14 = vcmp.eq.f32.partialorder %v10831_v34, inf  ;;  %vm5302_vm1 = vcmp.eq.f32.partialorder %v10831_v34, 0.0 }
 0x41e   : > { %v5539_v37 = vsel %vm5538_vm12, %v7362_v33, %v5535_v25  ;;  %v5307_v22 = vmul.f32 %v10892_v6, %v5306_v20  ;;  %vm5312_vm3 = vcmp.eq.f32.partialorder %v10859_v39, inf  ;;  %vm5551_vm2 = vweird.f32 %v10876_v46 }
 0x41f   : > { %v7372_v59 = vpop.eup %7371  ;;  %v5544_v54 = vsel %vm5541_vm13, %v5543_v1, %v5539_v37  ;;  %7379 = vrcp.f32 %v10901_v56  ;;  %v5420_v33 = vand.u32 2147483647, %v10901_v56  ;;  %v5422_v13 = vand.u32 2147483648, %v10901_v56 }
 0x420   : > { %v7374_v47 = vpop.eup %7373  ;;  %v5631_v12 = vmul.f32 %v5544_v54, %v10770_v32  ;;  %v5547_v30 = vmul.f32 %v7372_v59, %v10876_v46  ;;  %v5297_v63 = vsub.f32 1.5, %v5296_v21  ;;  %v5308_v24 = vmul.f32 0.5, %v5307_v22 }
 0x421   : > { %v10914_v16 = vadd.f32 1.0, %v7374_v47  ;;  %v7376_v50 = vpop.eup %7375  ;;  %vm10924_vm4 = vcmp.eq.f32.partialorder %v5555_v4, 8.507059e+37  ;;  %vm5552_vm5 = vweird.f32 %v7372_v59  ;;  %vm5314_vm0 = vcmp.eq.f32.partialorder %v10859_v39, 0.0 }
 0x422   : > { %v6319_v9 = vmul.f32 %v5631_v12, %v9862_v41  ;;  %v6351_v32 = vmul.f32 %v5631_v12, %v10349_v3  ;;  %v6384_v27 = vmul.f32 %v5631_v12, %v10568_v35  ;;  %v5548_v31 = vsub.f32 1.0, %v5547_v30  ;;  %v10921_v2 = vpop.eup %7377  ;;  %vm5553_vm8 = vmor %vm5551_vm2, %vm5552_vm5 }
 0x423   : > { %7381 = vrcp.f32 %v10914_v16  ;;  %v5315_v41 = vand.u32 2147483648, %v10859_v39  ;;  %v5298_v35 = vmul.f32 %v10874_v11, %v5297_v63  ;;  %v5309_v38 = vsub.f32 1.5, %v5308_v24 }
 0x424   : > { %6335 = vst [vmem:[%s10518_s11 + $0x50] sm:$0xff] %v6319_v9  ;;  %v5549_v3 = vmul.f32 %v7372_v59, %v5548_v31  ;;  %v5558_v25 = vor.u32 1.1754944e-38, %v5557_v61  ;;  %vm5416_vm7 = vweird.f32 %v10901_v56  ;;  %v5198_v15 = vmul.f32 %v7376_v50, %v10879_v52 }
 0x425   : > { %v7380_v10 = vpop.eup %7379  ;;  %6963 = vst [vmem:[%s10518_s11 + $0xd0] sm:$0xff] %v6351_v32  ;;  %v5210_v20 = vmul.f32 %v10921_v2, %v10887_v28  ;;  %vm10940_vm6 = vcmp.eq.f32.partialorder %v5420_v33, 8.507059e+37  ;;  %v5423_v11 = vor.u32 1.1754944e-38, %v5422_v13  ;;  %v5299_v22 = vmul.f32 %v5298_v35, %v10831_v34 }
 0x426   : > { %6979 = vst [vmem:[%s10518_s11 + $0x150] sm:$0xff] %v6384_v27  ;;  %v5550_v1 = vadd.f32 %v7372_v59, %v5549_v3  ;;  %v5412_v37 = vmul.f32 %v7380_v10, %v10901_v56  ;;  %v5310_v54 = vmul.f32 %v10892_v6, %v5309_v38  ;;  %v5199_v4 = vmul.f32 %v7376_v50, %v5198_v15 }
 0x427   : > { %v5211_v47 = vmul.f32 %v10921_v2, %v5210_v20  ;;  %v5435_v61 = vand.u32 2147483647, %v10914_v16  ;;  %v5437_v33 = vand.u32 2147483648, %v10914_v16  ;;  %vm5204_vm9 = vcmp.eq.f32.partialorder %v10879_v52, inf }
 0x428   : > { %v5554_v12 = vsel %vm5553_vm8, %v7372_v59, %v5550_v1  ;;  %v5413_v30 = vsub.f32 1.0, %v5412_v37  ;;  %v5301_v63 = vsel %vm5300_vm14, %v10831_v34, %v5299_v22  ;;  %v5311_v6 = vmul.f32 %v5310_v54, %v10859_v39 }
 0x429   : > { %v7382_v13 = vpop.eup %7381  ;;  %v5559_v46 = vsel %vm10924_vm4, %v5558_v25, %v5554_v12  ;;  %v5200_v24 = vmul.f32 0.5, %v5199_v4  ;;  %vm5206_vm15 = vcmp.eq.f32.partialorder %v10879_v52, 0.0  ;;  %vm5417_vm10 = vweird.f32 %v7380_v10 }
 0x42a   : > { %v5632_v59 = vmul.f32 %v5559_v46, %v10820_v7  ;;  %v5414_v9 = vmul.f32 %v7380_v10, %v5413_v30  ;;  %v5427_v32 = vmul.f32 %v7382_v13, %v10914_v16  ;;  %v10964_v27 = vsel %vm5302_vm1, %v5303_v42, %v5301_v63  ;;  %vm5418_vm11 = vmor %vm5416_vm7, %vm5417_vm10 }
 0x42b   : > { %v5313_v31 = vsel %vm5312_vm3, %v10859_v39, %v5311_v6  ;;  %v5201_v36 = vsub.f32 1.5, %v5200_v24  ;;  %v5212_v3 = vmul.f32 0.5, %v5211_v47  ;;  %v6919_v42 = vmul.f32 -1.442695, %v10964_v27 }
 0x42c   : > { %v6320_v35 = vmul.f32 %v5632_v59, %v9883_v26  ;;  %v6352_v7 = vmul.f32 %v5632_v59, %v10367_v57  ;;  %v6385_v38 = vmul.f32 %v5632_v59, %v10620_v49  ;;  %v5415_v25 = vadd.f32 %v7380_v10, %v5414_v9  ;;  %v11022_v59 = vpop.f32.mrf.mxu0 }
 0x42d   : > { %v5428_v34 = vsub.f32 1.0, %v5427_v32  ;;  %v10977_v15 = vsel %vm5314_vm0, %v5315_v41, %v5313_v31  ;;  %v5202_v20 = vmul.f32 %v7376_v50, %v5201_v36  ;;  %vm5432_vm12 = vweird.f32 %v7382_v13  ;;  %v11027_v36 = vld [vmem:[%s8023_s28] sm:$0xff] }
 0x42e   : > { %6336 = vst [vmem:[%s10518_s11 + $0x58] sm:$0xff] %v6320_v35  ;;  %v5419_v1 = vsel %vm5418_vm11, %v7380_v10, %v5415_v25  ;;  %v6920_v26 = vmul.f32 -1.442695, %v10977_v15  ;;  %v5213_v57 = vsub.f32 1.5, %v5212_v3  ;;  %7383 = vpow2.f32 %v6919_v42 }
 0x42f   : > { %6964 = vst [vmem:[%s10518_s11 + $0xd8] sm:$0xff] %v6352_v7  ;;  %v5424_v49 = vsel %vm10940_vm6, %v5423_v11, %v5419_v1  ;;  %v5429_v56 = vmul.f32 %v7382_v13, %v5428_v34  ;;  %v5203_v37 = vmul.f32 %v5202_v20, %v10879_v52  ;;  %v5207_v50 = vand.u32 2147483648, %v10879_v52 }
 0x430   : > { %6980 = vst [vmem:[%s10518_s11 + $0x158] sm:$0xff] %v6385_v38  ;;  %v5623_v39 = vmul.f32 %v5424_v49, %v10857_v43  ;;  %7385 = vpow2.f32 %v6920_v26  ;;  %v5214_v41 = vmul.f32 %v10921_v2, %v5213_v57  ;;  %vm5431_vm13 = vweird.f32 %v10914_v16 }
 0x431   : > { %v5430_v10 = vadd.f32 %v7382_v13, %v5429_v56  ;;  %v5438_v22 = vor.u32 1.1754944e-38, %v5437_v33  ;;  %v5205_v21 = vsel %vm5204_vm9, %v10879_v52, %v5203_v37  ;;  %vm5433_vm14 = vmor %vm5431_vm13, %vm5432_vm12  ;;  %vm5436_vm1 = vcmp.eq.f32.partialorder %v5435_v61, 8.507059e+37 }
 0x432   : > { %v6311_v11 = vmul.f32 %v5623_v39, %v12398_v0  ;;  %v6343_v54 = vmul.f32 %v5623_v39, %v10560_v51  ;;  %v6376_v43 = vmul.f32 %v5623_v39, %v10691_v60  ;;  %v10999_v2 = vsel %vm5206_vm15, %v5207_v50, %v5205_v21 }
 0x433   : > { %v5434_v16 = vsel %vm5433_vm14, %v7382_v13, %v5430_v10  ;;  %v6911_v4 = vmul.f32 -1.442695, %v10999_v2  ;;  %v5215_v47 = vmul.f32 %v5214_v41, %v10887_v28  ;;  %vm5216_vm3 = vcmp.eq.f32.partialorder %v10887_v28, inf }
 0x434   : > { %6327 = vst [vmem:[%s10518_s11 + $0x10] sm:$0xff] %v6311_v11  ;;  %v5439_v12 = vsel %vm5436_vm1, %v5438_v22, %v5434_v16  ;;  %v5219_v51 = vand.u32 2147483648, %v10887_v28  ;;  %v7384_v0 = vpop.eup %7383  ;;  %vm5218_vm2 = vcmp.eq.f32.partialorder %v10887_v28, 0.0 }
 0x435   : > { %6955 = vst [vmem:[%s10518_s11 + $0x90] sm:$0xff] %v6343_v54  ;;  %v5624_v60 = vmul.f32 %v5439_v12, %v10868_v44  ;;  %7387 = vpow2.f32 %v6911_v4  ;;  %v5217_v52 = vsel %vm5216_vm3, %v10887_v28, %v5215_v47  ;;  %v5379_v61 = vadd.f32 1.0, %v7384_v0 }
 0x436   : > { %v7386_v30 = vpop.eup %7385  ;;  %6971 = vst [vmem:[%s10518_s11 + $0x110] sm:$0xff] %v6376_v43  ;;  %v11011_v33 = vsel %vm5218_vm2, %v5219_v51, %v5217_v52  ;;  %v11044_v52 = vpop.f32.mrf.mxu1 }
 0x437   : > { %v6312_v13 = vmul.f32 %v5624_v60, %v12399_v29  ;;  %v6344_v46 = vmul.f32 %v5624_v60, %v10564_v62  ;;  %v6377_v63 = vmul.f32 %v5624_v60, %v10697_v23  ;;  %v5380_v6 = vadd.f32 1.0, %v7386_v30 }
 0x438   : > { %7389 = vrcp.f32 %v5379_v61  ;;  %v6912_v44 = vmul.f32 -1.442695, %v11011_v33  ;;  %v3845_v29 = vrot.slane %v11022_v59, 5  ;;  %v5600_v32 = vand.u32 2147483647, %v5379_v61 }
 0x439   : > { %6328 = vst [vmem:[%s10518_s11 + $0x18] sm:$0xff] %v6312_v13  ;;  %7391 = vrcp.f32 %v5380_v6  ;;  %vm5596_vm4 = vweird.f32 %v5379_v61  ;;  %v5602_v38 = vand.u32 2147483648, %v5379_v61  ;;  %v5615_v34 = vand.u32 2147483647, %v5380_v6 }
 0x43a   : > { %6956 = vst [vmem:[%s10518_s11 + $0x98] sm:$0xff] %v6344_v46  ;;  %7393 = vpow2.f32 %v6912_v44  ;;  %v3861_v35 = vmul.f32 %v3845_v29, %v11027_v36  ;;  %v5617_v42 = vand.u32 2147483648, %v5380_v6  ;;  %vm11032_vm0 = vcmp.eq.f32.partialorder %v5600_v32, 8.507059e+37 }
 0x43b   : > { %v7388_v28 = vpop.eup %7387  ;;  %6972 = vst [vmem:[%s10518_s11 + $0x118] sm:$0xff] %v6377_v63  ;;  %vm5611_vm7 = vweird.f32 %v5380_v6  ;;  %v5603_v41 = vor.u32 1.1754944e-38, %v5602_v38  ;;  %vm5616_vm9 = vcmp.eq.f32.partialorder %v5615_v34, 8.507059e+37 }
 0x43c   : > { %v11020_v24 = vadd.f32 1.0, %v7388_v28  ;;  %v3877_v26 = vrot.slane %v3861_v35, 1  ;;  %v3901_v50 = vrot.slane %v3861_v35, 2  ;;  %v5618_v22 = vor.u32 1.1754944e-38, %v5617_v42 }
 0x43e   : > { %v7390_v62 = vpop.eup %7389  ;;  %7395 = vrcp.f32 %v11020_v24  ;;  %v5480_v54 = vand.u32 2147483647, %v11020_v24  ;;  %v3893_v43 = vadd.f32 %v3877_v26, %v3861_v35  ;;  %v5482_v47 = vand.u32 2147483648, %v11020_v24 }
 0x43f   : > { %v7392_v23 = vpop.eup %7391  ;;  %v5592_v9 = vmul.f32 %v7390_v62, %v5379_v61  ;;  %vm5597_vm5 = vweird.f32 %v7390_v62  ;;  %vm5476_vm11 = vweird.f32 %v11020_v24  ;;  %v3846_v61 = vrot.slane %v11044_v52, 5 }
 0x440   : > { %v5607_v31 = vmul.f32 %v7392_v23, %v5380_v6  ;;  %v7394_v7 = vpop.eup %7393  ;;  %vm5612_vm6 = vweird.f32 %v7392_v23  ;;  %vm5598_vm8 = vmor %vm5596_vm4, %vm5597_vm5  ;;  %v3917_v60 = vadd.f32 %v3901_v50, %v3893_v43  ;;  %vm5481_vm13 = vcmp.eq.f32.partialorder %v5480_v54, 8.507059e+37 }
 0x441   : > { %v5593_v3 = vsub.f32 1.0, %v5592_v9  ;;  %v11030_v1 = vadd.f32 1.0, %v7394_v7  ;;  %vm5613_vm15 = vmor %vm5611_vm7, %vm5612_vm6  ;;  %vm3819_vm4 = vcmask 1040384   ;;  %vm3821_vm5 = vcmask 1042434  }
 0x442   : > { %v5608_v25 = vsub.f32 1.0, %v5607_v31  ;;  %3933 = vst [vmem:[#allocation1] sm:$0xff] %v3917_v60  ;;  %vm3825_vm7 = vcmask 1044484   ;;  %vm3827_vm6 = vcmask 1046534  }
 0x443   : > { %v5594_v20 = vmul.f32 %v7390_v62, %v5593_v3  ;;  %7397 = vrcp.f32 %v11030_v1  ;;  %v5497_v9 = vand.u32 2147483648, %v11030_v1  ;;  %v5495_v31 = vand.u32 2147483647, %v11030_v1 }
 0x444   : > { %v7396_v57 = vpop.eup %7395  ;;  %v5609_v56 = vmul.f32 %v7392_v23, %v5608_v25  ;;  %vm5491_vm1 = vweird.f32 %v11030_v1  ;;  %v11074_v25 = vpop.f32.mrf.mxu2 }
 0x445   : > { %v5595_v37 = vadd.f32 %v7390_v62, %v5594_v20  ;;  %v5472_v39 = vmul.f32 %v7396_v57, %v11020_v24  ;;  %vm5477_vm10 = vweird.f32 %v7396_v57  ;;  %v11056_v24 = vld [vmem:[%s8023_s28 + $0x8] sm:$0xff]  ;;  %v5498_v34 = vor.u32 1.1754944e-38, %v5497_v9 }
 0x446   : > { %v5610_v10 = vadd.f32 %v7392_v23, %v5609_v56  ;;  %vm5478_vm12 = vmor %vm5476_vm11, %vm5477_vm10  ;;  %v3847_v42 = vrot.slane %v11074_v25, 5  ;;  %vm5496_vm2 = vcmp.eq.f32.partialorder %v5495_v31, 8.507059e+37  ;;  %v3741_v50 = vmul.f32 %v11056_v24, %v11044_v52 }
 0x447   : > { %v5599_v21 = vsel %vm5598_vm8, %v7390_v62, %v5595_v37  ;;  %v5473_v11 = vsub.f32 1.0, %v5472_v39  ;;  %vm3829_vm8 = vcmask 1045508  }
 0x448   : > { %v5604_v16 = vsel %vm11032_vm0, %v5603_v41, %v5599_v21  ;;  %v5614_v4 = vsel %vm5613_vm15, %v7392_v23, %v5610_v10  ;;  %v11090_v10 = vpop.f32.mrf.mxu3  ;;  %v11100_v21 = vld [vmem:[%s8023_s28 + $0x18] sm:$0xff]  ;;  %vm3823_vm0 = vcmask 1041408   ;;  %vm12435_vm15 = vcmask 392192  }
 0x449   : > { %v5635_v12 = vmul.f32 %v5604_v16, %v10964_v27  ;;  %v5619_v51 = vsel %vm5616_vm9, %v5618_v22, %v5614_v4  ;;  %v5474_v0 = vmul.f32 %v7396_v57, %v5473_v11  ;;  %v7398_v13 = vpop.eup %7397  ;;  %v11092_v22 = vpop.f32.mrf.mxu0  ;;  %v11108_v16 = vld [vmem:[%s8023_s28 + $0x20] sm:$0xff]  ;;  %v3743_v4 = vmul.f32 %v11100_v21, %v11090_v10  ;;  %vm12436_vm10 = vmmov %vm12435_vm15 }
 0x44a   : > { %v5636_v30 = vmul.f32 %v5619_v51, %v10977_v15  ;;  %v5483_v15 = vor.u32 1.1754944e-38, %v5482_v47  ;;  %v5487_v28 = vmul.f32 %v7398_v13, %v11030_v1  ;;  %vm5492_vm14 = vweird.f32 %v7398_v13  ;;  %vm12437_vm11 = vmmov %vm12436_vm10 }
 0x44b   : > { %v6323_v46 = vmul.f32 %v5635_v12, %v10307_v8  ;;  %v6355_v63 = vmul.f32 %v5635_v12, %v10630_v48  ;;  %v6388_v27 = vmul.f32 %v5635_v12, %v10780_v45  ;;  %v5475_v6 = vadd.f32 %v7396_v57, %v5474_v0  ;;  %vm5493_vm3 = vmor %vm5491_vm1, %vm5492_vm14 }
 0x44c   : > { %v6324_v44 = vmul.f32 %v5636_v30, %v10311_v58  ;;  %v6356_v8 = vmul.f32 %v5636_v30, %v10634_v40  ;;  %v3862_v48 = vmul.f32 %v3846_v61, %v11056_v24  ;;  %v6389_v45 = vmul.f32 %v5636_v30, %v10784_v55  ;;  %v11114_v30 = vld [vmem:[%s8023_s28 + $0x28] sm:$0xff]  ;;  %vm12440_vm14 = vmmov %vm12436_vm10 }
 0x44d   : > { %6339 = vst [vmem:[%s10518_s11 + $0x70] sm:$0xff] %v6323_v46  ;;  %v5479_v29 = vsel %vm5478_vm12, %v7396_v57, %v5475_v6  ;;  %v5488_v62 = vsub.f32 1.0, %v5487_v28  ;;  %v3849_v43 = vrot.slane %v11092_v22, 5  ;;  %v3781_v0 = vrot.slane %v3741_v50, 2  ;;  %vm12438_vm12 = vmmov %vm12436_vm10 }
 0x44e   : > { %6967 = vst [vmem:[%s10518_s11 + $0xf0] sm:$0xff] %v6355_v63  ;;  %v5484_v58 = vsel %vm5481_vm13, %v5483_v15, %v5479_v29  ;;  %v3878_v32 = vrot.slane %v3862_v48, 1  ;;  %v3902_v3 = vrot.slane %v3862_v48, 2  ;;  %v3744_v63 = vmul.f32 %v11108_v16, %v11092_v22  ;;  %v11122_v29 = vpop.f32.mrf.mxu2  ;;  %vm12439_vm13 = vmmov %vm12436_vm10 }
 0x44f   : > { %6983 = vst [vmem:[%s10518_s11 + $0x170] sm:$0xff] %v6388_v27  ;;  %v5627_v23 = vmul.f32 %v5484_v58, %v10999_v2  ;;  %v5489_v40 = vmul.f32 %v7398_v13, %v5488_v62  ;;  %v3865_v60 = vmul.f32 %v3849_v43, %v11108_v16  ;;  %v3759_v15 = vrot.slane %v3743_v4, 1  ;;  %vm12441_vm1 = vmmov %vm12436_vm10 }
 0x450   : > { %6340 = vst [vmem:[%s10518_s11 + $0x78] sm:$0xff] %v6324_v44  ;;  %v3894_v38 = vadd.f32 %v3878_v32, %v3862_v48  ;;  %v11118_v44 = vpop.f32.mrf.mxu1  ;;  %v11125_v48 = vld [vmem:[%s8023_s28 + $0x30] sm:$0xff]  ;;  %v3947_v62 = vrot.slane %v11022_v59, 2  ;;  %vm3831_vm9 = vcmask 1043456  }
 0x451   : > { %6968 = vst [vmem:[%s10518_s11 + $0xf8] sm:$0xff] %v6356_v8  ;;  %v6315_v55 = vmul.f32 %v5627_v23, %v12411_v53  ;;  %v6347_v35 = vmul.f32 %v5627_v23, %v10638_v19  ;;  %v6380_v2 = vmul.f32 %v5627_v23, %v10789_v18  ;;  %v5490_v7 = vadd.f32 %v7398_v13, %v5489_v40  ;;  %v11080_v19 = vld [vmem:[%s8023_s28 + $0x10] sm:$0xff] }
 0x452   : > { %6984 = vst [vmem:[%s10518_s11 + $0x178] sm:$0xff] %v6389_v45  ;;  %v3918_v20 = vadd.f32 %v3902_v3, %v3894_v38  ;;  %v3863_v1 = vmul.f32 %v3847_v42, %v11080_v19  ;;  %v3742_v11 = vmul.f32 %v11080_v19, %v11074_v25  ;;  %v3881_v27 = vrot.slane %v3865_v60, 1 }
 0x453   : > { %6331 = vst [vmem:[%s10518_s11 + $0x30] sm:$0xff] %v6315_v55  ;;  %v5494_v53 = vsel %vm5493_vm3, %v7398_v13, %v5490_v7  ;;  %v3905_v6 = vrot.slane %v3865_v60, 2  ;;  %v3745_v8 = vmul.f32 %v11114_v30, %v11118_v44  ;;  %v3760_v40 = vrot.slane %v3744_v63, 1  ;;  %vm12442_vm3 = vmmov %vm12441_vm1 }
 0x454   : > { %6959 = vst [vmem:[%s10518_s11 + $0xb0] sm:$0xff] %v6347_v35  ;;  %v5499_v18 = vsel %vm5496_vm2, %v5498_v34, %v5494_v53  ;;  %v3879_v57 = vrot.slane %v3863_v1, 1  ;;  %v3903_v49 = vrot.slane %v3863_v1, 2  ;;  %v3758_v13 = vrot.slane %v3742_v11, 1  ;;  %vm12443_vm2 = vmmov %vm12441_vm1 }
 0x455   : > { %6975 = vst [vmem:[%s10518_s11 + $0x130] sm:$0xff] %v6380_v2  ;;  %v5628_v26 = vmul.f32 %v5499_v18, %v11011_v33  ;;  %v3848_v33 = vrot.slane %v11090_v10, 5  ;;  %v3897_v23 = vadd.f32 %v3881_v27, %v3865_v60  ;;  %v3850_v31 = vrot.slane %v11118_v44, 5 }
 0x456   : > { %3934 = vst [vmem:[#allocation1 + $0x9] sm:$0xff] %v3918_v20  ;;  %v3895_v41 = vadd.f32 %v3879_v57, %v3863_v1  ;;  %v3774_v32 = vadd.f32 %v3758_v13, %v3742_v11  ;;  %v3761_v55 = vrot.slane %v3745_v8, 1  ;;  %v3746_v35 = vmul.f32 %v11125_v48, %v11122_v29 }
 0x457   : > { %v6316_v56 = vmul.f32 %v5628_v26, %v10461_v14  ;;  %v6348_v37 = vmul.f32 %v5628_v26, %v10650_v5  ;;  %v6381_v39 = vmul.f32 %v5628_v26, %v10793_v17  ;;  %v3740_v14 = vmul.f32 %v11027_v36, %v11022_v59 }
 0x458   : > { %v3919_v5 = vadd.f32 %v3903_v49, %v3895_v41  ;;  %v3757_v17 = vrot.slane %v3741_v50, 1  ;;  %v3864_v54 = vmul.f32 %v3848_v33, %v11100_v21  ;;  %v3921_v3 = vadd.f32 %v3905_v6, %v3897_v23 }
 0x459   : > { %6332 = vst [vmem:[%s10518_s11 + $0x38] sm:$0xff] %v6316_v56  ;;  %v3756_v51 = vrot.slane %v3740_v14, 1  ;;  %v3780_v58 = vrot.slane %v3740_v14, 2  ;;  %v3851_v2 = vrot.slane %v11122_v29, 5  ;;  %v3782_v7 = vrot.slane %v3742_v11, 2 }
 0x45a   : > { %6960 = vst [vmem:[%s10518_s11 + $0xb8] sm:$0xff] %v6348_v37  ;;  %v3880_v47 = vrot.slane %v3864_v54, 1  ;;  %v3904_v12 = vrot.slane %v3864_v54, 2  ;;  %v3773_v61 = vadd.f32 %v3757_v17, %v3741_v50  ;;  %v3775_v38 = vadd.f32 %v3759_v15, %v3743_v4  ;;  %v11137_v56 = vpop.f32.mrf.mxu3  ;;  %v11140_v37 = vld [vmem:[%s8023_s28 + $0x38] sm:$0xff] }
 0x45b   : > { %6976 = vst [vmem:[%s10518_s11 + $0x138] sm:$0xff] %v6381_v39  ;;  %v3772_v45 = vadd.f32 %v3756_v51, %v3740_v14  ;;  %v3783_v59 = vrot.slane %v3743_v4, 2  ;;  %v3866_v34 = vmul.f32 %v3850_v31, %v11114_v30  ;;  %v11134_v53 = vmul.f32 %v3947_v62, %v11027_v36  ;;  %v11143_v39 = vld [vmem:[%s8023_s28 + $0x40] sm:$0x1]  ;;  %s6413_s11 = scalar_lea.sflag [#allocation13], %s8005_s13 }
 0x45c   : > { %3935 = vst [vmem:[#allocation1 + $0x12] sm:$0xff] %v3919_v5  ;;  %v3896_v46 = vadd.f32 %v3880_v47, %v3864_v54  ;;  %v3797_v9 = vadd.f32 %v3781_v0, %v3773_v61  ;;  %v3762_v20 = vrot.slane %v3746_v35, 1  ;;  %v3867_v18 = vmul.f32 %v3851_v2, %v11125_v48 }
 0x45d   : > { %v3796_v42 = vadd.f32 %v3780_v58, %v3772_v45  ;;  %3937 = vst [vmem:[#allocation1 + $0x24] sm:$0xff] %v3921_v3  ;;  %v3776_v1 = vadd.f32 %v3760_v40, %v3744_v63  ;;  %v3784_v26 = vrot.slane %v3744_v63, 2  ;;  %v3882_v57 = vrot.slane %v3866_v34, 1 }
 0x45e   : > { %v3920_v28 = vadd.f32 %v3904_v12, %v3896_v46  ;;  %v3906_v49 = vrot.slane %v3866_v34, 2  ;;  %v3777_v50 = vadd.f32 %v3761_v55, %v3745_v8  ;;  %v3785_v41 = vrot.slane %v3745_v8, 2 }
 0x45f   : > { %v3778_v33 = vadd.f32 %v3762_v20, %v3746_v35  ;;  %v3883_v14 = vrot.slane %v3867_v18, 1  ;;  %v3812_v5 = vrot.slane %v3797_v9, 7  ;;  %v3798_v17 = vadd.f32 %v3782_v7, %v3774_v32 }
 0x460   : > { %3936 = vst [vmem:[#allocation1 + $0x1b] sm:$0xff] %v3920_v28  ;;  %v3799_v11 = vadd.f32 %v3783_v59, %v3775_v38  ;;  %v3898_v54 = vadd.f32 %v3882_v57, %v3866_v34  ;;  %v3786_v43 = vrot.slane %v3746_v35, 2  ;;  %v3907_v47 = vrot.slane %v3867_v18, 2 }
 0x461   : > { %v3899_v4 = vadd.f32 %v3883_v14, %v3867_v18  ;;  %v3747_v12 = vmul.f32 %v11140_v37, %v11137_v56  ;;  %v11148_v51 = vmul.f32 %v3947_v62, %v11143_v39  ;;  %v3800_v0 = vadd.f32 %v3784_v26, %v3776_v1  ;;  %v11168_v18 = vld [vmem:[%s8023_s28 + $0x50] sm:$0x1] }
 0x462   : > { %v3922_v60 = vadd.f32 %v3906_v49, %v3898_v54  ;;  %v3801_v61 = vadd.f32 %v3785_v41, %v3777_v50  ;;  %v3802_v13 = vadd.f32 %v3786_v43, %v3778_v33  ;;  %v3979_v27 = vrot.slane %v11134_v53, 1  ;;  %v11175_v49 = vld [vmem:[%s8023_s28 + $0x58] sm:$0x1]  ;;  %v11178_v50 = vld [vmem:[%s8023_s28 + $0x60] sm:$0x1] }
 0x463   : > { %v3923_v46 = vadd.f32 %v3907_v47, %v3899_v4  ;;  %v3763_v63 = vrot.slane %v3747_v12, 1  ;;  %v3820_v6 = vsel %vm3819_vm4, %v3796_v42, %v3812_v5  ;;  %v3948_v15 = vrot.slane %v11044_v52, 2  ;;  %v11190_v4 = vpop.f32.mrf.mxu0 }
 0x464   : > { %v3813_v28 = vrot.slane %v3798_v17, 6  ;;  %3938 = vst [vmem:[#allocation1 + $0x2d] sm:$0xff] %v3922_v60  ;;  %v3814_v8 = vrot.slane %v3799_v11, 5  ;;  %v3787_v58 = vrot.slane %v3747_v12, 2  ;;  %v3852_v62 = vrot.slane %v11137_v56, 5 }
 0x465   : > { %3939 = vst [vmem:[#allocation1 + $0x36] sm:$0xff] %v3923_v46  ;;  %v3779_v45 = vadd.f32 %v3763_v63, %v3747_v12  ;;  %v3949_v23 = vrot.slane %v11074_v25, 2  ;;  %v3815_v9 = vrot.slane %v3800_v0, 4  ;;  %v3816_v32 = vrot.slane %v3801_v61, 3 }
 0x466   : > { %v3817_v40 = vrot.slane %v3802_v13, 2  ;;  %v3868_v3 = vmul.f32 %v3852_v62, %v11140_v37  ;;  %v3950_v52 = vrot.slane %v11090_v10, 2  ;;  %v3951_v55 = vrot.slane %v11092_v22, 2  ;;  %v11163_v10 = vld [vmem:[%s8023_s28 + $0x48] sm:$0x1] }
 0x467   : > { %v3803_v31 = vadd.f32 %v3787_v58, %v3779_v45  ;;  %v3822_v35 = vsel %vm3821_vm5, %v3813_v28, %v3814_v8  ;;  %v3964_v7 = vmul.f32 %v3948_v15, %v11056_v24  ;;  %v3965_v38 = vmul.f32 %v3949_v23, %v11080_v19  ;;  %v11199_v28 = vpop.f32.mrf.mxu1  ;;  %v11202_v62 = vld [vmem:[%s8023_s28 + $0x70] sm:$0x1] }
 0x468   : > { %v3884_v25 = vrot.slane %v3868_v3, 1  ;;  %v3952_v59 = vrot.slane %v11118_v44, 2  ;;  %v3826_v22 = vsel %vm3825_vm7, %v3815_v9, %v3816_v32  ;;  %v3908_v20 = vrot.slane %v3868_v3, 2  ;;  %v11205_v9 = vpop.f32.mrf.mxu2 }
 0x469   : > { %v3818_v2 = vrot.slane %v3803_v31, 1  ;;  %v3824_v1 = vsel %vm3823_vm0, %v3820_v6, %v3822_v35  ;;  %v3966_v26 = vmul.f32 %v3950_v52, %v11100_v21  ;;  %v3953_v57 = vrot.slane %v11122_v29, 2  ;;  %v11187_v29 = vld [vmem:[%s8023_s28 + $0x68] sm:$0x1] }
 0x46a   : > { %v3900_v42 = vadd.f32 %v3884_v25, %v3868_v3  ;;  %v3967_v41 = vmul.f32 %v3951_v55, %v11108_v16  ;;  %v3954_v5 = vrot.slane %v11137_v56, 2  ;;  %v3995_v17 = vadd.f32 %v3979_v27, %v11134_v53 }
 0x46b   : > { %v3828_v34 = vsel %vm3827_vm6, %v3817_v40, %v3818_v2  ;;  %v4019_v11 = vrot.slane %v11148_v51, 2  ;;  %v4004_v54 = vmul.f32 %v3948_v15, %v11163_v10  ;;  %v3968_v43 = vmul.f32 %v3952_v59, %v11114_v30 }
 0x46c   : > { %v3830_v44 = vsel %vm3829_vm8, %v3826_v22, %v3828_v34  ;;  %v3924_v14 = vadd.f32 %v3908_v20, %v3900_v42  ;;  %v3980_v47 = vrot.slane %v3964_v7, 1  ;;  %v3981_v12 = vrot.slane %v3965_v38, 1  ;;  %v11216_v34 = vpop.f32.mrf.mxu3 }
 0x46d   : > { %v3832_v33 = vsel %vm3831_vm9, %v3824_v1, %v3830_v44  ;;  %v4005_v0 = vmul.f32 %v3949_v23, %v11168_v18  ;;  %v3982_v60 = vrot.slane %v3966_v26, 1  ;;  %v4006_v53 = vmul.f32 %v3950_v52, %v11175_v49  ;;  %v11208_v52 = vld [vmem:[%s8023_s28 + $0x78] sm:$0x1] }
 0x46e   : > { %3835 = vst [vmem:[#allocation2 + $0x100] ss:$8 sm:$0xf] %v3832_v33  ;;  %v4007_v56 = vmul.f32 %v3951_v55, %v11178_v50  ;;  %v3969_v51 = vmul.f32 %v3953_v57, %v11125_v48  ;;  %v3983_v61 = vrot.slane %v3967_v41, 1  ;;  %v4008_v13 = vmul.f32 %v3952_v59, %v11187_v29 }
 0x46f   : > { %3836 = vst [vmem:[#allocation2 + $0x100] ss:$8 sm:$0xf0] %v3832_v33  ;;  %v3970_v46 = vmul.f32 %v3954_v5, %v11140_v37  ;;  %v4163_v63 = vrot.slane %v11190_v4, 5  ;;  %v4035_v27 = vadd.f32 %v4019_v11, %v3995_v17  ;;  %v4020_v6 = vrot.slane %v4004_v54, 2  ;;  %v11225_v17 = vpop.f32.mrf.mxu0 }
 0x470   : > { %3940 = vst [vmem:[#allocation1 + $0x3f] sm:$0xff] %v3924_v14  ;;  %v3984_v15 = vrot.slane %v3968_v43, 1  ;;  %v3996_v8 = vadd.f32 %v3980_v47, %v3964_v7  ;;  %v3997_v45 = vadd.f32 %v3981_v12, %v3965_v38  ;;  %v4021_v58 = vrot.slane %v4005_v0, 2 }
 0x471   : > { %v4164_v23 = vrot.slane %v11199_v28, 5  ;;  %v3998_v32 = vadd.f32 %v3982_v60, %v3966_v26  ;;  %v4022_v40 = vrot.slane %v4006_v53, 2  ;;  %v4023_v31 = vrot.slane %v4007_v56, 2 }
 0x472   : > { %v3985_v3 = vrot.slane %v3969_v51, 1  ;;  %v3999_v55 = vadd.f32 %v3983_v61, %v3967_v41  ;;  %v4024_v35 = vrot.slane %v4008_v13, 2  ;;  %v3986_v2 = vrot.slane %v3970_v46, 1 }
 0x473   : > { %v4179_v25 = vmul.f32 %v4163_v63, %v11027_v36  ;;  %v4000_v7 = vadd.f32 %v3984_v15, %v3968_v43  ;;  %v4009_v38 = vmul.f32 %v3953_v57, %v11202_v62  ;;  %v4066_v59 = vmul.f32 %v11056_v24, %v11199_v28 }
 0x474   : > { %v4067_v22 = vmul.f32 %v11080_v19, %v11205_v9  ;;  %v4036_v42 = vadd.f32 %v4020_v6, %v3996_v8  ;;  %v4010_v1 = vmul.f32 %v3954_v5, %v11208_v52  ;;  %v4180_v26 = vmul.f32 %v4164_v23, %v11056_v24 }
 0x475   : > { %v4165_v44 = vrot.slane %v11205_v9, 5  ;;  %v4037_v41 = vadd.f32 %v4021_v58, %v3997_v45  ;;  %v4038_v33 = vadd.f32 %v4022_v40, %v3998_v32  ;;  %v4001_v14 = vadd.f32 %v3985_v3, %v3969_v51 }
 0x476   : > { %v11223_v57 = vmul.f32 %v11027_v36, %v11190_v4  ;;  %v4039_v11 = vadd.f32 %v4023_v31, %v3999_v55  ;;  %v4002_v54 = vadd.f32 %v3986_v2, %v3970_v46  ;;  %v4195_v43 = vrot.slane %v4179_v25, 1 }
 0x477   : > { %v3942_v20 = vld [vmem:[#allocation1 + $0x3] ss:$9 sm:$0xff]  ;;  %v4166_v5 = vrot.slane %v11216_v34, 5  ;;  %v4040_v47 = vadd.f32 %v4024_v35, %v4000_v7  ;;  %v4025_v12 = vrot.slane %v4009_v38, 2  ;;  %v4082_v0 = vrot.slane %v4066_v59, 1  ;;  %v11237_v35 = vpop.f32.mrf.mxu1 }
 0x478   : > { %4051 = vst [vmem:[#allocation1] sm:$0xff] %v4035_v27  ;;  %v4083_v60 = vrot.slane %v4067_v22, 1  ;;  %v4026_v53 = vrot.slane %v4010_v1, 2  ;;  %v4196_v56 = vrot.slane %v4180_v26, 1  ;;  %v4181_v51 = vmul.f32 %v4165_v44, %v11080_v19 }
 0x479   : > { %4052 = vst [vmem:[#allocation1 + $0x9] sm:$0xff] %v4036_v42  ;;  %v4167_v61 = vrot.slane %v11225_v17, 5  ;;  %v4041_v13 = vadd.f32 %v4025_v12, %v4001_v14  ;;  %v4081_v46 = vrot.slane %v11223_v57, 1  ;;  %v4068_v63 = vmul.f32 %v11100_v21, %v11216_v34 }
 0x47a   : > { %4053 = vst [vmem:[#allocation1 + $0x12] sm:$0xff] %v4037_v41  ;;  %v4182_v27 = vmul.f32 %v4166_v5, %v11100_v21  ;;  %v4042_v6 = vadd.f32 %v4026_v53, %v4002_v54  ;;  %v4211_v15 = vadd.f32 %v4195_v43, %v4179_v25  ;;  %v4219_v8 = vrot.slane %v4179_v25, 2 }
 0x47b   : > { %4054 = vst [vmem:[#allocation1 + $0x1b] sm:$0xff] %v4038_v33  ;;  %v4069_v45 = vmul.f32 %v11108_v16, %v11225_v17  ;;  %v4098_v58 = vadd.f32 %v4082_v0, %v4066_v59  ;;  %v4106_v23 = vrot.slane %v4066_v59, 2  ;;  %v4099_v32 = vadd.f32 %v4083_v60, %v4067_v22 }
 0x47c   : > { %4055 = vst [vmem:[#allocation1 + $0x24] sm:$0xff] %v4039_v11  ;;  %v4212_v40 = vadd.f32 %v4196_v56, %v4180_v26  ;;  %v4220_v31 = vrot.slane %v4180_v26, 2  ;;  %v4197_v3 = vrot.slane %v4181_v51, 1  ;;  %v4183_v55 = vmul.f32 %v4167_v61, %v11108_v16  ;;  %v11247_v11 = vpop.f32.mrf.mxu2  ;;  %v11253_v61 = vpop.f32.mrf.mxu3 }
 0x47d   : > { %4056 = vst [vmem:[#allocation1 + $0x2d] sm:$0xff] %v4040_v47  ;;  %v4107_v2 = vrot.slane %v4067_v22, 2  ;;  %v4084_v7 = vrot.slane %v4068_v63, 1  ;;  %v4198_v38 = vrot.slane %v4182_v27, 1  ;;  %v4070_v25 = vmul.f32 %v11114_v30, %v11237_v35 }
 0x47e   : > { %4057 = vst [vmem:[#allocation1 + $0x36] sm:$0xff] %v4041_v13  ;;  %v4097_v42 = vadd.f32 %v4081_v46, %v11223_v57  ;;  %v4105_v59 = vrot.slane %v11223_v57, 2  ;;  %v4235_v1 = vadd.f32 %v4219_v8, %v4211_v15  ;;  %v4085_v44 = vrot.slane %v4069_v45, 1 }
 0x47f   : > { %4058 = vst [vmem:[#allocation1 + $0x3f] sm:$0xff] %v4042_v6  ;;  %v11243_v26 = vadd.f32 %v4106_v23, %v4098_v58  ;;  %v11245_v41 = vadd.f32 %v4107_v2, %v4099_v32  ;;  %v4221_v33 = vrot.slane %v4181_v51, 2  ;;  %v4199_v14 = vrot.slane %v4183_v55, 1 }
 0x480   : > { %3945 = vst [vmem:[#allocation2 + $0x101] ss:$8 sm:$0xf] %v3942_v20  ;;  %v4236_v22 = vadd.f32 %v4220_v31, %v4212_v40  ;;  %v4213_v54 = vadd.f32 %v4197_v3, %v4181_v51  ;;  %v4108_v43 = vrot.slane %v4068_v63, 2  ;;  %v4086_v5 = vrot.slane %v4070_v25, 1 }
 0x481   : > { %3946 = vst [vmem:[#allocation2 + $0x101] ss:$8 sm:$0xf0] %v3942_v20  ;;  %v4100_v47 = vadd.f32 %v4084_v7, %v4068_v63  ;;  %v4214_v20 = vadd.f32 %v4198_v38, %v4182_v27  ;;  %v4109_v12 = vrot.slane %v4069_v45, 2  ;;  %v4168_v0 = vrot.slane %v11237_v35, 5 }
 0x482   : > { %v4101_v57 = vadd.f32 %v4085_v44, %v4069_v45  ;;  %v4223_v60 = vrot.slane %v4183_v55, 2  ;;  %v4071_v53 = vmul.f32 %v11125_v48, %v11247_v11  ;;  %v4169_v56 = vrot.slane %v11247_v11, 5 }
 0x483   : > { %v4215_v46 = vadd.f32 %v4199_v14, %v4183_v55  ;;  %v4102_v6 = vadd.f32 %v4086_v5, %v4070_v25  ;;  %v4110_v51 = vrot.slane %v4070_v25, 2  ;;  %v4184_v15 = vmul.f32 %v4168_v0, %v11114_v30 }
 0x484   : > { %v4237_v63 = vadd.f32 %v4221_v33, %v4213_v54  ;;  %v4222_v8 = vrot.slane %v4182_v27, 2  ;;  %v4087_v58 = vrot.slane %v4071_v53, 1  ;;  %v4185_v45 = vmul.f32 %v4169_v56, %v11125_v48 }
 0x485   : > { %v4124_v23 = vadd.f32 %v4108_v43, %v4100_v47  ;;  %v4200_v32 = vrot.slane %v4184_v15, 1  ;;  %v4224_v40 = vrot.slane %v4184_v15, 2  ;;  %v4072_v31 = vmul.f32 %v11140_v37, %v11253_v61 }
 0x486   : > { %v4060_v13 = vld [vmem:[#allocation1 + $0x6] ss:$9 sm:$0xff]  ;;  %v4238_v3 = vadd.f32 %v4222_v8, %v4214_v20  ;;  %v4103_v55 = vadd.f32 %v4087_v58, %v4071_v53  ;;  %v4111_v2 = vrot.slane %v4071_v53, 2  ;;  %v4201_v7 = vrot.slane %v4185_v45, 1 }
 0x487   : > { %4063 = vst [vmem:[#allocation2 + $0x102] ss:$8 sm:$0xf] %v4060_v13  ;;  %v4125_v38 = vadd.f32 %v4109_v12, %v4101_v57  ;;  %v4239_v25 = vadd.f32 %v4223_v60, %v4215_v46  ;;  %v4126_v44 = vadd.f32 %v4110_v51, %v4102_v6  ;;  %v4216_v27 = vadd.f32 %v4200_v32, %v4184_v15 }
 0x488   : > { %4064 = vst [vmem:[#allocation2 + $0x102] ss:$8 sm:$0xf0] %v4060_v13  ;;  %v4127_v33 = vadd.f32 %v4111_v2, %v4103_v55  ;;  %v4217_v14 = vadd.f32 %v4201_v7, %v4185_v45  ;;  %v4225_v54 = vrot.slane %v4185_v45, 2  ;;  %v4088_v43 = vrot.slane %v4072_v31, 1 }
 0x489   : > { %4251 = vst [vmem:[#allocation1] sm:$0xff] %v4235_v1  ;;  %v4265_v5 = vrot.slane %v11190_v4, 2  ;;  %v4138_v47 = vrot.slane %v11245_v41, 6  ;;  %v4139_v0 = vrot.slane %v4124_v23, 5  ;;  %v4240_v1 = vadd.f32 %v4224_v40, %v4216_v27 }
 0x48a   : > { %4252 = vst [vmem:[#allocation1 + $0x9] sm:$0xff] %v4236_v22  ;;  %v4266_v20 = vrot.slane %v11199_v28, 2  ;;  %v4241_v22 = vadd.f32 %v4225_v54, %v4217_v14  ;;  %v4104_v12 = vadd.f32 %v4088_v43, %v4072_v31  ;;  %v4112_v57 = vrot.slane %v4072_v31, 2  ;;  %v11285_v14 = vpop.f32.mrf.mxu0 }
 0x48b   : > { %4253 = vst [vmem:[#allocation1 + $0x12] sm:$0xff] %v4237_v63  ;;  %v4121_v60 = vadd.f32 %v4105_v59, %v4097_v42  ;;  %v4137_v53 = vrot.slane %v11243_v26, 7  ;;  %v4170_v56 = vrot.slane %v11253_v61, 5  ;;  %v4272_v13 = vrot.slane %v11253_v61, 2 }
 0x48c   : > { %4254 = vst [vmem:[#allocation1 + $0x1b] sm:$0xff] %v4238_v3  ;;  %v4140_v4 = vrot.slane %v4125_v38, 4  ;;  %v4141_v46 = vrot.slane %v4126_v44, 3  ;;  %v4142_v41 = vrot.slane %v4127_v33, 2  ;;  %v4128_v6 = vadd.f32 %v4112_v57, %v4104_v12 }
 0x48d   : > { %4255 = vst [vmem:[#allocation1 + $0x24] sm:$0xff] %v4239_v25  ;;  %v4145_v51 = vsel %vm3821_vm5, %v4138_v47, %v4139_v0  ;;  %v4186_v28 = vmul.f32 %v4170_v56, %v11140_v37  ;;  %v4281_v15 = vmul.f32 %v4265_v5, %v11027_v36  ;;  %v4282_v42 = vmul.f32 %v4266_v20, %v11056_v24 }
 0x48e   : > { %4256 = vst [vmem:[#allocation1 + $0x2d] sm:$0xff] %v4240_v1  ;;  %v4267_v59 = vrot.slane %v11205_v9, 2  ;;  %v4143_v26 = vrot.slane %v4128_v6, 1  ;;  %v4144_v63 = vsel %vm3819_vm4, %v4121_v60, %v4137_v53  ;;  %v4268_v61 = vrot.slane %v11216_v34, 2 }
 0x48f   : > { %4257 = vst [vmem:[#allocation1 + $0x36] sm:$0xff] %v4241_v22  ;;  %v4202_v8 = vrot.slane %v4186_v28, 1  ;;  %v4288_v58 = vmul.f32 %v4272_v13, %v11140_v37  ;;  %v4146_v45 = vsel %vm3823_vm0, %v4144_v63, %v4145_v51  ;;  %v4269_v23 = vrot.slane %v11225_v17, 2  ;;  %v11296_v51 = vpop.f32.mrf.mxu1 }
 0x490   : > { %v4147_v32 = vsel %vm3825_vm7, %v4140_v4, %v4141_v46  ;;  %v4148_v40 = vsel %vm3827_vm6, %v4142_v41, %v4143_v26  ;;  %v4270_v31 = vrot.slane %v11237_v35, 2  ;;  %v4226_v55 = vrot.slane %v4186_v28, 2 }
 0x491   : > { %v4149_v9 = vsel %vm3829_vm8, %v4147_v32, %v4148_v40  ;;  %v4218_v3 = vadd.f32 %v4202_v8, %v4186_v28  ;;  %v4283_v2 = vmul.f32 %v4267_v59, %v11080_v19  ;;  %v4271_v34 = vrot.slane %v11247_v11, 2  ;;  %v11298_v28 = vpop.f32.mrf.mxu2 }
 0x492   : > { %v4150_v7 = vsel %vm3831_vm9, %v4146_v45, %v4149_v9  ;;  %v4321_v38 = vmul.f32 %v4265_v5, %v11143_v39  ;;  %v4284_v17 = vmul.f32 %v4268_v61, %v11100_v21  ;;  %v4304_v44 = vrot.slane %v4288_v58, 1 }
 0x493   : > { %4153 = vst [vmem:[#allocation2 + $0x103] ss:$8 sm:$0xf] %v4150_v7  ;;  %v4242_v25 = vadd.f32 %v4226_v55, %v4218_v3  ;;  %v4297_v27 = vrot.slane %v4281_v15, 1  ;;  %v4298_v33 = vrot.slane %v4282_v42, 1  ;;  %v4322_v35 = vmul.f32 %v4266_v20, %v11163_v10 }
 0x494   : > { %4154 = vst [vmem:[#allocation2 + $0x103] ss:$8 sm:$0xf0] %v4150_v7  ;;  %v4285_v54 = vmul.f32 %v4269_v23, %v11108_v16  ;;  %v4286_v11 = vmul.f32 %v4270_v31, %v11114_v30  ;;  %v4328_v43 = vmul.f32 %v4272_v13, %v11208_v52  ;;  %v4299_v5 = vrot.slane %v4283_v2, 1 }
 0x495   : > { %4258 = vst [vmem:[#allocation1 + $0x3f] sm:$0xff] %v4242_v25  ;;  %v4323_v47 = vmul.f32 %v4267_v59, %v11168_v18  ;;  %v4324_v0 = vmul.f32 %v4268_v61, %v11175_v49  ;;  %v4287_v1 = vmul.f32 %v4271_v34, %v11125_v48  ;;  %v4337_v22 = vrot.slane %v4321_v38, 2 }
 0x496   : > { %v4300_v12 = vrot.slane %v4284_v17, 1  ;;  %v4320_v20 = vadd.f32 %v4304_v44, %v4288_v58  ;;  %v4481_v57 = vrot.slane %v11285_v14, 5  ;;  %v4313_v60 = vadd.f32 %v4297_v27, %v4281_v15 }
 0x497   : > { %v4314_v53 = vadd.f32 %v4298_v33, %v4282_v42  ;;  %v4338_v56 = vrot.slane %v4322_v35, 2  ;;  %v4325_v4 = vmul.f32 %v4269_v23, %v11178_v50  ;;  %v4301_v46 = vrot.slane %v4285_v54, 1  ;;  %v11312_v35 = vpop.f32.mrf.mxu0 }
 0x498   : > { %v4302_v41 = vrot.slane %v4286_v11, 1  ;;  %v4326_v13 = vmul.f32 %v4270_v31, %v11187_v29  ;;  %v4344_v6 = vrot.slane %v4328_v43, 2  ;;  %v4315_v59 = vadd.f32 %v4299_v5, %v4283_v2 }
 0x499   : > { %v4339_v26 = vrot.slane %v4323_v47, 2  ;;  %v4340_v63 = vrot.slane %v4324_v0, 2  ;;  %v4303_v61 = vrot.slane %v4287_v1, 1  ;;  %v4316_v8 = vadd.f32 %v4300_v12, %v4284_v17 }
 0x49a   : > { %v4360_v58 = vadd.f32 %v4344_v6, %v4320_v20  ;;  %v4383_v15 = vmul.f32 %v11027_v36, %v11285_v14  ;;  %v4497_v42 = vmul.f32 %v4481_v57, %v11027_v36  ;;  %v4327_v45 = vmul.f32 %v4271_v34, %v11202_v62  ;;  %v11310_v34 = vpop.f32.mrf.mxu3 }
 0x49b   : > { %v4384_v32 = vmul.f32 %v11056_v24, %v11296_v51  ;;  %v4482_v40 = vrot.slane %v11296_v51, 5  ;;  %v4385_v31 = vmul.f32 %v11080_v19, %v11298_v28  ;;  %v4317_v9 = vadd.f32 %v4301_v46, %v4285_v54  ;;  %v11324_v46 = vpop.f32.mrf.mxu1 }
 0x49c   : > { %v4260_v23 = vld [vmem:[#allocation1 + $0x3] ss:$9 sm:$0xff]  ;;  %v4341_v3 = vrot.slane %v4325_v4, 2  ;;  %v4318_v55 = vadd.f32 %v4302_v41, %v4286_v11  ;;  %v4342_v2 = vrot.slane %v4326_v13, 2  ;;  %v4353_v7 = vadd.f32 %v4337_v22, %v4313_v60 }
 0x49d   : > { %4376 = vst [vmem:[#allocation1 + $0x3f] sm:$0xff] %v4360_v58  ;;  %v4354_v38 = vadd.f32 %v4338_v56, %v4314_v53  ;;  %v4319_v17 = vadd.f32 %v4303_v61, %v4287_v1  ;;  %v4483_v36 = vrot.slane %v11298_v28, 5  ;;  %v4355_v25 = vadd.f32 %v4339_v26, %v4315_v59 }
 0x49e   : > { %4263 = vst [vmem:[#allocation2 + $0x104] ss:$8 sm:$0xf] %v4260_v23  ;;  %v4356_v44 = vadd.f32 %v4340_v63, %v4316_v8  ;;  %v4399_v27 = vrot.slane %v4383_v15, 1  ;;  %v4513_v33 = vrot.slane %v4497_v42, 1  ;;  %v4343_v54 = vrot.slane %v4327_v45, 2 }
 0x49f   : > { %4264 = vst [vmem:[#allocation2 + $0x104] ss:$8 sm:$0xf0] %v4260_v23  ;;  %v4400_v11 = vrot.slane %v4384_v32, 1  ;;  %v4498_v43 = vmul.f32 %v4482_v40, %v11056_v24  ;;  %v4401_v5 = vrot.slane %v4385_v31, 1  ;;  %v4357_v47 = vadd.f32 %v4341_v3, %v4317_v9 }
 0x4a0   : > { %4369 = vst [vmem:[#allocation1] sm:$0xff] %v4353_v7  ;;  %v4358_v0 = vadd.f32 %v4342_v2, %v4318_v55  ;;  %v4386_v1 = vmul.f32 %v11100_v21, %v11310_v34  ;;  %v4484_v22 = vrot.slane %v11310_v34, 5  ;;  %v4359_v12 = vadd.f32 %v4343_v54, %v4319_v17 }
 0x4a1   : > { %4370 = vst [vmem:[#allocation1 + $0x9] sm:$0xff] %v4354_v38  ;;  %v4423_v20 = vrot.slane %v4383_v15, 2  ;;  %v11319_v57 = vmul.f32 %v4483_v36, %v11080_v19  ;;  %v4485_v60 = vrot.slane %v11312_v35, 5  ;;  %v4415_v53 = vadd.f32 %v4399_v27, %v4383_v15 }
 0x4a2   : > { %4371 = vst [vmem:[#allocation1 + $0x12] sm:$0xff] %v4355_v25  ;;  %v4529_v24 = vadd.f32 %v4513_v33, %v4497_v42  ;;  %v4537_v56 = vrot.slane %v4497_v42, 2  ;;  %v4387_v4 = vmul.f32 %v11108_v16, %v11312_v35  ;;  %v4416_v41 = vadd.f32 %v4400_v11, %v4384_v32  ;;  %v11341_v38 = vpop.f32.mrf.mxu3 }
 0x4a3   : > { %4372 = vst [vmem:[#allocation1 + $0x1b] sm:$0xff] %v4356_v44  ;;  %v4424_v13 = vrot.slane %v4384_v32, 2  ;;  %v4514_v6 = vrot.slane %v4498_v43, 1  ;;  %v4417_v59 = vadd.f32 %v4401_v5, %v4385_v31  ;;  %v4402_v26 = vrot.slane %v4386_v1, 1  ;;  %v11333_v32 = vpop.f32.mrf.mxu2 }
 0x4a4   : > { %4373 = vst [vmem:[#allocation1 + $0x24] sm:$0xff] %v4357_v47  ;;  %v4500_v19 = vmul.f32 %v4484_v22, %v11100_v21  ;;  %v4425_v63 = vrot.slane %v4385_v31, 2  ;;  %v4515_v61 = vrot.slane %v11319_v57, 1  ;;  %v4501_v8 = vmul.f32 %v4485_v60, %v11108_v16 }
 0x4a5   : > { %4374 = vst [vmem:[#allocation1 + $0x2d] sm:$0xff] %v4358_v0  ;;  %v4388_v58 = vmul.f32 %v11114_v30, %v11324_v46  ;;  %v11331_v15 = vadd.f32 %v4423_v20, %v4415_v53  ;;  %v4553_v42 = vadd.f32 %v4537_v56, %v4529_v24  ;;  %v4538_v45 = vrot.slane %v4498_v43, 2 }
 0x4a6   : > { %4375 = vst [vmem:[#allocation1 + $0x36] sm:$0xff] %v4359_v12  ;;  %v4403_v23 = vrot.slane %v4387_v4, 1  ;;  %v11335_v40 = vadd.f32 %v4424_v13, %v4416_v41  ;;  %v4530_v9 = vadd.f32 %v4514_v6, %v4498_v43  ;;  %v11337_v21 = vadd.f32 %v4425_v63, %v4417_v59 }
 0x4a7   : > { %v4404_v31 = vrot.slane %v4388_v58, 1  ;;  %v4539_v3 = vrot.slane %v11319_v57, 2  ;;  %v4418_v55 = vadd.f32 %v4402_v26, %v4386_v1  ;;  %v4516_v2 = vrot.slane %v4500_v19, 1 }
 0x4a8   : > { %v4486_v7 = vrot.slane %v11324_v46, 5  ;;  %v4531_v17 = vadd.f32 %v4515_v61, %v11319_v57  ;;  %v4426_v36 = vrot.slane %v4386_v1, 2  ;;  %v4517_v25 = vrot.slane %v4501_v8, 1 }
 0x4a9   : > { %v4389_v44 = vmul.f32 %v11125_v48, %v11333_v32  ;;  %v4419_v27 = vadd.f32 %v4403_v23, %v4387_v4  ;;  %v4427_v33 = vrot.slane %v4387_v4, 2  ;;  %v4487_v11 = vrot.slane %v11333_v32, 5 }
 0x4aa   : > { %v4502_v54 = vmul.f32 %v4486_v7, %v11114_v30  ;;  %v4420_v43 = vadd.f32 %v4404_v31, %v4388_v58  ;;  %v4428_v5 = vrot.slane %v4388_v58, 2  ;;  %v4390_v0 = vmul.f32 %v11140_v37, %v11341_v38 }
 0x4ab   : > { %v4405_v47 = vrot.slane %v4389_v44, 1  ;;  %v4554_v12 = vadd.f32 %v4538_v45, %v4530_v9  ;;  %v4442_v20 = vadd.f32 %v4426_v36, %v4418_v55  ;;  %v4532_v1 = vadd.f32 %v4516_v2, %v4500_v19 }
 0x4ac   : > { %v4518_v57 = vrot.slane %v4502_v54, 1  ;;  %v4533_v60 = vadd.f32 %v4517_v25, %v4501_v8  ;;  %v4541_v53 = vrot.slane %v4501_v8, 2  ;;  %v4542_v24 = vrot.slane %v4502_v54, 2 }
 0x4ad   : > { %v4378_v22 = vld [vmem:[#allocation1 + $0x6] ss:$9 sm:$0xff]  ;;  %v4421_v56 = vadd.f32 %v4405_v47, %v4389_v44  ;;  %v4540_v4 = vrot.slane %v4500_v19, 2  ;;  %v4429_v13 = vrot.slane %v4389_v44, 2  ;;  %v4503_v6 = vmul.f32 %v4487_v11, %v11125_v48 }
 0x4ae   : > { %4569 = vst [vmem:[#allocation1] sm:$0xff] %v4553_v42  ;;  %v4534_v41 = vadd.f32 %v4518_v57, %v4502_v54  ;;  %v4555_v59 = vadd.f32 %v4539_v3, %v4531_v17  ;;  %v4443_v26 = vadd.f32 %v4427_v33, %v4419_v27  ;;  %v4444_v63 = vadd.f32 %v4428_v5, %v4420_v43  ;;  %v7530_v57 = vld [vmem:[%s8023_s28] sm:$0xff] }
 0x4af   : > { %4381 = vst [vmem:[#allocation2 + $0x105] ss:$8 sm:$0xf] %v4378_v22  ;;  %v4406_v61 = vrot.slane %v4390_v0, 1  ;;  %v4456_v58 = vrot.slane %v11337_v21, 6  ;;  %v4556_v45 = vadd.f32 %v4540_v4, %v4532_v1  ;;  %v4445_v42 = vadd.f32 %v4429_v13, %v4421_v56 }
 0x4b0   : > { %4382 = vst [vmem:[#allocation2 + $0x105] ss:$8 sm:$0xf0] %v4378_v22  ;;  %v4519_v23 = vrot.slane %v4503_v6, 1  ;;  %v4457_v8 = vrot.slane %v4442_v20, 5  ;;  %v4557_v9 = vadd.f32 %v4541_v53, %v4533_v60  ;;  %v4558_v31 = vadd.f32 %v4542_v24, %v4534_v41 }
 0x4b1   : > { %4570 = vst [vmem:[#allocation1 + $0x9] sm:$0xff] %v4554_v12  ;;  %v4422_v19 = vadd.f32 %v4406_v61, %v4390_v0  ;;  %v4543_v2 = vrot.slane %v4503_v6, 2  ;;  %v4430_v7 = vrot.slane %v4390_v0, 2  ;;  %v4488_v3 = vrot.slane %v11341_v38, 5 }
 0x4b2   : > { %4571 = vst [vmem:[#allocation1 + $0x12] sm:$0xff] %v4555_v59  ;;  %v4535_v55 = vadd.f32 %v4519_v23, %v4503_v6  ;;  %v4455_v17 = vrot.slane %v11335_v40, 7  ;;  %v4458_v36 = vrot.slane %v4443_v26, 4  ;;  %v4459_v25 = vrot.slane %v4444_v63, 3  ;;  %v7532_v26 = vld [vmem:[%s8023_s28 + $0x10] sm:$0xff] }
 0x4b3   : > { %4572 = vst [vmem:[#allocation1 + $0x1b] sm:$0xff] %v4556_v45  ;;  %v4590_v21 = vrot.slane %v11341_v38, 2  ;;  %v4460_v44 = vrot.slane %v4445_v42, 2  ;;  %v4446_v33 = vadd.f32 %v4430_v7, %v4422_v19  ;;  %v4504_v54 = vmul.f32 %v4488_v3, %v11140_v37  ;;  %v7533_v45 = vld [vmem:[%s8023_s28 + $0x18] sm:$0xff] }
 0x4b4   : > { %4573 = vst [vmem:[#allocation1 + $0x24] sm:$0xff] %v4557_v9  ;;  %v4559_v27 = vadd.f32 %v4543_v2, %v4535_v55  ;;  %v4583_v11 = vrot.slane %v11285_v14, 2  ;;  %v4584_v43 = vrot.slane %v11296_v51, 2  ;;  %v4463_v5 = vsel %vm3821_vm5, %v4456_v58, %v4457_v8  ;;  %vm12445_vm5 = vmmov %vm12441_vm1 }
 0x4b5   : > { %4574 = vst [vmem:[#allocation1 + $0x2d] sm:$0xff] %v4558_v31  ;;  %v4461_v40 = vrot.slane %v4446_v33, 1  ;;  %v4520_v47 = vrot.slane %v4504_v54, 1  ;;  %v4462_v0 = vsel %vm3819_vm4, %v11331_v15, %v4455_v17  ;;  %v4585_v38 = vrot.slane %v11298_v28, 2  ;;  %vm12444_vm4 = vmmov %vm12441_vm1 }
 0x4b6   : > { %4575 = vst [vmem:[#allocation1 + $0x36] sm:$0xff] %v4559_v27  ;;  %v4606_v22 = vmul.f32 %v4590_v21, %v11140_v37  ;;  %v7734_v12 = vmov 0.0   ;;  %v4465_v14 = vsel %vm3825_vm7, %v4458_v36, %v4459_v25  ;;  %v4544_v1 = vrot.slane %v4504_v54, 2  ;;  %v7531_v37 = vld [vmem:[%s8023_s28 + $0x8] sm:$0xff]  ;;  %s7638_s28 = scalar_lea.hbm %s7637_s18, 384 }
 0x4b7   : > { %4701 = vst [vmem:[#allocation2 + $0x140] sm:$0xfe] %v7734_v12  ;;  %v4466_v20 = vsel %vm3827_vm6, %v4460_v44, %v4461_v40  ;;  %v4536_v51 = vadd.f32 %v4520_v47, %v4504_v54  ;;  %v4599_v60 = vmul.f32 %v7530_v57, %v4583_v11  ;;  %v4464_v53 = vsel %vm3823_vm0, %v4462_v0, %v4463_v5  ;;  %vm12446_vm0 = vmmov %vm12441_vm1  ;;  %p7639_p4 = scmp.ne.s32.totalorder %s7637_s18, %s7638_s28  ;;  %p7644_p3 = scmp.lt.s32.totalorder %s7642_s19, %s7638_s28 }
 0x4b8   : > { %4702 = vst [vmem:[#allocation2 + $0x148] sm:$0xfe] %v7734_v12  ;;  %v4586_v15 = vrot.slane %v11310_v34, 2  ;;  %v4467_v28 = vsel %vm3829_vm8, %v4465_v14, %v4466_v20  ;;  %v4600_v24 = vmul.f32 %v7531_v37, %v4584_v43  ;;  %v4587_v56 = vrot.slane %v11312_v35, 2  ;;  %v4737_v37 = vld [vmem:[#allocation2 + $0xc0] sm:$0xff]  ;;  %vm12447_vm7 = vmmov %vm12446_vm0 }
 0x4b9   : > { %4703 = vst [vmem:[#allocation2 + $0x150] sm:$0xfe] %v7734_v12  ;;  %v4468_v4 = vsel %vm3831_vm9, %v4464_v53, %v4467_v28  ;;  %v4560_v41 = vadd.f32 %v4544_v1, %v4536_v51  ;;  %v4588_v13 = vrot.slane %v11324_v46, 2  ;;  %v4622_v6 = vrot.slane %v4606_v22, 1  ;;  %vm12448_vm6 = vmmov %vm12446_vm0  ;;  %p7640_p5 = pnand %p7639_p4, %p7855_p11  ;;  %p7645_p7 = por %p7644_p3, %p7643_p13 }
 0x4ba   : > { %4704 = vst [vmem:[#allocation2 + $0x158] sm:$0xfe] %v7734_v12  ;;  %v4639_v59 = vmul.f32 %v4583_v11, %v11143_v39  ;;  %v4601_v34 = vmul.f32 %v7532_v26, %v4585_v38  ;;  %v4589_v63 = vrot.slane %v11333_v32, 2  ;;  %v4615_v61 = vrot.slane %v4599_v60, 1  ;;  %v4721_v26 = vld [vmem:[#allocation2 + $0x40] sm:$0xff]  ;;  %vm12449_vm8 = vmmov %vm12446_vm0 }
 0x4bb   : > { %4471 = vst [vmem:[#allocation2 + $0x106] ss:$8 sm:$0xf] %v4468_v4  ;;  %v4640_v58 = vmul.f32 %v4584_v43, %v11163_v10  ;;  %v4602_v35 = vmul.f32 %v7533_v45, %v4586_v15  ;;  %v4646_v42 = vmul.f32 %v4590_v21, %v11208_v52  ;;  %v4616_v23 = vrot.slane %v4600_v24, 1  ;;  %v4714_v45 = vld [vmem:[#allocation2 + $0x8] sm:$0xff]  ;;  %vm12450_vm9 = vmmov %vm12446_vm0  ;;  %p7641_p6 = pneg %p7640_p5 }
 0x4bc   : > { %4472 = vst [vmem:[#allocation2 + $0x106] ss:$8 sm:$0xf0] %v4468_v4  ;;  %v4603_v46 = vmul.f32 %v4587_v56, %v11108_v16  ;;  %v4604_v8 = vmul.f32 %v4588_v13, %v11114_v30  ;;  %v4638_v39 = vadd.f32 %v4622_v6, %v4606_v22  ;;  %v4655_v9 = vrot.slane %v4639_v59, 2  ;;  %v4740_v4 = vld [vmem:[#allocation2 + $0xd8] sm:$0xff]  ;;  %v4731_v6 = vld [vmem:[#allocation2 + $0x90] sm:$0xff] }
 0x4bd   : > { %4576 = vst [vmem:[#allocation1 + $0x3f] sm:$0xff] %v4560_v41  ;;  %v4617_v31 = vrot.slane %v4601_v34, 1  ;;  %v4605_v32 = vmul.f32 %v4589_v63, %v11125_v48  ;;  %v4631_v19 = vadd.f32 %v4615_v61, %v4599_v60  ;;  %v4656_v10 = vrot.slane %v4640_v58, 2  ;;  %v4729_v41 = vld [vmem:[#allocation2 + $0x80] sm:$0xff]  ;;  %v4732_v59 = vld [vmem:[#allocation2 + $0x98] sm:$0xff]  ;;  %p7646_p8 = pnand %p7645_p7, %p7641_p6 }
 0x4be   : > { %4705 = vst [vmem:[#allocation2 + $0x160] sm:$0xfe] %v7734_v12  ;;  %v4618_v55 = vrot.slane %v4602_v35, 1  ;;  %v4662_v2 = vrot.slane %v4646_v42, 2  ;;  %v4632_v7 = vadd.f32 %v4616_v23, %v4600_v24  ;;  %v4641_v52 = vmul.f32 %v4585_v38, %v11168_v18  ;;  %v4738_v24 = vld [vmem:[#allocation2 + $0xc8] sm:$0xff]  ;;  %v4724_v61 = vld [vmem:[#allocation2 + $0x58] sm:$0xff] }
 0x4bf   : > { %4706 = vst [vmem:[#allocation2 + $0x168] sm:$0xfe] %v7734_v12  ;;  %v4619_v3 = vrot.slane %v4603_v46, 1  ;;  %v4643_v16 = vmul.f32 %v4587_v56, %v11178_v50  ;;  %v4642_v30 = vmul.f32 %v4586_v15, %v11175_v49  ;;  %v4620_v17 = vrot.slane %v4604_v8, 1  ;;  %v4739_v56 = vld [vmem:[#allocation2 + $0xd0] sm:$0xff]  ;;  %v4713_v58 = vld [vmem:[#allocation2] sm:$0xff] }
 0x4c0   : > { %4707 = vst [vmem:[#allocation2 + $0x170] sm:$0xfe] %v7734_v12  ;;  %v4644_v36 = vmul.f32 %v4588_v13, %v11187_v29  ;;  %v4678_v25 = vadd.f32 %v4662_v2, %v4638_v39  ;;  %v4633_v21 = vadd.f32 %v4617_v31, %v4601_v34  ;;  %v4621_v48 = vrot.slane %v4605_v32, 1  ;;  %v4730_v13 = vld [vmem:[#allocation2 + $0x88] sm:$0xff]  ;;  %v4715_v42 = vld [vmem:[#allocation2 + $0x10] sm:$0xff]  ;;  %v4716_v23 = vld [vmem:[#allocation2 + $0x18] sm:$0xff] }
 0x4c1   : > { %4708 = vst [vmem:[#allocation2 + $0x178] sm:$0xfe] %v7734_v12  ;;  %v4671_v27 = vadd.f32 %v4655_v9, %v4631_v19  ;;  %v4634_v33 = vadd.f32 %v4618_v55, %v4602_v35  ;;  %v4657_v54 = vrot.slane %v4641_v52, 2  ;;  %v4635_v11 = vadd.f32 %v4619_v3, %v4603_v46  ;;  %v4722_v34 = vld [vmem:[#allocation2 + $0x48] sm:$0xff]  ;;  %v11390_v35 = vld [vmem:[%s12135_s9] sm:$0xff]  ;;  %v4741_v55 = vld [vmem:[#allocation2 + $0xe0] sm:$0xff] }
 0x4c2   : > { %v4659_v43 = vrot.slane %v4643_v16, 2  ;;  %v4645_v18 = vmul.f32 %v4589_v63, %v11202_v62  ;;  %v4672_v5 = vadd.f32 %v4656_v10, %v4632_v7  ;;  %v4658_v50 = vrot.slane %v4642_v30, 2  ;;  %v4723_v63 = vld [vmem:[#allocation2 + $0x50] sm:$0xff]  ;;  %v4742_v2 = vld [vmem:[#allocation2 + $0xe8] sm:$0xff]  ;;  %v4744_v52 = vld [vmem:[#allocation2 + $0xf8] sm:$0xff] }
 0x4c3   : > { %v4636_v40 = vadd.f32 %v4620_v17, %v4604_v8  ;;  %v4660_v49 = vrot.slane %v4644_v36, 2  ;;  %v4673_v47 = vadd.f32 %v4657_v54, %v4633_v21  ;;  %v4637_v29 = vadd.f32 %v4621_v48, %v4605_v32  ;;  %v4743_v7 = vld [vmem:[#allocation2 + $0xf0] sm:$0xff]  ;;  %v4733_v3 = vld [vmem:[#allocation2 + $0xa0] sm:$0xff]  ;;  %v4734_v16 = vld [vmem:[#allocation2 + $0xa8] sm:$0xff] }
 0x4c4   : > { %v4578_v44 = vld [vmem:[#allocation1 + $0x3] ss:$9 sm:$0xff]  ;;  %v4674_v0 = vadd.f32 %v4658_v50, %v4634_v33  ;;  %v4675_v38 = vadd.f32 %v4659_v43, %v4635_v11  ;;  %v4661_v22 = vrot.slane %v4645_v18, 2 }
 0x4c5   : > { %4694 = vst [vmem:[#allocation1 + $0x3f] sm:$0xff] %v4678_v25  ;;  %v4676_v12 = vadd.f32 %v4660_v49, %v4636_v40  ;;  %v4710_v30 = vld [vmem:[%s12135_s9 + $0x8] sm:$0xff]  ;;  %v4735_v17 = vld [vmem:[#allocation2 + $0xb0] sm:$0xff]  ;;  %v4736_v36 = vld [vmem:[#allocation2 + $0xb8] sm:$0xff] }
 0x4c6   : > { %4581 = vst [vmem:[#allocation2 + $0x107] ss:$8 sm:$0xf] %v4578_v44  ;;  %v4677_v14 = vadd.f32 %v4661_v22, %v4637_v29  ;;  %v4725_v25 = vld [vmem:[#allocation2 + $0x60] sm:$0xff]  ;;  %v4726_v21 = vld [vmem:[#allocation2 + $0x68] sm:$0xff]  ;;  %v4727_v48 = vld [vmem:[#allocation2 + $0x70] sm:$0xff] }
 0x4c7   : > { %4582 = vst [vmem:[#allocation2 + $0x107] ss:$8 sm:$0xf0] %v4578_v44  ;;  %v4728_v44 = vld [vmem:[#allocation2 + $0x78] sm:$0xff]  ;;  %v4718_v33 = vld [vmem:[#allocation2 + $0x28] sm:$0xff]  ;;  %v4719_v54 = vld [vmem:[#allocation2 + $0x30] sm:$0xff] }
 0x4c8   : > { %4687 = vst [vmem:[#allocation1] sm:$0xff] %v4671_v27  ;;  %v4717_v27 = vld [vmem:[#allocation2 + $0x20] sm:$0xff]  ;;  %v4720_v11 = vld [vmem:[#allocation2 + $0x38] sm:$0xff]  ;;  %v4711_v43 = vld [vmem:[%s12135_s9 + $0x10] sm:$0xff] }
 0x4c9   : > { %4688 = vst [vmem:[#allocation1 + $0x9] sm:$0xff] %v4672_v5  ;;  %v4712_v18 = vld [vmem:[%s12135_s9 + $0x18] sm:$0xff]  ;;  %v11441_v5 = vpop.permute.xlu0 %4767 }
 0x4ca   : > { %4689 = vst [vmem:[#allocation1 + $0x12] sm:$0xff] %v4673_v47 }
 0x4cb   : > { %4690 = vst [vmem:[#allocation1 + $0x1b] sm:$0xff] %v4674_v0 }
 0x4cc   : > { %4691 = vst [vmem:[#allocation1 + $0x24] sm:$0xff] %v4675_v38 }
 0x4cd   : > { %4692 = vst [vmem:[#allocation1 + $0x2d] sm:$0xff] %v4676_v12  ;;  %v4745_v60 = vld [vmem:[#allocation2 + $0x100] sm:$0xff]  ;;  %v4746_v53 = vld [vmem:[#allocation2 + $0x108] sm:$0xff]  ;;  %v4747_v15 = vld [vmem:[#allocation2 + $0x110] sm:$0xff] }
 0x4ce   : > { %4693 = vst [vmem:[#allocation1 + $0x36] sm:$0xff] %v4677_v14  ;;  %v4748_v28 = vld [vmem:[#allocation2 + $0x118] sm:$0xff]  ;;  %v4749_v31 = vld [vmem:[#allocation2 + $0x120] sm:$0xff]  ;;  %v4750_v32 = vld [vmem:[#allocation2 + $0x128] sm:$0xff] }
 0x4cf   : > { %v4751_v19 = vld [vmem:[#allocation2 + $0x130] sm:$0xff]  ;;  %v4752_v10 = vld [vmem:[#allocation2 + $0x138] sm:$0xff] }
 0x4d5   : > { %v4696_v62 = vld [vmem:[#allocation1 + $0x6] ss:$9 sm:$0xff] }
 0x4d6   : > { %4699 = vst [vmem:[#allocation2 + $0x140] ss:$8 sm:$0xf] %v4696_v62 }
 0x4d7   : > { %4700 = vst [vmem:[#allocation2 + $0x140] ss:$8 sm:$0xf0] %v4696_v62  ;;  %v11457_v62 = vpop.permute.xlu1 %4772 }
 0x4dd   : > { %v4753_v20 = vld [vmem:[#allocation2 + $0x140] sm:$0xff]  ;;  %v4754_v51 = vld [vmem:[#allocation2 + $0x148] sm:$0xff]  ;;  %v4755_v1 = vld [vmem:[#allocation2 + $0x150] sm:$0xff] }
 0x4de   : > { %4807 = vmatpush.msra.mxu0 %v4753_v20  ;;  %4836 = vmatpush.msra.mxu1 %v4754_v51  ;;  %v4756_v57 = vld [vmem:[#allocation2 + $0x158] sm:$0xff]  ;;  %v4757_v46 = vld [vmem:[#allocation2 + $0x160] sm:$0xff]  ;;  %v4758_v8 = vld [vmem:[#allocation2 + $0x168] sm:$0xff] }
 0x4df   : > { %4865 = vmatpush.msra.mxu2 %v4755_v1  ;;  %4894 = vmatpush.msra.mxu3 %v4756_v57  ;;  %v4759_v39 = vld [vmem:[#allocation2 + $0x170] sm:$0xff]  ;;  %v4760_v9 = vld [vmem:[#allocation2 + $0x178] sm:$0xff] }
 0x4e0   : > { %4808 = vmatpush.msra.mxu0 %v4745_v60  ;;  %4837 = vmatpush.msra.mxu1 %v4746_v53 }
 0x4e1   : > { %4866 = vmatpush.msra.mxu2 %v4747_v15  ;;  %4895 = vmatpush.msra.mxu3 %v4748_v28 }
 0x4e2   : > { %4809 = vmatpush.msra.mxu0 %v4737_v37  ;;  %4838 = vmatpush.msra.mxu1 %v4738_v24 }
 0x4e3   : > { %4867 = vmatpush.msra.mxu2 %v4739_v56  ;;  %4896 = vmatpush.msra.mxu3 %v4740_v4 }
 0x4e4   : > { %4810 = vmatpush.msra.mxu0 %v4729_v41  ;;  %4839 = vmatpush.msra.mxu1 %v4730_v13 }
 0x4e5   : > { %4868 = vmatpush.msra.mxu2 %v4731_v6  ;;  %4897 = vmatpush.msra.mxu3 %v4732_v59 }
 0x4e6   : > { %4811 = vmatpush.msra.mxu0 %v4721_v26  ;;  %4840 = vmatpush.msra.mxu1 %v4722_v34 }
 0x4e7   : > { %4869 = vmatpush.msra.mxu2 %v4723_v63  ;;  %4898 = vmatpush.msra.mxu3 %v4724_v61 }
 0x4e8   : > { %4812 = vmatpush.msra.mxu0 %v4713_v58  ;;  %4841 = vmatpush.msra.mxu1 %v4714_v45 }
 0x4e9   : > { %4870 = vmatpush.msra.mxu2 %v4715_v42  ;;  %4899 = vmatpush.msra.mxu3 %v4716_v23 }
 0x4ea   : > { %6873 = vmatmul.msk.f32.vlgmr.msra.gmra.mxu0 %vm12435_vm15, %v11390_v35  ;;  %6877 = vmatmul.msk.f32.vlgmr.msra.gmra.mxu1 %vm12436_vm10, %v11390_v35  ;;  %vm12451_vm15 = vmmov %vm12446_vm0 }
 0x4eb   : > { %6881 = vmatmul.msk.f32.vlgmr.msra.gmra.mxu2 %vm12437_vm11, %v11390_v35  ;;  %6885 = vmatmul.msk.f32.vlgmr.msra.gmra.mxu3 %vm12438_vm12, %v11390_v35  ;;  %vm12452_vm10 = vmmov %vm12446_vm0 }
 0x4ec   : > { %4923 = vmatpush.msrb.mxu0 %v4757_v46  ;;  %4952 = vmatpush.msrb.mxu1 %v4758_v8  ;;  %vm12453_vm11 = vmmov %vm12446_vm0 }
 0x4ed   : > { %4981 = vmatpush.msrb.mxu2 %v4759_v39  ;;  %5010 = vmatpush.msrb.mxu3 %v4760_v9  ;;  %vm12454_vm12 = vmmov %vm12446_vm0 }
 0x4ee   : > { %4924 = vmatpush.msrb.mxu0 %v4749_v31  ;;  %4953 = vmatpush.msrb.mxu1 %v4750_v32 }
 0x4ef   : > { %4982 = vmatpush.msrb.mxu2 %v4751_v19  ;;  %5011 = vmatpush.msrb.mxu3 %v4752_v10  ;;  %v11487_v19 = vpop.permute.xlu2 %4777 }
 0x4f0   : > { %4925 = vmatpush.msrb.mxu0 %v4741_v55  ;;  %4954 = vmatpush.msrb.mxu1 %v4742_v2 }
 0x4f1   : > { %4983 = vmatpush.msrb.mxu2 %v4743_v7  ;;  %5012 = vmatpush.msrb.mxu3 %v4744_v52 }
 0x4f2   : > { %4926 = vmatpush.msrb.mxu0 %v4733_v3  ;;  %4955 = vmatpush.msrb.mxu1 %v4734_v16 }
 0x4f3   : > { %4984 = vmatpush.msrb.mxu2 %v4735_v17  ;;  %5013 = vmatpush.msrb.mxu3 %v4736_v36 }
 0x4f4   : > { %6874 = vmatmul.msk.f32.gmra.mxu0 %vm12439_vm13, %v4710_v30  ;;  %6878 = vmatmul.msk.f32.gmra.mxu1 %vm12440_vm14, %v4710_v30  ;;  %vm12455_vm13 = vmmov %vm12446_vm0 }
 0x4f5   : > { %6882 = vmatmul.msk.f32.gmra.mxu2 %vm12441_vm1, %v4710_v30  ;;  %6886 = vmatmul.msk.f32.gmra.mxu3 %vm12442_vm3, %v4710_v30  ;;  %vm12456_vm14 = vmmov %vm12446_vm0 }
 0x4f6   : > { %4927 = vmatpush.msrb.mxu0 %v4725_v25  ;;  %4956 = vmatpush.msrb.mxu1 %v4726_v21  ;;  %vm12457_vm1 = vmmov %vm12446_vm0 }
 0x4f7   : > { %4985 = vmatpush.msrb.mxu2 %v4727_v48  ;;  %5014 = vmatpush.msrb.mxu3 %v4728_v44  ;;  %vm12458_vm3 = vmmov %vm12446_vm0 }
 0x4f8   : > { %4928 = vmatpush.msrb.mxu0 %v4717_v27  ;;  %4957 = vmatpush.msrb.mxu1 %v4718_v33 }
 0x4f9   : > { %4986 = vmatpush.msrb.mxu2 %v4719_v54  ;;  %5015 = vmatpush.msrb.mxu3 %v4720_v11 }
 0x4fc   : > { %6875 = vmatmul.msk.f32.gmra.mxu0 %vm12443_vm2, %v4711_v43  ;;  %6879 = vmatmul.msk.f32.gmra.mxu1 %vm12444_vm4, %v4711_v43  ;;  %vm12459_vm2 = vmmov %vm12446_vm0 }
 0x4fd   : > { %6883 = vmatmul.msk.f32.gmra.mxu2 %vm12445_vm5, %v4711_v43  ;;  %6887 = vmatmul.msk.f32.gmra.mxu3 %vm12446_vm0, %v4711_v43  ;;  %vm12460_vm4 = vmmov %vm12446_vm0 }
 0x4fe   : > { %vm12461_vm5 = vmmov %vm12446_vm0 }
 0x504   : > { %6876 = vmatmul.msk.f32.gmra.mxu0 %vm12447_vm7, %v4712_v18  ;;  %6880 = vmatmul.msk.f32.gmra.mxu1 %vm12448_vm6, %v4712_v18  ;;  %vm12462_vm7 = vmmov %vm12446_vm0 }
 0x505   : > { %6884 = vmatmul.msk.f32.gmra.mxu2 %vm12449_vm8, %v4712_v18  ;;  %6888 = vmatmul.msk.f32.gmra.mxu3 %vm12450_vm9, %v4712_v18  ;;  %vm12463_vm6 = vmmov %vm12446_vm0 }
 0x506   : > { %vm12464_vm8 = vmmov %vm12446_vm0 }
 0x507   : > { %vm12465_vm9 = vmmov %vm12446_vm0 }
 0x50c   : > { %6889 = vmatmul.msk.f32.vlgmr.msrb.gmra.mxu0 %vm12451_vm15, %v11390_v35  ;;  %6893 = vmatmul.msk.f32.vlgmr.msrb.gmra.mxu1 %vm12452_vm10, %v11390_v35 }
 0x50d   : > { %6897 = vmatmul.msk.f32.vlgmr.msrb.gmra.mxu2 %vm12453_vm11, %v11390_v35  ;;  %6901 = vmatmul.msk.f32.vlgmr.msrb.gmra.mxu3 %vm12454_vm12, %v11390_v35 }
 0x514   : > { %6890 = vmatmul.msk.f32.gmra.mxu0 %vm12455_vm13, %v4710_v30  ;;  %6894 = vmatmul.msk.f32.gmra.mxu1 %vm12456_vm14, %v4710_v30 }
 0x515   : > { %6898 = vmatmul.msk.f32.gmra.mxu2 %vm12457_vm1, %v4710_v30  ;;  %6902 = vmatmul.msk.f32.gmra.mxu3 %vm12458_vm3, %v4710_v30 }
 0x51c   : > { %6891 = vmatmul.msk.f32.gmra.mxu0 %vm12459_vm2, %v4711_v43  ;;  %6895 = vmatmul.msk.f32.gmra.mxu1 %vm12460_vm4, %v4711_v43 }
 0x51d   : > { %6899 = vmatmul.msk.f32.gmra.mxu2 %vm12461_vm5, %v4711_v43  ;;  %6903 = vmatmul.msk.f32.gmra.mxu3 %vm12446_vm0, %v4711_v43 }
 0x524   : > { %6892 = vmatmul.msk.f32.gmra.mxu0 %vm12462_vm7, %v4712_v18  ;;  %6896 = vmatmul.msk.f32.gmra.mxu1 %vm12463_vm6, %v4712_v18 }
 0x525   : > { %6900 = vmatmul.msk.f32.gmra.mxu2 %vm12464_vm8, %v4712_v18  ;;  %6904 = vmatmul.msk.f32.gmra.mxu3 %vm12465_vm9, %v4712_v18 }
 0x567   : > { %v4814_v50 = vpop.f32.mrf.mxu0  ;;  %v4843_v40 = vpop.f32.mrf.mxu1 }
 0x568   : > { %v11444_v49 = vadd.f32 %v4814_v50, %v11441_v5  ;;  %v11447_v47 = vadd.f32 %v4843_v40, %v11441_v5 }
 0x56a   : > { %v6921_v29 = vmul.f32 -1.442695, %v11444_v49  ;;  %v6922_v0 = vmul.f32 -1.442695, %v11447_v47 }
 0x56c   : > { %7399 = vpow2.f32 %v6921_v29 }
 0x56d   : > { %7401 = vpow2.f32 %v6922_v0 }
 0x56e   : > { %v4872_v38 = vpop.f32.mrf.mxu2  ;;  %v4901_v22 = vpop.f32.mrf.mxu3 }
 0x56f   : > { %v11452_v12 = vadd.f32 %v4872_v38, %v11441_v5  ;;  %v11455_v14 = vadd.f32 %v4901_v22, %v11441_v5 }
 0x571   : > { %v6923_v20 = vmul.f32 -1.442695, %v11452_v12  ;;  %v6924_v51 = vmul.f32 -1.442695, %v11455_v14  ;;  %v4817_v1 = vpop.f32.mrf.mxu0  ;;  %v4846_v57 = vpop.f32.mrf.mxu1 }
 0x572   : > { %v7400_v60 = vpop.eup %7399  ;;  %v11462_v53 = vadd.f32 %v4817_v1, %v11457_v62  ;;  %v11465_v15 = vadd.f32 %v4846_v57, %v11457_v62 }
 0x573   : > { %v7402_v28 = vpop.eup %7401  ;;  %v5733_v37 = vadd.f32 1.0, %v7400_v60  ;;  %7403 = vpow2.f32 %v6923_v20 }
 0x574   : > { %v11467_v24 = vadd.f32 1.0, %v7402_v28  ;;  %7405 = vpow2.f32 %v6924_v51  ;;  %v6929_v56 = vmul.f32 -1.442695, %v11462_v53  ;;  %v6930_v4 = vmul.f32 -1.442695, %v11465_v15 }
 0x575   : > { %7407 = vrcp.f32 %v5733_v37  ;;  %v5774_v41 = vand.u32 2147483647, %v5733_v37  ;;  %v5776_v13 = vand.u32 2147483648, %v5733_v37  ;;  %vm5770_vm15 = vweird.f32 %v5733_v37 }
 0x576   : > { %7409 = vrcp.f32 %v11467_v24  ;;  %v5789_v26 = vand.u32 2147483647, %v11467_v24  ;;  %v5791_v34 = vand.u32 2147483648, %v11467_v24  ;;  %vm5785_vm10 = vweird.f32 %v11467_v24 }
 0x577   : > { %7411 = vpow2.f32 %v6929_v56  ;;  %vm11482_vm11 = vcmp.eq.f32.partialorder %v5774_v41, 8.507059e+37  ;;  %v5777_v9 = vor.u32 1.1754944e-38, %v5776_v13 }
 0x578   : > { %7413 = vpow2.f32 %v6930_v4  ;;  %v4875_v6 = vpop.f32.mrf.mxu2  ;;  %v4904_v42 = vpop.f32.mrf.mxu3  ;;  %vm11490_vm12 = vcmp.eq.f32.partialorder %v5789_v26, 8.507059e+37  ;;  %v5792_v2 = vor.u32 1.1754944e-38, %v5791_v34 }
 0x579   : > { %v7404_v59 = vpop.eup %7403  ;;  %v11475_v63 = vadd.f32 %v4875_v6, %v11457_v62  ;;  %v4820_v23 = vpop.f32.mrf.mxu0  ;;  %v11497_v16 = vadd.f32 %v4904_v42, %v11457_v62 }
 0x57a   : > { %v7406_v61 = vpop.eup %7405  ;;  %v11477_v58 = vadd.f32 1.0, %v7404_v59  ;;  %v4849_v31 = vpop.f32.mrf.mxu1  ;;  %v11500_v30 = vadd.f32 %v4820_v23, %v11487_v19 }
 0x57b   : > { %v7408_v45 = vpop.eup %7407  ;;  %v11480_v35 = vadd.f32 1.0, %v7406_v61  ;;  %v6931_v7 = vmul.f32 -1.442695, %v11475_v63  ;;  %v11504_v25 = vadd.f32 %v4849_v31, %v11487_v19  ;;  %v6932_v50 = vmul.f32 -1.442695, %v11497_v16 }
 0x57c   : > { %v7410_v46 = vpop.eup %7409  ;;  %v5766_v8 = vmul.f32 %v7408_v45, %v5733_v37  ;;  %7415 = vrcp.f32 %v11477_v58  ;;  %vm5771_vm13 = vweird.f32 %v7408_v45  ;;  %v5804_v36 = vand.u32 2147483647, %v11477_v58 }
 0x57d   : > { %v7412_v32 = vpop.eup %7411  ;;  %v5781_v10 = vmul.f32 %v7410_v46, %v11467_v24  ;;  %7417 = vrcp.f32 %v11480_v35  ;;  %v5806_v48 = vand.u32 2147483648, %v11477_v58  ;;  %vm5786_vm14 = vweird.f32 %v7410_v46  ;;  %vm5772_vm1 = vmor %vm5770_vm15, %vm5771_vm13 }
 0x57e   : > { %v7414_v52 = vpop.eup %7413  ;;  %v5767_v3 = vsub.f32 1.0, %v5766_v8  ;;  %v11507_v44 = vadd.f32 1.0, %v7412_v32  ;;  %v5819_v54 = vand.u32 2147483647, %v11480_v35  ;;  %7419 = vpow2.f32 %v6931_v7  ;;  %vm5787_vm4 = vmor %vm5785_vm10, %vm5786_vm14 }
 0x57f   : > { %v5782_v17 = vsub.f32 1.0, %v5781_v10  ;;  %v11509_v27 = vadd.f32 1.0, %v7414_v52  ;;  %v5821_v18 = vand.u32 2147483648, %v11480_v35  ;;  %vm5800_vm3 = vweird.f32 %v11477_v58 }
 0x580   : > { %v5768_v21 = vmul.f32 %v7408_v45, %v5767_v3  ;;  %7421 = vrcp.f32 %v11507_v44  ;;  %vm5815_vm2 = vweird.f32 %v11480_v35  ;;  %vm11523_vm5 = vcmp.eq.f32.partialorder %v5804_v36, 8.507059e+37  ;;  %v4878_v3 = vpop.f32.mrf.mxu2 }
 0x581   : > { %v5783_v33 = vmul.f32 %v7410_v46, %v5782_v17  ;;  %v5807_v20 = vor.u32 1.1754944e-38, %v5806_v48  ;;  %7423 = vrcp.f32 %v11509_v27  ;;  %vm11531_vm0 = vcmp.eq.f32.partialorder %v5819_v54, 8.507059e+37  ;;  %v4907_v17 = vpop.f32.mrf.mxu3 }
 0x582   : > { %v7416_v11 = vpop.eup %7415  ;;  %v5769_v43 = vadd.f32 %v7408_v45, %v5768_v21  ;;  %v5822_v56 = vor.u32 1.1754944e-38, %v5821_v18  ;;  %v5894_v4 = vand.u32 2147483647, %v11507_v44  ;;  %vm5890_vm6 = vweird.f32 %v11507_v44  ;;  %v4852_v28 = vpop.f32.mrf.mxu1 }
 0x583   : > { %v5784_v40 = vadd.f32 %v7410_v46, %v5783_v33  ;;  %v5796_v29 = vmul.f32 %v7416_v11, %v11477_v58  ;;  %v7418_v0 = vpop.eup %7417  ;;  %vm5801_vm7 = vweird.f32 %v7416_v11  ;;  %7425 = vpow2.f32 %v6932_v50 }
 0x584   : > { %v5773_v38 = vsel %vm5772_vm1, %v7408_v45, %v5769_v43  ;;  %v5811_v60 = vmul.f32 %v7418_v0, %v11480_v35  ;;  %v7420_v41 = vpop.eup %7419  ;;  %v6937_v34 = vmul.f32 -1.442695, %v11500_v30  ;;  %vm5816_vm8 = vweird.f32 %v7418_v0  ;;  %vm5802_vm9 = vmor %vm5800_vm3, %vm5801_vm7 }
 0x585   : > { %v5778_v51 = vsel %vm11482_vm11, %v5777_v9, %v5773_v38  ;;  %v5788_v1 = vsel %vm5787_vm4, %v7410_v46, %v5784_v40  ;;  %v5797_v57 = vsub.f32 1.0, %v5796_v29  ;;  %vm11554_vm15 = vcmp.eq.f32.partialorder %v5894_v4, 8.507059e+37  ;;  %vm5817_vm11 = vmor %vm5815_vm2, %vm5816_vm8 }
 0x586   : > { %v6245_v37 = vmul.f32 %v5778_v51, %v11444_v49  ;;  %v5793_v24 = vsel %vm11490_vm12, %v5792_v2, %v5788_v1  ;;  %v5812_v59 = vsub.f32 1.0, %v5811_v60  ;;  %v7422_v26 = vpop.eup %7421  ;;  %v11546_v49 = vadd.f32 1.0, %v7420_v41  ;;  %v11607_v51 = vpop.permute.xlu0 %4782 }
 0x587   : > { %v6246_v13 = vmul.f32 %v5793_v24, %v11447_v47  ;;  %v5798_v6 = vmul.f32 %v7416_v11, %v5797_v57  ;;  %v5886_v45 = vmul.f32 %v7422_v26, %v11507_v44  ;;  %v7424_v42 = vpop.eup %7423  ;;  %v5896_v46 = vand.u32 2147483648, %v11507_v44 }
 0x588   : > { %6277 = vst [vmem:[%s11542_s0] sm:$0xff] %v6245_v37  ;;  %v5813_v47 = vmul.f32 %v7418_v0, %v5812_v59  ;;  %vm5905_vm10 = vweird.f32 %v11509_v27  ;;  %7427 = vrcp.f32 %v11546_v49  ;;  %v5901_v31 = vmul.f32 %v7424_v42, %v11509_v27 }
 0x589   : > { %6278 = vst [vmem:[%s11542_s0 + $0x8] sm:$0xff] %v6246_v13  ;;  %v5799_v61 = vadd.f32 %v7416_v11, %v5798_v6  ;;  %v5887_v9 = vsub.f32 1.0, %v5886_v45  ;;  %vm5891_vm12 = vweird.f32 %v7422_v26  ;;  %v5909_v58 = vand.u32 2147483647, %v11509_v27  ;;  %v7426_v36 = vpop.eup %7425 }
 0x58a   : > { %v5814_v39 = vadd.f32 %v7418_v0, %v5813_v47  ;;  %v6938_v10 = vmul.f32 -1.442695, %v11504_v25  ;;  %v5902_v52 = vsub.f32 1.0, %v5901_v31  ;;  %vm5906_vm13 = vweird.f32 %v7424_v42  ;;  %vm5892_vm14 = vmor %vm5890_vm6, %vm5891_vm12 }
 0x58b   : > { %v5803_v8 = vsel %vm5802_vm9, %v7416_v11, %v5799_v61  ;;  %v5888_v7 = vmul.f32 %v7422_v26, %v5887_v9  ;;  %v5911_v35 = vand.u32 2147483648, %v11509_v27  ;;  %7429 = vpow2.f32 %v6937_v34  ;;  %vm5907_vm3 = vmor %vm5905_vm10, %vm5906_vm13 }
 0x58c   : > { %v5808_v32 = vsel %vm11523_vm5, %v5807_v20, %v5803_v8  ;;  %v5818_v2 = vsel %vm5817_vm11, %v7418_v0, %v5814_v39  ;;  %v11574_v54 = vadd.f32 1.0, %v7426_v36  ;;  %v5897_v43 = vor.u32 1.1754944e-38, %v5896_v46  ;;  %v4823_v0 = vpop.f32.mrf.mxu0 }
 0x58d   : > { %v6247_v55 = vmul.f32 %v5808_v32, %v11452_v12  ;;  %v5823_v21 = vsel %vm11531_vm0, %v5822_v56, %v5818_v2  ;;  %v5889_v33 = vadd.f32 %v7422_v26, %v5888_v7  ;;  %v5903_v12 = vmul.f32 %v7424_v42, %v5902_v52 }
 0x58e   : > { %v6248_v48 = vmul.f32 %v5823_v21, %v11455_v14  ;;  %v11577_v11 = vpop.eup %7427  ;;  %7431 = vpow2.f32 %v6938_v10  ;;  %v11583_v18 = vadd.f32 %v4878_v3, %v11487_v19  ;;  %v11586_v50 = vadd.f32 %v4907_v17, %v11487_v19 }
 0x58f   : > { %6279 = vst [vmem:[%s11542_s0 + $0x10] sm:$0xff] %v6247_v55  ;;  %v5893_v14 = vsel %vm5892_vm14, %v7422_v26, %v5889_v33  ;;  %v5904_v40 = vadd.f32 %v7424_v42, %v5903_v12  ;;  %vm11589_vm1 = vcmp.eq.f32.partialorder %v5909_v58, 8.507059e+37  ;;  %v5916_v44 = vmul.f32 %v11577_v11, %v11546_v49 }
 0x590   : > { %6280 = vst [vmem:[%s11542_s0 + $0x18] sm:$0xff] %v6248_v48  ;;  %v5898_v38 = vsel %vm11554_vm15, %v5897_v43, %v5893_v14  ;;  %v5912_v22 = vor.u32 1.1754944e-38, %v5911_v35  ;;  %v5924_v20 = vand.u32 2147483647, %v11546_v49  ;;  %7433 = vrcp.f32 %v11574_v54 }
 0x591   : > { %v6253_v1 = vmul.f32 %v5898_v38, %v11462_v53  ;;  %v5908_v57 = vsel %vm5907_vm3, %v7424_v42, %v5904_v40  ;;  %v5917_v60 = vsub.f32 1.0, %v5916_v44  ;;  %v5926_v27 = vand.u32 2147483648, %v11546_v49  ;;  %v7430_v37 = vpop.eup %7429 }
 0x592   : > { %v5913_v24 = vsel %vm11589_vm1, %v5912_v22, %v5908_v57  ;;  %v6939_v56 = vmul.f32 -1.442695, %v11583_v18  ;;  %v6940_v4 = vmul.f32 -1.442695, %v11586_v50  ;;  %v11617_v41 = vadd.f32 %v4823_v0, %v11607_v51 }
 0x593   : > { %6285 = vst [vmem:[%s11542_s0 + $0x40] sm:$0xff] %v6253_v1  ;;  %v6254_v53 = vmul.f32 %v5913_v24, %v11465_v15  ;;  %v5918_v13 = vmul.f32 %v11577_v11, %v5917_v60  ;;  %vm5921_vm2 = vweird.f32 %v11577_v11  ;;  %v11627_v6 = vadd.f32 1.0, %v7430_v37 }
 0x594   : > { %v7432_v59 = vpop.eup %7431  ;;  %vm5920_vm4 = vweird.f32 %v11546_v49  ;;  %7435 = vpow2.f32 %v6939_v56  ;;  %v11631_v26 = vadd.f32 %v4852_v28, %v11607_v51 }
 0x595   : > { %7649 = shalt.err (!%p7646_p8)
}
 0x596   : > { %s7735_s26 = smov 1024   ;;  %s7736_s15 = smov 2048   ;;  %6286 = vst [vmem:[%s11542_s0 + $0x48] sm:$0xff] %v6254_v53  ;;  %v5919_v15 = vadd.f32 %v11577_v11, %v5918_v13  ;;  %v5927_v34 = vor.u32 1.1754944e-38, %v5926_v27  ;;  %v5939_v61 = vand.u32 2147483647, %v11574_v54  ;;  %7437 = vrcp.f32 %v11627_v6  ;;  %v7434_v47 = vpop.eup %7433  ;;  %vm5922_vm5 = vmor %vm5920_vm4, %vm5921_vm2  ;;  %v4881_v46 = vpop.f32.mrf.mxu2 }
 0x597   : > { %s7737_s23 = smov 64   ;;  %v5941_v45 = vand.u32 2147483648, %v11574_v54  ;;  %v11659_v42 = vadd.f32 1.0, %v7432_v59  ;;  %7439 = vpow2.f32 %v6940_v4  ;;  %v6945_v23 = vmul.f32 -1.442695, %v11617_v41  ;;  %v4910_v31 = vpop.f32.mrf.mxu3  ;;  %s6408_s25 = scalar_lea.sflag [#allocation6], %s8005_s13 }
 0x598   : > { %7010 = dma.vmem_to_hbm [thread:$0]  (%p7855_p11), %s11621_s14, 6144, %s11619_s17, %s6413_s11, %s7735_s26, %s7736_s15, %s7737_s23   ;;  %v5923_v8 = vsel %vm5922_vm5, %v11577_v11, %v5919_v15  ;;  %vm5925_vm0 = vcmp.eq.f32.partialorder %v5924_v20, 8.507059e+37  ;;  %v5931_v39 = vmul.f32 %v7434_v47, %v11574_v54  ;;  %v6014_v9 = vand.u32 2147483647, %v11627_v6  ;;  %v4930_v11 = vpop.f32.mrf.mxu0 }
 0x599   : > { %v5928_v32 = vsel %vm5925_vm0, %v5927_v34, %v5923_v8  ;;  %v6016_v49 = vand.u32 2147483648, %v11627_v6  ;;  %7441 = vrcp.f32 %v11659_v42  ;;  %v6946_v58 = vmul.f32 -1.442695, %v11631_v26  ;;  %s12509_s17 = sld [smem:[#allocation68_spill]]  ;;  %s6425_s11 = sshll.u32 %s11542_s0, 4  ;;  %s6426_s11 = int_to_ptr.vmem [resolvable:$true] %s6425_s11 }
 0x59a   : > { %v6255_v10 = vmul.f32 %v5928_v32, %v11475_v63  ;;  %v5932_v55 = vsub.f32 1.0, %v5931_v39  ;;  %vm5935_vm7 = vweird.f32 %v11574_v54  ;;  %v11671_v2 = vadd.f32 %v4881_v46, %v11607_v51  ;;  %v7436_v7 = vpop.eup %7435 }
 0x59b   : > { %vm11673_vm6 = vcmp.eq.f32.partialorder %v5939_v61, 8.507059e+37  ;;  %v5942_v3 = vor.u32 1.1754944e-38, %v5941_v45  ;;  %7443 = vpow2.f32 %v6945_v23  ;;  %v11678_v17 = vadd.f32 %v4910_v31, %v11607_v51 }
 0x59c   : > { %v7438_v36 = vpop.eup %7437  ;;  %6287 = vst [vmem:[%s11542_s0 + $0x50] sm:$0xff] %v6255_v10  ;;  %v5933_v21 = vmul.f32 %v7434_v47, %v5932_v55  ;;  %vm5936_vm8 = vweird.f32 %v7434_v47  ;;  %vm6010_vm9 = vweird.f32 %v11627_v6  ;;  %v11682_v63 = vadd.f32 1.0, %v7436_v7 }
 0x59d   : > { %v7440_v35 = vpop.eup %7439  ;;  %v6006_v48 = vmul.f32 %v7438_v36, %v11627_v6  ;;  %vm11685_vm15 = vcmp.eq.f32.partialorder %v6014_v9, 8.507059e+37  ;;  %v6017_v12 = vor.u32 1.1754944e-38, %v6016_v49  ;;  %7445 = vpow2.f32 %v6946_v58  ;;  %vm5937_vm11 = vmor %vm5935_vm7, %vm5936_vm8 }
 0x59e   : > { %v5934_v43 = vadd.f32 %v7434_v47, %v5933_v21  ;;  %vm6025_vm10 = vweird.f32 %v11659_v42  ;;  %v6029_v14 = vand.u32 2147483647, %v11659_v42  ;;  %7447 = vrcp.f32 %v11682_v63 }
 0x59f   : > { %v6947_v40 = vmul.f32 -1.442695, %v11671_v2  ;;  %v7442_v29 = vpop.eup %7441  ;;  %v6007_v44 = vsub.f32 1.0, %v6006_v48  ;;  %v6031_v0 = vand.u32 2147483648, %v11659_v42  ;;  %v11697_v38 = vadd.f32 1.0, %v7440_v35  ;;  %s6424_s14 = scalar_lea.hbm %s12509_s17, %s6995_s21  ;;  %s7670_s19 = scalar_lea.hbm %s12509_s17, 512 }
 0x5a0   : > { %v6948_v22 = vmul.f32 -1.442695, %v11678_v17  ;;  %v5938_v20 = vsel %vm5937_vm11, %v7434_v47, %v5934_v43  ;;  %vm6011_vm12 = vweird.f32 %v7438_v36  ;;  %v6021_v1 = vmul.f32 %v7442_v29, %v11659_v42  ;;  %s6427_s18 = sshll.u32 %s6424_s14, 4  ;;  %s6428_s18 = int_to_ptr.hbm [resolvable:$true] %s6427_s18 }
 0x5a1   : > { %v11702_v57 = vadd.f32 %v4930_v11, %v11441_v5  ;;  %v7444_v60 = vpop.eup %7443  ;;  %v5943_v54 = vsel %vm11673_vm6, %v5942_v3, %v5938_v20  ;;  %v6008_v27 = vmul.f32 %v7438_v36, %v6007_v44  ;;  %v6044_v28 = vand.u32 2147483647, %v11682_v63  ;;  %vm6012_vm14 = vmor %vm6010_vm9, %vm6011_vm12  ;;  %s7664_s21 = sshra.s32 %s6428_s18, 4  ;;  %s7665_s21 = int_to_ptr.hbm [resolvable:$true] %s7664_s21 }
 0x5a2   : > { %7449 = vrcp.f32 %v11697_v38  ;;  %v6256_v37 = vmul.f32 %v5943_v54, %v11497_v16  ;;  %v6022_v24 = vsub.f32 1.0, %v6021_v1  ;;  %vm11709_vm13 = vcmp.eq.f32.partialorder %v6029_v14, 8.507059e+37  ;;  %s7666_s28 = scalar_lea.hbm %s7665_s21, 256  ;;  %p7671_p0 = scmp.lt.s32.totalorder %s7665_s21, %s12509_s17 }
 0x5a3   : > { %7451 = vpow2.f32 %v6947_v40  ;;  %v7446_v4 = vpop.eup %7445  ;;  %v6009_v53 = vadd.f32 %v7438_v36, %v6008_v27  ;;  %v6046_v13 = vand.u32 2147483648, %v11682_v63  ;;  %v11714_v59 = vadd.f32 1.0, %v7444_v60  ;;  %p7667_p9 = scmp.ne.s32.totalorder %s7665_s21, %s7666_s28  ;;  %p7672_p4 = scmp.lt.s32.totalorder %s7670_s19, %s7666_s28 }
 0x5a4   : > { %7453 = vpow2.f32 %v6948_v22  ;;  %v7448_v15 = vpop.eup %7447  ;;  %6288 = vst [vmem:[%s11542_s0 + $0x58] sm:$0xff] %v6256_v37  ;;  %v6023_v16 = vmul.f32 %v7442_v29, %v6022_v24  ;;  %vm6026_vm1 = vweird.f32 %v7442_v29  ;;  %v6032_v34 = vor.u32 1.1754944e-38, %v6031_v0  ;;  %v4959_v0 = vpop.f32.mrf.mxu1 }
 0x5a5   : > { %v11720_v61 = vadd.f32 1.0, %v7446_v4  ;;  %v6013_v47 = vsel %vm6012_vm14, %v7438_v36, %v6009_v53  ;;  %v6036_v45 = vmul.f32 %v7448_v15, %v11682_v63  ;;  %vm6040_vm3 = vweird.f32 %v11682_v63  ;;  %vm6027_vm4 = vmor %vm6025_vm10, %vm6026_vm1  ;;  %v4988_v37 = vpop.f32.mrf.mxu2  ;;  %v5017_v4 = vpop.f32.mrf.mxu3  ;;  %p7668_p10 = pnand %p7667_p9, %p7855_p11  ;;  %p7673_p5 = por %p7672_p4, %p7671_p0 }
 0x5a6   : > { %vm11724_vm2 = vcmp.eq.f32.partialorder %v6044_v28, 8.507059e+37  ;;  %v6018_v46 = vsel %vm11685_vm15, %v6017_v12, %v6013_v47  ;;  %v6024_v6 = vadd.f32 %v7442_v29, %v6023_v16  ;;  %v6059_v8 = vand.u32 2147483647, %v11697_v38 }
 0x5a7   : > { %7455 = vrcp.f32 %v11714_v59  ;;  %v6261_v9 = vmul.f32 %v6018_v46, %v11500_v30  ;;  %v6037_v31 = vsub.f32 1.0, %v6036_v45  ;;  %v6047_v32 = vor.u32 1.1754944e-38, %v6046_v13  ;;  %p7669_p1 = pneg %p7668_p10 }
 0x5a8   : > { %v7450_v39 = vpop.eup %7449  ;;  %v6061_v49 = vand.u32 2147483648, %v11697_v38  ;;  %v6028_v10 = vsel %vm6027_vm4, %v7442_v29, %v6024_v6  ;;  %7457 = vrcp.f32 %v11720_v61  ;;  %v6925_v7 = vmul.f32 -1.442695, %v11702_v57 }
 0x5a9   : > { %v7452_v58 = vpop.eup %7451  ;;  %v6051_v55 = vmul.f32 %v7450_v39, %v11697_v38  ;;  %6293 = vst [vmem:[%s11542_s0 + $0x80] sm:$0xff] %v6261_v9  ;;  %v6033_v30 = vsel %vm11709_vm13, %v6032_v34, %v6028_v10  ;;  %v6038_v42 = vmul.f32 %v7448_v15, %v6037_v31  ;;  %vm6041_vm5 = vweird.f32 %v7448_v15  ;;  %p7674_p6 = pnand %p7673_p5, %p7669_p1 }
 0x5aa   : > { %v7454_v52 = vpop.eup %7453  ;;  %v6134_v3 = vand.u32 2147483647, %v11714_v59  ;;  %v6262_v36 = vmul.f32 %v6033_v30, %v11504_v25  ;;  %vm6055_vm0 = vweird.f32 %v11697_v38  ;;  %vm11745_vm7 = vcmp.eq.f32.partialorder %v6059_v8, 8.507059e+37  ;;  %vm6042_vm8 = vmor %vm6040_vm3, %vm6041_vm5 }
 0x5ab   : > { %v6052_v21 = vsub.f32 1.0, %v6051_v55  ;;  %v6039_v48 = vadd.f32 %v7448_v15, %v6038_v42  ;;  %v6062_v33 = vor.u32 1.1754944e-38, %v6061_v49  ;;  %vm6130_vm6 = vweird.f32 %v11714_v59 }
 0x5ac   : > { %v11750_v12 = vadd.f32 1.0, %v7452_v58  ;;  %6294 = vst [vmem:[%s11542_s0 + $0x88] sm:$0xff] %v6262_v36  ;;  %vm6056_vm9 = vweird.f32 %v7450_v39  ;;  %v11755_v25 = vadd.f32 1.0, %v7454_v52  ;;  %7459 = vpow2.f32 %v6925_v7  ;;  %v4933_v58 = vpop.f32.mrf.mxu0 }
 0x5ad   : > { %v7456_v11 = vpop.eup %7455  ;;  %v6053_v43 = vmul.f32 %v7450_v39, %v6052_v21  ;;  %v6043_v14 = vsel %vm6042_vm8, %v7448_v15, %v6039_v48  ;;  %vm11758_vm15 = vcmp.eq.f32.partialorder %v6134_v3, 8.507059e+37  ;;  %v6136_v44 = vand.u32 2147483648, %v11714_v59  ;;  %vm6057_vm10 = vmor %vm6055_vm0, %vm6056_vm9  ;;  %v4962_v48 = vpop.f32.mrf.mxu1 }
 0x5ae   : > { %v6126_v40 = vmul.f32 %v7456_v11, %v11714_v59  ;;  %v7458_v22 = vpop.eup %7457  ;;  %v6048_v63 = vsel %vm11724_vm2, %v6047_v32, %v6043_v14  ;;  %v6149_v1 = vand.u32 2147483647, %v11720_v61  ;;  %7461 = vrcp.f32 %v11750_v12  ;;  %v5020_v29 = vpop.f32.mrf.mxu3 }
 0x5af   : > { %v6054_v20 = vadd.f32 %v7450_v39, %v6053_v43  ;;  %v6263_v60 = vmul.f32 %v6048_v63, %v11583_v18  ;;  %v6141_v27 = vmul.f32 %v7458_v22, %v11720_v61  ;;  %v6151_v28 = vand.u32 2147483648, %v11720_v61 }
 0x5b0   : > { %v6127_v54 = vsub.f32 1.0, %v6126_v40  ;;  %vm6131_vm11 = vweird.f32 %v7456_v11  ;;  %7463 = vrcp.f32 %v11755_v25  ;;  %v11774_v56 = vadd.f32 %v4959_v0, %v11441_v5 }
 0x5b1   : > { %v6058_v24 = vsel %vm6057_vm10, %v7450_v39, %v6054_v20  ;;  %6295 = vst [vmem:[%s11542_s0 + $0x90] sm:$0xff] %v6263_v60  ;;  %v6142_v53 = vsub.f32 1.0, %v6141_v27  ;;  %v6164_v13 = vand.u32 2147483647, %v11750_v12  ;;  %v6137_v34 = vor.u32 1.1754944e-38, %v6136_v44  ;;  %vm6132_vm1 = vmor %vm6130_vm6, %vm6131_vm11 }
 0x5b2   : > { %v6063_v18 = vsel %vm11745_vm7, %v6062_v33, %v6058_v24  ;;  %v6128_v38 = vmul.f32 %v7456_v11, %v6127_v54  ;;  %v7460_v15 = vpop.eup %7459  ;;  %vm6145_vm12 = vweird.f32 %v11720_v61  ;;  %vm11782_vm13 = vcmp.eq.f32.partialorder %v6149_v1, 8.507059e+37 }
 0x5b3   : > { %v6264_v16 = vmul.f32 %v6063_v18, %v11586_v50  ;;  %v6143_v23 = vmul.f32 %v7458_v22, %v6142_v53  ;;  %vm6146_vm14 = vweird.f32 %v7458_v22  ;;  %v11786_v46 = vadd.f32 1.0, %v7460_v15 }
 0x5b4   : > { %v6129_v45 = vadd.f32 %v7456_v11, %v6128_v38  ;;  %v7462_v6 = vpop.eup %7461  ;;  %v6152_v8 = vor.u32 1.1754944e-38, %v6151_v28  ;;  %vm6160_vm3 = vweird.f32 %v11750_v12  ;;  %v6166_v50 = vand.u32 2147483648, %v11750_v12  ;;  %vm6147_vm5 = vmor %vm6145_vm12, %vm6146_vm14  ;;  %v4936_v15 = vpop.f32.mrf.mxu0 }
 0x5b5   : > { %6296 = vst [vmem:[%s11542_s0 + $0x98] sm:$0xff] %v6264_v16  ;;  %v6179_v39 = vand.u32 2147483647, %v11755_v25  ;;  %v6144_v31 = vadd.f32 %v7458_v22, %v6143_v23  ;;  %v6156_v32 = vmul.f32 %v7462_v6, %v11750_v12  ;;  %vm11796_vm2 = vcmp.eq.f32.partialorder %v6164_v13, 8.507059e+37 }
 0x5b6   : > { %v6133_v9 = vsel %vm6132_vm1, %v7456_v11, %v6129_v45  ;;  %vm6175_vm4 = vweird.f32 %v11755_v25  ;;  %v6926_v59 = vmul.f32 -1.442695, %v11774_v56  ;;  %v7464_v10 = vpop.eup %7463  ;;  %7465 = vrcp.f32 %v11786_v46 }
 0x5b7   : > { %v6138_v55 = vsel %vm11758_vm15, %v6137_v34, %v6133_v9  ;;  %v11809_v7 = vadd.f32 %v4988_v37, %v11441_v5  ;;  %v11812_v52 = vadd.f32 %v5017_v4, %v11441_v5  ;;  %v6148_v42 = vsel %vm6147_vm5, %v7458_v22, %v6144_v31 }
 0x5b8   : > { %v6269_v30 = vmul.f32 %v6138_v55, %v11617_v41  ;;  %v6157_v3 = vsub.f32 1.0, %v6156_v32  ;;  %v6171_v36 = vmul.f32 %v7464_v10, %v11755_v25  ;;  %v6153_v21 = vsel %vm11782_vm13, %v6152_v8, %v6148_v42  ;;  %v4991_v41 = vpop.f32.mrf.mxu2  ;;  %v4965_v32 = vpop.f32.mrf.mxu1 }
 0x5b9   : > { %vm6161_vm0 = vweird.f32 %v7462_v6  ;;  %v6167_v61 = vor.u32 1.1754944e-38, %v6166_v50  ;;  %v6181_v35 = vand.u32 2147483648, %v11755_v25  ;;  %v6270_v33 = vmul.f32 %v6153_v21, %v11631_v26 }
 0x5ba   : > { %6301 = vst [vmem:[%s11542_s0 + $0xc0] sm:$0xff] %v6269_v30  ;;  %v6158_v5 = vmul.f32 %v7462_v6, %v6157_v3  ;;  %v6172_v11 = vsub.f32 1.0, %v6171_v36  ;;  %7467 = vpow2.f32 %v6926_v59  ;;  %vm6176_vm7 = vweird.f32 %v7464_v10  ;;  %vm6162_vm8 = vmor %vm6160_vm3, %vm6161_vm0 }
 0x5bb   : > { %vm11821_vm6 = vcmp.eq.f32.partialorder %v6179_v39, 8.507059e+37  ;;  %v6927_v14 = vmul.f32 -1.442695, %v11809_v7  ;;  %v6928_v40 = vmul.f32 -1.442695, %v11812_v52  ;;  %6302 = vst [vmem:[%s11542_s0 + $0xc8] sm:$0xff] %v6270_v33  ;;  %v11829_v22 = vadd.f32 %v4933_v58, %v11457_v62  ;;  %vm6177_vm9 = vmor %vm6175_vm4, %vm6176_vm7 }
 0x5bc   : > { %v6159_v44 = vadd.f32 %v7462_v6, %v6158_v5  ;;  %v6173_v0 = vmul.f32 %v7464_v10, %v6172_v11  ;;  %v11832_v26 = vadd.f32 %v4962_v48, %v11457_v62  ;;  %v7466_v63 = vpop.eup %7465  ;;  %v6182_v20 = vor.u32 1.1754944e-38, %v6181_v35 }
 0x5bd   : > { %v5834_v1 = vand.u32 2147483647, %v11786_v46  ;;  %7469 = vpow2.f32 %v6927_v14  ;;  %v11839_v60 = vadd.f32 %v4991_v41, %v11457_v62  ;;  %v5826_v28 = vmul.f32 %v7466_v63, %v11786_v46 }
 0x5be   : > { %v6163_v54 = vsel %vm6162_vm8, %v7462_v6, %v6159_v44  ;;  %v6174_v27 = vadd.f32 %v7464_v10, %v6173_v0  ;;  %v11843_v37 = vadd.f32 %v5020_v29, %v11457_v62  ;;  %7471 = vpow2.f32 %v6928_v40 }
 0x5bf   : > { %v6168_v24 = vsel %vm11796_vm2, %v6167_v61, %v6163_v54  ;;  %v6933_v12 = vmul.f32 -1.442695, %v11829_v22  ;;  %v6934_v4 = vmul.f32 -1.442695, %v11832_v26  ;;  %v5827_v13 = vsub.f32 1.0, %v5826_v28 }
 0x5c0   : > { %v7468_v18 = vpop.eup %7467  ;;  %v6271_v38 = vmul.f32 %v6168_v24, %v11671_v2  ;;  %v6178_v53 = vsel %vm6177_vm9, %v7464_v10, %v6174_v27  ;;  %v6935_v62 = vmul.f32 -1.442695, %v11839_v60  ;;  %v5836_v25 = vand.u32 2147483648, %v11786_v46  ;;  %v4994_v55 = vpop.f32.mrf.mxu2 }
 0x5c1   : > { %v6183_v16 = vsel %vm11821_vm6, %v6182_v20, %v6178_v53  ;;  %v11857_v34 = vadd.f32 1.0, %v7468_v18  ;;  %7473 = vpow2.f32 %v6933_v12  ;;  %v5828_v45 = vmul.f32 %v7466_v63, %v5827_v13 }
 0x5c2   : > { %6303 = vst [vmem:[%s11542_s0 + $0xd0] sm:$0xff] %v6271_v38  ;;  %v6272_v47 = vmul.f32 %v6183_v16, %v11678_v17  ;;  %vm5831_vm15 = vweird.f32 %v7466_v63  ;;  %7475 = vpow2.f32 %v6934_v4  ;;  %vm5830_vm10 = vweird.f32 %v11786_v46 }
 0x5c3   : > { %v7470_v2 = vpop.eup %7469  ;;  %7477 = vrcp.f32 %v11857_v34  ;;  %v11864_v23 = vadd.f32 %v4936_v15, %v11487_v19  ;;  %v5829_v6 = vadd.f32 %v7466_v63, %v5828_v45  ;;  %v6936_v50 = vmul.f32 -1.442695, %v11843_v37  ;;  %vm5832_vm11 = vmor %vm5830_vm10, %vm5831_vm15 }
 0x5c4   : > { %6304 = vst [vmem:[%s11542_s0 + $0xd8] sm:$0xff] %v6272_v47  ;;  %v11867_v8 = vadd.f32 1.0, %v7470_v2  ;;  %7479 = vpow2.f32 %v6935_v62  ;;  %v7472_v39 = vpop.eup %7471  ;;  %vm5835_vm12 = vcmp.eq.f32.partialorder %v5834_v1, 8.507059e+37  ;;  %v5837_v17 = vor.u32 1.1754944e-38, %v5836_v25 }
 0x5c5   : > { %v5833_v9 = vsel %vm5832_vm11, %v7466_v63, %v5829_v6  ;;  %v5849_v31 = vand.u32 2147483647, %v11857_v34  ;;  %v5851_v46 = vand.u32 2147483648, %v11857_v34  ;;  %v11873_v58 = vadd.f32 1.0, %v7472_v39 }
 0x5c6   : > { %7481 = vrcp.f32 %v11867_v8  ;;  %v5838_v59 = vsel %vm5835_vm12, %v5837_v17, %v5833_v9  ;;  %v6941_v10 = vmul.f32 -1.442695, %v11864_v23  ;;  %vm5845_vm13 = vweird.f32 %v11857_v34 }
 0x5c7   : > { %v7474_v49 = vpop.eup %7473  ;;  %v6249_v42 = vmul.f32 %v5838_v59, %v11702_v57  ;;  %7483 = vpow2.f32 %v6936_v50  ;;  %v5864_v21 = vand.u32 2147483647, %v11867_v8  ;;  %v11883_v61 = vadd.f32 %v4965_v32, %v11487_v19 }
 0x5c8   : > { %v7476_v30 = vpop.eup %7475  ;;  %v11877_v3 = vadd.f32 1.0, %v7474_v49  ;;  %7485 = vrcp.f32 %v11873_v58  ;;  %vm11887_vm14 = vcmp.eq.f32.partialorder %v5849_v31, 8.507059e+37  ;;  %v5852_v57 = vor.u32 1.1754944e-38, %v5851_v46 }
 0x5c9   : > { %v7478_v36 = vpop.eup %7477  ;;  %6281 = vst [vmem:[%s11542_s0 + $0x20] sm:$0xff] %v6249_v42  ;;  %v11893_v5 = vadd.f32 %v4994_v55, %v11487_v19  ;;  %vm5860_vm1 = vweird.f32 %v11867_v8  ;;  %v5866_v11 = vand.u32 2147483648, %v11867_v8  ;;  %v5879_v41 = vand.u32 2147483647, %v11873_v58 }
 0x5ca   : > { %v7480_v35 = vpop.eup %7479  ;;  %v5841_v48 = vmul.f32 %v7478_v36, %v11857_v34  ;;  %7487 = vrcp.f32 %v11877_v3  ;;  %v5881_v40 = vand.u32 2147483648, %v11873_v58  ;;  %v11899_v29 = vadd.f32 1.0, %v7476_v30 }
 0x5cb   : > { %7489 = vpow2.f32 %v6941_v10  ;;  %v11901_v44 = vadd.f32 1.0, %v7480_v35  ;;  %vm11904_vm3 = vcmp.eq.f32.partialorder %v5864_v21, 8.507059e+37  ;;  %v5954_v20 = vand.u32 2147483647, %v11877_v3 }
 0x5cc   : > { %v7482_v43 = vpop.eup %7481  ;;  %v5842_v14 = vsub.f32 1.0, %v5841_v48  ;;  %v11910_v1 = vmul.f32 -1.442695, %v11883_v61  ;;  %vm5846_vm2 = vweird.f32 %v7478_v36  ;;  %v5956_v28 = vand.u32 2147483648, %v11877_v3 }
 0x5cd   : > { %v5856_v0 = vmul.f32 %v7482_v43, %v11867_v8  ;;  %v7484_v54 = vpop.eup %7483  ;;  %7491 = vrcp.f32 %v11899_v29  ;;  %v5867_v4 = vor.u32 1.1754944e-38, %v5866_v11  ;;  %vm5875_vm4 = vweird.f32 %v11873_v58  ;;  %vm5847_vm7 = vmor %vm5845_vm13, %vm5846_vm2 }
 0x5ce   : > { %v5843_v27 = vmul.f32 %v7478_v36, %v5842_v14  ;;  %v7486_v24 = vpop.eup %7485  ;;  %7493 = vrcp.f32 %v11901_v44  ;;  %vm11917_vm5 = vcmp.eq.f32.partialorder %v5879_v41, 8.507059e+37  ;;  %v5882_v62 = vor.u32 1.1754944e-38, %v5881_v40  ;;  %v5023_v41 = vpop.f32.mrf.mxu3 }
 0x5cf   : > { %v5857_v12 = vsub.f32 1.0, %v5856_v0  ;;  %v5871_v53 = vmul.f32 %v7486_v24, %v11873_v58  ;;  %vm5950_vm0 = vweird.f32 %v11877_v3  ;;  %vm5861_vm6 = vweird.f32 %v7482_v43 }
 0x5d0   : > { %v7488_v18 = vpop.eup %7487  ;;  %v5844_v38 = vadd.f32 %v7478_v36, %v5843_v27  ;;  %vm11926_vm8 = vcmp.eq.f32.partialorder %v5954_v20, 8.507059e+37  ;;  %v5957_v6 = vor.u32 1.1754944e-38, %v5956_v28  ;;  %v5969_v50 = vand.u32 2147483647, %v11899_v29  ;;  %vm5862_vm15 = vmor %vm5860_vm1, %vm5861_vm6 }
 0x5d1   : > { %v7490_v15 = vpop.eup %7489  ;;  %v5858_v16 = vmul.f32 %v7482_v43, %v5857_v12  ;;  %v5946_v25 = vmul.f32 %v7488_v18, %v11877_v3  ;;  %v5872_v2 = vsub.f32 1.0, %v5871_v53  ;;  %vm5965_vm9 = vweird.f32 %v11899_v29 }
 0x5d2   : > { %v5848_v45 = vsel %vm5847_vm7, %v7478_v36, %v5844_v38  ;;  %v11934_v9 = vadd.f32 1.0, %v7484_v54  ;;  %vm5876_vm10 = vweird.f32 %v7486_v24  ;;  %v5971_v49 = vand.u32 2147483648, %v11899_v29 }
 0x5d3   : > { %v5853_v39 = vsel %vm11887_vm14, %v5852_v57, %v5848_v45  ;;  %v5859_v17 = vadd.f32 %v7482_v43, %v5858_v16  ;;  %v5947_v34 = vsub.f32 1.0, %v5946_v25  ;;  %v7492_v31 = vpop.eup %7491  ;;  %v5873_v32 = vmul.f32 %v7486_v24, %v5872_v2  ;;  %vm5877_vm13 = vmor %vm5875_vm4, %vm5876_vm10 }
 0x5d4   : > { %v6250_v46 = vmul.f32 %v5853_v39, %v11774_v56  ;;  %v7494_v59 = vpop.eup %7493  ;;  %vm5951_vm11 = vweird.f32 %v7488_v18  ;;  %v5961_v30 = vmul.f32 %v7492_v31, %v11899_v29  ;;  %vm5980_vm12 = vweird.f32 %v11901_v44 }
 0x5d5   : > { %v5863_v10 = vsel %vm5862_vm15, %v7482_v43, %v5859_v17  ;;  %v5948_v55 = vmul.f32 %v7488_v18, %v5947_v34  ;;  %v5874_v36 = vadd.f32 %v7486_v24, %v5873_v32  ;;  %v5976_v56 = vmul.f32 %v7494_v59, %v11901_v44  ;;  %vm5952_vm14 = vmor %vm5950_vm0, %vm5951_vm11 }
 0x5d6   : > { %6282 = vst [vmem:[%s11542_s0 + $0x28] sm:$0xff] %v6250_v46  ;;  %v5868_v42 = vsel %vm11904_vm3, %v5867_v4, %v5863_v10  ;;  %v5962_v35 = vsub.f32 1.0, %v5961_v30  ;;  %7495 = vrcp.f32 %v11934_v9  ;;  %v5984_v57 = vand.u32 2147483647, %v11901_v44 }
 0x5d7   : > { %v6251_v8 = vmul.f32 %v5868_v42, %v11809_v7  ;;  %v5949_v21 = vadd.f32 %v7488_v18, %v5948_v55  ;;  %v5878_v48 = vsel %vm5877_vm13, %v7486_v24, %v5874_v36  ;;  %v5977_v33 = vsub.f32 1.0, %v5976_v56 }
 0x5d8   : > { %v5986_v11 = vand.u32 2147483648, %v11901_v44  ;;  %v5883_v7 = vsel %vm11917_vm5, %v5882_v62, %v5878_v48  ;;  %v5963_v43 = vmul.f32 %v7492_v31, %v5962_v35  ;;  %vm5966_vm1 = vweird.f32 %v7492_v31 }
 0x5d9   : > { %6283 = vst [vmem:[%s11542_s0 + $0x30] sm:$0xff] %v6251_v8  ;;  %v5953_v58 = vsel %vm5952_vm14, %v7488_v18, %v5949_v21  ;;  %v6252_v14 = vmul.f32 %v5883_v7, %v11812_v52  ;;  %v5978_v40 = vmul.f32 %v7494_v59, %v5977_v33  ;;  %vm5981_vm3 = vweird.f32 %v7494_v59  ;;  %vm5967_vm2 = vmor %vm5965_vm9, %vm5966_vm1  ;;  %v4968_v18 = vpop.f32.mrf.mxu1 }
 0x5da   : > { %v5958_v3 = vsel %vm11926_vm8, %v5957_v6, %v5953_v58  ;;  %v5964_v63 = vadd.f32 %v7492_v31, %v5963_v43  ;;  %v5972_v20 = vor.u32 1.1754944e-38, %v5971_v49  ;;  %v11961_v54 = vadd.f32 1.0, %v7490_v15  ;;  %vm5982_vm5 = vmor %vm5980_vm12, %vm5981_vm3  ;;  %v4997_v15 = vpop.f32.mrf.mxu2 }
 0x5db   : > { %v6257_v0 = vmul.f32 %v5958_v3, %v11829_v22  ;;  %6284 = vst [vmem:[%s11542_s0 + $0x38] sm:$0xff] %v6252_v14  ;;  %v5979_v27 = vadd.f32 %v7494_v59, %v5978_v40  ;;  %7497 = vpow2.f32 %v11910_v1  ;;  %v6943_v52 = vmul.f32 -1.442695, %v11893_v5 }
 0x5dc   : > { %v11969_v28 = vadd.f32 %v5023_v41, %v11487_v19  ;;  %v7496_v24 = vpop.eup %7495  ;;  %v5968_v12 = vsel %vm5967_vm2, %v7492_v31, %v5964_v63  ;;  %vm5970_vm4 = vcmp.eq.f32.partialorder %v5969_v50, 8.507059e+37  ;;  %v5987_v22 = vor.u32 1.1754944e-38, %v5986_v11  ;;  %v4939_v19 = vpop.f32.mrf.mxu0 }
 0x5dd   : > { %6289 = vst [vmem:[%s11542_s0 + $0x60] sm:$0xff] %v6257_v0  ;;  %7499 = vrcp.f32 %v11961_v54  ;;  %v5973_v29 = vsel %vm5970_vm4, %v5972_v20, %v5968_v12  ;;  %v5983_v4 = vsel %vm5982_vm5, %v7494_v59, %v5979_v27  ;;  %vm5985_vm0 = vcmp.eq.f32.partialorder %v5984_v57, 8.507059e+37 }
 0x5de   : > { %v5991_v1 = vmul.f32 %v7496_v24, %v11934_v9  ;;  %v6258_v38 = vmul.f32 %v5973_v29, %v11832_v26  ;;  %v5988_v53 = vsel %vm5985_vm0, %v5987_v22, %v5983_v4  ;;  %7501 = vpow2.f32 %v6943_v52 }
 0x5df   : > { %v6259_v13 = vmul.f32 %v5988_v53, %v11839_v60  ;;  %v6944_v44 = vmul.f32 -1.442695, %v11969_v28  ;;  %v5999_v16 = vand.u32 2147483647, %v11934_v9  ;;  %v6001_v25 = vand.u32 2147483648, %v11934_v9  ;;  %v5026_v60 = vpop.f32.mrf.mxu3 }
 0x5e0   : > { %v5992_v62 = vsub.f32 1.0, %v5991_v1  ;;  %6290 = vst [vmem:[%s11542_s0 + $0x68] sm:$0xff] %v6258_v38  ;;  %v11984_v47 = vadd.f32 %v4939_v19, %v11607_v51  ;;  %v11987_v45 = vadd.f32 %v4968_v18, %v11607_v51  ;;  %vm5996_vm7 = vweird.f32 %v7496_v24 }
 0x5e1   : > { %v7498_v26 = vpop.eup %7497  ;;  %6291 = vst [vmem:[%s11542_s0 + $0x70] sm:$0xff] %v6259_v13  ;;  %7503 = vpow2.f32 %v6944_v44  ;;  %v11994_v17 = vadd.f32 %v4997_v15, %v11607_v51  ;;  %vm5995_vm6 = vweird.f32 %v11934_v9  ;;  %vm6000_vm9 = vcmp.eq.f32.partialorder %v5999_v16, 8.507059e+37 }
 0x5e2   : > { %v5993_v2 = vmul.f32 %v7496_v24, %v5992_v62  ;;  %v11990_v50 = vadd.f32 1.0, %v7498_v26  ;;  %v6949_v39 = vmul.f32 -1.442695, %v11984_v47  ;;  %v6950_v46 = vmul.f32 -1.442695, %v11987_v45  ;;  %vm5997_vm8 = vmor %vm5995_vm6, %vm5996_vm7 }
 0x5e3   : > { %v7500_v6 = vpop.eup %7499  ;;  %v6002_v32 = vor.u32 1.1754944e-38, %v6001_v25  ;;  %v12001_v49 = vadd.f32 %v5026_v60, %v11607_v51  ;;  %v6074_v30 = vand.u32 2147483647, %v11961_v54  ;;  %v6076_v42 = vand.u32 2147483648, %v11961_v54 }
 0x5e4   : > { %v5994_v34 = vadd.f32 %v7496_v24, %v5993_v2  ;;  %v6066_v31 = vmul.f32 %v7500_v6, %v11961_v54  ;;  %7505 = vrcp.f32 %v11990_v50  ;;  %v7502_v59 = vpop.eup %7501  ;;  %v6951_v56 = vmul.f32 -1.442695, %v11994_v17 }
 0x5e5   : > { %7507 = vpow2.f32 %v6949_v39  ;;  %v12005_v36 = vadd.f32 1.0, %v7502_v59  ;;  %vm6071_vm15 = vweird.f32 %v7500_v6  ;;  %v6952_v51 = vmul.f32 -1.442695, %v12001_v49 }
 0x5e6   : > { %v5998_v10 = vsel %vm5997_vm8, %v7496_v24, %v5994_v34  ;;  %v6067_v55 = vsub.f32 1.0, %v6066_v31  ;;  %7509 = vpow2.f32 %v6950_v46  ;;  %vm6070_vm10 = vweird.f32 %v11961_v54 }
 0x5e7   : > { %v6003_v9 = vsel %vm6000_vm9, %v6002_v32, %v5998_v10  ;;  %v7504_v8 = vpop.eup %7503  ;;  %7511 = vrcp.f32 %v12005_v36  ;;  %vm6072_vm11 = vmor %vm6070_vm10, %vm6071_vm15  ;;  %v6077_v11 = vor.u32 1.1754944e-38, %v6076_v42  ;;  %vm6075_vm12 = vcmp.eq.f32.partialorder %v6074_v30, 8.507059e+37 }
 0x5e8   : > { %v6260_v21 = vmul.f32 %v6003_v9, %v11843_v37  ;;  %v6068_v35 = vmul.f32 %v7500_v6, %v6067_v55  ;;  %v12013_v33 = vadd.f32 1.0, %v7504_v8  ;;  %7513 = vpow2.f32 %v6951_v56 }
 0x5e9   : > { %v6089_v43 = vand.u32 2147483647, %v11990_v50  ;;  %v6091_v0 = vand.u32 2147483648, %v11990_v50  ;;  %v6104_v54 = vand.u32 2147483647, %v12005_v36  ;;  %vm6085_vm14 = vweird.f32 %v11990_v50 }
 0x5ea   : > { %6292 = vst [vmem:[%s11542_s0 + $0x78] sm:$0xff] %v6260_v21  ;;  %v6069_v48 = vadd.f32 %v7500_v6, %v6068_v35  ;;  %v7506_v57 = vpop.eup %7505  ;;  %7515 = vrcp.f32 %v12013_v33  ;;  %vm6100_vm2 = vweird.f32 %v12005_v36  ;;  %v6119_v53 = vand.u32 2147483647, %v12013_v33 }
 0x5eb   : > { %v7508_v41 = vpop.eup %7507  ;;  %v6081_v7 = vmul.f32 %v7506_v57, %v11990_v50  ;;  %7517 = vpow2.f32 %v6952_v51  ;;  %vm6086_vm13 = vweird.f32 %v7506_v57  ;;  %vm6090_vm1 = vcmp.eq.f32.partialorder %v6089_v43, 8.507059e+37 }
 0x5ec   : > { %v6073_v37 = vsel %vm6072_vm11, %v7500_v6, %v6069_v48  ;;  %v7510_v14 = vpop.eup %7509  ;;  %v12020_v63 = vadd.f32 1.0, %v7508_v41  ;;  %v6092_v4 = vor.u32 1.1754944e-38, %v6091_v0  ;;  %vm6087_vm3 = vmor %vm6085_vm14, %vm6086_vm13  ;;  %vm12032_vm4 = vcmp.eq.f32.partialorder %v6104_v54, 8.507059e+37 }
 0x5ed   : > { %v6078_v58 = vsel %vm6075_vm12, %v6077_v11, %v6073_v37  ;;  %v6082_v40 = vsub.f32 1.0, %v6081_v7  ;;  %v7512_v20 = vpop.eup %7511  ;;  %v12023_v27 = vadd.f32 1.0, %v7510_v14  ;;  %v6121_v44 = vand.u32 2147483648, %v12013_v33 }
 0x5ee   : > { %v6265_v3 = vmul.f32 %v6078_v58, %v11864_v23  ;;  %v6096_v24 = vmul.f32 %v7512_v20, %v12005_v36  ;;  %7519 = vrcp.f32 %v12020_v63  ;;  %v7514_v12 = vpop.eup %7513  ;;  %v6106_v23 = vand.u32 2147483648, %v12005_v36 }
 0x5ef   : > { %v6083_v52 = vmul.f32 %v7506_v57, %v6082_v40  ;;  %7521 = vrcp.f32 %v12023_v27  ;;  %vm6101_vm5 = vweird.f32 %v7512_v20  ;;  %v12039_v26 = vadd.f32 1.0, %v7514_v12 }
 0x5f0   : > { %6297 = vst [vmem:[%s11542_s0 + $0xa0] sm:$0xff] %v6265_v3  ;;  %v7516_v22 = vpop.eup %7515  ;;  %v6097_v1 = vsub.f32 1.0, %v6096_v24  ;;  %v6107_v16 = vor.u32 1.1754944e-38, %v6106_v23  ;;  %vm6115_vm0 = vweird.f32 %v12013_v33  ;;  %vm6102_vm7 = vmor %vm6100_vm2, %vm6101_vm5  ;;  %vm12050_vm8 = vcmp.eq.f32.partialorder %v6119_v53, 8.507059e+37 }
 0x5f1   : > { %v6084_v29 = vadd.f32 %v7506_v57, %v6083_v52  ;;  %v7518_v19 = vpop.eup %7517  ;;  %v6111_v38 = vmul.f32 %v7516_v22, %v12013_v33  ;;  %vm6116_vm6 = vweird.f32 %v7516_v22  ;;  %7523 = vrcp.f32 %v12039_v26 }
 0x5f2   : > { %v6098_v62 = vmul.f32 %v7512_v20, %v6097_v1  ;;  %v12043_v50 = vadd.f32 1.0, %v7518_v19  ;;  %v6194_v9 = vand.u32 2147483647, %v12020_v63  ;;  %vm6117_vm9 = vmor %vm6115_vm0, %vm6116_vm6  ;;  %v6196_v36 = vand.u32 2147483648, %v12020_v63 }
 0x5f3   : > { %v6088_v13 = vsel %vm6087_vm3, %v7506_v57, %v6084_v29  ;;  %v6112_v25 = vsub.f32 1.0, %v6111_v38  ;;  %v6211_v35 = vand.u32 2147483648, %v12023_v27  ;;  %vm6190_vm11 = vweird.f32 %v12020_v63 }
 0x5f4   : > { %v6093_v15 = vsel %vm6090_vm1, %v6092_v4, %v6088_v13  ;;  %v7520_v2 = vpop.eup %7519  ;;  %v6099_v6 = vadd.f32 %v7512_v20, %v6098_v62  ;;  %7525 = vrcp.f32 %v12043_v50  ;;  %v6197_v41 = vor.u32 1.1754944e-38, %v6196_v36 }
 0x5f5   : > { %v6266_v60 = vmul.f32 %v6093_v15, %v11883_v61  ;;  %v7522_v39 = vpop.eup %7521  ;;  %v6113_v34 = vmul.f32 %v7516_v22, %v6112_v25  ;;  %v6186_v31 = vmul.f32 %v7520_v2, %v12020_v63  ;;  %v6122_v61 = vor.u32 1.1754944e-38, %v6121_v44 }
 0x5f6   : > { %v6103_v46 = vsel %vm6102_vm7, %v7512_v20, %v6099_v6  ;;  %v6201_v59 = vmul.f32 %v7522_v39, %v12023_v27  ;;  %vm6191_vm15 = vweird.f32 %v7520_v2  ;;  %vm6206_vm10 = vweird.f32 %v7522_v39 }
 0x5f7   : > { %6298 = vst [vmem:[%s11542_s0 + $0xa8] sm:$0xff] %v6266_v60  ;;  %v6108_v10 = vsel %vm12032_vm4, %v6107_v16, %v6103_v46  ;;  %v6114_v55 = vadd.f32 %v7516_v22, %v6113_v34  ;;  %v6187_v30 = vsub.f32 1.0, %v6186_v31  ;;  %v7524_v33 = vpop.eup %7523  ;;  %vm6192_vm12 = vmor %vm6190_vm11, %vm6191_vm15  ;;  %vm6205_vm13 = vweird.f32 %v12023_v27 }
 0x5f8   : > { %v6267_v42 = vmul.f32 %v6108_v10, %v11893_v5  ;;  %v6202_v56 = vsub.f32 1.0, %v6201_v59  ;;  %v6209_v5 = vand.u32 2147483647, %v12023_v27  ;;  %v6216_v7 = vmul.f32 %v7524_v33, %v12039_v26  ;;  %vm6207_vm1 = vmor %vm6205_vm13, %vm6206_vm10 }
 0x5f9   : > { %v6118_v8 = vsel %vm6117_vm9, %v7516_v22, %v6114_v55  ;;  %v6188_v21 = vmul.f32 %v7520_v2, %v6187_v30  ;;  %vm6195_vm14 = vcmp.eq.f32.partialorder %v6194_v9, 8.507059e+37  ;;  %v6212_v43 = vor.u32 1.1754944e-38, %v6211_v35 }
 0x5fa   : > { %6299 = vst [vmem:[%s11542_s0 + $0xb0] sm:$0xff] %v6267_v42  ;;  %v6123_v51 = vsel %vm12050_vm8, %v6122_v61, %v6118_v8  ;;  %v6203_v48 = vmul.f32 %v7522_v39, %v6202_v56  ;;  %v7526_v14 = vpop.eup %7525  ;;  %vm6210_vm3 = vcmp.eq.f32.partialorder %v6209_v5, 8.507059e+37  ;;  %v6217_v40 = vsub.f32 1.0, %v6216_v7 }
 0x5fb   : > { %v6268_v57 = vmul.f32 %v6123_v51, %v11969_v28  ;;  %v6189_v11 = vadd.f32 %v7520_v2, %v6188_v21  ;;  %v6226_v20 = vand.u32 2147483648, %v12039_v26  ;;  %v6231_v54 = vmul.f32 %v7526_v14, %v12043_v50 }
 0x5fc   : > { %v6204_v37 = vadd.f32 %v7522_v39, %v6203_v48  ;;  %v6218_v52 = vmul.f32 %v7524_v33, %v6217_v40  ;;  %vm6221_vm2 = vweird.f32 %v7524_v33  ;;  %v6224_v24 = vand.u32 2147483647, %v12039_v26 }
 0x5fd   : > { %6300 = vst [vmem:[%s11542_s0 + $0xb8] sm:$0xff] %v6268_v57  ;;  %v6193_v58 = vsel %vm6192_vm12, %v7520_v2, %v6189_v11  ;;  %v6232_v12 = vsub.f32 1.0, %v6231_v54  ;;  %vm6220_vm4 = vweird.f32 %v12039_v26  ;;  %v6227_v22 = vor.u32 1.1754944e-38, %v6226_v20 }
 0x5fe   : > { %v6198_v3 = vsel %vm6195_vm14, %v6197_v41, %v6193_v58  ;;  %v6208_v28 = vsel %vm6207_vm1, %v7522_v39, %v6204_v37  ;;  %v6219_v23 = vadd.f32 %v7524_v33, %v6218_v52  ;;  %vm6222_vm5 = vmor %vm6220_vm4, %vm6221_vm2  ;;  %vm6236_vm0 = vweird.f32 %v7526_v14 }
 0x5ff   : > { %v6273_v0 = vmul.f32 %v6198_v3, %v11984_v47  ;;  %v6213_v63 = vsel %vm6210_vm3, %v6212_v43, %v6208_v28  ;;  %v6241_v47 = vand.u32 2147483648, %v12043_v50  ;;  %v6233_v29 = vmul.f32 %v7526_v14, %v6232_v12 }
 0x600   : > { %v6274_v27 = vmul.f32 %v6213_v63, %v11987_v45  ;;  %v6239_v45 = vand.u32 2147483647, %v12043_v50  ;;  %v6223_v4 = vsel %vm6222_vm5, %v7524_v33, %v6219_v23  ;;  %vm6225_vm7 = vcmp.eq.f32.partialorder %v6224_v24, 8.507059e+37 }
 0x601   : > { %6305 = vst [vmem:[%s11542_s0 + $0xe0] sm:$0xff] %v6273_v0  ;;  %v6228_v1 = vsel %vm6225_vm7, %v6227_v22, %v6223_v4  ;;  %v6234_v19 = vadd.f32 %v7526_v14, %v6233_v29  ;;  %vm6235_vm6 = vweird.f32 %v12043_v50  ;;  %v6242_v38 = vor.u32 1.1754944e-38, %v6241_v47 }
 0x602   : > { %6306 = vst [vmem:[%s11542_s0 + $0xe8] sm:$0xff] %v6274_v27  ;;  %v6275_v18 = vmul.f32 %v6228_v1, %v11994_v17  ;;  %vm6237_vm8 = vmor %vm6235_vm6, %vm6236_vm0  ;;  %vm6240_vm9 = vcmp.eq.f32.partialorder %v6239_v45, 8.507059e+37 }
 0x603   : > { %v6238_v53 = vsel %vm6237_vm8, %v7526_v14, %v6234_v19 }
 0x604   : > { %6307 = vst [vmem:[%s11542_s0 + $0xf0] sm:$0xff] %v6275_v18  ;;  %v6243_v13 = vsel %vm6240_vm9, %v6242_v38, %v6238_v53 }
 0x605   : > { %v6276_v62 = vmul.f32 %v6243_v13, %v12001_v49 }
 0x607   : > { %6308 = vst [vmem:[%s11542_s0 + $0xf8] sm:$0xff] %v6276_v62 }
 0x608   : > { %7677 = shalt.err (!%p7674_p6)
}
 0x609   : > { %7009 = dma.vmem_to_hbm [thread:$0]  (%p7855_p11), %s6426_s11, 4096, %s6428_s18, %s6408_s25, %s7735_s26, %s7736_s15, %s7737_s23  }
 0x60a PF: > { %s12510_s13 = sld [smem:[#allocation18_spill]]  ;;  %p7021_p13 = pnand %p6610_p2, %p7859_p12 }
 0x60c   : > { %p7022_p3 = pneg %p7021_p13 }
 0x610   : > { %s6459_s29 = sand.u32 1, %s12510_s13  }
 0x611   : > { %s6460_s20 = scalar_lea.sflag [#allocation6], %s6459_s29 }
 0x612   : > { %7703 = dma.done.wait (%p7022_p3), %s6460_s20, 4096  }
 0x613   : > { %7705 = vsyncadd (%p7022_p3), %s6460_s20, 4294963200  ;;  %s6470_s14 = scalar_lea.sflag [#allocation13], %s6459_s29 }
 0x614   : > { %7707 = dma.done.wait (%p7022_p3), %s6470_s14, 6144  }
 0x615   : > { %7709 = vsyncadd (%p7022_p3), %s6470_s14, 4294961152  ;;  %s12512_s24 = sld [smem:[#allocation20_spill]]  ;;  %s12515_s21 = smov %s7716_s22 }
 0x616   : > { %s12513_s27 = sld [smem:[#allocation19_spill]] }
 0x617   : > { %s12514_s23 = sld [smem:[#allocation21_spill]] }
 0x61b   : > { %p30_p11 = scmp.ge.s32.totalorder %s12512_s24, 4  }
 0x61c   : > { %s12516_s22 = smov %s12513_s27 }
 0x61d   :  { %32 = sbr.rel (!%p30_p11) target bundleno = 13 (0xd), region = 215 }
 0x622   :  { %6476 = vsyncpa [#allocation5], 1 }
 0x623   :  { %6478 = vsyncpa [#allocation5 + $0x1], 1 }
 0x624   :  { %6479 = vsyncpa [#allocation9], 1 }
 0x625   :  { %6480 = vsyncpa [#allocation6], 1 }
 0x626   :  { %6482 = vsyncpa [#allocation6 + $0x1], 1 }
 0x627   :  { %6483 = vsyncpa [#allocation13], 1 }
 0x628   :  { %6485 = vsyncpa [#allocation13 + $0x1], 1 }

</bundles_post_ra>
